<compile_context>
chip_gen: v5e
topology: v5e:2x2
jax: 0.10.0
libtpu: 0.0.40
codegen_flags: <defaults>
</compile_context>

<pallas_src>
import numpy as np

import jax
import jax.numpy as jnp
from jax import lax
from jax.experimental import pallas as pl
from jax.experimental.pallas import tpu as pltpu

# ------------------------- configuration (globals of the original script) -------------------------
C = 128                 # feature channels (stand-in for VGG's 512; small for the demo)
Hf = Wf = 8             # feature-map spatial size
sampling = 4            # feature stride
H = Hf * sampling       # image height
W = Wf * sampling       # image width
anc_ratio = [0.5, 1.0, 2.0]
anc_size = [2.0]
k = len(anc_ratio) * len(anc_size)      # anchors per location
thr_pos, thr_neg = 0.7, 0.3
n_pos, n_neg = 128, 128                 # only used by the skipped random subsampling
lambda_rpn = 10.0
thr_nms = 0.7
topN_nms = 12000
n_nms = 2000

HW = Hf * Wf
N_ANCHOR = k * HW                       # 192
N_PAD = 256                             # NMS lane dimension padded to a multiple of 128
HEAD_PAD = 128                          # lane-dense fused head width (6*k real columns + pad)

_NMS_BIG = 65536.0                      # > any possible remaining-box count (packs two scalars)


# ----------------------------------- small shared helpers -----------------------------------
def _full_spec(shape):
    zeros = (0,) * len(shape)
    return pl.BlockSpec(shape, lambda i, z=zeros: z)


def _trunc(v):
    # int() cast of the reference code truncates toward zero
    return jnp.where(v >= 0, jnp.floor(v), jnp.ceil(v))


def generate_anchor(hf, wf, ratios, sizes, stride):
    """Faithful reproduction of RPN.GenerateAnchor (W-major ordering, rounded to int)."""
    anchor = np.zeros((k * hf * wf, 4))
    ind = 0
    for ii in range(wf):
        ctrx = (ii + 0.5) * stride
        for jj in range(hf):
            ctry = (jj + 0.5) * stride
            for r in ratios:
                for s in sizes:
                    w = stride * s / np.sqrt(r)
                    h = stride * s * np.sqrt(r)
                    anchor[ind, 0] = ctrx - w / 2
                    anchor[ind, 2] = ctrx + w / 2
                    anchor[ind, 1] = ctry - h / 2
                    anchor[ind, 3] = ctry + h / 2
                    ind += 1
    return np.round(anchor).astype(int)


# --------------------------------------- Pallas kernels ---------------------------------------
def _rpn_megakernel(xpad_ref, w3_ref, b3_ref, wh_ref, bh_ref, anc_ref, mask_ref, gt_ref,
                    roi_ref, obj_ref, loss_ref):
    """conv_3 + ReLU + fused heads + delta2xy/clip + IoU(anchor, gt) + labeling + xy2delta + loss.

    xpad_ref : (Hf+2, Wf+2, C) f32 zero-padded feature map
    w3_ref   : (9*C, C)  bf16 conv_3 weights, tap-major rows (t = ky*3 + kx)
    wh_ref   : (C, 128)  bf16 fused 1x1 heads, coordinate-major columns
               [cls0(a0..ak) | cls1 | tx | ty | tw | th | zero pad]
    anc_ref  : (4, HW, k) f32 anchors in (coord, spatial, anchor) layout
    mask_ref : (HW, k)    f32 inside-image mask
    gt_ref   : (G, 4)     f32 ground-truth boxes
    roi_ref  : (4, HW, k) f32 clipped RoIs;  obj_ref: (HW, k) objectness logits
    loss_ref : (1, 8)     f32 row [loss_cls, loss_reg, 0...]
    """
    # ---- conv_3 (3x3, pad=1) + bias + ReLU : one K = 9*C MXU matmul over in-VMEM im2col ----
    xp = xpad_ref[...]                                               # (Hf+2, Wf+2, C)
    taps = jnp.concatenate(
        [xp[ky:ky + Hf, kx:kx + Wf, :].reshape(HW, C).astype(jnp.bfloat16)
         for ky in range(3) for kx in range(3)], axis=1)             # (HW, 9C) bf16
    feat = jnp.dot(taps, w3_ref[...], preferred_element_type=jnp.float32) + b3_ref[...]
    feat = jnp.maximum(feat, 0.0)                                    # F.relu(conv_3(x))

    # ---- fused 1x1 cls/reg heads (coordinate-major columns -> contiguous (HW, k) slices) ----
    hh = jnp.dot(feat.astype(jnp.bfloat16), wh_ref[...],
                 preferred_element_type=jnp.float32) + bh_ref[...]   # (HW, 128)
    l0 = hh[:, 0 * k:1 * k]          # cls logit, class 0
    l1 = hh[:, 1 * k:2 * k]          # cls logit, class 1  (= pred_obj)
    tx = hh[:, 2 * k:3 * k]
    ty = hh[:, 3 * k:4 * k]
    tw = hh[:, 4 * k:5 * k]
    th = hh[:, 5 * k:6 * k]
    obj_ref[...] = l1

    # ---- delta2xy + MakeRoI clipping ----
    ax1 = anc_ref[0]; ay1 = anc_ref[1]; ax2 = anc_ref[2]; ay2 = anc_ref[3]   # (HW, k)
    aw = ax2 - ax1
    ah = ay2 - ay1
    acx = ax1 + aw * 0.5
    acy = ay1 + ah * 0.5
    cx = tx * aw + acx
    cy = ty * ah + acy
    pw = jnp.exp(tw) * aw
    ph = jnp.exp(th) * ah
    x1 = jnp.maximum(cx - pw * 0.5, 0.0)                 # roi[roi < 0] = 0
    y1 = jnp.maximum(cy - ph * 0.5, 0.0)
    x2 = jnp.maximum(cx + pw * 0.5, 0.0)
    y2 = jnp.maximum(cy + ph * 0.5, 0.0)
    y2 = jnp.where(y2 > float(H), float(H) - 1.0, y2)    # roi[:,3][roi[:,3] > H] = H - 1
    x2 = jnp.where(x2 > float(W), float(W) - 1.0, x2)    # roi[:,2][roi[:,2] > W] = W - 1
    roi_ref[0] = x1
    roi_ref[1] = y1
    roi_ref[2] = x2
    roi_ref[3] = y2

    # ---- my_IoU(anchor_in, gt) + Labeling + gt assignment (running argmax over the G gts) ----
    inb = mask_ref[...] > 0.5                            # inside-image anchors
    gv = gt_ref[...]                                     # (G, 4)
    G = gv.shape[0]
    aarea = ah * aw
    is_max = jnp.zeros_like(inb)
    best = None
    gx1 = gy1 = gx2 = gy2 = None
    for g in range(G):
        t0 = _trunc(gv[g:g + 1, 0:1]); t1 = _trunc(gv[g:g + 1, 1:2])
        t2 = _trunc(gv[g:g + 1, 2:3]); t3 = _trunc(gv[g:g + 1, 3:4])
        gw = _trunc(gv[g:g + 1, 2:3] - gv[g:g + 1, 0:1])
        gh = _trunc(gv[g:g + 1, 3:4] - gv[g:g + 1, 1:2])
        iw = jnp.maximum(jnp.minimum(jnp.minimum(ax1, ax2), jnp.minimum(t0, t2)) + aw + gw
                         - jnp.maximum(jnp.maximum(ax1, ax2), jnp.maximum(t0, t2)), 0.0)
        ih = jnp.maximum(jnp.minimum(jnp.minimum(ay1, ay2), jnp.minimum(t1, t3)) + ah + gh
                         - jnp.maximum(jnp.maximum(ay1, ay2), jnp.maximum(t1, t3)), 0.0)
        inter = iw * ih
        iou_g = inter / (aarea + gh * gw - inter)        # (HW, k)
        col_max = jnp.max(jnp.where(inb, iou_g, -jnp.inf), axis=(0, 1), keepdims=True)
        is_max = is_max | ((iou_g == col_max) & inb)
        if g == 0:
            best = iou_g
            gx1 = gv[0:1, 0:1]; gy1 = gv[0:1, 1:2]; gx2 = gv[0:1, 2:3]; gy2 = gv[0:1, 3:4]
        else:
            upd = iou_g > best                           # argmax keeps the first gt on ties
            gx1 = jnp.where(upd, gv[g:g + 1, 0:1], gx1)
            gy1 = jnp.where(upd, gv[g:g + 1, 1:2], gy1)
            gx2 = jnp.where(upd, gv[g:g + 1, 2:3], gx2)
            gy2 = jnp.where(upd, gv[g:g + 1, 3:4], gy2)
            best = jnp.where(upd, iou_g, best)

    # Labeling (same rule order as the reference: max-IoU, >=thr_pos, <=thr_neg last).
    # TODO(synk): random.sample pos/neg subsampling is nondeterministic -> skipped.
    label = jnp.full_like(aw, -1.0)
    label = jnp.where(is_max, 1.0, label)
    label = jnp.where(inb & (best >= thr_pos), 1.0, label)
    label = jnp.where(inb & (best <= thr_neg), 0.0, label)

    # ---- xy2delta(anchor, gt_anc) ----
    gt_w = gx2 - gx1
    gt_h = gy2 - gy1
    gt_cx = gx1 + gt_w * 0.5
    gt_cy = gy1 + gt_h * 0.5
    aw_s = jnp.where(aw <= 0.0, 1e-30, aw)   # reference uses 1e-100, which underflows in f32
    ah_s = jnp.where(ah <= 0.0, 1e-30, ah)
    dtx = (gt_cx - acx) / aw_s
    dty = (gt_cy - acy) / ah_s
    dtw = jnp.log(gt_w / aw_s)
    dth = jnp.log(gt_h / ah_s)

    # ---- RPNLoss: CrossEntropy over label != -1 (mean) + smooth-L1 over label > 0 (sum) ----
    validl = (label != -1.0).astype(jnp.float32)
    m = jnp.maximum(l0, l1)
    lse = m + jnp.log(jnp.exp(l0 - m) + jnp.exp(l1 - m))
    logp = jnp.where(label == 1.0, l1, l0) - lse
    cnt = jnp.sum(validl, axis=(0, 1), keepdims=True)
    lcls = jnp.sum(-logp * validl, axis=(0, 1), keepdims=True) / jnp.maximum(cnt, 1.0)

    pos = (label > 0.0).astype(jnp.float32)

    def _smooth_l1(pred, tgt):
        d = jnp.abs(pred - tgt) * pos
        return jnp.where(d < 1.0, 0.5 * d * d, d - 0.5) * pos

    lreg = jnp.sum(_smooth_l1(tx, dtx) + _smooth_l1(ty, dty)
                   + _smooth_l1(tw, dtw) + _smooth_l1(th, dth),
                   axis=(0, 1), keepdims=True)
    loss_ref[...] = jnp.concatenate([lcls, lreg, jnp.zeros((1, 6), jnp.float32)], axis=1)


def _nms_kernel(nv_ref, tb_ref, fbox_ref, keep_ref, present_sc):
    """Greedy NMS of MakeRoI, fully VMEM/SMEM resident, O(N) memory.

    nv_ref    : (1,)       int32 SMEM  number of valid (size-filtered, topN-capped) sorted boxes
    tb_ref    : (8, N_PAD) f32   SMEM  per-box truncated-operand table:
                [min(tx1,tx2), max(tx1,tx2), trunc(w), min(ty1,ty2), max(ty1,ty2),
                 trunc(h), trunc(w)*trunc(h), unused]
    fbox_ref  : (4, N_PAD) f32   VMEM  score-sorted float boxes [x1;y1;x2;y2] (boxes on lanes)
    keep_ref  : (1, N_PAD) f32   output keep mask
    present_sc: (1, N_PAD) f32   scratch ("roi_nms still present")
    """
    nv = nv_ref[0]
    f = fbox_ref[...]
    x1, y1, x2, y2 = f[0:1], f[1:2], f[2:3], f[3:4]
    # per-box loop invariants of the float operand, hoisted out of the serial loop
    fminx = jnp.minimum(x1, x2)
    fmaxx = jnp.maximum(x1, x2)
    fw = x2 - x1
    fminy = jnp.minimum(y1, y2)
    fmaxy = jnp.maximum(y1, y2)
    fh = y2 - y1
    farea = fh * fw
    lane = lax.broadcasted_iota(jnp.int32, (1, N_PAD), 1)
    present_sc[...] = (lane < nv).astype(jnp.float32)
    keep_ref[...] = jnp.zeros_like(keep_ref)

    # Sequential greedy selection mirroring `while len(roi_nms) > 1`.  One cross-lane reduction
    # per step packs both "box i still present" and the remaining-box count; the IoU column of
    # the selected box is formed on the fly and the suppression test is division-free.
    @pl.loop(0, nv)
    def _(i):
        present = present_sc[...]                                   # (1, N_PAD), values in {0,1}
        onehot = (lane == i).astype(jnp.float32)
        s = jnp.sum(present * (1.0 + _NMS_BIG * onehot), axis=(0, 1), keepdims=True)
        sel = (s >= _NMS_BIG + 2.0).astype(jnp.float32)             # present[i] and cnt > 1
        keep_ref[...] = keep_ref[...] + sel * onehot
        tminx = tb_ref[0, i]; tmaxx = tb_ref[1, i]; tw = tb_ref[2, i]
        tminy = tb_ref[3, i]; tmaxy = tb_ref[4, i]; th = tb_ref[5, i]
        tarea = tb_ref[6, i]
        iou_w = jnp.maximum(jnp.minimum(fminx, tminx) + fw + tw
                            - jnp.maximum(fmaxx, tmaxx), 0.0)
        iou_h = jnp.maximum(jnp.minimum(fminy, tminy) + fh + th
                            - jnp.maximum(fmaxy, tmaxy), 0.0)
        inter = iou_w * iou_h
        denom = farea + tarea - inter
        drop = (inter >= thr_nms * denom).astype(jnp.float32)       # IoU >= thr, division-free
        present_sc[...] = present * (1.0 - sel * drop)              # roi_nms = roi_nms[IoU < thr]


# --------------------------------- host-side parameter prep ---------------------------------
def prepare_rpn_params(w3, b3, wcls, bcls, wreg, breg):
    """One-time prep (hoisted out of the jitted forward): bf16 casts, coordinate-major head
    weight permutation, anchor generation and inside-image mask in (HW, k) layout."""
    w3f = w3.reshape(9 * C, C).astype(jnp.bfloat16)

    cls_perm = np.array([a * 2 + c for c in range(2) for a in range(k)], np.int32)
    reg_perm = np.array([a * 4 + c for c in range(4) for a in range(k)], np.int32)
    whead = jnp.zeros((C, HEAD_PAD), jnp.float32)
    whead = whead.at[:, 0:2 * k].set(wcls[:, cls_perm])
    whead = whead.at[:, 2 * k:6 * k].set(wreg[:, reg_perm])
    whead = whead.astype(jnp.bfloat16)
    bhead = jnp.zeros((1, HEAD_PAD), jnp.float32)
    bhead = bhead.at[:, 0:2 * k].set(bcls[:, cls_perm])
    bhead = bhead.at[:, 2 * k:6 * k].set(breg[:, reg_perm])

    anchor_np = generate_anchor(Hf, Wf, anc_ratio, anc_size, sampling).astype(np.float32)
    anchor_cm = jnp.asarray(anchor_np.T.reshape(4, HW, k))          # (coord, spatial, anchor)
    in_np = ((anchor_np[:, 0] >= 0) & (anchor_np[:, 1] >= 0)
             & (anchor_np[:, 2] <= W) & (anchor_np[:, 3] <= H)).astype(np.float32)
    in_mask_cm = jnp.asarray(in_np.reshape(HW, k))
    return (w3f, b3, whead, bhead, anchor_cm, in_mask_cm)


# ------------------------------------------ forward ------------------------------------------
def rpn_forward(x_nchw, prep, gt):
    """Jitted RPN forward (minus the external VGG backbone).

    Returns (loss, roi, n_roi, loss_cls, loss_reg); roi has fixed shape (N_ANCHOR, 4) with the
    kept RoIs compacted to the front (rows [:n_roi]), score-descending like the reference.
    """
    w3f, b3, whead, bhead, anchor_cm, in_mask_cm = prep

    x = jnp.transpose(x_nchw, (0, 2, 3, 1))[0]                      # NCHW -> (Hf, Wf, C)
    xpad = jnp.pad(x, ((1, 1), (1, 1), (0, 0)))                     # TODO(synk): in-kernel halo

    # ---- fused head + RoI decode + IoU + labeling + loss: one Pallas call ----
    roi_cm, obj_cm, loss_row = pl.pallas_call(
        _rpn_megakernel,
        out_shape=(jax.ShapeDtypeStruct((4, HW, k), jnp.float32),
                   jax.ShapeDtypeStruct((HW, k), jnp.float32),
                   jax.ShapeDtypeStruct((1, 8), jnp.float32)),
        grid=(1,),
        in_specs=[_full_spec((Hf + 2, Wf + 2, C)),
                  _full_spec((9 * C, C)),
                  _full_spec((1, C)),
                  _full_spec((C, HEAD_PAD)),
                  _full_spec((1, HEAD_PAD)),
                  _full_spec((4, HW, k)),
                  _full_spec((HW, k)),
                  _full_spec(gt.shape)],
        out_specs=(_full_spec((4, HW, k)),
                   _full_spec((HW, k)),
                   _full_spec((1, 8))),
    )(xpad, w3f, b3, whead, bhead, anchor_cm, in_mask_cm, gt)

    loss_cls = loss_row[0, 0]
    loss_reg = loss_row[0, 1]
    loss = loss_cls + lambda_rpn * loss_reg

    # ---- MakeRoI: validity / score sort in XLA, greedy NMS in one Pallas call ----
    roi4 = roi_cm.reshape(4, N_ANCHOR)                              # (4, N) anchor order
    roi = roi4.T                                                    # (N, 4)
    scores = obj_cm.reshape(N_ANCHOR)
    ind_roi = (roi4[2] - roi4[0] > float(sampling)) & (roi4[3] - roi4[1] > float(sampling))
    scores_m = jnp.where(ind_roi, scores, -jnp.inf)
    order = jnp.argsort(-scores_m)                                  # descending; invalid last
    roi_sorted = roi[order]                                         # (N, 4)
    valid_sorted = ind_roi[order] & (jnp.arange(N_ANCHOR) < topN_nms)
    nv = jnp.sum(valid_sorted).astype(jnp.int32)                    # contiguous valid prefix

    roi_pad = jnp.concatenate(
        [roi_sorted, jnp.zeros((N_PAD - N_ANCHOR, 4), jnp.float32)], axis=0)   # (N_PAD, 4)
    fbox_t = roi_pad.T                                              # (4, N_PAD)
    t0 = _trunc(roi_pad[:, 0]); t1 = _trunc(roi_pad[:, 1])
    t2 = _trunc(roi_pad[:, 2]); t3 = _trunc(roi_pad[:, 3])
    tw = _trunc(roi_pad[:, 2] - roi_pad[:, 0])
    th = _trunc(roi_pad[:, 3] - roi_pad[:, 1])
    tb = jnp.stack([jnp.minimum(t0, t2), jnp.maximum(t0, t2), tw,
                    jnp.minimum(t1, t3), jnp.maximum(t1, t3), th,
                    tw * th, jnp.zeros_like(tw)], axis=0)           # (8, N_PAD) SMEM table

    keep_row = pl.pallas_call(
        _nms_kernel,
        out_shape=jax.ShapeDtypeStruct((1, N_PAD), jnp.float32),
        grid=(1,),
        in_specs=[pl.BlockSpec(memory_space=pltpu.MemorySpace.SMEM),
                  pl.BlockSpec(memory_space=pltpu.MemorySpace.SMEM),
                  _full_spec((4, N_PAD))],
        out_specs=_full_spec((1, N_PAD)),
        scratch_shapes=[pltpu.VMEM((1, N_PAD), jnp.float32)],
    )(jnp.reshape(nv, (1,)), tb, fbox_t)

    keep = keep_row[0, :N_ANCHOR] > 0.5
    keep = keep & (jnp.cumsum(keep.astype(jnp.int32)) <= n_nms)     # ind_nms_[:n_nms]
    n_roi = jnp.sum(keep.astype(jnp.int32))
    # fixed-shape compaction (stable): kept boxes first, score-descending as in the reference
    comp = jnp.argsort(jnp.logical_not(keep))
    roi_out = roi_sorted[comp]                                      # rows [:n_roi] are the RoIs

    return loss, roi_out, n_roi, loss_cls, loss_reg


# ------------------------------------------- main -------------------------------------------
if __name__ == "__main__":
    key = jax.random.PRNGKey(0)
    k1, k2, k3, k4 = jax.random.split(key, 4)

    # conv_3 / conv_cls / conv_reg parameters: normal(0, 0.01) weights, zero biases
    w3 = 0.01 * jax.random.normal(k1, (9, C, C), jnp.float32)       # (tap = ky*3+kx, Cin, Cout)
    b3 = jnp.zeros((1, C), jnp.float32)
    wcls = 0.01 * jax.random.normal(k2, (C, 2 * k), jnp.float32)
    bcls = jnp.zeros((1, 2 * k), jnp.float32)
    wreg = 0.01 * jax.random.normal(k3, (C, 4 * k), jnp.float32)
    breg = jnp.zeros((1, 4 * k), jnp.float32)

    # "VGG feature map" input (NCHW, as PyTorch would feed conv_3) and ground-truth boxes
    x = jax.random.normal(k4, (1, C, Hf, Wf), jnp.float32)
    gt = jnp.array([[4.0, 5.0, 20.0, 26.0],
                    [10.0, 8.0, 30.0, 28.0]], jnp.float32)

    prep = prepare_rpn_params(w3, b3, wcls, bcls, wreg, breg)       # hoisted out of the jit
    fwd = jax.jit(rpn_forward)
    loss, roi, n_roi, loss_cls, loss_reg = fwd(x, prep, gt)
    jax.block_until_ready((loss, roi, n_roi, loss_cls, loss_reg))
    print("KERNEL_OK")
</pallas_src>

<mosaic_0001>
module attributes {stable_mosaic.version = 11 : i64} {
  func.func @_rpn_megakernel(%arg0: i32, %arg1: memref<10x10x128xf32, #tpu.memory_space<vmem>>, %arg2: memref<1152x128xbf16, #tpu.memory_space<vmem>>, %arg3: memref<1x128xf32, #tpu.memory_space<vmem>>, %arg4: memref<128x128xbf16, #tpu.memory_space<vmem>>, %arg5: memref<1x128xf32, #tpu.memory_space<vmem>>, %arg6: memref<4x64x3xf32, #tpu.memory_space<vmem>>, %arg7: memref<64x3xf32, #tpu.memory_space<vmem>>, %arg8: memref<2x4xf32, #tpu.memory_space<vmem>>, %arg9: memref<4x64x3xf32, #tpu.memory_space<vmem>>, %arg10: memref<64x3xf32, #tpu.memory_space<vmem>>, %arg11: memref<1x8xf32, #tpu.memory_space<vmem>>) attributes {dimension_semantics = [#tpu.dimension_semantics<arbitrary>], iteration_bounds = array<i64: 1>, scalar_prefetch = 0 : i64, scratch_operands = 0 : i64, tpu.core_type = #tpu.core_type<tc>, window_params = [{pipeline_mode = #tpu.pipeline_mode<synchronous>, transform_indices = @transform_0, window_bounds = array<i64: 10, 10, 128>}, {pipeline_mode = #tpu.pipeline_mode<synchronous>, transform_indices = @transform_1, window_bounds = array<i64: 1152, 128>}, {pipeline_mode = #tpu.pipeline_mode<synchronous>, transform_indices = @transform_2, window_bounds = array<i64: 1, 128>}, {pipeline_mode = #tpu.pipeline_mode<synchronous>, transform_indices = @transform_3, window_bounds = array<i64: 128, 128>}, {pipeline_mode = #tpu.pipeline_mode<synchronous>, transform_indices = @transform_4, window_bounds = array<i64: 1, 128>}, {pipeline_mode = #tpu.pipeline_mode<synchronous>, transform_indices = @transform_5, window_bounds = array<i64: 4, 64, 3>}, {pipeline_mode = #tpu.pipeline_mode<synchronous>, transform_indices = @transform_6, window_bounds = array<i64: 64, 3>}, {pipeline_mode = #tpu.pipeline_mode<synchronous>, transform_indices = @transform_7, window_bounds = array<i64: 2, 4>}, {pipeline_mode = #tpu.pipeline_mode<synchronous>, transform_indices = @transform_8, window_bounds = array<i64: 4, 64, 3>}, {pipeline_mode = #tpu.pipeline_mode<synchronous>, transform_indices = @transform_9, window_bounds = array<i64: 64, 3>}, {pipeline_mode = #tpu.pipeline_mode<synchronous>, transform_indices = @transform_10, window_bounds = array<i64: 1, 8>}]} {
    %c0 = arith.constant 0 : index
    %c0_0 = arith.constant 0 : index
    %c0_1 = arith.constant 0 : index
    %0 = vector.load %arg1[%c0, %c0_0, %c0_1] : memref<10x10x128xf32, #tpu.memory_space<vmem>>, vector<10x10x128xf32>
    %1 = vector.extract_strided_slice %0 {offsets = [0, 0, 0], sizes = [8, 8, 128], strides = [1, 1, 1]} : vector<10x10x128xf32> to vector<8x8x128xf32>
    %2 = vector.shape_cast %1 : vector<8x8x128xf32> to vector<64x128xf32>
    %3 = arith.truncf %2 : vector<64x128xf32> to vector<64x128xbf16>
    %4 = vector.extract_strided_slice %0 {offsets = [0, 1, 0], sizes = [8, 8, 128], strides = [1, 1, 1]} : vector<10x10x128xf32> to vector<8x8x128xf32>
    %5 = vector.shape_cast %4 : vector<8x8x128xf32> to vector<64x128xf32>
    %6 = arith.truncf %5 : vector<64x128xf32> to vector<64x128xbf16>
    %7 = vector.extract_strided_slice %0 {offsets = [0, 2, 0], sizes = [8, 8, 128], strides = [1, 1, 1]} : vector<10x10x128xf32> to vector<8x8x128xf32>
    %8 = vector.shape_cast %7 : vector<8x8x128xf32> to vector<64x128xf32>
    %9 = arith.truncf %8 : vector<64x128xf32> to vector<64x128xbf16>
    %10 = vector.extract_strided_slice %0 {offsets = [1, 0, 0], sizes = [8, 8, 128], strides = [1, 1, 1]} : vector<10x10x128xf32> to vector<8x8x128xf32>
    %11 = vector.shape_cast %10 : vector<8x8x128xf32> to vector<64x128xf32>
    %12 = arith.truncf %11 : vector<64x128xf32> to vector<64x128xbf16>
    %13 = vector.extract_strided_slice %0 {offsets = [1, 1, 0], sizes = [8, 8, 128], strides = [1, 1, 1]} : vector<10x10x128xf32> to vector<8x8x128xf32>
    %14 = vector.shape_cast %13 : vector<8x8x128xf32> to vector<64x128xf32>
    %15 = arith.truncf %14 : vector<64x128xf32> to vector<64x128xbf16>
    %16 = vector.extract_strided_slice %0 {offsets = [1, 2, 0], sizes = [8, 8, 128], strides = [1, 1, 1]} : vector<10x10x128xf32> to vector<8x8x128xf32>
    %17 = vector.shape_cast %16 : vector<8x8x128xf32> to vector<64x128xf32>
    %18 = arith.truncf %17 : vector<64x128xf32> to vector<64x128xbf16>
    %19 = vector.extract_strided_slice %0 {offsets = [2, 0, 0], sizes = [8, 8, 128], strides = [1, 1, 1]} : vector<10x10x128xf32> to vector<8x8x128xf32>
    %20 = vector.shape_cast %19 : vector<8x8x128xf32> to vector<64x128xf32>
    %21 = arith.truncf %20 : vector<64x128xf32> to vector<64x128xbf16>
    %22 = vector.extract_strided_slice %0 {offsets = [2, 1, 0], sizes = [8, 8, 128], strides = [1, 1, 1]} : vector<10x10x128xf32> to vector<8x8x128xf32>
    %23 = vector.shape_cast %22 : vector<8x8x128xf32> to vector<64x128xf32>
    %24 = arith.truncf %23 : vector<64x128xf32> to vector<64x128xbf16>
    %25 = vector.extract_strided_slice %0 {offsets = [2, 2, 0], sizes = [8, 8, 128], strides = [1, 1, 1]} : vector<10x10x128xf32> to vector<8x8x128xf32>
    %26 = vector.shape_cast %25 : vector<8x8x128xf32> to vector<64x128xf32>
    %27 = arith.truncf %26 : vector<64x128xf32> to vector<64x128xbf16>
    %28 = tpu.concatenate %3, %6, %9, %12, %15, %18, %21, %24, %27 in 1 : vector<64x128xbf16>, vector<64x128xbf16>, vector<64x128xbf16>, vector<64x128xbf16>, vector<64x128xbf16>, vector<64x128xbf16>, vector<64x128xbf16>, vector<64x128xbf16>, vector<64x128xbf16> -> vector<64x1152xbf16>
    %c0_2 = arith.constant 0 : index
    %c0_3 = arith.constant 0 : index
    %29 = vector.load %arg2[%c0_2, %c0_3] : memref<1152x128xbf16, #tpu.memory_space<vmem>>, vector<1152x128xbf16>
    %cst = arith.constant dense<0.000000e+00> : vector<64x128xf32>
    %30 = tpu.matmul %28, %29, %cst {dimension_numbers = #tpu.dot_dimension_numbers<[1], [0], [0], [1], [0, 0, 1, 1], [], []>} : vector<64x1152xbf16>, vector<1152x128xbf16>, vector<64x128xf32> -> vector<64x128xf32>
    %c0_4 = arith.constant 0 : index
    %c0_5 = arith.constant 0 : index
    %31 = vector.load %arg3[%c0_4, %c0_5] : memref<1x128xf32, #tpu.memory_space<vmem>>, vector<1x128xf32>
    %32 = vector.broadcast %31 : vector<1x128xf32> to vector<64x128xf32>
    %33 = arith.addf %30, %32 : vector<64x128xf32>
    %cst_6 = arith.constant 0.000000e+00 : f32
    %34 = vector.broadcast %cst_6 : f32 to vector<64x128xf32>
    %35 = arith.maximumf %33, %34 : vector<64x128xf32>
    %36 = arith.truncf %35 : vector<64x128xf32> to vector<64x128xbf16>
    %c0_7 = arith.constant 0 : index
    %c0_8 = arith.constant 0 : index
    %37 = vector.load %arg4[%c0_7, %c0_8] : memref<128x128xbf16, #tpu.memory_space<vmem>>, vector<128x128xbf16>
    %cst_9 = arith.constant dense<0.000000e+00> : vector<64x128xf32>
    %38 = tpu.matmul %36, %37, %cst_9 {dimension_numbers = #tpu.dot_dimension_numbers<[1], [0], [0], [1], [0, 0, 1, 1], [], []>} : vector<64x128xbf16>, vector<128x128xbf16>, vector<64x128xf32> -> vector<64x128xf32>
    %c0_10 = arith.constant 0 : index
    %c0_11 = arith.constant 0 : index
    %39 = vector.load %arg5[%c0_10, %c0_11] : memref<1x128xf32, #tpu.memory_space<vmem>>, vector<1x128xf32>
    %40 = vector.broadcast %39 : vector<1x128xf32> to vector<64x128xf32>
    %41 = arith.addf %38, %40 : vector<64x128xf32>
    %42 = vector.extract_strided_slice %41 {offsets = [0, 0], sizes = [64, 3], strides = [1, 1]} : vector<64x128xf32> to vector<64x3xf32>
    %43 = vector.extract_strided_slice %41 {offsets = [0, 3], sizes = [64, 3], strides = [1, 1]} : vector<64x128xf32> to vector<64x3xf32>
    %44 = vector.extract_strided_slice %41 {offsets = [0, 6], sizes = [64, 3], strides = [1, 1]} : vector<64x128xf32> to vector<64x3xf32>
    %45 = vector.extract_strided_slice %41 {offsets = [0, 9], sizes = [64, 3], strides = [1, 1]} : vector<64x128xf32> to vector<64x3xf32>
    %46 = vector.extract_strided_slice %41 {offsets = [0, 12], sizes = [64, 3], strides = [1, 1]} : vector<64x128xf32> to vector<64x3xf32>
    %47 = vector.extract_strided_slice %41 {offsets = [0, 15], sizes = [64, 3], strides = [1, 1]} : vector<64x128xf32> to vector<64x3xf32>
    %c0_12 = arith.constant 0 : index
    %c0_13 = arith.constant 0 : index
    %48 = vector.load %arg10[%c0_12, %c0_13] : memref<64x3xf32, #tpu.memory_space<vmem>>, vector<64x3xf32>
    tpu.vector_store %arg10[%c0_12, %c0_13], %43 {strides = array<i32>} : memref<64x3xf32, #tpu.memory_space<vmem>>, vector<64x3xf32>,
    %c0_14 = arith.constant 0 : index
    %c0_15 = arith.constant 0 : index
    %c0_16 = arith.constant 0 : index
    %49 = vector.load %arg6[%c0_14, %c0_15, %c0_16] : memref<4x64x3xf32, #tpu.memory_space<vmem>>, vector<1x64x3xf32>
    %50 = vector.shape_cast %49 : vector<1x64x3xf32> to vector<64x3xf32>
    %c1 = arith.constant 1 : index
    %c0_17 = arith.constant 0 : index
    %c0_18 = arith.constant 0 : index
    %51 = vector.load %arg6[%c1, %c0_17, %c0_18] : memref<4x64x3xf32, #tpu.memory_space<vmem>>, vector<1x64x3xf32>
    %52 = vector.shape_cast %51 : vector<1x64x3xf32> to vector<64x3xf32>
    %c2 = arith.constant 2 : index
    %c0_19 = arith.constant 0 : index
    %c0_20 = arith.constant 0 : index
    %53 = vector.load %arg6[%c2, %c0_19, %c0_20] : memref<4x64x3xf32, #tpu.memory_space<vmem>>, vector<1x64x3xf32>
    %54 = vector.shape_cast %53 : vector<1x64x3xf32> to vector<64x3xf32>
    %c3 = arith.constant 3 : index
    %c0_21 = arith.constant 0 : index
    %c0_22 = arith.constant 0 : index
    %55 = vector.load %arg6[%c3, %c0_21, %c0_22] : memref<4x64x3xf32, #tpu.memory_space<vmem>>, vector<1x64x3xf32>
    %56 = vector.shape_cast %55 : vector<1x64x3xf32> to vector<64x3xf32>
    %57 = arith.subf %54, %50 : vector<64x3xf32>
    %58 = arith.subf %56, %52 : vector<64x3xf32>
    %cst_23 = arith.constant 5.000000e-01 : f32
    %59 = vector.broadcast %cst_23 : f32 to vector<64x3xf32>
    %60 = arith.mulf %57, %59 : vector<64x3xf32>
    %61 = arith.addf %50, %60 : vector<64x3xf32>
    %cst_24 = arith.constant 5.000000e-01 : f32
    %62 = vector.broadcast %cst_24 : f32 to vector<64x3xf32>
    %63 = arith.mulf %58, %62 : vector<64x3xf32>
    %64 = arith.addf %52, %63 : vector<64x3xf32>
    %65 = arith.mulf %44, %57 : vector<64x3xf32>
    %66 = arith.addf %65, %61 : vector<64x3xf32>
    %67 = arith.mulf %45, %58 : vector<64x3xf32>
    %68 = arith.addf %67, %64 : vector<64x3xf32>
    %69 = math.exp %46 : vector<64x3xf32>
    %70 = arith.mulf %69, %57 : vector<64x3xf32>
    %71 = math.exp %47 : vector<64x3xf32>
    %72 = arith.mulf %71, %58 : vector<64x3xf32>
    %cst_25 = arith.constant 5.000000e-01 : f32
    %73 = vector.broadcast %cst_25 : f32 to vector<64x3xf32>
    %74 = arith.mulf %70, %73 : vector<64x3xf32>
    %75 = arith.subf %66, %74 : vector<64x3xf32>
    %cst_26 = arith.constant 0.000000e+00 : f32
    %76 = vector.broadcast %cst_26 : f32 to vector<64x3xf32>
    %77 = arith.maximumf %75, %76 : vector<64x3xf32>
    %cst_27 = arith.constant 5.000000e-01 : f32
    %78 = vector.broadcast %cst_27 : f32 to vector<64x3xf32>
    %79 = arith.mulf %72, %78 : vector<64x3xf32>
    %80 = arith.subf %68, %79 : vector<64x3xf32>
    %cst_28 = arith.constant 0.000000e+00 : f32
    %81 = vector.broadcast %cst_28 : f32 to vector<64x3xf32>
    %82 = arith.maximumf %80, %81 : vector<64x3xf32>
    %cst_29 = arith.constant 5.000000e-01 : f32
    %83 = vector.broadcast %cst_29 : f32 to vector<64x3xf32>
    %84 = arith.mulf %70, %83 : vector<64x3xf32>
    %85 = arith.addf %66, %84 : vector<64x3xf32>
    %cst_30 = arith.constant 0.000000e+00 : f32
    %86 = vector.broadcast %cst_30 : f32 to vector<64x3xf32>
    %87 = arith.maximumf %85, %86 : vector<64x3xf32>
    %cst_31 = arith.constant 5.000000e-01 : f32
    %88 = vector.broadcast %cst_31 : f32 to vector<64x3xf32>
    %89 = arith.mulf %72, %88 : vector<64x3xf32>
    %90 = arith.addf %68, %89 : vector<64x3xf32>
    %cst_32 = arith.constant 0.000000e+00 : f32
    %91 = vector.broadcast %cst_32 : f32 to vector<64x3xf32>
    %92 = arith.maximumf %90, %91 : vector<64x3xf32>
    %cst_33 = arith.constant 3.200000e+01 : f32
    %93 = vector.broadcast %cst_33 : f32 to vector<64x3xf32>
    %94 = arith.cmpf ogt, %92, %93 : vector<64x3xf32>
    %cst_34 = arith.constant 3.100000e+01 : f32
    %95 = vector.broadcast %cst_34 : f32 to vector<64x3xf32>
    %96 = arith.select %94, %95, %92 : vector<64x3xi1>, vector<64x3xf32>
    %cst_35 = arith.constant 3.200000e+01 : f32
    %97 = vector.broadcast %cst_35 : f32 to vector<64x3xf32>
    %98 = arith.cmpf ogt, %87, %97 : vector<64x3xf32>
    %cst_36 = arith.constant 3.100000e+01 : f32
    %99 = vector.broadcast %cst_36 : f32 to vector<64x3xf32>
    %100 = arith.select %98, %99, %87 : vector<64x3xi1>, vector<64x3xf32>
    %c0_37 = arith.constant 0 : index
    %c0_38 = arith.constant 0 : index
    %c0_39 = arith.constant 0 : index
    %101 = vector.load %arg9[%c0_37, %c0_38, %c0_39] : memref<4x64x3xf32, #tpu.memory_space<vmem>>, vector<1x64x3xf32>
    %102 = vector.shape_cast %101 : vector<1x64x3xf32> to vector<64x3xf32>
    %103 = vector.shape_cast %77 : vector<64x3xf32> to vector<1x64x3xf32>
    tpu.vector_store %arg9[%c0_37, %c0_38, %c0_39], %103 {strides = array<i32>} : memref<4x64x3xf32, #tpu.memory_space<vmem>>, vector<1x64x3xf32>,
    %c1_40 = arith.constant 1 : index
    %c0_41 = arith.constant 0 : index
    %c0_42 = arith.constant 0 : index
    %104 = vector.load %arg9[%c1_40, %c0_41, %c0_42] : memref<4x64x3xf32, #tpu.memory_space<vmem>>, vector<1x64x3xf32>
    %105 = vector.shape_cast %104 : vector<1x64x3xf32> to vector<64x3xf32>
    %106 = vector.shape_cast %82 : vector<64x3xf32> to vector<1x64x3xf32>
    tpu.vector_store %arg9[%c1_40, %c0_41, %c0_42], %106 {strides = array<i32>} : memref<4x64x3xf32, #tpu.memory_space<vmem>>, vector<1x64x3xf32>,
    %c2_43 = arith.constant 2 : index
    %c0_44 = arith.constant 0 : index
    %c0_45 = arith.constant 0 : index
    %107 = vector.load %arg9[%c2_43, %c0_44, %c0_45] : memref<4x64x3xf32, #tpu.memory_space<vmem>>, vector<1x64x3xf32>
    %108 = vector.shape_cast %107 : vector<1x64x3xf32> to vector<64x3xf32>
    %109 = vector.shape_cast %100 : vector<64x3xf32> to vector<1x64x3xf32>
    tpu.vector_store %arg9[%c2_43, %c0_44, %c0_45], %109 {strides = array<i32>} : memref<4x64x3xf32, #tpu.memory_space<vmem>>, vector<1x64x3xf32>,
    %c3_46 = arith.constant 3 : index
    %c0_47 = arith.constant 0 : index
    %c0_48 = arith.constant 0 : index
    %110 = vector.load %arg9[%c3_46, %c0_47, %c0_48] : memref<4x64x3xf32, #tpu.memory_space<vmem>>, vector<1x64x3xf32>
    %111 = vector.shape_cast %110 : vector<1x64x3xf32> to vector<64x3xf32>
    %112 = vector.shape_cast %96 : vector<64x3xf32> to vector<1x64x3xf32>
    tpu.vector_store %arg9[%c3_46, %c0_47, %c0_48], %112 {strides = array<i32>} : memref<4x64x3xf32, #tpu.memory_space<vmem>>, vector<1x64x3xf32>,
    %c0_49 = arith.constant 0 : index
    %c0_50 = arith.constant 0 : index
    %113 = vector.load %arg7[%c0_49, %c0_50] : memref<64x3xf32, #tpu.memory_space<vmem>>, vector<64x3xf32>
    %cst_51 = arith.constant 5.000000e-01 : f32
    %114 = vector.broadcast %cst_51 : f32 to vector<64x3xf32>
    %115 = arith.cmpf ogt, %113, %114 : vector<64x3xf32>
    %c0_52 = arith.constant 0 : index
    %c0_53 = arith.constant 0 : index
    %116 = vector.load %arg8[%c0_52, %c0_53] : memref<2x4xf32, #tpu.memory_space<vmem>>, vector<2x4xf32>
    %117 = arith.mulf %58, %57 : vector<64x3xf32>
    %false = arith.constant false
    %118 = vector.broadcast %false : i1 to vector<64x3xi1>
    %119 = vector.extract_strided_slice %116 {offsets = [0, 0], sizes = [1, 1], strides = [1, 1]} : vector<2x4xf32> to vector<1x1xf32>
    %cst_54 = arith.constant 0.000000e+00 : f32
    %120 = vector.broadcast %cst_54 : f32 to vector<1x1xf32>
    %121 = arith.cmpf oge, %119, %120 : vector<1x1xf32>
    %122 = math.floor %119 : vector<1x1xf32>
    %123 = math.ceil %119 : vector<1x1xf32>
    %124 = arith.select %121, %122, %123 : vector<1x1xi1>, vector<1x1xf32>
    %125 = vector.extract_strided_slice %116 {offsets = [0, 1], sizes = [1, 1], strides = [1, 1]} : vector<2x4xf32> to vector<1x1xf32>
    %cst_55 = arith.constant 0.000000e+00 : f32
    %126 = vector.broadcast %cst_55 : f32 to vector<1x1xf32>
    %127 = arith.cmpf oge, %125, %126 : vector<1x1xf32>
    %128 = math.floor %125 : vector<1x1xf32>
    %129 = math.ceil %125 : vector<1x1xf32>
    %130 = arith.select %127, %128, %129 : vector<1x1xi1>, vector<1x1xf32>
    %131 = vector.extract_strided_slice %116 {offsets = [0, 2], sizes = [1, 1], strides = [1, 1]} : vector<2x4xf32> to vector<1x1xf32>
    %cst_56 = arith.constant 0.000000e+00 : f32
    %132 = vector.broadcast %cst_56 : f32 to vector<1x1xf32>
    %133 = arith.cmpf oge, %131, %132 : vector<1x1xf32>
    %134 = math.floor %131 : vector<1x1xf32>
    %135 = math.ceil %131 : vector<1x1xf32>
    %136 = arith.select %133, %134, %135 : vector<1x1xi1>, vector<1x1xf32>
    %137 = vector.extract_strided_slice %116 {offsets = [0, 3], sizes = [1, 1], strides = [1, 1]} : vector<2x4xf32> to vector<1x1xf32>
    %cst_57 = arith.constant 0.000000e+00 : f32
    %138 = vector.broadcast %cst_57 : f32 to vector<1x1xf32>
    %139 = arith.cmpf oge, %137, %138 : vector<1x1xf32>
    %140 = math.floor %137 : vector<1x1xf32>
    %141 = math.ceil %137 : vector<1x1xf32>
    %142 = arith.select %139, %140, %141 : vector<1x1xi1>, vector<1x1xf32>
    %143 = vector.extract_strided_slice %116 {offsets = [0, 2], sizes = [1, 1], strides = [1, 1]} : vector<2x4xf32> to vector<1x1xf32>
    %144 = vector.extract_strided_slice %116 {offsets = [0, 0], sizes = [1, 1], strides = [1, 1]} : vector<2x4xf32> to vector<1x1xf32>
    %145 = arith.subf %143, %144 : vector<1x1xf32>
    %cst_58 = arith.constant 0.000000e+00 : f32
    %146 = vector.broadcast %cst_58 : f32 to vector<1x1xf32>
    %147 = arith.cmpf oge, %145, %146 : vector<1x1xf32>
    %148 = math.floor %145 : vector<1x1xf32>
    %149 = math.ceil %145 : vector<1x1xf32>
    %150 = arith.select %147, %148, %149 : vector<1x1xi1>, vector<1x1xf32>
    %151 = vector.extract_strided_slice %116 {offsets = [0, 3], sizes = [1, 1], strides = [1, 1]} : vector<2x4xf32> to vector<1x1xf32>
    %152 = vector.extract_strided_slice %116 {offsets = [0, 1], sizes = [1, 1], strides = [1, 1]} : vector<2x4xf32> to vector<1x1xf32>
    %153 = arith.subf %151, %152 : vector<1x1xf32>
    %cst_59 = arith.constant 0.000000e+00 : f32
    %154 = vector.broadcast %cst_59 : f32 to vector<1x1xf32>
    %155 = arith.cmpf oge, %153, %154 : vector<1x1xf32>
    %156 = math.floor %153 : vector<1x1xf32>
    %157 = math.ceil %153 : vector<1x1xf32>
    %158 = arith.select %155, %156, %157 : vector<1x1xi1>, vector<1x1xf32>
    %159 = arith.minimumf %50, %54 : vector<64x3xf32>
    %160 = arith.minimumf %124, %136 : vector<1x1xf32>
    %161 = vector.broadcast %160 : vector<1x1xf32> to vector<64x3xf32>
    %162 = arith.minimumf %159, %161 : vector<64x3xf32>
    %163 = arith.addf %162, %57 : vector<64x3xf32>
    %164 = vector.broadcast %150 : vector<1x1xf32> to vector<64x3xf32>
    %165 = arith.addf %163, %164 : vector<64x3xf32>
    %166 = arith.maximumf %50, %54 : vector<64x3xf32>
    %167 = arith.maximumf %124, %136 : vector<1x1xf32>
    %168 = vector.broadcast %167 : vector<1x1xf32> to vector<64x3xf32>
    %169 = arith.maximumf %166, %168 : vector<64x3xf32>
    %170 = arith.subf %165, %169 : vector<64x3xf32>
    %cst_60 = arith.constant 0.000000e+00 : f32
    %171 = vector.broadcast %cst_60 : f32 to vector<64x3xf32>
    %172 = arith.maximumf %170, %171 : vector<64x3xf32>
    %173 = arith.minimumf %52, %56 : vector<64x3xf32>
    %174 = arith.minimumf %130, %142 : vector<1x1xf32>
    %175 = vector.broadcast %174 : vector<1x1xf32> to vector<64x3xf32>
    %176 = arith.minimumf %173, %175 : vector<64x3xf32>
    %177 = arith.addf %176, %58 : vector<64x3xf32>
    %178 = vector.broadcast %158 : vector<1x1xf32> to vector<64x3xf32>
    %179 = arith.addf %177, %178 : vector<64x3xf32>
    %180 = arith.maximumf %52, %56 : vector<64x3xf32>
    %181 = arith.maximumf %130, %142 : vector<1x1xf32>
    %182 = vector.broadcast %181 : vector<1x1xf32> to vector<64x3xf32>
    %183 = arith.maximumf %180, %182 : vector<64x3xf32>
    %184 = arith.subf %179, %183 : vector<64x3xf32>
    %cst_61 = arith.constant 0.000000e+00 : f32
    %185 = vector.broadcast %cst_61 : f32 to vector<64x3xf32>
    %186 = arith.maximumf %184, %185 : vector<64x3xf32>
    %187 = arith.mulf %172, %186 : vector<64x3xf32>
    %188 = arith.mulf %158, %150 : vector<1x1xf32>
    %189 = vector.broadcast %188 : vector<1x1xf32> to vector<64x3xf32>
    %190 = arith.addf %117, %189 : vector<64x3xf32>
    %191 = arith.subf %190, %187 : vector<64x3xf32>
    %192 = arith.divf %187, %191 : vector<64x3xf32>
    %cst_62 = arith.constant 0xFF800000 : f32
    %193 = vector.broadcast %cst_62 : f32 to vector<64x3xf32>
    %194 = arith.select %115, %192, %193 : vector<64x3xi1>, vector<64x3xf32>
    %195 = vector.shape_cast %194 : vector<64x3xf32> to vector<1x64x3xf32>
    %cst_63 = arith.constant dense<0xFF800000> : vector<1xf32>
    %196 = vector.multi_reduction <maximumf>, %195, %cst_63 [1, 2] : vector<1x64x3xf32> to vector<1xf32>
    %197 = vector.shape_cast %196 : vector<1xf32> to vector<1x1x1xf32>
    %198 = vector.extract %197[0, 0, 0] : f32 from vector<1x1x1xf32>
    %199 = vector.broadcast %198 : f32 to vector<1x1xf32>
    %200 = vector.broadcast %199 : vector<1x1xf32> to vector<64x3xf32>
    %201 = arith.cmpf oeq, %192, %200 : vector<64x3xf32>
    %202 = arith.andi %201, %115 : vector<64x3xi1>
    %203 = arith.ori %118, %202 : vector<64x3xi1>
    %204 = vector.extract_strided_slice %116 {offsets = [0, 0], sizes = [1, 1], strides = [1, 1]} : vector<2x4xf32> to vector<1x1xf32>
    %205 = vector.extract_strided_slice %116 {offsets = [0, 1], sizes = [1, 1], strides = [1, 1]} : vector<2x4xf32> to vector<1x1xf32>
    %206 = vector.extract_strided_slice %116 {offsets = [0, 2], sizes = [1, 1], strides = [1, 1]} : vector<2x4xf32> to vector<1x1xf32>
    %207 = vector.extract_strided_slice %116 {offsets = [0, 3], sizes = [1, 1], strides = [1, 1]} : vector<2x4xf32> to vector<1x1xf32>
    %208 = vector.extract_strided_slice %116 {offsets = [1, 0], sizes = [1, 1], strides = [1, 1]} : vector<2x4xf32> to vector<1x1xf32>
    %cst_64 = arith.constant 0.000000e+00 : f32
    %209 = vector.broadcast %cst_64 : f32 to vector<1x1xf32>
    %210 = arith.cmpf oge, %208, %209 : vector<1x1xf32>
    %211 = math.floor %208 : vector<1x1xf32>
    %212 = math.ceil %208 : vector<1x1xf32>
    %213 = arith.select %210, %211, %212 : vector<1x1xi1>, vector<1x1xf32>
    %214 = vector.extract_strided_slice %116 {offsets = [1, 1], sizes = [1, 1], strides = [1, 1]} : vector<2x4xf32> to vector<1x1xf32>
    %cst_65 = arith.constant 0.000000e+00 : f32
    %215 = vector.broadcast %cst_65 : f32 to vector<1x1xf32>
    %216 = arith.cmpf oge, %214, %215 : vector<1x1xf32>
    %217 = math.floor %214 : vector<1x1xf32>
    %218 = math.ceil %214 : vector<1x1xf32>
    %219 = arith.select %216, %217, %218 : vector<1x1xi1>, vector<1x1xf32>
    %220 = vector.extract_strided_slice %116 {offsets = [1, 2], sizes = [1, 1], strides = [1, 1]} : vector<2x4xf32> to vector<1x1xf32>
    %cst_66 = arith.constant 0.000000e+00 : f32
    %221 = vector.broadcast %cst_66 : f32 to vector<1x1xf32>
    %222 = arith.cmpf oge, %220, %221 : vector<1x1xf32>
    %223 = math.floor %220 : vector<1x1xf32>
    %224 = math.ceil %220 : vector<1x1xf32>
    %225 = arith.select %222, %223, %224 : vector<1x1xi1>, vector<1x1xf32>
    %226 = vector.extract_strided_slice %116 {offsets = [1, 3], sizes = [1, 1], strides = [1, 1]} : vector<2x4xf32> to vector<1x1xf32>
    %cst_67 = arith.constant 0.000000e+00 : f32
    %227 = vector.broadcast %cst_67 : f32 to vector<1x1xf32>
    %228 = arith.cmpf oge, %226, %227 : vector<1x1xf32>
    %229 = math.floor %226 : vector<1x1xf32>
    %230 = math.ceil %226 : vector<1x1xf32>
    %231 = arith.select %228, %229, %230 : vector<1x1xi1>, vector<1x1xf32>
    %232 = vector.extract_strided_slice %116 {offsets = [1, 2], sizes = [1, 1], strides = [1, 1]} : vector<2x4xf32> to vector<1x1xf32>
    %233 = vector.extract_strided_slice %116 {offsets = [1, 0], sizes = [1, 1], strides = [1, 1]} : vector<2x4xf32> to vector<1x1xf32>
    %234 = arith.subf %232, %233 : vector<1x1xf32>
    %cst_68 = arith.constant 0.000000e+00 : f32
    %235 = vector.broadcast %cst_68 : f32 to vector<1x1xf32>
    %236 = arith.cmpf oge, %234, %235 : vector<1x1xf32>
    %237 = math.floor %234 : vector<1x1xf32>
    %238 = math.ceil %234 : vector<1x1xf32>
    %239 = arith.select %236, %237, %238 : vector<1x1xi1>, vector<1x1xf32>
    %240 = vector.extract_strided_slice %116 {offsets = [1, 3], sizes = [1, 1], strides = [1, 1]} : vector<2x4xf32> to vector<1x1xf32>
    %241 = vector.extract_strided_slice %116 {offsets = [1, 1], sizes = [1, 1], strides = [1, 1]} : vector<2x4xf32> to vector<1x1xf32>
    %242 = arith.subf %240, %241 : vector<1x1xf32>
    %cst_69 = arith.constant 0.000000e+00 : f32
    %243 = vector.broadcast %cst_69 : f32 to vector<1x1xf32>
    %244 = arith.cmpf oge, %242, %243 : vector<1x1xf32>
    %245 = math.floor %242 : vector<1x1xf32>
    %246 = math.ceil %242 : vector<1x1xf32>
    %247 = arith.select %244, %245, %246 : vector<1x1xi1>, vector<1x1xf32>
    %248 = arith.minimumf %50, %54 : vector<64x3xf32>
    %249 = arith.minimumf %213, %225 : vector<1x1xf32>
    %250 = vector.broadcast %249 : vector<1x1xf32> to vector<64x3xf32>
    %251 = arith.minimumf %248, %250 : vector<64x3xf32>
    %252 = arith.addf %251, %57 : vector<64x3xf32>
    %253 = vector.broadcast %239 : vector<1x1xf32> to vector<64x3xf32>
    %254 = arith.addf %252, %253 : vector<64x3xf32>
    %255 = arith.maximumf %50, %54 : vector<64x3xf32>
    %256 = arith.maximumf %213, %225 : vector<1x1xf32>
    %257 = vector.broadcast %256 : vector<1x1xf32> to vector<64x3xf32>
    %258 = arith.maximumf %255, %257 : vector<64x3xf32>
    %259 = arith.subf %254, %258 : vector<64x3xf32>
    %cst_70 = arith.constant 0.000000e+00 : f32
    %260 = vector.broadcast %cst_70 : f32 to vector<64x3xf32>
    %261 = arith.maximumf %259, %260 : vector<64x3xf32>
    %262 = arith.minimumf %52, %56 : vector<64x3xf32>
    %263 = arith.minimumf %219, %231 : vector<1x1xf32>
    %264 = vector.broadcast %263 : vector<1x1xf32> to vector<64x3xf32>
    %265 = arith.minimumf %262, %264 : vector<64x3xf32>
    %266 = arith.addf %265, %58 : vector<64x3xf32>
    %267 = vector.broadcast %247 : vector<1x1xf32> to vector<64x3xf32>
    %268 = arith.addf %266, %267 : vector<64x3xf32>
    %269 = arith.maximumf %52, %56 : vector<64x3xf32>
    %270 = arith.maximumf %219, %231 : vector<1x1xf32>
    %271 = vector.broadcast %270 : vector<1x1xf32> to vector<64x3xf32>
    %272 = arith.maximumf %269, %271 : vector<64x3xf32>
    %273 = arith.subf %268, %272 : vector<64x3xf32>
    %cst_71 = arith.constant 0.000000e+00 : f32
    %274 = vector.broadcast %cst_71 : f32 to vector<64x3xf32>
    %275 = arith.maximumf %273, %274 : vector<64x3xf32>
    %276 = arith.mulf %261, %275 : vector<64x3xf32>
    %277 = arith.mulf %247, %239 : vector<1x1xf32>
    %278 = vector.broadcast %277 : vector<1x1xf32> to vector<64x3xf32>
    %279 = arith.addf %117, %278 : vector<64x3xf32>
    %280 = arith.subf %279, %276 : vector<64x3xf32>
    %281 = arith.divf %276, %280 : vector<64x3xf32>
    %cst_72 = arith.constant 0xFF800000 : f32
    %282 = vector.broadcast %cst_72 : f32 to vector<64x3xf32>
    %283 = arith.select %115, %281, %282 : vector<64x3xi1>, vector<64x3xf32>
    %284 = vector.shape_cast %283 : vector<64x3xf32> to vector<1x64x3xf32>
    %cst_73 = arith.constant dense<0xFF800000> : vector<1xf32>
    %285 = vector.multi_reduction <maximumf>, %284, %cst_73 [1, 2] : vector<1x64x3xf32> to vector<1xf32>
    %286 = vector.shape_cast %285 : vector<1xf32> to vector<1x1x1xf32>
    %287 = vector.extract %286[0, 0, 0] : f32 from vector<1x1x1xf32>
    %288 = vector.broadcast %287 : f32 to vector<1x1xf32>
    %289 = vector.broadcast %288 : vector<1x1xf32> to vector<64x3xf32>
    %290 = arith.cmpf oeq, %281, %289 : vector<64x3xf32>
    %291 = arith.andi %290, %115 : vector<64x3xi1>
    %292 = arith.ori %203, %291 : vector<64x3xi1>
    %293 = arith.cmpf ogt, %281, %192 : vector<64x3xf32>
    %294 = vector.extract_strided_slice %116 {offsets = [1, 0], sizes = [1, 1], strides = [1, 1]} : vector<2x4xf32> to vector<1x1xf32>
    %295 = vector.shape_cast %294 : vector<1x1xf32> to vector<1x1xf32>
    %296 = vector.broadcast %295 : vector<1x1xf32> to vector<64x3xf32>
    %297 = vector.shape_cast %204 : vector<1x1xf32> to vector<1x1xf32>
    %298 = vector.broadcast %297 : vector<1x1xf32> to vector<64x3xf32>
    %299 = arith.select %293, %296, %298 : vector<64x3xi1>, vector<64x3xf32>
    %300 = vector.extract_strided_slice %116 {offsets = [1, 1], sizes = [1, 1], strides = [1, 1]} : vector<2x4xf32> to vector<1x1xf32>
    %301 = vector.shape_cast %300 : vector<1x1xf32> to vector<1x1xf32>
    %302 = vector.broadcast %301 : vector<1x1xf32> to vector<64x3xf32>
    %303 = vector.shape_cast %205 : vector<1x1xf32> to vector<1x1xf32>
    %304 = vector.broadcast %303 : vector<1x1xf32> to vector<64x3xf32>
    %305 = arith.select %293, %302, %304 : vector<64x3xi1>, vector<64x3xf32>
    %306 = vector.extract_strided_slice %116 {offsets = [1, 2], sizes = [1, 1], strides = [1, 1]} : vector<2x4xf32> to vector<1x1xf32>
    %307 = vector.shape_cast %306 : vector<1x1xf32> to vector<1x1xf32>
    %308 = vector.broadcast %307 : vector<1x1xf32> to vector<64x3xf32>
    %309 = vector.shape_cast %206 : vector<1x1xf32> to vector<1x1xf32>
    %310 = vector.broadcast %309 : vector<1x1xf32> to vector<64x3xf32>
    %311 = arith.select %293, %308, %310 : vector<64x3xi1>, vector<64x3xf32>
    %312 = vector.extract_strided_slice %116 {offsets = [1, 3], sizes = [1, 1], strides = [1, 1]} : vector<2x4xf32> to vector<1x1xf32>
    %313 = vector.shape_cast %312 : vector<1x1xf32> to vector<1x1xf32>
    %314 = vector.broadcast %313 : vector<1x1xf32> to vector<64x3xf32>
    %315 = vector.shape_cast %207 : vector<1x1xf32> to vector<1x1xf32>
    %316 = vector.broadcast %315 : vector<1x1xf32> to vector<64x3xf32>
    %317 = arith.select %293, %314, %316 : vector<64x3xi1>, vector<64x3xf32>
    %318 = arith.select %293, %281, %192 : vector<64x3xi1>, vector<64x3xf32>
    %cst_74 = arith.constant -1.000000e+00 : f32
    %319 = vector.broadcast %cst_74 : f32 to vector<64x3xf32>
    %cst_75 = arith.constant 1.000000e+00 : f32
    %320 = vector.broadcast %cst_75 : f32 to vector<64x3xf32>
    %321 = arith.select %292, %320, %319 : vector<64x3xi1>, vector<64x3xf32>
    %cst_76 = arith.constant 0.699999988 : f32
    %322 = vector.broadcast %cst_76 : f32 to vector<64x3xf32>
    %323 = arith.cmpf oge, %318, %322 : vector<64x3xf32>
    %324 = arith.andi %115, %323 : vector<64x3xi1>
    %cst_77 = arith.constant 1.000000e+00 : f32
    %325 = vector.broadcast %cst_77 : f32 to vector<64x3xf32>
    %326 = arith.select %324, %325, %321 : vector<64x3xi1>, vector<64x3xf32>
    %cst_78 = arith.constant 3.000000e-01 : f32
    %327 = vector.broadcast %cst_78 : f32 to vector<64x3xf32>
    %328 = arith.cmpf ole, %318, %327 : vector<64x3xf32>
    %329 = arith.andi %115, %328 : vector<64x3xi1>
    %cst_79 = arith.constant 0.000000e+00 : f32
    %330 = vector.broadcast %cst_79 : f32 to vector<64x3xf32>
    %331 = arith.select %329, %330, %326 : vector<64x3xi1>, vector<64x3xf32>
    %332 = arith.subf %311, %299 : vector<64x3xf32>
    %333 = arith.subf %317, %305 : vector<64x3xf32>
    %cst_80 = arith.constant 5.000000e-01 : f32
    %334 = vector.broadcast %cst_80 : f32 to vector<64x3xf32>
    %335 = arith.mulf %332, %334 : vector<64x3xf32>
    %336 = arith.addf %299, %335 : vector<64x3xf32>
    %cst_81 = arith.constant 5.000000e-01 : f32
    %337 = vector.broadcast %cst_81 : f32 to vector<64x3xf32>
    %338 = arith.mulf %333, %337 : vector<64x3xf32>
    %339 = arith.addf %305, %338 : vector<64x3xf32>
    %cst_82 = arith.constant 0.000000e+00 : f32
    %340 = vector.broadcast %cst_82 : f32 to vector<64x3xf32>
    %341 = arith.cmpf ole, %57, %340 : vector<64x3xf32>
    %cst_83 = arith.constant 1.000000e-30 : f32
    %342 = vector.broadcast %cst_83 : f32 to vector<64x3xf32>
    %343 = arith.select %341, %342, %57 : vector<64x3xi1>, vector<64x3xf32>
    %cst_84 = arith.constant 0.000000e+00 : f32
    %344 = vector.broadcast %cst_84 : f32 to vector<64x3xf32>
    %345 = arith.cmpf ole, %58, %344 : vector<64x3xf32>
    %cst_85 = arith.constant 1.000000e-30 : f32
    %346 = vector.broadcast %cst_85 : f32 to vector<64x3xf32>
    %347 = arith.select %345, %346, %58 : vector<64x3xi1>, vector<64x3xf32>
    %348 = arith.subf %336, %61 : vector<64x3xf32>
    %349 = arith.divf %348, %343 : vector<64x3xf32>
    %350 = arith.subf %339, %64 : vector<64x3xf32>
    %351 = arith.divf %350, %347 : vector<64x3xf32>
    %352 = arith.divf %332, %343 : vector<64x3xf32>
    %353 = math.log %352 : vector<64x3xf32>
    %354 = arith.divf %333, %347 : vector<64x3xf32>
    %355 = math.log %354 : vector<64x3xf32>
    %cst_86 = arith.constant -1.000000e+00 : f32
    %356 = vector.broadcast %cst_86 : f32 to vector<64x3xf32>
    %357 = arith.cmpf one, %331, %356 : vector<64x3xf32>
    %358 = arith.extui %357 : vector<64x3xi1> to vector<64x3xi32>
    %359 = arith.sitofp %358 : vector<64x3xi32> to vector<64x3xf32>
    %360 = arith.maximumf %42, %43 : vector<64x3xf32>
    %361 = arith.subf %42, %360 : vector<64x3xf32>
    %362 = math.exp %361 : vector<64x3xf32>
    %363 = arith.subf %43, %360 : vector<64x3xf32>
    %364 = math.exp %363 : vector<64x3xf32>
    %365 = arith.addf %362, %364 : vector<64x3xf32>
    %366 = math.log %365 : vector<64x3xf32>
    %367 = arith.addf %360, %366 : vector<64x3xf32>
    %cst_87 = arith.constant 1.000000e+00 : f32
    %368 = vector.broadcast %cst_87 : f32 to vector<64x3xf32>
    %369 = arith.cmpf oeq, %331, %368 : vector<64x3xf32>
    %370 = arith.select %369, %43, %42 : vector<64x3xi1>, vector<64x3xf32>
    %371 = arith.subf %370, %367 : vector<64x3xf32>
    %372 = vector.shape_cast %359 : vector<64x3xf32> to vector<1x64x3xf32>
    %cst_88 = arith.constant dense<0.000000e+00> : vector<1xf32>
    %373 = vector.multi_reduction <add>, %372, %cst_88 [1, 2] : vector<1x64x3xf32> to vector<1xf32>
    %374 = vector.shape_cast %373 : vector<1xf32> to vector<1x1x1xf32>
    %375 = vector.extract %374[0, 0, 0] : f32 from vector<1x1x1xf32>
    %376 = vector.broadcast %375 : f32 to vector<1x1xf32>
    %cst_89 = arith.constant 0.000000e+00 : f32
    %377 = vector.broadcast %cst_89 : f32 to vector<64x3xf32>
    %378 = arith.subf %377, %371 : vector<64x3xf32>
    %379 = arith.mulf %378, %359 : vector<64x3xf32>
    %380 = vector.shape_cast %379 : vector<64x3xf32> to vector<1x64x3xf32>
    %cst_90 = arith.constant dense<0.000000e+00> : vector<1xf32>
    %381 = vector.multi_reduction <add>, %380, %cst_90 [1, 2] : vector<1x64x3xf32> to vector<1xf32>
    %382 = vector.shape_cast %381 : vector<1xf32> to vector<1x1x1xf32>
    %383 = vector.extract %382[0, 0, 0] : f32 from vector<1x1x1xf32>
    %384 = vector.broadcast %383 : f32 to vector<1x1xf32>
    %cst_91 = arith.constant 1.000000e+00 : f32
    %385 = vector.broadcast %cst_91 : f32 to vector<1x1xf32>
    %386 = arith.maximumf %376, %385 : vector<1x1xf32>
    %387 = arith.divf %384, %386 : vector<1x1xf32>
    %cst_92 = arith.constant 0.000000e+00 : f32
    %388 = vector.broadcast %cst_92 : f32 to vector<64x3xf32>
    %389 = arith.cmpf ogt, %331, %388 : vector<64x3xf32>
    %390 = arith.extui %389 : vector<64x3xi1> to vector<64x3xi32>
    %391 = arith.sitofp %390 : vector<64x3xi32> to vector<64x3xf32>
    %392 = arith.subf %44, %349 : vector<64x3xf32>
    %393 = math.absf %392 : vector<64x3xf32>
    %394 = arith.mulf %393, %391 : vector<64x3xf32>
    %cst_93 = arith.constant 1.000000e+00 : f32
    %395 = vector.broadcast %cst_93 : f32 to vector<64x3xf32>
    %396 = arith.cmpf olt, %394, %395 : vector<64x3xf32>
    %cst_94 = arith.constant 5.000000e-01 : f32
    %397 = vector.broadcast %cst_94 : f32 to vector<64x3xf32>
    %398 = arith.mulf %397, %394 : vector<64x3xf32>
    %399 = arith.mulf %398, %394 : vector<64x3xf32>
    %cst_95 = arith.constant 5.000000e-01 : f32
    %400 = vector.broadcast %cst_95 : f32 to vector<64x3xf32>
    %401 = arith.subf %394, %400 : vector<64x3xf32>
    %402 = arith.select %396, %399, %401 : vector<64x3xi1>, vector<64x3xf32>
    %403 = arith.mulf %402, %391 : vector<64x3xf32>
    %404 = arith.subf %45, %351 : vector<64x3xf32>
    %405 = math.absf %404 : vector<64x3xf32>
    %406 = arith.mulf %405, %391 : vector<64x3xf32>
    %cst_96 = arith.constant 1.000000e+00 : f32
    %407 = vector.broadcast %cst_96 : f32 to vector<64x3xf32>
    %408 = arith.cmpf olt, %406, %407 : vector<64x3xf32>
    %cst_97 = arith.constant 5.000000e-01 : f32
    %409 = vector.broadcast %cst_97 : f32 to vector<64x3xf32>
    %410 = arith.mulf %409, %406 : vector<64x3xf32>
    %411 = arith.mulf %410, %406 : vector<64x3xf32>
    %cst_98 = arith.constant 5.000000e-01 : f32
    %412 = vector.broadcast %cst_98 : f32 to vector<64x3xf32>
    %413 = arith.subf %406, %412 : vector<64x3xf32>
    %414 = arith.select %408, %411, %413 : vector<64x3xi1>, vector<64x3xf32>
    %415 = arith.mulf %414, %391 : vector<64x3xf32>
    %416 = arith.addf %403, %415 : vector<64x3xf32>
    %417 = arith.subf %46, %353 : vector<64x3xf32>
    %418 = math.absf %417 : vector<64x3xf32>
    %419 = arith.mulf %418, %391 : vector<64x3xf32>
    %cst_99 = arith.constant 1.000000e+00 : f32
    %420 = vector.broadcast %cst_99 : f32 to vector<64x3xf32>
    %421 = arith.cmpf olt, %419, %420 : vector<64x3xf32>
    %cst_100 = arith.constant 5.000000e-01 : f32
    %422 = vector.broadcast %cst_100 : f32 to vector<64x3xf32>
    %423 = arith.mulf %422, %419 : vector<64x3xf32>
    %424 = arith.mulf %423, %419 : vector<64x3xf32>
    %cst_101 = arith.constant 5.000000e-01 : f32
    %425 = vector.broadcast %cst_101 : f32 to vector<64x3xf32>
    %426 = arith.subf %419, %425 : vector<64x3xf32>
    %427 = arith.select %421, %424, %426 : vector<64x3xi1>, vector<64x3xf32>
    %428 = arith.mulf %427, %391 : vector<64x3xf32>
    %429 = arith.addf %416, %428 : vector<64x3xf32>
    %430 = arith.subf %47, %355 : vector<64x3xf32>
    %431 = math.absf %430 : vector<64x3xf32>
    %432 = arith.mulf %431, %391 : vector<64x3xf32>
    %cst_102 = arith.constant 1.000000e+00 : f32
    %433 = vector.broadcast %cst_102 : f32 to vector<64x3xf32>
    %434 = arith.cmpf olt, %432, %433 : vector<64x3xf32>
    %cst_103 = arith.constant 5.000000e-01 : f32
    %435 = vector.broadcast %cst_103 : f32 to vector<64x3xf32>
    %436 = arith.mulf %435, %432 : vector<64x3xf32>
    %437 = arith.mulf %436, %432 : vector<64x3xf32>
    %cst_104 = arith.constant 5.000000e-01 : f32
    %438 = vector.broadcast %cst_104 : f32 to vector<64x3xf32>
    %439 = arith.subf %432, %438 : vector<64x3xf32>
    %440 = arith.select %434, %437, %439 : vector<64x3xi1>, vector<64x3xf32>
    %441 = arith.mulf %440, %391 : vector<64x3xf32>
    %442 = arith.addf %429, %441 : vector<64x3xf32>
    %443 = vector.shape_cast %442 : vector<64x3xf32> to vector<1x64x3xf32>
    %cst_105 = arith.constant dense<0.000000e+00> : vector<1xf32>
    %444 = vector.multi_reduction <add>, %443, %cst_105 [1, 2] : vector<1x64x3xf32> to vector<1xf32>
    %445 = vector.shape_cast %444 : vector<1xf32> to vector<1x1x1xf32>
    %446 = vector.extract %445[0, 0, 0] : f32 from vector<1x1x1xf32>
    %447 = vector.broadcast %446 : f32 to vector<1x1xf32>
    %cst_106 = arith.constant 0.000000e+00 : f32
    %448 = vector.broadcast %cst_106 : f32 to vector<1x6xf32>
    %449 = tpu.concatenate %387, %447, %448 in 1 : vector<1x1xf32>, vector<1x1xf32>, vector<1x6xf32> -> vector<1x8xf32>
    %c0_107 = arith.constant 0 : index
    %c0_108 = arith.constant 0 : index
    %450 = vector.load %arg11[%c0_107, %c0_108] : memref<1x8xf32, #tpu.memory_space<vmem>>, vector<1x8xf32>
    tpu.vector_store %arg11[%c0_107, %c0_108], %449 {strides = array<i32>} : memref<1x8xf32, #tpu.memory_space<vmem>>, vector<1x8xf32>,
    return
  }
  func.func @transform_0(%arg0: i32) -> (i32, i32, i32) {
    %c0_i32 = arith.constant 0 : i32
    %c0_i32_0 = arith.constant 0 : i32
    %c0_i32_1 = arith.constant 0 : i32
    %c0_i32_2 = arith.constant 0 : i32
    return %c0_i32, %c0_i32_0, %c0_i32_1 : i32, i32, i32
  }
  func.func @transform_1(%arg0: i32) -> (i32, i32) {
    %c0_i32 = arith.constant 0 : i32
    %c0_i32_0 = arith.constant 0 : i32
    %c0_i32_1 = arith.constant 0 : i32
    return %c0_i32, %c0_i32_0 : i32, i32
  }
  func.func @transform_2(%arg0: i32) -> (i32, i32) {
    %c0_i32 = arith.constant 0 : i32
    %c0_i32_0 = arith.constant 0 : i32
    %c0_i32_1 = arith.constant 0 : i32
    return %c0_i32, %c0_i32_0 : i32, i32
  }
  func.func @transform_3(%arg0: i32) -> (i32, i32) {
    %c0_i32 = arith.constant 0 : i32
    %c0_i32_0 = arith.constant 0 : i32
    %c0_i32_1 = arith.constant 0 : i32
    return %c0_i32, %c0_i32_0 : i32, i32
  }
  func.func @transform_4(%arg0: i32) -> (i32, i32) {
    %c0_i32 = arith.constant 0 : i32
    %c0_i32_0 = arith.constant 0 : i32
    %c0_i32_1 = arith.constant 0 : i32
    return %c0_i32, %c0_i32_0 : i32, i32
  }
  func.func @transform_5(%arg0: i32) -> (i32, i32, i32) {
    %c0_i32 = arith.constant 0 : i32
    %c0_i32_0 = arith.constant 0 : i32
    %c0_i32_1 = arith.constant 0 : i32
    %c0_i32_2 = arith.constant 0 : i32
    return %c0_i32, %c0_i32_0, %c0_i32_1 : i32, i32, i32
  }
  func.func @transform_6(%arg0: i32) -> (i32, i32) {
    %c0_i32 = arith.constant 0 : i32
    %c0_i32_0 = arith.constant 0 : i32
    %c0_i32_1 = arith.constant 0 : i32
    return %c0_i32, %c0_i32_0 : i32, i32
  }
  func.func @transform_7(%arg0: i32) -> (i32, i32) {
    %c0_i32 = arith.constant 0 : i32
    %c0_i32_0 = arith.constant 0 : i32
    %c0_i32_1 = arith.constant 0 : i32
    return %c0_i32, %c0_i32_0 : i32, i32
  }
  func.func @transform_8(%arg0: i32) -> (i32, i32, i32) {
    %c0_i32 = arith.constant 0 : i32
    %c0_i32_0 = arith.constant 0 : i32
    %c0_i32_1 = arith.constant 0 : i32
    %c0_i32_2 = arith.constant 0 : i32
    return %c0_i32, %c0_i32_0, %c0_i32_1 : i32, i32, i32
  }
  func.func @transform_9(%arg0: i32) -> (i32, i32) {
    %c0_i32 = arith.constant 0 : i32
    %c0_i32_0 = arith.constant 0 : i32
    %c0_i32_1 = arith.constant 0 : i32
    return %c0_i32, %c0_i32_0 : i32, i32
  }
  func.func @transform_10(%arg0: i32) -> (i32, i32) {
    %c0_i32 = arith.constant 0 : i32
    %c0_i32_0 = arith.constant 0 : i32
    %c0_i32_1 = arith.constant 0 : i32
    return %c0_i32, %c0_i32_0 : i32, i32
  }
}

module attributes {stable_mosaic.version = 11 : i64} {
  func.func @_nms_kernel(%arg0: i32, %arg1: memref<1xi32, #tpu.memory_space<smem>>, %arg2: memref<8x256xf32, #tpu.memory_space<smem>>, %arg3: memref<4x256xf32, #tpu.memory_space<vmem>>, %arg4: memref<1x256xf32, #tpu.memory_space<vmem>>, %arg5: memref<1x256xf32, #tpu.memory_space<vmem>>) attributes {dimension_semantics = [#tpu.dimension_semantics<arbitrary>], iteration_bounds = array<i64: 1>, scalar_prefetch = 0 : i64, scratch_operands = 1 : i64, tpu.core_type = #tpu.core_type<tc>, window_params = [{transform_indices = @transform_0, window_bounds = array<i64: 1>}, {transform_indices = @transform_1, window_bounds = array<i64: 8, 256>}, {pipeline_mode = #tpu.pipeline_mode<synchronous>, transform_indices = @transform_2, window_bounds = array<i64: 4, 256>}, {pipeline_mode = #tpu.pipeline_mode<synchronous>, transform_indices = @transform_3, window_bounds = array<i64: 1, 256>}]} {
    %c0 = arith.constant 0 : index
    %0 = memref.load %arg1[%c0] : memref<1xi32, #tpu.memory_space<smem>>
    %c0_0 = arith.constant 0 : index
    %c0_1 = arith.constant 0 : index
    %1 = vector.load %arg3[%c0_0, %c0_1] : memref<4x256xf32, #tpu.memory_space<vmem>>, vector<4x256xf32>
    %2 = vector.extract_strided_slice %1 {offsets = [0, 0], sizes = [1, 256], strides = [1, 1]} : vector<4x256xf32> to vector<1x256xf32>
    %3 = vector.extract_strided_slice %1 {offsets = [1, 0], sizes = [1, 256], strides = [1, 1]} : vector<4x256xf32> to vector<1x256xf32>
    %4 = vector.extract_strided_slice %1 {offsets = [2, 0], sizes = [1, 256], strides = [1, 1]} : vector<4x256xf32> to vector<1x256xf32>
    %5 = vector.extract_strided_slice %1 {offsets = [3, 0], sizes = [1, 256], strides = [1, 1]} : vector<4x256xf32> to vector<1x256xf32>
    %6 = arith.minimumf %2, %4 : vector<1x256xf32>
    %7 = arith.maximumf %2, %4 : vector<1x256xf32>
    %8 = arith.subf %4, %2 : vector<1x256xf32>
    %9 = arith.minimumf %3, %5 : vector<1x256xf32>
    %10 = arith.maximumf %3, %5 : vector<1x256xf32>
    %11 = arith.subf %5, %3 : vector<1x256xf32>
    %12 = arith.mulf %11, %8 : vector<1x256xf32>
    %13 = tpu.iota {dimensions = array<i32: 1>} : vector<1x256xi32>
    %14 = vector.broadcast %0 : i32 to vector<1x256xi32>
    %15 = arith.cmpi slt, %13, %14 : vector<1x256xi32>
    %16 = arith.extui %15 : vector<1x256xi1> to vector<1x256xi32>
    %17 = arith.sitofp %16 : vector<1x256xi32> to vector<1x256xf32>
    %c0_2 = arith.constant 0 : index
    %c0_3 = arith.constant 0 : index
    %18 = vector.load %arg5[%c0_2, %c0_3] : memref<1x256xf32, #tpu.memory_space<vmem>>, vector<1x256xf32>
    tpu.vector_store %arg5[%c0_2, %c0_3], %17 {strides = array<i32>} : memref<1x256xf32, #tpu.memory_space<vmem>>, vector<1x256xf32>,
    %cst = arith.constant 0.000000e+00 : f32
    %19 = vector.broadcast %cst : f32 to vector<1x256xf32>
    %c0_4 = arith.constant 0 : index
    %c0_5 = arith.constant 0 : index
    %20 = vector.load %arg4[%c0_4, %c0_5] : memref<1x256xf32, #tpu.memory_space<vmem>>, vector<1x256xf32>
    tpu.vector_store %arg4[%c0_4, %c0_5], %19 {strides = array<i32>} : memref<1x256xf32, #tpu.memory_space<vmem>>, vector<1x256xf32>,
    %c0_i32 = arith.constant 0 : i32
    %21 = arith.subi %0, %c0_i32 : i32
    %c1_i32 = arith.constant 1 : i32
    %c1_i32_6 = arith.constant 1 : i32
    %22 = arith.subi %c1_i32, %c1_i32_6 : i32
    %23 = arith.addi %21, %22 : i32
    %c1_i32_7 = arith.constant 1 : i32
    %24 = arith.divsi %23, %c1_i32_7 : i32
    %c1_i32_8 = arith.constant 1 : i32
    %c0_i32_9 = arith.constant 0 : i32
    %c0_i32_10 = arith.constant 0 : i32
    %25 = arith.subi %24, %c0_i32_10 : i32
    %26 = arith.addi %c0_i32_10, %25 : i32
    %c1_i32_11 = arith.constant 1 : i32
    scf.for %arg6 = %c0_i32_10 to %26 step %c1_i32_11  : i32 {
      %27 = arith.muli %arg6, %c1_i32_8 : i32
      %28 = arith.addi %c0_i32_9, %27 : i32
      %c0_12 = arith.constant 0 : index
      %c0_13 = arith.constant 0 : index
      %29 = vector.load %arg5[%c0_12, %c0_13] : memref<1x256xf32, #tpu.memory_space<vmem>>, vector<1x256xf32>
      %30 = vector.broadcast %28 : i32 to vector<1x256xi32>
      %31 = arith.cmpi eq, %13, %30 : vector<1x256xi32>
      %32 = arith.extui %31 : vector<1x256xi1> to vector<1x256xi32>
      %33 = arith.sitofp %32 : vector<1x256xi32> to vector<1x256xf32>
      %cst_14 = arith.constant 6.553600e+04 : f32
      %34 = vector.broadcast %cst_14 : f32 to vector<1x256xf32>
      %35 = arith.mulf %34, %33 : vector<1x256xf32>
      %cst_15 = arith.constant 1.000000e+00 : f32
      %36 = vector.broadcast %cst_15 : f32 to vector<1x256xf32>
      %37 = arith.addf %36, %35 : vector<1x256xf32>
      %38 = arith.mulf %29, %37 : vector<1x256xf32>
      %39 = vector.shape_cast %38 : vector<1x256xf32> to vector<1x1x256xf32>
      %cst_16 = arith.constant dense<0.000000e+00> : vector<1xf32>
      %40 = vector.multi_reduction <add>, %39, %cst_16 [1, 2] : vector<1x1x256xf32> to vector<1xf32>
      %41 = vector.shape_cast %40 : vector<1xf32> to vector<1x1x1xf32>
      %42 = vector.extract %41[0, 0, 0] : f32 from vector<1x1x1xf32>
      %43 = vector.broadcast %42 : f32 to vector<1x1xf32>
      %cst_17 = arith.constant 6.553800e+04 : f32
      %44 = vector.broadcast %cst_17 : f32 to vector<1x1xf32>
      %45 = arith.cmpf oge, %43, %44 : vector<1x1xf32>
      %46 = arith.extui %45 : vector<1x1xi1> to vector<1x1xi32>
      %47 = arith.sitofp %46 : vector<1x1xi32> to vector<1x1xf32>
      %c0_18 = arith.constant 0 : index
      %c0_19 = arith.constant 0 : index
      %48 = vector.load %arg4[%c0_18, %c0_19] : memref<1x256xf32, #tpu.memory_space<vmem>>, vector<1x256xf32>
      %49 = vector.broadcast %47 : vector<1x1xf32> to vector<1x256xf32>
      %50 = arith.mulf %49, %33 : vector<1x256xf32>
      %51 = arith.addf %48, %50 : vector<1x256xf32>
      %c0_20 = arith.constant 0 : index
      %c0_21 = arith.constant 0 : index
      %52 = vector.load %arg4[%c0_20, %c0_21] : memref<1x256xf32, #tpu.memory_space<vmem>>, vector<1x256xf32>
      tpu.vector_store %arg4[%c0_20, %c0_21], %51 {strides = array<i32>} : memref<1x256xf32, #tpu.memory_space<vmem>>, vector<1x256xf32>,
      %c0_22 = arith.constant 0 : index
      %53 = arith.index_cast %28 : i32 to index
      %54 = memref.load %arg2[%c0_22, %53] : memref<8x256xf32, #tpu.memory_space<smem>>
      %c1 = arith.constant 1 : index
      %55 = arith.index_cast %28 : i32 to index
      %56 = memref.load %arg2[%c1, %55] : memref<8x256xf32, #tpu.memory_space<smem>>
      %c2 = arith.constant 2 : index
      %57 = arith.index_cast %28 : i32 to index
      %58 = memref.load %arg2[%c2, %57] : memref<8x256xf32, #tpu.memory_space<smem>>
      %c3 = arith.constant 3 : index
      %59 = arith.index_cast %28 : i32 to index
      %60 = memref.load %arg2[%c3, %59] : memref<8x256xf32, #tpu.memory_space<smem>>
      %c4 = arith.constant 4 : index
      %61 = arith.index_cast %28 : i32 to index
      %62 = memref.load %arg2[%c4, %61] : memref<8x256xf32, #tpu.memory_space<smem>>
      %c5 = arith.constant 5 : index
      %63 = arith.index_cast %28 : i32 to index
      %64 = memref.load %arg2[%c5, %63] : memref<8x256xf32, #tpu.memory_space<smem>>
      %c6 = arith.constant 6 : index
      %65 = arith.index_cast %28 : i32 to index
      %66 = memref.load %arg2[%c6, %65] : memref<8x256xf32, #tpu.memory_space<smem>>
      %67 = vector.broadcast %54 : f32 to vector<1x256xf32>
      %68 = arith.minimumf %6, %67 : vector<1x256xf32>
      %69 = arith.addf %68, %8 : vector<1x256xf32>
      %70 = vector.broadcast %58 : f32 to vector<1x256xf32>
      %71 = arith.addf %69, %70 : vector<1x256xf32>
      %72 = vector.broadcast %56 : f32 to vector<1x256xf32>
      %73 = arith.maximumf %7, %72 : vector<1x256xf32>
      %74 = arith.subf %71, %73 : vector<1x256xf32>
      %cst_23 = arith.constant 0.000000e+00 : f32
      %75 = vector.broadcast %cst_23 : f32 to vector<1x256xf32>
      %76 = arith.maximumf %74, %75 : vector<1x256xf32>
      %77 = vector.broadcast %60 : f32 to vector<1x256xf32>
      %78 = arith.minimumf %9, %77 : vector<1x256xf32>
      %79 = arith.addf %78, %11 : vector<1x256xf32>
      %80 = vector.broadcast %64 : f32 to vector<1x256xf32>
      %81 = arith.addf %79, %80 : vector<1x256xf32>
      %82 = vector.broadcast %62 : f32 to vector<1x256xf32>
      %83 = arith.maximumf %10, %82 : vector<1x256xf32>
      %84 = arith.subf %81, %83 : vector<1x256xf32>
      %cst_24 = arith.constant 0.000000e+00 : f32
      %85 = vector.broadcast %cst_24 : f32 to vector<1x256xf32>
      %86 = arith.maximumf %84, %85 : vector<1x256xf32>
      %87 = arith.mulf %76, %86 : vector<1x256xf32>
      %88 = vector.broadcast %66 : f32 to vector<1x256xf32>
      %89 = arith.addf %12, %88 : vector<1x256xf32>
      %90 = arith.subf %89, %87 : vector<1x256xf32>
      %cst_25 = arith.constant 0.699999988 : f32
      %91 = vector.broadcast %cst_25 : f32 to vector<1x256xf32>
      %92 = arith.mulf %91, %90 : vector<1x256xf32>
      %93 = arith.cmpf oge, %87, %92 : vector<1x256xf32>
      %94 = arith.extui %93 : vector<1x256xi1> to vector<1x256xi32>
      %95 = arith.sitofp %94 : vector<1x256xi32> to vector<1x256xf32>
      %96 = vector.broadcast %47 : vector<1x1xf32> to vector<1x256xf32>
      %97 = arith.mulf %96, %95 : vector<1x256xf32>
      %cst_26 = arith.constant 1.000000e+00 : f32
      %98 = vector.broadcast %cst_26 : f32 to vector<1x256xf32>
      %99 = arith.subf %98, %97 : vector<1x256xf32>
      %100 = arith.mulf %29, %99 : vector<1x256xf32>
      %c0_27 = arith.constant 0 : index
      %c0_28 = arith.constant 0 : index
      %101 = vector.load %arg5[%c0_27, %c0_28] : memref<1x256xf32, #tpu.memory_space<vmem>>, vector<1x256xf32>
      tpu.vector_store %arg5[%c0_27, %c0_28], %100 {strides = array<i32>} : memref<1x256xf32, #tpu.memory_space<vmem>>, vector<1x256xf32>,
    }
    return
  }
  func.func @transform_0(%arg0: i32) -> i32 {
    %c0_i32 = arith.constant 0 : i32
    %c0_i32_0 = arith.constant 0 : i32
    return %c0_i32 : i32
  }
  func.func @transform_1(%arg0: i32) -> (i32, i32) {
    %c0_i32 = arith.constant 0 : i32
    %c0_i32_0 = arith.constant 0 : i32
    %c0_i32_1 = arith.constant 0 : i32
    return %c0_i32, %c0_i32_0 : i32, i32
  }
  func.func @transform_2(%arg0: i32) -> (i32, i32) {
    %c0_i32 = arith.constant 0 : i32
    %c0_i32_0 = arith.constant 0 : i32
    %c0_i32_1 = arith.constant 0 : i32
    return %c0_i32, %c0_i32_0 : i32, i32
  }
  func.func @transform_3(%arg0: i32) -> (i32, i32) {
    %c0_i32 = arith.constant 0 : i32
    %c0_i32_0 = arith.constant 0 : i32
    %c0_i32_1 = arith.constant 0 : i32
    return %c0_i32, %c0_i32_0 : i32, i32
  }
}

</mosaic_0001>

<bundles_post_ra>
// kernel: squeeze.20
= control target key start
LH: loop header
LB: loop body
LE: loop exit
PB: predicated region body
PF: predicated region fallthrough
CT: control target
= control target key end

     0   :  { %vm9_vm0 = vcmask 15360   ;;  %s544_s12 = smov 126   ;;  %s545_s13 = smov 120   ;;  %vm3_vm1 = vcmask 23552   ;;  %vm13_vm2 = vcmask 7168   ;;  %vm16_vm3 = vcmask 1048560   ;;  %s815_s0 = inlined_call_operand.vmem [shape: f32[1,64,3], index: 0, kind: input, shape index: {}]   ;;  %s816_s1 = inlined_call_operand.vmem [shape: f32[192], index: 1, kind: output, shape index: {}]  }
   0x1   :  { %v417_v0 = vld [vmem:[%s815_s0 + $0x2a] sm:$0x1]   ;;  %v420_v3 = vld [vmem:[%s815_s0 + $0x28] sm:$0x1]   ;;  %v422_v4 = vld [vmem:[%s815_s0 + $0x26] sm:$0x1]  }
   0x2   :  { %v418_v1 = vld [vmem:[%s815_s0 + $0x2a] sm:$0x1]   ;;  %26 = vrot.lane.b32.xlu1 %v420_v3, %s545_s13  ;;  %s546_s16 = smov 114   ;;  %v419_v5 = vld [vmem:[%s815_s0 + $0x29] sm:$0x1]   ;;  %s547_s21 = smov 123  }
   0x3   :  { %v10_v2 = vsel %vm9_vm0, %v418_v1, %v417_v0  ;;  %38 = vrot.lane.b32.xlu2 %v422_v4, %s546_s16  ;;  %v421_v6 = vld [vmem:[%s815_s0 + $0x27] sm:$0x1]   ;;  %s548_s22 = smov 117   ;;  %v423_v7 = vld [vmem:[%s815_s0 + $0x25] sm:$0x1]   ;;  %s549_s25 = smov 111  }
   0x4   :  { %11 = vrot.lane.b32.xlu0 %v10_v2, %s544_s12  ;;  %v424_v8 = vld [vmem:[%s815_s0 + $0x24] sm:$0x1]   ;;  %v425_v9 = vld [vmem:[%s815_s0 + $0x23] sm:$0x1]   ;;  %s550_s30 = smov 108   ;;  %s551_s2 = smov 105  }
   0x5   :  { %v426_v10 = vld [vmem:[%s815_s0 + $0x22] sm:$0x1]   ;;  %s552_s5 = smov 102   ;;  %v427_v11 = vld [vmem:[%s815_s0 + $0x21] sm:$0x1]   ;;  %s553_s10 = smov 99  }
   0x6   :  { %v428_v12 = vld [vmem:[%s815_s0 + $0x20] sm:$0x1]   ;;  %s554_s11 = smov 96   ;;  %v429_v13 = vld [vmem:[%s815_s0 + $0x1f] sm:$0x1]   ;;  %s555_s14 = smov 93  }
   0x7   :  { %v430_v14 = vld [vmem:[%s815_s0 + $0x1e] sm:$0x1]   ;;  %v431_v15 = vld [vmem:[%s815_s0 + $0x1d] sm:$0x1]   ;;  %s556_s19 = smov 90   ;;  %s557_s20 = smov 87  }
   0x8   :  { %v432_v16 = vld [vmem:[%s815_s0 + $0x1c] sm:$0x1]   ;;  %s558_s23 = smov 84   ;;  %v433_v17 = vld [vmem:[%s815_s0 + $0x1b] sm:$0x1]   ;;  %s559_s28 = smov 81  }
   0x9   :  { %v434_v18 = vld [vmem:[%s815_s0 + $0x1a] sm:$0x1]   ;;  %s560_s29 = smov 78   ;;  %v435_v19 = vld [vmem:[%s815_s0 + $0x19] sm:$0x1]   ;;  %s561_s3 = smov 75  }
   0xa   :  { %32 = vrot.lane.b32.xlu1 %v421_v6, %s548_s22  ;;  %v436_v20 = vld [vmem:[%s815_s0 + $0x18] sm:$0x1]   ;;  %v437_v21 = vld [vmem:[%s815_s0 + $0x17] sm:$0x1]   ;;  %s562_s8 = smov 72   ;;  %s563_s9 = smov 69  }
   0xb   :  { %44 = vrot.lane.b32.xlu2 %v423_v7, %s549_s25  ;;  %v438_v22 = vld [vmem:[%s815_s0 + $0x16] sm:$0x1]   ;;  %s564_s12 = smov 66   ;;  %v439_v23 = vld [vmem:[%s815_s0 + $0x15] sm:$0x1]   ;;  %s565_s17 = smov 63  }
   0xc   :  { %20 = vrot.lane.b32.xlu0 %v419_v5, %s547_s21  ;;  %v440_v24 = vld [vmem:[%s815_s0 + $0x3f] sm:$0x1]   ;;  %s566_s18 = smov 61   ;;  %v441_v25 = vld [vmem:[%s815_s0 + $0x14] sm:$0x1]   ;;  %s567_s21 = smov 60  }
   0xd   :  { %v442_v26 = vld [vmem:[%s815_s0 + $0x3e] sm:$0x1]   ;;  %v443_v27 = vld [vmem:[%s815_s0 + $0x13] sm:$0x1]   ;;  %s568_s26 = smov 58   ;;  %s569_s27 = smov 57  }
   0xe   :  { %v444_v28 = vld [vmem:[%s815_s0 + $0x3d] sm:$0x1]   ;;  %v445_v29 = vld [vmem:[%s815_s0 + $0x12] sm:$0x1]   ;;  %v446_v30 = vld [vmem:[%s815_s0 + $0x3c] sm:$0x1]  }
   0xf   :  { %s571_s6 = smov 54   ;;  %s572_s7 = smov 52   ;;  %v447_v31 = vld [vmem:[%s815_s0 + $0x11] sm:$0x1]   ;;  %v448_v32 = vld [vmem:[%s815_s0 + $0x3b] sm:$0x1]  }
  0x10   :  { %v449_v33 = vld [vmem:[%s815_s0 + $0x10] sm:$0x1]   ;;  %s574_s15 = smov 49   ;;  %s575_s16 = smov 48   ;;  %v450_v34 = vld [vmem:[%s815_s0 + $0x3a] sm:$0x1]  }
  0x11   :  { %v2_v35 = vld [vmem:[%s815_s0] sm:$0x1]   ;;  %v451_v36 = vld [vmem:[%s815_s0 + $0xf] sm:$0x1]   ;;  %v452_v37 = vld [vmem:[%s815_s0 + $0x39] sm:$0x1]  }
  0x12   :  { %56 = vrot.lane.b32.xlu1 %v425_v9, %s551_s2  ;;  %4 = vst.msk [vmem:[#allocation0] sm:$0x1] %vm3_vm1, %v2_v35   ;;  %v453_v38 = vld [vmem:[%s815_s0 + $0xe] sm:$0x1]   ;;  %v454_v39 = vld [vmem:[%s815_s0 + $0x38] sm:$0x1]  }
  0x13   :  { %62 = vrot.lane.b32.xlu2 %v426_v10, %s552_s5  ;;  %v455_v40 = vld [vmem:[%s815_s0 + $0xd] sm:$0x1]   ;;  %v456_v42 = vld [vmem:[%s815_s0 + $0x37] sm:$0x1]   ;;  %v457_v43 = vld [vmem:[%s815_s0 + $0xc] sm:$0x1]  }
  0x14   :  { %50 = vrot.lane.b32.xlu0 %v424_v8, %s550_s30  ;;  %s570_s30 = smov 55   ;;  %v458_v44 = vld [vmem:[%s815_s0 + $0x36] sm:$0x1]   ;;  %v459_v46 = vld [vmem:[%s815_s0 + $0xb] sm:$0x1]   ;;  %s586_s24 = smov 31  }
  0x15   :  { %v460_v47 = vld [vmem:[%s815_s0 + $0x35] sm:$0x1]   ;;  %v461_v48 = vld [vmem:[%s815_s0 + $0xa] sm:$0x1]   ;;  %s587_s25 = smov 30   ;;  %s589_s4 = smov 27  }
  0x16   :  { %v462_v50 = vld [vmem:[%s815_s0 + $0x34] sm:$0x1]   ;;  %v463_v53 = vld [vmem:[%s815_s0 + $0x9] sm:$0x1]   ;;  %v464_v54 = vld [vmem:[%s815_s0 + $0x33] sm:$0x1]  }
  0x17   :  { %s590_s5 = smov 25   ;;  %vm22_vm4 = vcmask 1032152   ;;  %v465_v56 = vld [vmem:[%s815_s0 + $0x8] sm:$0x1]   ;;  %vm28_vm5 = vcmask 1007552   ;;  %vm34_vm6 = vcmask 982952  }
  0x18   :  { %vm40_vm7 = vcmask 958352   ;;  %vm46_vm8 = vcmask 933752   ;;  %v466_v59 = vld [vmem:[%s815_s0 + $0x32] sm:$0x1]   ;;  %v467_v60 = vld [vmem:[%s815_s0 + $0x7] sm:$0x1]  }
  0x19   :  { %s592_s13 = smov 22   ;;  %vm52_vm9 = vcmask 909152   ;;  %v468_v62 = vld [vmem:[%s815_s0 + $0x31] sm:$0x1]   ;;  %vm58_vm10 = vcmask 884552   ;;  %vm64_vm11 = vcmask 859952  }
  0x1a   :  { %74 = vrot.lane.b32.xlu1 %v428_v12, %s554_s11  ;;  %v469_v1 = vld [vmem:[%s815_s0 + $0x6] sm:$0x1]   ;;  %v470_v2 = vld [vmem:[%s815_s0 + $0x30] sm:$0x1]   ;;  %s595_s22 = smov 18   ;;  %vm70_vm12 = vcmask 835352  }
  0x1b   :  { %80 = vrot.lane.b32.xlu2 %v429_v13, %s555_s14  ;;  %s593_s14 = smov 21   ;;  %v471_v4 = vld [vmem:[%s815_s0 + $0x5] sm:$0x1]   ;;  %vm76_vm13 = vcmask 810752   ;;  %vm82_vm14 = vcmask 786152   ;;  %s598_s2 = smov 13  }
  0x1c   :  { %68 = vrot.lane.b32.xlu0 %v427_v11, %s553_s10  ;;  %s573_s10 = smov 51   ;;  %v472_v7 = vld [vmem:[%s815_s0 + $0x2f] sm:$0x1]   ;;  %v473_v8 = vld [vmem:[%s815_s0 + $0x4] sm:$0x1]   ;;  %vm88_vm15 = vcmask 761552  }
  0x1d   :  { %v474_v10 = vld [vmem:[%s815_s0 + $0x2e] sm:$0x1]   ;;  %vm94_vm0 = vcmask 736952   ;;  %vm100_vm1 = vcmask 712352   ;;  %v475_v13 = vld [vmem:[%s815_s0 + $0x3] sm:$0x1]  }
  0x1e   :  { %s601_s11 = smov 9  }
  0x22   :  { %92 = vrot.lane.b32.xlu1 %v431_v15, %s557_s20  ;;  %s604_s20 = smov 4  }
  0x23   :  { %98 = vrot.lane.b32.xlu2 %v432_v16, %s558_s23  ;;  %s596_s23 = smov 16   ;;  %v477_v16 = vld [vmem:[%s815_s0 + $0x2] sm:$0x1]  }
  0x24   :  { %86 = vrot.lane.b32.xlu0 %v430_v14, %s556_s19  ;;  %s585_s19 = smov 33   ;;  %v476_v14 = vld [vmem:[%s815_s0 + $0x2d] sm:$0x1]  }
  0x2a   :  { %110 = vrot.lane.b32.xlu1 %v434_v18, %s560_s29 }
  0x2b   :  { %116 = vrot.lane.b32.xlu2 %v435_v19, %s561_s3  ;;  %s599_s3 = smov 12   ;;  %v478_v19 = vld [vmem:[%s815_s0 + $0x2c] sm:$0x1]  }
  0x2c   :  { %104 = vrot.lane.b32.xlu0 %v433_v17, %s559_s28  ;;  %s588_s28 = smov 28  }
  0x32   :  { %128 = vrot.lane.b32.xlu1 %v437_v21, %s563_s9 }
  0x33   :  { %134 = vrot.lane.b32.xlu2 %v438_v22, %s564_s12  ;;  %s602_s12 = smov 7   ;;  %v480_v22 = vld [vmem:[%s815_s0 + $0x2b] sm:$0x1]  }
  0x34   :  { %122 = vrot.lane.b32.xlu0 %v436_v20, %s562_s8  ;;  %s591_s8 = smov 24   ;;  %v479_v20 = vld [vmem:[%s815_s0 + $0x1] sm:$0x1]   ;;  %s606_s0 = smov 1  }
  0x3a   :  { %146 = vrot.lane.b32.xlu1 %v440_v24, %s566_s18 }
  0x3b   :  { %153 = vrot.lane.b32.xlu2 %v441_v25, %s567_s21  ;;  %s576_s21 = smov 46  }
  0x3c   :  { %140 = vrot.lane.b32.xlu0 %v439_v23, %s565_s17  ;;  %s594_s17 = smov 19  }
  0x42   :  { %166 = vrot.lane.b32.xlu1 %v443_v27, %s569_s27  ;;  %s578_s27 = smov 43  }
  0x43   :  { %172 = vrot.lane.b32.xlu2 %v444_v28, %s570_s30  ;;  %s579_s30 = smov 42  }
  0x44   :  { %159 = vrot.lane.b32.xlu0 %v442_v26, %s568_s26  ;;  %s577_s26 = smov 45  }
  0x4a   :  { %185 = vrot.lane.b32.xlu1 %v446_v30, %s572_s7  ;;  %s581_s7 = smov 39  }
  0x4b   :  { %192 = vrot.lane.b32.xlu2 %v447_v31, %s573_s10  ;;  %s582_s10 = smov 37  }
  0x4c   :  { %179 = vrot.lane.b32.xlu0 %v445_v29, %s571_s6  ;;  %s580_s6 = smov 40  }
  0x52   :  { %205 = vrot.lane.b32.xlu1 %v449_v33, %s575_s16  ;;  %s584_s16 = smov 34  }
  0x53   :  { %211 = vrot.lane.b32.xlu2 %v450_v34, %s576_s21  ;;  %s605_s21 = smov 3  }
  0x54   :  { %198 = vrot.lane.b32.xlu0 %v448_v32, %s574_s15  ;;  %s583_s15 = smov 36  }
  0x5a   :  { %224 = vrot.lane.b32.xlu1 %v452_v37, %s578_s27 }
  0x5b   :  { %231 = vrot.lane.b32.xlu2 %v453_v38, %s579_s30 }
  0x5c   :  { %218 = vrot.lane.b32.xlu0 %v451_v36, %s577_s26  ;;  %s597_s26 = smov 15  }
  0x5d   :  { %v39_v41 = vpop.permute.xlu2 %38  }
  0x62   :  { %244 = vrot.lane.b32.xlu1 %v455_v40, %s581_s7 }
  0x63   :  { %250 = vrot.lane.b32.xlu2 %v456_v42, %s582_s10 }
  0x64   :  { %237 = vrot.lane.b32.xlu0 %v454_v39, %s580_s6  ;;  %s600_s6 = smov 10  }
  0x65   :  { %v45_v45 = vpop.permute.xlu2 %44  }
  0x6a   :  { %263 = vrot.lane.b32.xlu1 %v458_v44, %s584_s16 }
  0x6b   :  { %270 = vrot.lane.b32.xlu2 %v459_v46, %s585_s19 }
  0x6c   :  { %257 = vrot.lane.b32.xlu0 %v457_v43, %s583_s15  ;;  %s603_s15 = smov 6  }
  0x6d   :  { %v63_v49 = vpop.permute.xlu2 %62  }
  0x72   :  { %283 = vrot.lane.b32.xlu1 %v461_v48, %s587_s25 }
  0x73   :  { %289 = vrot.lane.b32.xlu2 %v462_v50, %s588_s28 }
  0x74   :  { %276 = vrot.lane.b32.xlu0 %v460_v47, %s586_s24  ;;  %v27_v52 = vpop.permute.xlu1 %26  }
  0x75   :  { %v81_v55 = vpop.permute.xlu2 %80  }
  0x76   :  { %v12_v51 = vpop.permute.xlu0 %11  }
  0x77   :  { %15 = vst.msk [vmem:[#allocation0 + $0x1] sm:$0x1] %vm13_vm2, %v12_v51   ;;  %vm106_vm2 = vcmask 687752  }
  0x78   :  { %17 = vst.msk [vmem:[#allocation0] sm:$0x1] %vm16_vm3, %v12_v51   ;;  %vm112_vm3 = vcmask 663152  }
  0x7a   :  { %302 = vrot.lane.b32.xlu1 %v464_v54, %s590_s5 }
  0x7b   :  { %309 = vrot.lane.b32.xlu2 %v465_v56, %s591_s8 }
  0x7c   :  { %296 = vrot.lane.b32.xlu0 %v463_v53, %s589_s4  ;;  %v33_v58 = vpop.permute.xlu1 %32  }
  0x7d   :  { %v99_v61 = vpop.permute.xlu2 %98  }
  0x7e   :  { %v21_v57 = vpop.permute.xlu0 %20  }
  0x7f   :  { %23 = vst.msk [vmem:[#allocation0] sm:$0x1] %vm22_vm4, %v21_v57   ;;  %vm118_vm4 = vcmask 638552  }
  0x80   :  { %29 = vst.msk [vmem:[#allocation0] sm:$0x1] %vm28_vm5, %v27_v52   ;;  %vm124_vm5 = vcmask 613952  }
  0x81   :  { %35 = vst.msk [vmem:[#allocation0] sm:$0x1] %vm34_vm6, %v33_v58   ;;  %vm130_vm6 = vcmask 589352  }
  0x82   :  { %41 = vst.msk [vmem:[#allocation0] sm:$0x1] %vm40_vm7, %v39_v41   ;;  %322 = vrot.lane.b32.xlu1 %v467_v60, %s593_s14  ;;  %vm136_vm7 = vcmask 564752  }
  0x83   :  { %47 = vst.msk [vmem:[#allocation0] sm:$0x1] %vm46_vm8, %v45_v45   ;;  %328 = vrot.lane.b32.xlu2 %v468_v62, %s594_s17  ;;  %vm142_vm8 = vcmask 540152  }
  0x84   :  { %315 = vrot.lane.b32.xlu0 %v466_v59, %s592_s13  ;;  %v57_v0 = vpop.permute.xlu1 %56  }
  0x85   :  { %v117_v3 = vpop.permute.xlu2 %116  }
  0x86   :  { %v51_v63 = vpop.permute.xlu0 %50  }
  0x87   :  { %53 = vst.msk [vmem:[#allocation0] sm:$0x1] %vm52_vm9, %v51_v63   ;;  %vm155_vm9 = vcmask 515552  }
  0x88   :  { %59 = vst.msk [vmem:[#allocation0] sm:$0x1] %vm58_vm10, %v57_v0   ;;  %vm148_vm10 = vcmask 523752  }
  0x89   :  { %65 = vst.msk [vmem:[#allocation0] sm:$0x1] %vm64_vm11, %v63_v49   ;;  %vm161_vm11 = vcmask 499152  }
  0x8a   :  { %341 = vrot.lane.b32.xlu1 %v470_v2, %s596_s23 }
  0x8b   :  { %348 = vrot.lane.b32.xlu2 %v471_v4, %s597_s26 }
  0x8c   :  { %335 = vrot.lane.b32.xlu0 %v469_v1, %s595_s22  ;;  %v75_v6 = vpop.permute.xlu1 %74  }
  0x8d   :  { %v135_v9 = vpop.permute.xlu2 %134  }
  0x8e   :  { %v69_v5 = vpop.permute.xlu0 %68  }
  0x8f   :  { %71 = vst.msk [vmem:[#allocation0] sm:$0x1] %vm70_vm12, %v69_v5   ;;  %vm174_vm12 = vcmask 474552  }
  0x90   :  { %77 = vst.msk [vmem:[#allocation0] sm:$0x1] %vm76_vm13, %v75_v6   ;;  %vm168_vm13 = vcmask 490952  }
  0x91   :  { %83 = vst.msk [vmem:[#allocation0] sm:$0x1] %vm82_vm14, %v81_v55   ;;  %vm181_vm14 = vcmask 466352  }
  0x92   :  { %361 = vrot.lane.b32.xlu1 %v473_v8, %s599_s3 }
  0x93   :  { %367 = vrot.lane.b32.xlu2 %v474_v10, %s600_s6 }
  0x94   :  { %354 = vrot.lane.b32.xlu0 %v472_v7, %s598_s2  ;;  %v93_v12 = vpop.permute.xlu1 %92  }
  0x95   :  { %v154_v15 = vpop.permute.xlu2 %153  }
  0x96   :  { %v87_v11 = vpop.permute.xlu0 %86  }
  0x97   :  { %89 = vst.msk [vmem:[#allocation0] sm:$0x1] %vm88_vm15, %v87_v11   ;;  %vm194_vm15 = vcmask 441752  }
  0x98   :  { %95 = vst.msk [vmem:[#allocation0] sm:$0x1] %vm94_vm0, %v93_v12   ;;  %vm187_vm0 = vcmask 449952  }
  0x99   :  { %101 = vst.msk [vmem:[#allocation0] sm:$0x1] %vm100_vm1, %v99_v61   ;;  %vm200_vm1 = vcmask 425352  }
  0x9a   :  { %380 = vrot.lane.b32.xlu1 %v476_v14, %s602_s12 }
  0x9b   :  { %387 = vrot.lane.b32.xlu2 %v477_v16, %s603_s15 }
  0x9c   :  { %374 = vrot.lane.b32.xlu0 %v475_v13, %s601_s11  ;;  %v111_v18 = vpop.permute.xlu1 %110  }
  0x9d   :  { %v173_v21 = vpop.permute.xlu2 %172  }
  0x9e   :  { %v105_v17 = vpop.permute.xlu0 %104  }
  0x9f   :  { %107 = vst.msk [vmem:[#allocation0] sm:$0x1] %vm106_vm2, %v105_v17   ;;  %vm213_vm2 = vcmask 400752  }
  0xa0   :  { %113 = vst.msk [vmem:[#allocation0] sm:$0x1] %vm112_vm3, %v111_v18   ;;  %vm207_vm3 = vcmask 417152  }
  0xa1   :  { %119 = vst.msk [vmem:[#allocation0] sm:$0x1] %vm118_vm4, %v117_v3   ;;  %vm220_vm4 = vcmask 392552  }
  0xa2   :  { %400 = vrot.lane.b32.xlu1 %v479_v20, %s605_s21 }
  0xa3   :  { %406 = vrot.lane.b32.xlu2 %v480_v22, %s606_s0 }
  0xa4   :  { %393 = vrot.lane.b32.xlu0 %v478_v19, %s604_s20  ;;  %v129_v24 = vpop.permute.xlu1 %128  }
  0xa5   :  { %v193_v25 = vpop.permute.xlu2 %192  }
  0xa6   :  { %v123_v23 = vpop.permute.xlu0 %122  }
  0xa7   :  { %125 = vst.msk [vmem:[#allocation0] sm:$0x1] %vm124_vm5, %v123_v23   ;;  %vm233_vm5 = vcmask 367952  }
  0xa8   :  { %131 = vst.msk [vmem:[#allocation0] sm:$0x1] %vm130_vm6, %v129_v24   ;;  %vm226_vm6 = vcmask 376152  }
  0xa9   :  { %137 = vst.msk [vmem:[#allocation0] sm:$0x1] %vm136_vm7, %v135_v9   ;;  %vm239_vm7 = vcmask 351552  }
  0xac   :  { %v147_v27 = vpop.permute.xlu1 %146  }
  0xad   :  { %150 = vst.msk [vmem:[#allocation0 + $0x1] sm:$0x1] %vm148_vm10, %v147_v27   ;;  %v212_v28 = vpop.permute.xlu2 %211   ;;  %vm259_vm10 = vcmask 318752  }
  0xae   :  { %v141_v26 = vpop.permute.xlu0 %140  }
  0xaf   :  { %143 = vst.msk [vmem:[#allocation0] sm:$0x1] %vm142_vm8, %v141_v26   ;;  %vm252_vm8 = vcmask 326952  }
  0xb0   :  { %156 = vst.msk [vmem:[#allocation0] sm:$0x1] %vm155_vm9, %v154_v15   ;;  %vm246_vm9 = vcmask 343352  }
  0xb4   :  { %v167_v30 = vpop.permute.xlu1 %166  }
  0xb5   :  { %169 = vst.msk [vmem:[#allocation0] sm:$0x1] %vm168_vm13, %v167_v30   ;;  %v232_v31 = vpop.permute.xlu2 %231   ;;  %vm278_vm13 = vcmask 277752  }
  0xb6   :  { %v160_v29 = vpop.permute.xlu0 %159  }
  0xb7   :  { %163 = vst.msk [vmem:[#allocation0 + $0x1] sm:$0x1] %vm161_vm11, %v160_v29   ;;  %vm272_vm11 = vcmask 294152  }
  0xb8   :  { %176 = vst.msk [vmem:[#allocation0 + $0x1] sm:$0x1] %vm174_vm12, %v173_v21   ;;  %vm265_vm12 = vcmask 302352  }
  0xbc   :  { %v186_v33 = vpop.permute.xlu1 %185  }
  0xbd   :  { %189 = vst.msk [vmem:[#allocation0 + $0x1] sm:$0x1] %vm187_vm0, %v186_v33   ;;  %v251_v34 = vpop.permute.xlu2 %250   ;;  %vm298_vm0 = vcmask 244952  }
  0xbe   :  { %v180_v32 = vpop.permute.xlu0 %179  }
  0xbf   :  { %182 = vst.msk [vmem:[#allocation0] sm:$0x1] %vm181_vm14, %v180_v32   ;;  %vm291_vm14 = vcmask 253152  }
  0xc0   :  { %195 = vst.msk [vmem:[#allocation0] sm:$0x1] %vm194_vm15, %v193_v25   ;;  %vm285_vm15 = vcmask 269552  }
  0xc4   :  { %v206_v36 = vpop.permute.xlu1 %205  }
  0xc5   :  { %208 = vst.msk [vmem:[#allocation0] sm:$0x1] %vm207_vm3, %v206_v36   ;;  %v271_v37 = vpop.permute.xlu2 %270   ;;  %vm317_vm3 = vcmask 203952  }
  0xc6   :  { %v199_v35 = vpop.permute.xlu0 %198  }
  0xc7   :  { %202 = vst.msk [vmem:[#allocation0 + $0x1] sm:$0x1] %vm200_vm1, %v199_v35   ;;  %vm311_vm1 = vcmask 220352  }
  0xc8   :  { %215 = vst.msk [vmem:[#allocation0 + $0x1] sm:$0x1] %vm213_vm2, %v212_v28   ;;  %vm304_vm2 = vcmask 228552  }
  0xcc   :  { %v225_v39 = vpop.permute.xlu1 %224  }
  0xcd   :  { %228 = vst.msk [vmem:[#allocation0 + $0x1] sm:$0x1] %vm226_vm6, %v225_v39   ;;  %v290_v40 = vpop.permute.xlu2 %289   ;;  %vm337_vm6 = vcmask 171152  }
  0xce   :  { %v219_v38 = vpop.permute.xlu0 %218  }
  0xcf   :  { %221 = vst.msk [vmem:[#allocation0] sm:$0x1] %vm220_vm4, %v219_v38   ;;  %vm330_vm4 = vcmask 179352  }
  0xd0   :  { %234 = vst.msk [vmem:[#allocation0] sm:$0x1] %vm233_vm5, %v232_v31   ;;  %vm324_vm5 = vcmask 195752  }
  0xd4   :  { %v245_v42 = vpop.permute.xlu1 %244  }
  0xd5   :  { %247 = vst.msk [vmem:[#allocation0] sm:$0x1] %vm246_vm9, %v245_v42   ;;  %v310_v43 = vpop.permute.xlu2 %309   ;;  %vm356_vm9 = vcmask 130152  }
  0xd6   :  { %v238_v41 = vpop.permute.xlu0 %237  }
  0xd7   :  { %241 = vst.msk [vmem:[#allocation0 + $0x1] sm:$0x1] %vm239_vm7, %v238_v41   ;;  %vm350_vm7 = vcmask 146552  }
  0xd8   :  { %254 = vst.msk [vmem:[#allocation0 + $0x1] sm:$0x1] %vm252_vm8, %v251_v34   ;;  %vm343_vm8 = vcmask 154752  }
  0xdc   :  { %v264_v45 = vpop.permute.xlu1 %263  }
  0xdd   :  { %267 = vst.msk [vmem:[#allocation0 + $0x1] sm:$0x1] %vm265_vm12, %v264_v45   ;;  %v329_v46 = vpop.permute.xlu2 %328   ;;  %vm376_vm12 = vcmask 97352  }
  0xde   :  { %v258_v44 = vpop.permute.xlu0 %257  }
  0xdf   :  { %260 = vst.msk [vmem:[#allocation0] sm:$0x1] %vm259_vm10, %v258_v44   ;;  %vm369_vm10 = vcmask 105552  }
  0xe0   :  { %273 = vst.msk [vmem:[#allocation0] sm:$0x1] %vm272_vm11, %v271_v37   ;;  %vm363_vm11 = vcmask 121952  }
  0xe4   :  { %v284_v48 = vpop.permute.xlu1 %283  }
  0xe5   :  { %286 = vst.msk [vmem:[#allocation0] sm:$0x1] %vm285_vm15, %v284_v48   ;;  %v349_v49 = vpop.permute.xlu2 %348   ;;  %vm395_vm15 = vcmask 56352  }
  0xe6   :  { %v277_v47 = vpop.permute.xlu0 %276  }
  0xe7   :  { %280 = vst.msk [vmem:[#allocation0 + $0x1] sm:$0x1] %vm278_vm13, %v277_v47   ;;  %vm389_vm13 = vcmask 72752  }
  0xe8   :  { %293 = vst.msk [vmem:[#allocation0 + $0x1] sm:$0x1] %vm291_vm14, %v290_v40   ;;  %vm382_vm14 = vcmask 80952  }
  0xec   :  { %v303_v51 = vpop.permute.xlu1 %302  }
  0xed   :  { %306 = vst.msk [vmem:[#allocation0 + $0x1] sm:$0x1] %vm304_vm2, %v303_v51   ;;  %v368_v52 = vpop.permute.xlu2 %367  }
  0xee   :  { %v297_v50 = vpop.permute.xlu0 %296  }
  0xef   :  { %299 = vst.msk [vmem:[#allocation0] sm:$0x1] %vm298_vm0, %v297_v50   ;;  %vm408_vm0 = vcmask 31752  }
  0xf0   :  { %312 = vst.msk [vmem:[#allocation0] sm:$0x1] %vm311_vm1, %v310_v43   ;;  %vm402_vm1 = vcmask 48152  }
  0xf4   :  { %v323_v54 = vpop.permute.xlu1 %322  }
  0xf5   :  { %325 = vst.msk [vmem:[#allocation0] sm:$0x1] %vm324_vm5, %v323_v54   ;;  %v388_v55 = vpop.permute.xlu2 %387  }
  0xf6   :  { %v316_v53 = vpop.permute.xlu0 %315  }
  0xf7   :  { %319 = vst.msk [vmem:[#allocation0 + $0x1] sm:$0x1] %vm317_vm3, %v316_v53  }
  0xf8   :  { %332 = vst.msk [vmem:[#allocation0 + $0x1] sm:$0x1] %vm330_vm4, %v329_v46  }
  0xfc   :  { %v342_v57 = vpop.permute.xlu1 %341  }
  0xfd   :  { %345 = vst.msk [vmem:[#allocation0 + $0x1] sm:$0x1] %vm343_vm8, %v342_v57   ;;  %v407_v58 = vpop.permute.xlu2 %406  }
  0xfe   :  { %v336_v56 = vpop.permute.xlu0 %335  }
  0xff   :  { %338 = vst.msk [vmem:[#allocation0] sm:$0x1] %vm337_vm6, %v336_v56  }
 0x100   :  { %351 = vst.msk [vmem:[#allocation0] sm:$0x1] %vm350_vm7, %v349_v49  }
 0x104   :  { %v362_v60 = vpop.permute.xlu1 %361  }
 0x105   :  { %364 = vst.msk [vmem:[#allocation0] sm:$0x1] %vm363_vm11, %v362_v60  }
 0x106   :  { %v355_v59 = vpop.permute.xlu0 %354  }
 0x107   :  { %358 = vst.msk [vmem:[#allocation0 + $0x1] sm:$0x1] %vm356_vm9, %v355_v59  }
 0x108   :  { %371 = vst.msk [vmem:[#allocation0 + $0x1] sm:$0x1] %vm369_vm10, %v368_v52  }
 0x10c   :  { %v381_v62 = vpop.permute.xlu1 %380  }
 0x10d   :  { %384 = vst.msk [vmem:[#allocation0 + $0x1] sm:$0x1] %vm382_vm14, %v381_v62  }
 0x10e   :  { %v375_v61 = vpop.permute.xlu0 %374  }
 0x10f   :  { %377 = vst.msk [vmem:[#allocation0] sm:$0x1] %vm376_vm12, %v375_v61  }
 0x110   :  { %390 = vst.msk [vmem:[#allocation0] sm:$0x1] %vm389_vm13, %v388_v55  }
 0x114   :  { %v401_v0 = vpop.permute.xlu1 %400  }
 0x115   :  { %403 = vst.msk [vmem:[#allocation0] sm:$0x1] %vm402_vm1, %v401_v0  }
 0x116   :  { %v394_v63 = vpop.permute.xlu0 %393  }
 0x117   :  { %397 = vst.msk [vmem:[#allocation0 + $0x1] sm:$0x1] %vm395_vm15, %v394_v63  }
 0x118   :  { %410 = vst.msk [vmem:[#allocation0 + $0x1] sm:$0x1] %vm408_vm0, %v407_v58  }
 0x11f   :  { %v413_v1 = vld [vmem:[#allocation0] sm:$0x3] }
 0x120   :  { %416 = vst [vmem:[%s816_s1] sm:$0x3] %v413_v1 }

// kernel: rpn_forward.3
= control target key start
LH: loop header
LB: loop body
LE: loop exit
PB: predicated region body
PF: predicated region fallthrough
CT: control target
= control target key end

     0   :  { %9 = vsyncpa [#allocation5], 0  ;;  %s247_s15 = smov [#allocation4]   ;;  %s382_s0 = inlined_call_operand.<no memory space> [shape: s32[1], index: 0, kind: input, shape index: {}]   ;;  %s383_s1 = inlined_call_operand.vmem [shape: f32[8,256], index: 1, kind: input, shape index: {}]   ;;  %s384_s2 = inlined_call_operand.vmem [shape: f32[4,256], index: 2, kind: input, shape index: {}]   ;;  %s385_s3 = inlined_call_operand.vmem [shape: f32[1,256], index: 3, kind: output, shape index: {}]  }
   0x1   :  { %s17_s14 = sshll.u32 %s383_s1, 4  ;;  %s18_s14 = int_to_ptr.vmem [resolvable:$true] %s17_s14 }
   0x2   :  { %20 = dma.vmem_to_smem %s18_s14, 256, %s247_s15, [#allocation5]  }
   0x3   :  { %241 = dma.done.wait [#allocation5], 256  }
   0x4   :  { %242 = vsyncadd [#allocation5], 4294967040 }
   0x5   :  { %27 = sfence }
   0x6   :  { %v29_v0 = vld [vmem:[%s384_s2] sm:$0xff]  ;;  %v42_v1 = vlaneseq  ;;  %v45_v7 = vstv %s382_s0  ;;  %v248_v8 = vmov 0.0   ;;  %vm55_vm3 = vcmask 1040384   ;;  %p204_p0 = scmp.le.s32.totalorder %s382_s0, 0 }
   0x7   :  { %v31_v2 = vrot.slane %v29_v0, 6  ;;  %s311_s22 = smov (!%p204_p0), 0  }
   0x8   :  { %v276_v3 = vand.u32 127, %v42_v1  ;;  %vm278_vm0 = vcmp.lt.s32.totalorder %v42_v1, 256 }
   0x9   :  { %v32_v5 = vrot.slane %v31_v2, 4  ;;  %v282_v6 = vsub.f32 %v29_v0, %v31_v2  ;;  %63 = vst.msk [vmem:[%s385_s3] sm:$0x3] %vm278_vm0, %v248_v8 }
   0xa   :  { %v293_v9 = vadd.s32 128, %v276_v3  ;;  %vm46_vm1 = vcmp.lt.s32.totalorder %v276_v3, %v45_v7 }
   0xb   :  { %v296_v10 = vmin.f32 %v29_v0, %v32_v5  ;;  %v298_v11 = vmax.f32 %v29_v0, %v32_v5  ;;  %v39_v12 = vrot.slane %v282_v6, 7  ;;  %v202_v14 = vsel %vm46_vm1, 1.0, %v248_v8 }
   0xc   :  { %vm47_vm2 = vcmp.lt.s32.totalorder %v293_v9, %v45_v7 }
   0xd   :  { %v303_v13 = vmul.f32 %v39_v12, %v282_v6  ;;  %v203_v15 = vsel %vm47_vm2, 1.0, %v248_v8  ;;  %199 = sbr.rel (%p204_p0) target bundleno = 226 (0xe2), region = 37 }
   0xe   :  { %v54_v16 = vrot.slane %v203_v15, 7 }
  0x10   :  { %v56_v17 = vsel %vm55_vm3, %v202_v14, %v54_v16 }
  0x11   :  { %62 = vst.msk [vmem:[#allocation2] sm:$0x3] %vm278_vm0, %v56_v17 }
  0x12 LB: > { %v71_v18 = vstv %s245_s22  ;;  %v249_v19 = vmov 0.0   ;;  %s119_s23 = sshra.s32 %s245_s22, 7  ;;  %s335_s24 = sand.u32 127, %s245_s22  ;;  %v146_v42 = vrot.slane %v282_v6, 6  ;;  %s245_s22 = sphi %s311_s22, %s67_s22  }
  0x13   : > { %vm72_vm4 = vcmp.eq.s32.totalorder %v276_v3, %v71_v18  ;;  %vm73_vm5 = vcmp.eq.s32.totalorder %v293_v9, %v71_v18  ;;  %s337_s25 = sshll.u32 %s119_s23, 10  ;;  %s132_s26 = sadd.s32 384, %s335_s24  ;;  %v109_v18 = vld [vmem:[%s385_s3] sm:$0x3] }
  0x14   : > { %v320_v20 = vsel %vm72_vm4, 1.0, %v249_v19  ;;  %v323_v21 = vsel %vm73_vm5, 1.0, %v249_v19  ;;  %s133_s27 = sadd.s32 %s337_s25, %s132_s26  ;;  %s124_s29 = sadd.s32 %s337_s25, %s335_s24  ;;  %v147_v44 = vrot.slane %v146_v42, 4 }
  0x15   : > { %v78_v22 = vmul.f32 65536.0, %v320_v20  ;;  %v79_v23 = vmul.f32 65536.0, %v323_v21  ;;  %s134_s28 = sld [smem:[#allocation4 + %s133_s27]]  ;;  %s135_s30 = sadd.s32 512, %s335_s24 }
  0x16   : > { %s138_s4 = sadd.s32 640, %s335_s24  ;;  %s125_s5 = sld [smem:[#allocation4 + %s124_s29]] }
  0x17   : > { %v80_v24 = vadd.f32 1.0, %v78_v22  ;;  %v81_v25 = vadd.f32 1.0, %v79_v23  ;;  %s136_s6 = sadd.s32 %s337_s25, %s135_s30  ;;  %s126_s7 = sadd.s32 128, %s335_s24 }
  0x18   : > { %v327_v26 = vld [vmem:[#allocation2] sm:$0x3]  ;;  %s139_s8 = sadd.s32 %s337_s25, %s138_s4  ;;  %s129_s9 = sadd.s32 256, %s335_s24 }
  0x19   : > { %v84_v27 = vrot.slane %v81_v25, 7  ;;  %s137_s10 = sld [smem:[#allocation4 + %s136_s6]]  ;;  %s127_s11 = sadd.s32 %s337_s25, %s126_s7 }
  0x1a   : > { %s140_s12 = sld [smem:[#allocation4 + %s139_s8]]  ;;  %s130_s13 = sadd.s32 %s337_s25, %s129_s9 }
  0x1b   : > { %v85_v28 = vsel %vm55_vm3, %v80_v24, %v84_v27  ;;  %v156_v43 = vstv %s134_s28  ;;  %s128_s14 = sld [smem:[#allocation4 + %s127_s11]]  ;;  %s141_s16 = sadd.s32 768, %s335_s24 }
  0x1c   : > { %v87_v29 = vmul.f32 %v85_v28, %v327_v26  ;;  %v157_v45 = vmin.f32 %v296_v10, %v156_v43  ;;  %s131_s15 = sld [smem:[#allocation4 + %s130_s13]]  ;;  %v144_v46 = vstv %s125_s5  ;;  %s142_s17 = sadd.s32 %s337_s25, %s141_s16 }
  0x1d   : > { %v145_v47 = vmin.f32 %v296_v10, %v144_v46  ;;  %s143_s1 = sld [smem:[#allocation4 + %s142_s17]]  ;;  %s67_s22 = sadd.s32 1, %s245_s22  }
  0x1e   : > { %v89_v30 = vperm.slane %v87_v29, 0  ;;  %v90_v31 = vperm.slane %v87_v29, 1  ;;  %v158_v48 = vadd.f32 %v157_v45, %v147_v44  ;;  %p66_p1 = scmp.ge.s32.totalorder %s67_s22, %s382_s0 }
  0x1f   : > { %v161_v50 = vstv %s137_s10  ;;  %v149_v51 = vadd.f32 %v147_v44, %v145_v47 }
  0x20   : > { %v93_v32 = vsel %vm55_vm3, %v89_v30, 0.0  ;;  %v94_v33 = vsel %vm55_vm3, %v90_v31, 0.0  ;;  %v159_v49 = vstv %s140_s12  ;;  %v162_v53 = vmax.f32 %v298_v11, %v161_v50 }
  0x21   : > { %v95_v34 = vadd.f32 %v94_v33, %v93_v32  ;;  %v160_v52 = vadd.f32 %v159_v49, %v158_v48  ;;  %v152_v55 = vstv %s128_s14 }
  0x22   : > { %v150_v54 = vstv %s131_s15  ;;  %v153_v57 = vmax.f32 %v298_v11, %v152_v55 }
  0x23   : > { %96 = vadd.xlane.f32.xlu0 %v95_v34  ;;  %v151_v56 = vadd.f32 %v150_v54, %v149_v51  ;;  %v163_v58 = vsub.f32 %v160_v52, %v162_v53  ;;  %v170_v0 = vstv %s143_s1 }
  0x24   : > { %v171_v1 = vadd.f32 %v170_v0, %v303_v13 }
  0x25   : > { %v154_v59 = vsub.f32 %v151_v56, %v153_v57  ;;  %v164_v60 = vmax.f32 %v163_v58, 0.0 }
  0x27   : > { %v155_v61 = vmax.f32 %v154_v59, 0.0  ;;  %v209_v62 = vrot.slane %v164_v60, 9 }
  0x29   : > { %v169_v63 = vmul.f32 %v209_v62, %v155_v61 }
  0x2b   : > { %v173_v2 = vrot.slane %v169_v63, 5 }
  0x2d   : > { %v175_v5 = vsub.f32 %v171_v1, %v173_v2 }
  0x2f   : > { %v176_v7 = vmul.f32 0.7, %v175_v5 }
  0x31   : > { %v210_v8 = vrot.slane %v176_v7, 11 }
  0x33   : > { %vm181_vm6 = vcmp.ge.f32.partialorder %v169_v63, %v210_v8 }
  0x34   : > { %v211_v14 = vsel %vm181_vm6, 1.0, %v249_v19 }
  0x96   : > { %v97_v35 = vpop.xlane.xlu0 %96 }
  0x97   : > { %v98_v36 = vrot.slane %v97_v35, 4 }
  0x99   : > { %v99_v37 = vadd.f32 %v98_v36, %v97_v35 }
  0x9b   : > { %v100_v38 = vrot.slane %v99_v37, 2 }
  0x9d   : > { %v101_v39 = vadd.f32 %v100_v38, %v99_v37 }
  0x9f   : > { %v102_v40 = vrot.slane %v101_v39, 1 }
  0xa1   : > { %v103_v41 = vadd.f32 %v102_v40, %v101_v39 }
  0xa3   : > { %212 = vpush %v103_v41 }
  0xd4   : > { %s213_s18 = spop %212 }
  0xd5   : > { %v105_v12 = vstv %s213_s18 }
  0xd6   : > { %vm106_vm7 = vcmp.ge.f32.partialorder %v105_v12, 65538.0 }
  0xd7   : > { %v207_v15 = vsel %vm106_vm7, 1.0, %v249_v19 }
  0xd8   : > { %v111_v16 = vmul.f32 %v207_v15, %v323_v21  ;;  %v184_v17 = vmul.f32 %v211_v14, %v207_v15  ;;  %v110_v22 = vmul.f32 %v207_v15, %v320_v20 }
  0xda   : > { %v114_v23 = vrot.slane %v111_v16, 7  ;;  %v185_v24 = vsub.f32 1.0, %v184_v17 }
  0xdc   : > { %v115_v25 = vsel %vm55_vm3, %v110_v22, %v114_v23  ;;  %v187_v27 = vrot.slane %v185_v24, 3 }
  0xdd   : > { %v117_v28 = vadd.f32 %v115_v25, %v109_v18  ;;  %69 = sbr.rel (!%p66_p1) target bundleno = 18 (0x12), region = 43 }
  0xde   : > { %v188_v29 = vsel %vm55_vm3, %v185_v24, %v187_v27 }
  0xdf   : > { %118 = vst.msk [vmem:[%s385_s3] sm:$0x3] %vm278_vm0, %v117_v28  ;;  %v190_v19 = vmul.f32 %v188_v29, %v327_v26 }
  0xe1   : > { %191 = vst.msk [vmem:[#allocation2] sm:$0x3] %vm278_vm0, %v190_v19 }
  0xe2 PF:  { %196 = vsyncpa [#allocation5], 1 }

// kernel: rpn_forward.2
= control target key start
LH: loop header
LB: loop body
LE: loop exit
PB: predicated region body
PF: predicated region fallthrough
CT: control target
= control target key end

     0   :  { %16 = vsyncpa [#allocation3], 0  ;;  %s5135_s16 = smov [#allocation2]   ;;  %s5136_s18 = smov 64   ;;  %s9284_s0 = inlined_call_operand.vmem [shape: f32[10,10,128], index: 0, kind: input, shape index: {}]   ;;  %s9285_s1 = inlined_call_operand.hbm [shape: bf16[1152,128], index: 1, kind: input, shape index: {}]   ;;  %s9286_s2 = inlined_call_operand.vmem [shape: f32[1,128], index: 2, kind: input, shape index: {}]   ;;  %s9287_s3 = inlined_call_operand.vmem [shape: bf16[128,128], index: 3, kind: input, shape index: {}]   ;;  %s9288_s4 = inlined_call_operand.vmem [shape: f32[1,128], index: 4, kind: input, shape index: {}]   ;;  %s9289_s5 = inlined_call_operand.vmem [shape: f32[4,64,3], index: 5, kind: input, shape index: {}]   ;;  %s9290_s6 = inlined_call_operand.vmem [shape: f32[64,3], index: 6, kind: input, shape index: {}]   ;;  %s9291_s7 = inlined_call_operand.vmem [shape: f32[2,4], index: 7, kind: input, shape index: {}]   ;;  %s9292_s8 = inlined_call_operand.vmem [shape: f32[4,64,3], index: 8, kind: output, shape index: {0}]   ;;  %s9293_s9 = inlined_call_operand.vmem [shape: f32[64,3], index: 9, kind: output, shape index: {1}]   ;;  %s9294_s10 = inlined_call_operand.vmem [shape: f32[1,8], index: 10, kind: output, shape index: {2}]  }
   0x1   :  { %s23_s15 = sshll.u32 %s9285_s1, 4  ;;  %s25_s17 = sshll.u32 %s5135_s16, 4  ;;  %s24_s15 = int_to_ptr.hbm [resolvable:$true] %s23_s15  ;;  %s26_s17 = int_to_ptr.vmem [resolvable:$true] %s25_s17 }
   0x2   :  { %s5137_s19 = smov 4  }
   0x3   :  { %31 = dma.hbm_to_vmem [thread:$0]  %s24_s15, 9216, %s26_s17, [#allocation3], %s5136_s18, %s5136_s18, %s5137_s19  }
   0x4   :  { %5133 = dma.done.wait [#allocation3], 9216  }
   0x5   :  { %5134 = vsyncadd [#allocation3], 4294958080  ;;  %v5213_v0 = vld [vmem:[%s9289_s5 + $0x10] sm:$0xff]  ;;  %v5221_v2 = vld [vmem:[%s9289_s5 + $0x8] sm:$0xff]  ;;  %s5138_s27 = smov 6   ;;  %vm92_vm0 = vcmask 1046528  }
   0x6   :  { %v4580_v1 = vld [vmem:[%s9289_s5 + $0x90] sm:$0xff]  ;;  %v4579_v4 = vld [vmem:[%s9289_s5 + $0x88] sm:$0xff]  ;;  %v4673_v5 = vld [vmem:[#allocation2 + $0x38] sm:$0xff]  ;;  %s5139_s30 = smov 2   ;;  %vm133_vm1 = vcmask 1045504   ;;  %s5140_s15 = smov 9  }
   0x7   :  { %v5224_v3 = vsub.f32 %v4580_v1, %v5213_v0  ;;  %v4681_v6 = vld [vmem:[#allocation2 + $0x78] sm:$0xff]  ;;  %v5230_v7 = vsub.f32 %v4579_v4, %v5221_v2  ;;  %4746 = vmatpush.bf16.msra.mxu2 %v4673_v5  ;;  %v4672_v8 = vld [vmem:[#allocation2 + $0x30] sm:$0xff]  ;;  %v5239_v10 = vld [vmem:[%s9289_s5 + $0x28] sm:$0xff]  ;;  %894 = vmatpush.bf16.msra.mxu0 %v4673_v5  ;;  %s5141_s28 = smov 126   ;;  %s5142_s25 = smov 12  }
   0x8   :  { %4754 = vmatpush.bf16.msra.mxu3 %v4681_v6  ;;  %v4680_v9 = vld [vmem:[#allocation2 + $0x70] sm:$0xff]  ;;  %v4583_v11 = vld [vmem:[%s9289_s5 + $0xa8] sm:$0xff]  ;;  %923 = vmatpush.bf16.msra.mxu1 %v4681_v6  ;;  %v5247_v12 = vld [vmem:[%s9289_s5 + $0x20] sm:$0xff]  ;;  %s5143_s26 = smov 125   ;;  %s5144_s29 = smov 1  }
   0x9   :  { %9497 = vst [vmem:[#allocation5_spill] sm:$0xff] %v5224_v3  ;;  %1400 = vrot.lane.b32.xlu1 %v5224_v3, %s5138_s27  ;;  %1398 = vrot.lane.b32.xlu0 %v5230_v7, %s5138_s27  ;;  %v4582_v13 = vld [vmem:[%s9289_s5 + $0xa0] sm:$0xff]  ;;  %v5259_v16 = vsub.f32 %v4583_v11, %v5239_v10  ;;  %v4671_v17 = vld [vmem:[#allocation2 + $0x28] sm:$0xff]  ;;  %v5280_v26 = vld [vmem:[%s9289_s5 + $0x38] sm:$0xff]  ;;  %v1358_v53 = vmul.f32 0.5, %v5224_v3  ;;  %s5148_s24 = smov 3  }
   0xa   :  { %9498 = vst [vmem:[#allocation6_spill] sm:$0xff] %v5230_v7  ;;  %v1305_v14 = vld [vmem:[%s9289_s5] sm:$0xff]  ;;  %v5268_v21 = vsub.f32 %v4582_v13, %v5247_v12  ;;  %v4679_v22 = vld [vmem:[#allocation2 + $0x68] sm:$0xff]  ;;  %v4585_v27 = vld [vmem:[%s9289_s5 + $0xb8] sm:$0xff] }
   0xb   :  { %v4578_v15 = vld [vmem:[%s9289_s5 + $0x80] sm:$0xff]  ;;  %4747 = vmatpush.bf16.msra.mxu2 %v4672_v8  ;;  %9499 = vst [vmem:[#allocation7_spill] sm:$0xff] %v5259_v16  ;;  %895 = vmatpush.bf16.msra.mxu0 %v4672_v8  ;;  %v4669_v29 = vld [vmem:[#allocation2 + $0x18] sm:$0xff]  ;;  %v5293_v30 = vld [vmem:[%s9284_s0 + $0x50] sm:$0xff]  ;;  %v5321_v36 = vsub.f32 %v4585_v27, %v5280_v26  ;;  %v5382_v8 = vadd.f32 %v1358_v53, %v5213_v0 }
   0xc   :  { %v5261_v18 = vsub.f32 %v4578_v15, %v1305_v14  ;;  %v5263_v19 = vmin.f32 %v1305_v14, %v4578_v15  ;;  %v5265_v20 = vmax.f32 %v1305_v14, %v4578_v15  ;;  %4755 = vmatpush.bf16.msra.mxu3 %v4680_v9  ;;  %9503 = vst [vmem:[#allocation11_spill] sm:$0xff] %v5268_v21  ;;  %v4670_v23 = vld [vmem:[#allocation2 + $0x20] sm:$0xff]  ;;  %v5298_v31 = vld [vmem:[%s9284_s0 + $0x48] sm:$0x3]  ;;  %v5303_v32 = vld [vmem:[%s9284_s0 + $0x58] sm:$0x3] }
   0xd   :  { %924 = vmatpush.bf16.msra.mxu1 %v4680_v9  ;;  %v4678_v24 = vld [vmem:[#allocation2 + $0x60] sm:$0xff]  ;;  %v5313_v34 = vld [vmem:[%s9284_s0 + $0x10] sm:$0xff]  ;;  %v5318_v35 = vld [vmem:[%s9284_s0 + $0x8] sm:$0x3]  ;;  %9504 = vst [vmem:[#allocation12_spill] sm:$0xff] %v5321_v36  ;;  %v108_v43 = vrot.slane %v5293_v30, 1  ;;  %v73_v58 = vpack.c.bf16 %v5293_v30, %v5293_v30 }
   0xe   :  { %9500 = vst [vmem:[#allocation8_spill] sm:$0xff] %v5261_v18  ;;  %1396 = vrot.lane.b32.xlu2 %v5261_v18, %s5138_s27  ;;  %v1356_v25 = vmul.f32 0.5, %v5261_v18  ;;  %v5288_v28 = vld [vmem:[%s9284_s0 + $0x40] sm:$0xff]  ;;  %v5328_v38 = vld [vmem:[%s9284_s0 + $0x18] sm:$0x3]  ;;  %v106_v44 = vrot.slane %v5298_v31, 1  ;;  %v69_v4 = vpack.c.bf16 %v5313_v34, %v5313_v34 }
   0xf   :  { %9501 = vst [vmem:[#allocation9_spill] sm:$0xff] %v5263_v19  ;;  %4748 = vmatpush.bf16.msra.mxu2 %v4671_v17  ;;  %896 = vmatpush.bf16.msra.mxu0 %v4671_v17  ;;  %v5308_v33 = vld [vmem:[%s9284_s0] sm:$0xff]  ;;  %v5333_v39 = vld [vmem:[%s9289_s5 + $0x18] sm:$0xff]  ;;  %v105_v42 = vrot.slane %v5288_v28, 1  ;;  %v109_v45 = vrot.slane %v5303_v32, 1  ;;  %v96_v47 = vrot.slane %v5313_v34, 1  ;;  %v72_v57 = vpack.c.bf16 %v5288_v28, %v5288_v28 }
  0x10   :  { %9502 = vst [vmem:[#allocation10_spill] sm:$0xff] %v5265_v20  ;;  %4756 = vmatpush.bf16.msra.mxu3 %v4679_v22  ;;  %v5323_v37 = vadd.f32 %v1356_v25, %v1305_v14  ;;  %v4581_v40 = vld [vmem:[%s9289_s5 + $0x98] sm:$0xff]  ;;  %v93_v46 = vrot.slane %v5308_v33, 1  ;;  %v94_v48 = vrot.slane %v5318_v35, 1  ;;  %v97_v49 = vrot.slane %v5328_v38, 1  ;;  %v4668_v51 = vld [vmem:[#allocation2 + $0x10] sm:$0xff] }
  0x11   :  { %1406 = vrot.lane.b32.xlu1 %v5259_v16, %s5138_s27  ;;  %1404 = vrot.lane.b32.xlu0 %v5268_v21, %s5138_s27  ;;  %v4677_v41 = vld [vmem:[#allocation2 + $0x58] sm:$0xff]  ;;  %v5347_v50 = vsub.f32 %v4581_v40, %v5333_v39  ;;  %v4676_v52 = vld [vmem:[#allocation2 + $0x50] sm:$0xff]  ;;  %v107_v54 = vsel %vm92_vm0, %v105_v42, %v106_v44  ;;  %v110_v55 = vsel %vm92_vm0, %v108_v43, %v109_v45  ;;  %v5359_v56 = vld [vmem:[%s9291_s7] sm:$0x3]  ;;  %v5384_v14 = vunpack.c.l.b16 %v72_v57 }
  0x12   :  { %925 = vmatpush.bf16.msra.mxu1 %v4679_v22  ;;  %9505 = vst [vmem:[#allocation13_spill] sm:$0xff] %v5323_v37  ;;  %v95_v59 = vsel %vm92_vm0, %v93_v46, %v94_v48  ;;  %v98_v60 = vsel %vm92_vm0, %v96_v47, %v97_v49  ;;  %v4667_v61 = vld [vmem:[#allocation2 + $0x8] sm:$0xff]  ;;  %v129_v62 = vpack.c.bf16 %v107_v54, %v107_v54  ;;  %v5376_v5 = vld [vmem:[%s9289_s5 + $0x30] sm:$0xff]  ;;  %v5386_v15 = vunpack.c.l.b16 %v73_v58  ;;  %v4666_v0 = vld [vmem:[#allocation2] sm:$0xff] }
  0x13   :  { %4749 = vmatpush.bf16.msra.mxu2 %v4670_v23  ;;  %897 = vmatpush.bf16.msra.mxu0 %v4670_v23  ;;  %9506 = vst [vmem:[#allocation14_spill] sm:$0xff] %v5347_v50  ;;  %v130_v63 = vpack.c.bf16 %v110_v55, %v110_v55  ;;  %v68_v1 = vpack.c.bf16 %v5308_v33, %v5308_v33  ;;  %v4584_v6 = vld [vmem:[%s9289_s5 + $0xb0] sm:$0xff]  ;;  %v4675_v9 = vld [vmem:[#allocation2 + $0x48] sm:$0xff]  ;;  %v1360_v17 = vmul.f32 0.5, %v5268_v21  ;;  %v5397_v27 = vunpack.c.l.b16 %v69_v4  ;;  %v4674_v40 = vld [vmem:[#allocation2 + $0x40] sm:$0xff] }
  0x14   :  { %4757 = vmatpush.bf16.msra.mxu3 %v4678_v24  ;;  %9507 = vst [vmem:[#allocation15_spill] sm:$0xff] %v5382_v8  ;;  %v125_v11 = vpack.c.bf16 %v95_v59, %v95_v59  ;;  %v126_v13 = vpack.c.bf16 %v98_v60, %v98_v60  ;;  %v5390_v22 = vsub.f32 %v4584_v6, %v5376_v5  ;;  %v5393_v23 = vunpack.c.l.b16 %v129_v62  ;;  %v5411_v44 = vld [vmem:[%s9284_s0 + $0x70] sm:$0xff]  ;;  %v5416_v45 = vld [vmem:[%s9284_s0 + $0x68] sm:$0x3]  ;;  %v5421_v46 = vld [vmem:[%s9284_s0 + $0x78] sm:$0x3] }
  0x15   :  { %v208_v25 = vunpack.c.l.b16 %v68_v1  ;;  %v5425_v47 = vpack.c.b16 %v5386_v15, %v5384_v14  ;;  %v4697_v48 = vld [vmem:[#allocation2 + $0xf8] sm:$0xff]  ;;  %v5440_v54 = vadd.f32 %v1360_v17, %v5247_v12  ;;  %v5446_v57 = vld [vmem:[%s9284_s0 + $0x30] sm:$0xff]  ;;  %v5451_v58 = vld [vmem:[%s9284_s0 + $0x28] sm:$0x3]  ;;  %v1357_v12 = vmul.f32 0.5, %v5230_v7 }
  0x16   :  { %926 = vmatpush.bf16.msra.mxu1 %v4678_v24  ;;  %1402 = vrot.lane.b32.xlu2 %v5347_v50, %s5138_s27  ;;  %9508 = vst [vmem:[#allocation16_spill] sm:$0xff] %v5390_v22  ;;  %v5395_v24 = vunpack.c.l.b16 %v130_v63  ;;  %v232_v42 = vunpack.c.l.b16 %v125_v11  ;;  %v5406_v43 = vunpack.c.l.b16 %v126_v13  ;;  %v4705_v49 = vld [vmem:[#allocation2 + $0x138] sm:$0xff]  ;;  %v114_v60 = vrot.slane %v5411_v44, 1  ;;  %v4688_v4 = vld [vmem:[#allocation2 + $0xb0] sm:$0xff]  ;;  %v4699_v19 = vld [vmem:[#allocation2 + $0x108] sm:$0xff] }
  0x17   :  { %4750 = vmatpush.bf16.msra.mxu2 %v4669_v29  ;;  %898 = vmatpush.bf16.msra.mxu0 %v4669_v29  ;;  %v5402_v29 = vld [vmem:[%s9284_s0 + $0x60] sm:$0xff]  ;;  %9510 = vst [vmem:[#allocation18_spill] sm:$0xff] %v5440_v54  ;;  %v216_v55 = vpack.c.b16 %v5397_v27, %v208_v25  ;;  %v5456_v59 = vld [vmem:[%s9284_s0 + $0x38] sm:$0x3]  ;;  %v115_v62 = vrot.slane %v5421_v46, 1  ;;  %v1361_v63 = vmul.f32 0.5, %v5259_v16  ;;  %v1993_v20 = vfloor.f32 %v5359_v56 }
  0x18   :  { %4758 = vmatpush.bf16.msra.mxu3 %v4677_v41  ;;  %v5437_v53 = vpack.c.b16 %v5395_v24, %v5393_v23  ;;  %v240_v1 = vpack.c.b16 %v5406_v43, %v232_v42  ;;  %v4696_v6 = vld [vmem:[#allocation2 + $0xf0] sm:$0xff]  ;;  %v102_v13 = vrot.slane %v5446_v57, 1  ;;  %v100_v17 = vrot.slane %v5451_v58, 1 }
  0x19   :  { %1436 = vrot.lane.b32.xlu1 %v5323_v37, %s5138_s27  ;;  %1410 = vrot.lane.b32.xlu0 %v5321_v36, %s5138_s27  ;;  %v103_v25 = vrot.slane %v5456_v59, 1  ;;  %vm1992_vm2 = vcmp.ge.f32.partialorder %v5359_v56, 0.0 }
  0x1a   :  { %927 = vmatpush.bf16.msra.mxu1 %v4677_v41  ;;  %v4689_v41 = vld [vmem:[#allocation2 + $0xb8] sm:$0xff]  ;;  %9509 = vst [vmem:[#allocation17_spill] sm:$0xff] %v5437_v53 }
  0x1b   :  { %4751 = vmatpush.bf16.msra.mxu2 %v4668_v51  ;;  %899 = vmatpush.bf16.msra.mxu0 %v4668_v51  ;;  %v111_v51 = vrot.slane %v5402_v29, 1 }
  0x1c   :  { %4759 = vmatpush.bf16.msra.mxu3 %v4676_v52 }
  0x1e   :  { %928 = vmatpush.bf16.msra.mxu1 %v4676_v52  ;;  %1408 = vrot.lane.b32.xlu2 %v5390_v22, %s5138_s27  ;;  %v5433_v52 = vld [vmem:[%s9284_s0 + $0x20] sm:$0xff] }
  0x1f   :  { %4752 = vmatpush.bf16.msra.mxu2 %v4667_v61  ;;  %900 = vmatpush.bf16.msra.mxu0 %v4667_v61  ;;  %v112_v61 = vrot.slane %v5416_v45, 1  ;;  %v99_v11 = vrot.slane %v5433_v52, 1 }
  0x20   :  { %4760 = vmatpush.bf16.msra.mxu3 %v4675_v9 }
  0x21   :  { %1997 = vrot.lane.b32.xlu1 %v5359_v56, %s5139_s30  ;;  %1440 = vrot.lane.b32.xlu0 %v5382_v8, %s5138_s27  ;;  %v113_v42 = vsel %vm92_vm0, %v111_v51, %v112_v61  ;;  %v5479_v8 = vadd.f32 %v1361_v63, %v5239_v10  ;;  %v101_v51 = vsel %vm92_vm0, %v99_v11, %v100_v17  ;;  %v4703_v10 = vld [vmem:[#allocation2 + $0x128] sm:$0xff]  ;;  %v1359_v63 = vmul.f32 0.5, %v5347_v50  ;;  %v5502_v17 = vld [vmem:[%s9289_s5 + $0x40] sm:$0xff]  ;;  %s5145_s30 = smov 15  }
  0x22   :  { %929 = vmatpush.bf16.msra.mxu1 %v4675_v9  ;;  %v4713_v9 = vld [vmem:[#allocation2 + $0x178] sm:$0xff]  ;;  %v131_v61 = vpack.c.bf16 %v113_v42, %v113_v42  ;;  %v127_v11 = vpack.c.bf16 %v101_v51, %v101_v51  ;;  %v4711_v42 = vld [vmem:[#allocation2 + $0x168] sm:$0xff] }
  0x23   :  { %4753 = vmatpush.bf16.msra.mxu2 %v4666_v0  ;;  %901 = vmatpush.bf16.msra.mxu0 %v4666_v0  ;;  %v4704_v0 = vld [vmem:[#allocation2 + $0x130] sm:$0xff]  ;;  %9512 = vst [vmem:[#allocation20_spill] sm:$0xff] %v5479_v8 }
  0x24   :  { %4761 = vmatpush.bf16.msra.mxu3 %v4674_v40 }
  0x26   :  { %930 = vmatpush.bf16.msra.mxu1 %v4674_v40  ;;  %912 = vmatmul.bf16.vlgmr.msra.gmra.mxu2 %v5425_v47  ;;  %v5471_v40 = vadd.f32 %v1357_v12, %v5221_v2  ;;  %v74_v2 = vpack.c.bf16 %v5402_v29, %v5402_v29  ;;  %v4695_v12 = vld [vmem:[#allocation2 + $0xe8] sm:$0xff] }
  0x27   :  { %952 = vmatpush.bf16.msrb.mxu2 %v4689_v41  ;;  %941 = vmatmul.bf16.vlgmr.msra.gmra.mxu3 %v5437_v53  ;;  %v1363_v41 = vmul.f32 0.5, %v5321_v36  ;;  %v143_v53 = vrot.slane %v5446_v57, 2 }
  0x28   :  { %981 = vmatpush.bf16.msrb.mxu3 %v4697_v48  ;;  %1010 = vmatpush.bf16.msrb.mxu0 %v4705_v49  ;;  %9511 = vst [vmem:[#allocation19_spill] sm:$0xff] %v5471_v40  ;;  %v116_v48 = vsel %vm92_vm0, %v114_v60, %v115_v62  ;;  %v4687_v49 = vld [vmem:[#allocation2 + $0xa8] sm:$0xff]  ;;  %v104_v60 = vsel %vm92_vm0, %v102_v13, %v103_v25  ;;  %v4694_v25 = vld [vmem:[#allocation2 + $0xe0] sm:$0xff] }
  0x29   :  { %1444 = vrot.lane.b32.xlu0 %v5440_v54, %s5138_s27  ;;  %902 = vmatmul.bf16.vlgmr.msra.gmra.mxu0 %v216_v55  ;;  %v75_v55 = vpack.c.bf16 %v5411_v44, %v5411_v44  ;;  %v4712_v54 = vld [vmem:[#allocation2 + $0x170] sm:$0xff]  ;;  %v132_v62 = vpack.c.bf16 %v116_v48, %v116_v48  ;;  %v128_v13 = vpack.c.bf16 %v104_v60, %v104_v60  ;;  %v4702_v48 = vld [vmem:[#allocation2 + $0x120] sm:$0xff] }
  0x2a   :  { %931 = vmatmul.bf16.vlgmr.msra.gmra.mxu1 %v240_v1  ;;  %1438 = vrot.lane.b32.xlu2 %v5471_v40, %s5138_s27  ;;  %v5491_v1 = vadd.f32 %v1363_v41, %v5280_v26  ;;  %v4586_v26 = vld [vmem:[%s9289_s5 + $0xc0] sm:$0xff]  ;;  %v5516_v60 = vadd.f32 %v1359_v63, %v5333_v39  ;;  %v4588_v39 = vld [vmem:[%s9289_s5 + $0xd0] sm:$0xff]  ;;  %v134_v63 = vrot.slane %v5308_v33, 2  ;;  %v1362_v33 = vmul.f32 0.5, %v5390_v22 }
  0x2b   :  { %953 = vmatpush.bf16.msrb.mxu2 %v4688_v4  ;;  %1039 = vmatpush.bf16.msrb.mxu1 %v4713_v9  ;;  %v70_v4 = vpack.c.bf16 %v5433_v52, %v5433_v52  ;;  %v4686_v9 = vld [vmem:[#allocation2 + $0xa0] sm:$0xff]  ;;  %v5509_v41 = vunpack.c.l.b16 %v75_v55  ;;  %v5513_v51 = vunpack.c.l.b16 %v132_v62  ;;  %v5525_v55 = vsub.f32 %v4586_v26, %v5502_v17 }
  0x2c   :  { %982 = vmatpush.bf16.msrb.mxu3 %v4696_v6  ;;  %1011 = vmatpush.bf16.msrb.mxu0 %v4704_v0  ;;  %9513 = vst [vmem:[#allocation21_spill] sm:$0xff] %v5491_v1  ;;  %v71_v6 = vpack.c.bf16 %v5446_v57, %v5446_v57  ;;  %v5507_v0 = vunpack.c.l.b16 %v74_v2  ;;  %v5537_v62 = vunpack.c.l.b16 %v128_v13  ;;  %v135_v26 = vrot.slane %v5318_v35, 2  ;;  %v4701_v13 = vld [vmem:[#allocation2 + $0x118] sm:$0xff]  ;;  %v4736_v57 = vld [vmem:[#allocation2 + $0x230] sm:$0xff] }
  0x2d   :  { %1446 = vrot.lane.b32.xlu1 %v5479_v8, %s5138_s27  ;;  %9514 = vst [vmem:[#allocation22_spill] sm:$0xff] %v5516_v60  ;;  %v5580_v8 = vadd.f32 %v1362_v33, %v5376_v5  ;;  %v4691_v5 = vld [vmem:[#allocation2 + $0xc8] sm:$0xff]  ;;  %v140_v33 = vrot.slane %v5433_v52, 2 }
  0x2e   :  { %v5522_v2 = vunpack.c.l.b16 %v71_v6  ;;  %9515 = vst [vmem:[#allocation23_spill] sm:$0xff] %v5525_v55  ;;  %v5543_v6 = vpack.c.b16 %v5509_v41, %v5507_v0  ;;  %v136_v40 = vsel %vm133_vm1, %v134_v63, %v135_v26  ;;  %v1994_v63 = vceil.f32 %v5359_v56 }
  0x2f   :  { %954 = vmatpush.bf16.msrb.mxu2 %v4687_v49  ;;  %1040 = vmatpush.bf16.msrb.mxu1 %v4712_v54  ;;  %v5511_v49 = vunpack.c.l.b16 %v131_v61  ;;  %v4685_v54 = vld [vmem:[#allocation2 + $0x98] sm:$0xff]  ;;  %v5535_v61 = vunpack.c.l.b16 %v127_v11  ;;  %9519 = vst [vmem:[#allocation27_spill] sm:$0xff] %v5580_v8 }
  0x30   :  { %983 = vmatpush.bf16.msrb.mxu3 %v4695_v12  ;;  %1012 = vmatpush.bf16.msrb.mxu0 %v4703_v10  ;;  %v5520_v12 = vunpack.c.l.b16 %v70_v4  ;;  %v5530_v10 = vld [vmem:[%s9289_s5 + $0x50] sm:$0xff]  ;;  %v137_v4 = vrot.slane %v5313_v34, 2  ;;  %9516 = vst [vmem:[#allocation24_spill] sm:$0xff] %v5543_v6 }
  0x31   :  { %1450 = vrot.lane.b32.xlu0 %v5491_v1, %s5138_s27  ;;  %v138_v1 = vrot.slane %v5328_v38, 2  ;;  %v5549_v11 = vpack.c.b16 %v5513_v51, %v5511_v49  ;;  %v5555_v34 = vsub.f32 %v4588_v39, %v5530_v10  ;;  %v5565_v35 = vpack.c.b16 %v5537_v62, %v5535_v61  ;;  %v4684_v38 = vld [vmem:[#allocation2 + $0x90] sm:$0xff] }
  0x32   :  { %1442 = vrot.lane.b32.xlu2 %v5516_v60, %s5138_s27  ;;  %v4692_v39 = vld [vmem:[#allocation2 + $0xd0] sm:$0xff]  ;;  %v4710_v60 = vld [vmem:[#allocation2 + $0x160] sm:$0xff] }
  0x33   :  { %955 = vmatpush.bf16.msrb.mxu2 %v4686_v9  ;;  %v4693_v9 = vld [vmem:[#allocation2 + $0xd8] sm:$0xff]  ;;  %1041 = vmatpush.bf16.msrb.mxu1 %v4711_v42  ;;  %9517 = vst [vmem:[#allocation25_spill] sm:$0xff] %v5549_v11  ;;  %v139_v37 = vsel %vm133_vm1, %v137_v4, %v138_v1  ;;  %v166_v4 = vpack.c.bf16 %v136_v40, %v136_v40  ;;  %v4587_v40 = vld [vmem:[%s9289_s5 + $0xc8] sm:$0xff] }
  0x34   :  { %984 = vmatpush.bf16.msrb.mxu3 %v4694_v25  ;;  %1013 = vmatpush.bf16.msrb.mxu0 %v4702_v48  ;;  %9518 = vst [vmem:[#allocation26_spill] sm:$0xff] %v5555_v34  ;;  %v5559_v25 = vpack.c.b16 %v5522_v2, %v5520_v12  ;;  %v5570_v42 = vld [vmem:[%s9289_s5 + $0x58] sm:$0xff]  ;;  %v167_v26 = vpack.c.bf16 %v139_v37, %v139_v37  ;;  %v4571_v37 = vld [vmem:[%s9289_s5 + $0x48] sm:$0xff] }
  0x35   :  { %1476 = vrot.lane.b32.xlu1 %v5525_v55, %s5140_s15  ;;  %v4589_v48 = vld [vmem:[%s9289_s5 + $0xd8] sm:$0xff]  ;;  %v256_v52 = vunpack.c.l.b16 %v166_v4 }
  0x36   :  { %917 = vmatmul.bf16.gmra.mxu2 %v5543_v6  ;;  %v4709_v1 = vld [vmem:[#allocation2 + $0x158] sm:$0xff] }
  0x37   :  { %956 = vmatpush.bf16.msrb.mxu2 %v4685_v54  ;;  %946 = vmatmul.bf16.gmra.mxu3 %v5549_v11  ;;  %v4700_v54 = vld [vmem:[#allocation2 + $0x110] sm:$0xff]  ;;  %v4721_v11 = vld [vmem:[#allocation2 + $0x1b8] sm:$0xff] }
  0x38   :  { %985 = vmatpush.bf16.msrb.mxu3 %v4693_v9  ;;  %1014 = vmatpush.bf16.msrb.mxu0 %v4701_v13  ;;  %v5586_v9 = vsub.f32 %v4589_v48, %v5570_v42  ;;  %v4683_v13 = vld [vmem:[#allocation2 + $0x88] sm:$0xff]  ;;  %v141_v48 = vrot.slane %v5451_v58, 2  ;;  %v5603_v58 = vunpack.c.l.b16 %v167_v26  ;;  %v4737_v4 = vld [vmem:[#allocation2 + $0x238] sm:$0xff]  ;;  %v5619_v26 = vsub.f32 %v4587_v40, %v4571_v37 }
  0x39   :  { %1480 = vrot.lane.b32.xlu0 %v5555_v34, %s5140_s15  ;;  %907 = vmatmul.bf16.gmra.mxu0 %v5559_v25  ;;  %v284_v40 = vpack.c.b16 %v5535_v61, %v5406_v43  ;;  %v4590_v43 = vld [vmem:[%s9289_s5 + $0xe0] sm:$0xff] }
  0x3a   :  { %9520 = vst [vmem:[#allocation28_spill] sm:$0xff] %v5586_v9  ;;  %936 = vmatmul.bf16.gmra.mxu1 %v5565_v35  ;;  %1448 = vrot.lane.b32.xlu2 %v5580_v8, %s5138_s27  ;;  %v264_v6 = vpack.c.b16 %v5603_v58, %v256_v52  ;;  %v4719_v52 = vld [vmem:[#allocation2 + $0x1a8] sm:$0xff] }
  0x3b   :  { %957 = vmatpush.bf16.msrb.mxu2 %v4684_v38  ;;  %1042 = vmatpush.bf16.msrb.mxu1 %v4710_v60  ;;  %v4682_v38 = vld [vmem:[#allocation2 + $0x80] sm:$0xff]  ;;  %9521 = vst [vmem:[#allocation29_spill] sm:$0xff] %v5619_v26 }
  0x3c   :  { %986 = vmatpush.bf16.msrb.mxu3 %v4692_v39  ;;  %1015 = vmatpush.bf16.msrb.mxu0 %v4700_v54  ;;  %v5598_v39 = vsel %vm1992_vm2, %v1993_v20, %v1994_v63  ;;  %v4690_v60 = vld [vmem:[#allocation2 + $0xc0] sm:$0xff]  ;;  %v5611_v20 = vld [vmem:[%s9289_s5 + $0x68] sm:$0xff]  ;;  %v4708_v63 = vld [vmem:[#allocation2 + $0x150] sm:$0xff] }
  0x3d   :  { %1482 = vrot.lane.b32.xlu1 %v5586_v9, %s5140_s15  ;;  %v4591_v54 = vld [vmem:[%s9289_s5 + $0xe8] sm:$0xff] }
  0x3e   :  { %v5622_v8 = vsub.f32 %v4591_v54, %v5611_v20  ;;  %v4720_v54 = vld [vmem:[#allocation2 + $0x1b0] sm:$0xff] }
  0x3f   :  { %958 = vmatpush.bf16.msrb.mxu2 %v4683_v13  ;;  %1043 = vmatpush.bf16.msrb.mxu1 %v4709_v1  ;;  %v4698_v13 = vld [vmem:[#allocation2 + $0x100] sm:$0xff]  ;;  %v4729_v1 = vld [vmem:[#allocation2 + $0x1f8] sm:$0xff] }
  0x40   :  { %987 = vmatpush.bf16.msrb.mxu3 %v4691_v5  ;;  %1016 = vmatpush.bf16.msrb.mxu0 %v4699_v19  ;;  %v142_v5 = vsel %vm133_vm1, %v140_v33, %v141_v48  ;;  %9522 = vst [vmem:[#allocation30_spill] sm:$0xff] %v5622_v8  ;;  %v274_v33 = vpack.c.b16 %v5520_v12, %v5397_v27  ;;  %v4707_v48 = vld [vmem:[#allocation2 + $0x148] sm:$0xff]  ;;  %v4706_v12 = vld [vmem:[#allocation2 + $0x140] sm:$0xff] }
  0x41   :  { %2014 = vrot.lane.b32.xlu0 %v5598_v39, %s5141_s28  ;;  %v168_v19 = vpack.c.bf16 %v142_v5, %v142_v5 }
  0x42   :  { %1478 = vrot.lane.b32.xlu2 %v5619_v26, %s5140_s15 }
  0x43   :  { %959 = vmatpush.bf16.msrb.mxu2 %v4682_v38  ;;  %1044 = vmatpush.bf16.msrb.mxu1 %v4708_v63  ;;  %v144_v38 = vrot.slane %v5456_v59, 2  ;;  %v258_v27 = vunpack.c.l.b16 %v168_v19  ;;  %v5638_v59 = vld [vmem:[%s9289_s5 + $0x60] sm:$0xff]  ;;  %v4727_v63 = vld [vmem:[#allocation2 + $0x1e8] sm:$0xff] }
  0x44   :  { %988 = vmatpush.bf16.msrb.mxu3 %v4690_v60  ;;  %1017 = vmatpush.bf16.msrb.mxu0 %v4698_v13  ;;  %v4728_v60 = vld [vmem:[#allocation2 + $0x1f0] sm:$0xff]  ;;  %v1373_v13 = vmul.f32 0.5, %v5619_v26  ;;  %v5654_v5 = vsub.f32 %v4590_v43, %v5638_v59  ;;  %v4717_v43 = vld [vmem:[#allocation2 + $0x198] sm:$0xff] }
  0x45   :  { %1486 = vrot.lane.b32.xlu1 %v5622_v8, %s5140_s15  ;;  %v145_v61 = vsel %vm133_vm1, %v143_v53, %v144_v38  ;;  %v294_v53 = vpack.c.b16 %v258_v27, %v5603_v58  ;;  %v147_v38 = vrot.slane %v5298_v31, 2  ;;  %v4726_v58 = vld [vmem:[#allocation2 + $0x1e0] sm:$0xff]  ;;  %v5678_v31 = vld [vmem:[%s9289_s5 + $0xf0] sm:$0xff] }
  0x46   :  { %960 = vmatmul.bf16.vlgmr.msrb.gmra.mxu2 %v264_v6  ;;  %v4593_v6 = vld [vmem:[%s9289_s5 + $0xf8] sm:$0xff]  ;;  %9523 = vst [vmem:[#allocation31_spill] sm:$0xff] %v5654_v5  ;;  %v5660_v19 = vadd.f32 %v4571_v37, %v1373_v13  ;;  %v1374_v37 = vmul.f32 0.5, %v5555_v34 }
  0x47   :  { %1068 = vmatpush.bf16.msra.mxu2 %v4721_v11  ;;  %989 = vmatmul.bf16.vlgmr.msrb.gmra.mxu3 %v274_v33  ;;  %v5647_v11 = vld [vmem:[%s9289_s5 + $0x78] sm:$0xff]  ;;  %v146_v33 = vrot.slane %v5288_v28, 2  ;;  %v5673_v28 = vld [vmem:[%s9289_s5 + $0x70] sm:$0xff] }
  0x48   :  { %1097 = vmatpush.bf16.msra.mxu3 %v4729_v1  ;;  %1126 = vmatpush.bf16.msra.mxu0 %v4737_v4  ;;  %v169_v1 = vpack.c.bf16 %v145_v61, %v145_v61  ;;  %v5658_v4 = vsub.f32 %v4593_v6, %v5647_v11  ;;  %9525 = vst [vmem:[#allocation33_spill] sm:$0xff] %v5660_v19  ;;  %v4725_v61 = vld [vmem:[#allocation2 + $0x1d8] sm:$0xff] }
  0x49   :  { %1045 = vmatpush.bf16.msrb.mxu1 %v4707_v48  ;;  %1018 = vmatmul.bf16.vlgmr.msrb.gmra.mxu0 %v284_v40  ;;  %v4735_v48 = vld [vmem:[#allocation2 + $0x228] sm:$0xff]  ;;  %v4718_v40 = vld [vmem:[#allocation2 + $0x1a0] sm:$0xff]  ;;  %v5689_v13 = vadd.f32 %v5530_v10, %v1374_v37  ;;  %v1372_v10 = vmul.f32 0.5, %v5525_v55 }
  0x4a   :  { %9524 = vst [vmem:[#allocation32_spill] sm:$0xff] %v5658_v4  ;;  %1518 = vrot.lane.b32.xlu0 %v5660_v19, %s5140_s15  ;;  %1484 = vrot.lane.b32.xlu2 %v5654_v5, %s5140_s15  ;;  %v4723_v37 = vld [vmem:[#allocation2 + $0x1c8] sm:$0xff] }
  0x4b   :  { %1069 = vmatpush.bf16.msra.mxu2 %v4720_v54  ;;  %v259_v54 = vunpack.c.l.b16 %v169_v1  ;;  %9527 = vst [vmem:[#allocation35_spill] sm:$0xff] %v5689_v13  ;;  %v150_v1 = vrot.slane %v5303_v32, 2  ;;  %v1377_v32 = vmul.f32 0.5, %v5622_v8 }
  0x4c   :  { %1098 = vmatpush.bf16.msra.mxu3 %v4728_v60  ;;  %1127 = vmatpush.bf16.msra.mxu0 %v4736_v57  ;;  %v148_v60 = vsel %vm133_vm1, %v146_v33, %v147_v38  ;;  %v4734_v57 = vld [vmem:[#allocation2 + $0x220] sm:$0xff]  ;;  %v4733_v33 = vld [vmem:[#allocation2 + $0x218] sm:$0xff]  ;;  %v4716_v38 = vld [vmem:[#allocation2 + $0x190] sm:$0xff] }
  0x4d   :  { %1046 = vmatpush.bf16.msrb.mxu1 %v4706_v12  ;;  %1490 = vrot.lane.b32.xlu1 %v5658_v4, %s5140_s15  ;;  %v5684_v12 = vsub.f32 %v5678_v31, %v5673_v28  ;;  %v5686_v6 = vpack.c.b16 %v259_v54, %v258_v27  ;;  %v4724_v27 = vld [vmem:[#allocation2 + $0x1d0] sm:$0xff] }
  0x4f   :  { %1070 = vmatpush.bf16.msra.mxu2 %v4719_v52  ;;  %9526 = vst [vmem:[#allocation34_spill] sm:$0xff] %v5684_v12  ;;  %v170_v52 = vpack.c.bf16 %v148_v60, %v148_v60 }
  0x50   :  { %1099 = vmatpush.bf16.msra.mxu3 %v4727_v63  ;;  %1047 = vmatmul.bf16.vlgmr.msrb.gmra.mxu1 %v294_v53  ;;  %v149_v63 = vrot.slane %v5293_v30, 2  ;;  %v275_v53 = vpack.c.b16 %v5384_v14, %v5522_v2  ;;  %v1376_v30 = vmul.f32 0.5, %v5654_v5 }
  0x51   :  { %1128 = vmatpush.bf16.msra.mxu0 %v4735_v48  ;;  %v285_v48 = vpack.c.b16 %v5393_v23, %v5537_v62  ;;  %v260_v14 = vunpack.c.l.b16 %v170_v52  ;;  %v4715_v62 = vld [vmem:[#allocation2 + $0x188] sm:$0xff]  ;;  %v153_v52 = vrot.slane %v5416_v45, 2 }
  0x52   :  { %1488 = vrot.lane.b32.xlu2 %v5684_v12, %s5140_s15  ;;  %v151_v23 = vsel %vm133_vm1, %v149_v63, %v150_v1  ;;  %v5707_v2 = vadd.f32 %v5638_v59, %v1376_v30  ;;  %v1379_v59 = vmul.f32 0.5, %v5658_v4  ;;  %v4731_v63 = vld [vmem:[#allocation2 + $0x208] sm:$0xff]  ;;  %v156_v30 = vrot.slane %v5421_v46, 2 }
  0x53   :  { %1071 = vmatpush.bf16.msra.mxu2 %v4718_v40  ;;  %v4732_v40 = vld [vmem:[#allocation2 + $0x210] sm:$0xff]  ;;  %v295_v60 = vpack.c.b16 %v260_v14, %v259_v54 }
  0x54   :  { %1100 = vmatpush.bf16.msra.mxu3 %v4726_v58  ;;  %9528 = vst [vmem:[#allocation36_spill] sm:$0xff] %v5707_v2  ;;  %v5710_v58 = vadd.f32 %v5502_v17, %v1372_v10  ;;  %1524 = vrot.lane.b32.xlu0 %v5707_v2, %s5140_s15  ;;  %v4714_v17 = vld [vmem:[#allocation2 + $0x180] sm:$0xff]  ;;  %v5724_v54 = vadd.f32 %v5647_v11, %v1379_v59  ;;  %v4743_v2 = vld [vmem:[%s9287_s3 + $0x28] sm:$0xff] }
  0x55   :  { %1129 = vmatpush.bf16.msra.mxu0 %v4734_v57  ;;  %1520 = vrot.lane.b32.xlu1 %v5689_v13, %s5140_s15  ;;  %v171_v57 = vpack.c.bf16 %v151_v23, %v151_v23  ;;  %v4730_v10 = vld [vmem:[#allocation2 + $0x200] sm:$0xff] }
  0x56   :  { %965 = vmatmul.bf16.gmra.mxu2 %v5686_v6  ;;  %9529 = vst [vmem:[#allocation37_spill] sm:$0xff] %v5710_v58 }
  0x57   :  { %1072 = vmatpush.bf16.msra.mxu2 %v4717_v43  ;;  %994 = vmatmul.bf16.gmra.mxu3 %v275_v53  ;;  %v5715_v43 = vadd.f32 %v5611_v20, %v1377_v32  ;;  %v1375_v53 = vmul.f32 0.5, %v5586_v9  ;;  %9531 = vst [vmem:[#allocation39_spill] sm:$0xff] %v5724_v54  ;;  %v4722_v20 = vld [vmem:[#allocation2 + $0x1c0] sm:$0xff]  ;;  %v261_v1 = vunpack.c.l.b16 %v171_v57 }
  0x58   :  { %1101 = vmatpush.bf16.msra.mxu3 %v4725_v61  ;;  %v152_v61 = vrot.slane %v5402_v29, 2 }
  0x59   :  { %1130 = vmatpush.bf16.msra.mxu0 %v4733_v33  ;;  %9530 = vst [vmem:[#allocation38_spill] sm:$0xff] %v5715_v43  ;;  %v5730_v45 = vadd.f32 %v5570_v42, %v1375_v53  ;;  %v5734_v33 = vpack.c.b16 %v261_v1, %v260_v14  ;;  %v276_v42 = vpack.c.b16 %v5507_v0, %v5386_v15 }
  0x5a   :  { %1023 = vmatmul.bf16.gmra.mxu0 %v285_v48  ;;  %1516 = vrot.lane.b32.xlu2 %v5710_v58, %s5140_s15  ;;  %v154_v29 = vsel %vm133_vm1, %v152_v61, %v153_v52  ;;  %v64_v48 = vld [vmem:[%s9284_s0 + $0x80] sm:$0xff]  ;;  %v286_v14 = vpack.c.b16 %v5511_v49, %v5395_v24 }
  0x5b   :  { %1073 = vmatpush.bf16.msra.mxu2 %v4716_v38  ;;  %9532 = vst [vmem:[#allocation40_spill] sm:$0xff] %v5730_v45  ;;  %v172_v11 = vpack.c.bf16 %v154_v29, %v154_v29  ;;  %v65_v38 = vld [vmem:[%s9284_s0 + $0x88] sm:$0x3]  ;;  %v177_v32 = vrot.slane %v64_v48, 1 }
  0x5c   :  { %1102 = vmatpush.bf16.msra.mxu3 %v4724_v27  ;;  %1530 = vrot.lane.b32.xlu0 %v5724_v54, %s5140_s15  ;;  %v155_v27 = vrot.slane %v5411_v44, 2  ;;  %v178_v23 = vrot.slane %v65_v38, 1  ;;  %v183_v57 = vrot.slane %v65_v38, 2 }
  0x5d   :  { %1131 = vmatpush.bf16.msra.mxu0 %v4732_v40  ;;  %1526 = vrot.lane.b32.xlu1 %v5715_v43, %s5140_s15  ;;  %v262_v40 = vunpack.c.l.b16 %v172_v11 }
  0x5e   :  { %v157_v15 = vsel %vm133_vm1, %v155_v27, %v156_v30  ;;  %v179_v24 = vsel %vm92_vm0, %v177_v32, %v178_v23 }
  0x5f   :  { %1074 = vmatpush.bf16.msra.mxu2 %v4715_v62  ;;  %v1378_v62 = vmul.f32 0.5, %v5684_v12  ;;  %v296_v46 = vpack.c.b16 %v262_v40, %v261_v1  ;;  %v173_v0 = vpack.c.bf16 %v157_v15, %v157_v15  ;;  %v181_v59 = vpack.c.bf16 %v179_v24, %v179_v24 }
  0x60   :  { %1103 = vmatpush.bf16.msra.mxu3 %v4723_v37  ;;  %1052 = vmatmul.bf16.gmra.mxu1 %v295_v60  ;;  %v174_v37 = vpack.c.bf16 %v64_v48, %v64_v48  ;;  %v182_v60 = vrot.slane %v64_v48, 2 }
  0x61   :  { %1132 = vmatpush.bf16.msra.mxu0 %v4731_v63  ;;  %v5757_v44 = vadd.f32 %v5673_v28, %v1378_v62  ;;  %v263_v61 = vunpack.c.l.b16 %v173_v0 }
  0x62   :  { %1522 = vrot.lane.b32.xlu2 %v5730_v45, %s5140_s15  ;;  %v5767_v52 = vunpack.c.l.b16 %v174_v37  ;;  %v184_v63 = vsel %vm133_vm1, %v182_v60, %v183_v57  ;;  %v66_v37 = vld [vmem:[%s9284_s0 + $0x90] sm:$0xff]  ;;  %v67_v60 = vld [vmem:[%s9284_s0 + $0x98] sm:$0x3]  ;;  %s5146_s0 = smov 127  }
  0x63   :  { %1075 = vmatpush.bf16.msra.mxu2 %v4714_v17  ;;  %9533 = vst [vmem:[#allocation41_spill] sm:$0xff] %v5757_v44  ;;  %v5770_v17 = vunpack.c.l.b16 %v181_v59  ;;  %v267_v53 = vpack.c.b16 %v263_v61, %v262_v40  ;;  %v191_v59 = vrot.slane %v67_v60, 1 }
  0x64   :  { %1104 = vmatpush.bf16.msra.mxu3 %v4722_v20  ;;  %1570 = vrot.lane.b32.xlu0 %v5347_v50, %s5142_s25  ;;  %v186_v20 = vpack.c.bf16 %v184_v63, %v184_v63  ;;  %v277_v1 = vpack.c.b16 %v5767_v52, %v5509_v41  ;;  %v9551_v63 = vld [vmem:[#allocation24_spill] sm:$0xff] }
  0x65   :  { %1133 = vmatpush.bf16.msra.mxu0 %v4730_v10  ;;  %1564 = vrot.lane.b32.xlu1 %v5261_v18, %s5142_s25  ;;  %v287_v29 = vpack.c.b16 %v5770_v17, %v5513_v51 }
  0x66   :  { %970 = vmatmul.bf16.gmra.mxu2 %v5734_v33  ;;  %v5782_v48 = vunpack.c.l.b16 %v186_v20  ;;  %v195_v20 = vrot.slane %v66_v37, 2 }
  0x67   :  { %999 = vmatmul.bf16.gmra.mxu3 %v276_v42 }
  0x68   :  { %v5761_v49 = vpop.permute.xlu2 %1396  ;;  %v297_v41 = vpack.c.b16 %v5782_v48, %v263_v61  ;;  %v5846_v61 = vld [vmem:[%s9286_s2] ss:$0 sm:$0xff] }
  0x69   :  { %9534 = vst [vmem:[#allocation42_spill] sm:$0xff] %v5761_v49 }
  0x6a   :  { %1028 = vmatmul.bf16.gmra.mxu0 %v286_v14  ;;  %1528 = vrot.lane.b32.xlu2 %v5757_v44, %s5140_s15 }
  0x6c   :  { %1576 = vrot.lane.b32.xlu0 %v5390_v22, %s5142_s25 }
  0x6d   :  { %1566 = vrot.lane.b32.xlu1 %v5230_v7, %s5142_s25 }
  0x70   :  { %1057 = vmatmul.bf16.gmra.mxu1 %v296_v46  ;;  %v5778_v11 = vpop.permute.xlu2 %1402 }
  0x71   :  { %9535 = vst [vmem:[#allocation43_spill] sm:$0xff] %v5778_v11 }
  0x72   :  { %1568 = vrot.lane.b32.xlu2 %v5224_v3, %s5142_s25 }
  0x75   :  { %1572 = vrot.lane.b32.xlu1 %v5268_v21, %s5142_s25 }
  0x76   :  { %975 = vmatmul.bf16.gmra.mxu2 %v267_v53 }
  0x77   :  { %1004 = vmatmul.bf16.gmra.mxu3 %v277_v1  ;;  %v196_v1 = vrot.slane %v67_v60, 2 }
  0x78   :  { %v5791_v51 = vpop.permute.xlu2 %1408 }
  0x79   :  { %9538 = vst [vmem:[#allocation46_spill] sm:$0xff] %v5791_v51  ;;  %v197_v43 = vsel %vm133_vm1, %v195_v20, %v196_v1  ;;  %v4741_v51 = vld [vmem:[%s9287_s3 + $0x18] sm:$0xff] }
  0x7a   :  { %1033 = vmatmul.bf16.gmra.mxu0 %v287_v29  ;;  %1574 = vrot.lane.b32.xlu2 %v5259_v16, %s5142_s25  ;;  %v9552_v29 = vld [vmem:[#allocation25_spill] sm:$0xff] }
  0x7b   :  { %v5786_v38 = vpop.permute.xlu1 %1400  ;;  %v5788_v10 = vpop.permute.xlu0 %1398 }
  0x7c   :  { %9536 = vst [vmem:[#allocation44_spill] sm:$0xff] %v5786_v38 }
  0x7d   :  { %9537 = vst [vmem:[#allocation45_spill] sm:$0xff] %v5788_v10  ;;  %1578 = vrot.lane.b32.xlu1 %v5321_v36, %s5142_s25 }
  0x80   :  { %1062 = vmatmul.bf16.gmra.mxu1 %v297_v41 }
  0x83   :  { %v5797_v27 = vpop.permute.xlu1 %1406  ;;  %v5799_v42 = vpop.permute.xlu0 %1404 }
  0x84   :  { %9539 = vst [vmem:[#allocation47_spill] sm:$0xff] %v5797_v27  ;;  %v5801_v30 = vpop.permute.xlu2 %1438 }
  0x85   :  { %9540 = vst [vmem:[#allocation48_spill] sm:$0xff] %v5799_v42 }
  0x86   :  { %9541 = vst [vmem:[#allocation49_spill] sm:$0xff] %v5801_v30  ;;  %1076 = vmatmul.bf16.vlgmr.msra.gmra.mxu2 %v5559_v25 }
  0x87   :  { %1105 = vmatmul.bf16.vlgmr.msra.gmra.mxu3 %v5565_v35 }
  0x8a   :  { %1134 = vmatmul.bf16.vlgmr.msra.gmra.mxu0 %v5686_v6 }
  0x8b   :  { %v5806_v14 = vpop.permute.xlu1 %1436  ;;  %v5808_v32 = vpop.permute.xlu0 %1410 }
  0x8c   :  { %9542 = vst [vmem:[#allocation50_spill] sm:$0xff] %v5806_v14  ;;  %v5810_v23 = vpop.permute.xlu2 %1442 }
  0x8d   :  { %9543 = vst [vmem:[#allocation51_spill] sm:$0xff] %v5808_v32 }
  0x8e   :  { %9544 = vst [vmem:[#allocation52_spill] sm:$0xff] %v5810_v23 }
  0x93   :  { %v1998_v62 = vpop.permute.xlu1 %1997  ;;  %v5812_v40 = vpop.permute.xlu0 %1440 }
  0x94   :  { %9545 = vst [vmem:[#allocation53_spill] sm:$0xff] %v5812_v40  ;;  %v2000_v15 = vsub.f32 %v5359_v56, %v1998_v62  ;;  %v5822_v35 = vpop.permute.xlu2 %1448  ;;  %v9547_v56 = vld [vmem:[#allocation17_spill] sm:$0xff] }
  0x95   :  { %9546 = vst [vmem:[#allocation54_spill] sm:$0xff] %v5822_v35 }
  0x96   :  { %vm2001_vm3 = vcmp.ge.f32.partialorder %v2000_v15, 0.0  ;;  %v2002_v24 = vfloor.f32 %v2000_v15  ;;  %v2003_v46 = vceil.f32 %v2000_v15  ;;  %1081 = vmatmul.bf16.gmra.mxu2 %v5425_v47 }
  0x97   :  { %1110 = vmatmul.bf16.gmra.mxu3 %v9547_v56  ;;  %v187_v56 = vpack.c.bf16 %v66_v37, %v66_v37 }
  0x98   :  { %v5816_v25 = vsel %vm2001_vm3, %v2002_v24, %v2003_v46 }
  0x99   :  { %2118 = vrot.lane.b32.xlu1 %v5816_v25, %s5143_s26  ;;  %2039 = vrot.lane.b32.xlu2 %v5816_v25, %s5141_s28  ;;  %v303_v45 = vunpack.c.l.b16 %v187_v56 }
  0x9a   :  { %2176 = vrot.lane.b32.xlu0 %v5816_v25, %s5144_s29  ;;  %1139 = vmatmul.bf16.gmra.mxu0 %v5734_v33  ;;  %v190_v33 = vrot.slane %v66_v37, 1  ;;  %s5147_s29 = smov 122  }
  0x9b   :  { %v5827_v6 = vpop.permute.xlu0 %1444  ;;  %v304_v1 = vpack.c.b16 %v303_v45, %v5767_v52 }
  0x9c   :  { %9548 = vst [vmem:[#allocation17_spill] sm:$0xff] %v5827_v6  ;;  %v5831_v47 = vpop.permute.xlu2 %1478  ;;  %v192_v62 = vsel %vm92_vm0, %v190_v33, %v191_v59 }
  0x9d   :  { %9549 = vst [vmem:[#allocation55_spill] sm:$0xff] %v5831_v47  ;;  %v194_v58 = vpack.c.bf16 %v192_v62, %v192_v62 }
  0x9f   :  { %v307_v33 = vunpack.c.l.b16 %v194_v58 }
  0xa1   :  { %1600 = vrot.lane.b32.xlu1 %v5555_v34, %s5145_s30 }
  0xa3   :  { %v5833_v0 = vpop.permute.xlu0 %1450 }
  0xa4   :  { %9550 = vst [vmem:[#allocation56_spill] sm:$0xff] %v5833_v0 }
  0xa6   :  { %v5841_v57 = vpop.f32.mrf.mxu0  ;;  %1086 = vmatmul.bf16.gmra.mxu2 %v9551_v63  ;;  %v5857_v63 = vpop.permute.xlu2 %1484 }
  0xa7   :  { %1115 = vmatmul.bf16.gmra.mxu3 %v9552_v29  ;;  %9554 = vst [vmem:[#allocation25_spill] sm:$0xff] %v5857_v63  ;;  %v2391_v29 = vrot.slane %v5816_v25, 1 }
  0xa9   :  { %1606 = vrot.lane.b32.xlu1 %v5622_v8, %s5145_s30  ;;  %v913_v41 = vpop.f32.mrf.mxu2 }
  0xaa   :  { %1144 = vmatmul.bf16.gmra.mxu0 %v267_v53  ;;  %v914_v24 = vadd.f32 %v5846_v61, %v913_v41  ;;  %v942_v46 = vpop.f32.mrf.mxu3  ;;  %v199_v53 = vpack.c.bf16 %v197_v43, %v197_v43  ;;  %v308_v43 = vpack.c.b16 %v307_v33, %v5770_v17 }
  0xab   :  { %v5853_v15 = vpop.permute.xlu0 %1480 }
  0xac   :  { %9553 = vst [vmem:[#allocation24_spill] sm:$0xff] %v5853_v15  ;;  %v5859_v60 = vadd.f32 %v942_v46, %v914_v24  ;;  %v311_v41 = vunpack.c.l.b16 %v199_v53 }
  0xae   :  { %v5861_v44 = vpop.f32.mrf.mxu0  ;;  %v312_v45 = vpack.c.b16 %v311_v41, %v5782_v48  ;;  %v5881_v52 = vpop.permute.xlu2 %1488 }
  0xaf   :  { %9557 = vst [vmem:[#allocation59_spill] sm:$0xff] %v5881_v52  ;;  %v932_v41 = vpop.f32.mrf.mxu1 }
  0xb1   :  { %2392 = vrot.lane.b32.xlu1 %v2391_v29, %s5141_s28  ;;  %v915_v59 = vpop.f32.mrf.mxu2 }
  0xb2   :  { %v916_v37 = vadd.f32 %v5846_v61, %v915_v59  ;;  %v944_v20 = vpop.f32.mrf.mxu3 }
  0xb3   :  { %v2015_v13 = vpop.permute.xlu0 %2014 }
  0xb4   :  { %v5868_v24 = vmin.f32 %v5598_v39, %v2015_v13  ;;  %v5871_v62 = vmax.f32 %v5598_v39, %v2015_v13  ;;  %v5873_v46 = vadd.f32 %v944_v20, %v916_v37  ;;  %v5885_v39 = vpop.permute.xlu1 %1446 }
  0xb5   :  { %9558 = vst [vmem:[#allocation60_spill] sm:$0xff] %v5885_v39 }
  0xb6   :  { %9555 = vst [vmem:[#allocation57_spill] sm:$0xff] %v5868_v24  ;;  %2139 = vrot.lane.b32.xlu2 %v5871_v62, %s5146_s0  ;;  %2097 = vrot.lane.b32.xlu0 %v5868_v24, %s5146_s0  ;;  %v908_v58 = vpop.f32.mrf.mxu0  ;;  %v5899_v33 = vpop.permute.xlu2 %1516 }
  0xb7   :  { %9556 = vst [vmem:[#allocation58_spill] sm:$0xff] %v5871_v62  ;;  %1091 = vmatmul.bf16.gmra.mxu2 %v304_v1  ;;  %1120 = vmatmul.bf16.gmra.mxu3 %v308_v43  ;;  %v904_v43 = vadd.f32 %v5846_v61, %v5841_v57 }
  0xb8   :  { %4762 = vpush %v5868_v24 }
  0xb9   :  { %2454 = vrot.lane.b32.xlu1 %v2391_v29, %s5143_s26  ;;  %v918_v13 = vpop.f32.mrf.mxu2  ;;  %v4745_v29 = vld [vmem:[%s9287_s3 + $0x38] sm:$0xff]  ;;  %9559 = vst [vmem:[#allocation61_spill] sm:$0xff] %v5899_v33 }
  0xba   :  { %1149 = vmatmul.bf16.gmra.mxu0 %v312_v45  ;;  %v919_v17 = vadd.f32 %v5846_v61, %v918_v13  ;;  %v947_v56 = vpop.f32.mrf.mxu3  ;;  %1235 = vmatpush.bf16.msra.mxu1 %v4745_v29  ;;  %v4744_v13 = vld [vmem:[%s9287_s3 + $0x30] sm:$0xff] }
  0xbc   :  { %v5888_v53 = vadd.f32 %v947_v56, %v919_v17  ;;  %v5902_v1 = vpop.permute.xlu1 %1476  ;;  %v933_v56 = vadd.f32 %v932_v41, %v904_v43  ;;  %v5955_v0 = vpop.permute.xlu0 %1518 }
  0xbd   :  { %9560 = vst [vmem:[#allocation62_spill] sm:$0xff] %v5902_v1 }
  0xbe   :  { %1596 = vrot.lane.b32.xlu2 %v5525_v55, %s5145_s30  ;;  %v5892_v48 = vpop.f32.mrf.mxu0  ;;  %1598 = vrot.lane.b32.xlu0 %v5619_v26, %s5145_s30  ;;  %9565 = vst [vmem:[#allocation67_spill] sm:$0xff] %v5955_v0 }
  0xbf   :  { %1236 = vmatpush.bf16.msra.mxu1 %v4744_v13 }
  0xc1   :  { %v920_v59 = vpop.f32.mrf.mxu2 }
  0xc2   :  { %v921_v37 = vadd.f32 %v5846_v61, %v920_v59  ;;  %v949_v20 = vpop.f32.mrf.mxu3  ;;  %v5915_v59 = vpop.permute.xlu2 %1522 }
  0xc3   :  { %9561 = vst [vmem:[#allocation63_spill] sm:$0xff] %v5915_v59  ;;  %1237 = vmatpush.bf16.msra.mxu1 %v4743_v2  ;;  %v5949_v2 = vld [vmem:[%s9291_s7] sm:$0x3] }
  0xc4   :  { %v5906_v45 = vadd.f32 %v949_v20, %v921_v37  ;;  %v5917_v37 = vpop.f32.mrf.mxu1  ;;  %v5922_v19 = vpop.permute.xlu1 %1482 }
  0xc5   :  { %9562 = vst [vmem:[#allocation64_spill] sm:$0xff] %v5922_v19 }
  0xc6   :  { %1602 = vrot.lane.b32.xlu2 %v5586_v9, %s5145_s30  ;;  %v1019_v17 = vpop.f32.mrf.mxu0  ;;  %1604 = vrot.lane.b32.xlu0 %v5654_v5, %s5145_s30 }
  0xc9   :  { %v961_v29 = vpop.f32.mrf.mxu2 }
  0xca   :  { %v962_v54 = vadd.f32 %v961_v29, %v933_v56  ;;  %v990_v57 = vpop.f32.mrf.mxu3  ;;  %v5937_v56 = vpop.permute.xlu2 %1528  ;;  %v909_v29 = vadd.f32 %v5846_v61, %v908_v58 }
  0xcb   :  { %9563 = vst [vmem:[#allocation65_spill] sm:$0xff] %v5937_v56 }
  0xcc   :  { %v991_v20 = vadd.f32 %v990_v57, %v962_v54  ;;  %v9316_v54 = vrot.slane %v5868_v24, 1  ;;  %v4742_v57 = vld [vmem:[%s9287_s3 + $0x20] sm:$0xff]  ;;  %v5953_v58 = vpop.permute.xlu1 %1486 }
  0xcd   :  { %1238 = vmatpush.bf16.msra.mxu1 %v4742_v57  ;;  %9564 = vst [vmem:[#allocation66_spill] sm:$0xff] %v5953_v58 }
  0xce   :  { %1608 = vrot.lane.b32.xlu2 %v5684_v12, %s5145_s30  ;;  %v5926_v39 = vpop.f32.mrf.mxu0  ;;  %1610 = vrot.lane.b32.xlu0 %v5658_v4, %s5145_s30  ;;  %v5930_v41 = vadd.f32 %v1019_v17, %v991_v20  ;;  %v937_v20 = vpop.f32.mrf.mxu1 }
  0xcf   :  { %v938_v27 = vadd.f32 %v937_v20, %v909_v29  ;;  %v5978_v29 = vpop.permute.xlu0 %1524  ;;  %v4740_v20 = vld [vmem:[%s9287_s3 + $0x10] sm:$0xff] }
  0xd0   :  { %9568 = vst [vmem:[#allocation70_spill] sm:$0xff] %v5978_v29 }
  0xd1   :  { %v5932_v43 = vpop.f32.mrf.mxu2  ;;  %1239 = vmatpush.bf16.msra.mxu1 %v4741_v51 }
  0xd2   :  { %v5935_v13 = vpop.f32.mrf.mxu3  ;;  %v5966_v58 = vpop.permute.xlu2 %1568 }
  0xd3   :  { %9566 = vst [vmem:[#allocation68_spill] sm:$0xff] %v5966_v58 }
  0xd5   :  { %1240 = vmatpush.bf16.msra.mxu1 %v4740_v20  ;;  %v4739_v20 = vld [vmem:[%s9287_s3 + $0x8] sm:$0xff] }
  0xd6   :  { %2433 = vrot.lane.b32.xlu2 %v9316_v54, %s5146_s0  ;;  %2731 = vrot.lane.b32.xlu0 %v5949_v2, %s5146_s0  ;;  %v9317_v54 = vrot.slane %v5871_v62, 1  ;;  %v939_v19 = vpop.f32.mrf.mxu1 }
  0xd7   :  { %v1024_v17 = vpop.f32.mrf.mxu0  ;;  %v5990_v29 = vpop.permute.xlu0 %1530 }
  0xd8   :  { %9571 = vst [vmem:[#allocation73_spill] sm:$0xff] %v5990_v29 }
  0xd9   :  { %v966_v32 = vpop.f32.mrf.mxu2  ;;  %1241 = vmatpush.bf16.msra.mxu1 %v4739_v20  ;;  %v906_v20 = vadd.f32 %v5846_v61, %v5861_v44 }
  0xda   :  { %v967_v56 = vadd.f32 %v966_v32, %v938_v27  ;;  %v995_v35 = vpop.f32.mrf.mxu3  ;;  %v5972_v32 = vpop.permute.xlu1 %1490 }
  0xdb   :  { %9567 = vst [vmem:[#allocation69_spill] sm:$0xff] %v5972_v32  ;;  %v935_v42 = vadd.f32 %v5917_v37, %v906_v20 }
  0xdc   :  { %v996_v52 = vadd.f32 %v995_v35, %v967_v56 }
  0xde   :  { %2467 = vrot.lane.b32.xlu2 %v9317_v54, %s5146_s0  ;;  %2749 = vrot.lane.b32.xlu0 %v5949_v2, %s5141_s28  ;;  %v5970_v27 = vadd.f32 %v1024_v17, %v996_v52  ;;  %v5985_v52 = vpop.permute.xlu2 %1574 }
  0xdf   :  { %v5964_v57 = vpop.f32.mrf.mxu0  ;;  %9569 = vst [vmem:[#allocation71_spill] sm:$0xff] %v5985_v52 }
  0xe1   :  { %v5974_v35 = vpop.f32.mrf.mxu2 }
  0xe2   :  { %v5976_v56 = vpop.f32.mrf.mxu3  ;;  %v5988_v59 = vpop.permute.xlu1 %1520 }
  0xe3   :  { %9570 = vst [vmem:[#allocation72_spill] sm:$0xff] %v5988_v59 }
  0xe6   :  { %2767 = vrot.lane.b32.xlu0 %v5949_v2, %s5143_s26 }
  0xe7   :  { %v1029_v54 = vpop.f32.mrf.mxu0 }
  0xe9   :  { %v971_v51 = vpop.f32.mrf.mxu2 }
  0xea   :  { %v972_v17 = vadd.f32 %v971_v51, %v5859_v60  ;;  %v1000_v32 = vpop.f32.mrf.mxu3  ;;  %v1048_v60 = vpop.f32.mrf.mxu1 }
  0xec   :  { %v1001_v63 = vadd.f32 %v1000_v32, %v972_v17  ;;  %v6004_v32 = vpop.permute.xlu1 %1526  ;;  %v6006_v17 = vpop.permute.xlu0 %1570 }
  0xed   :  { %9572 = vst [vmem:[#allocation74_spill] sm:$0xff] %v6004_v32 }
  0xee   :  { %v5994_v40 = vadd.f32 %v1029_v54, %v1001_v63  ;;  %9573 = vst [vmem:[#allocation75_spill] sm:$0xff] %v6006_v17  ;;  %v4738_v63 = vld [vmem:[%s9287_s3] sm:$0xff]  ;;  %s4763_s3 = spop %4762 }
  0xef   :  { %v5992_v15 = vpop.f32.mrf.mxu0  ;;  %1242 = vmatpush.bf16.msra.mxu1 %v4738_v63 }
  0xf1   :  { %v5999_v24 = vpop.f32.mrf.mxu2 }
  0xf2   :  { %v6001_v23 = vpop.f32.mrf.mxu3 }
  0xf3   :  { %v2040_v38 = vpop.permute.xlu2 %2039 }
  0xf4   :  { %4764 = vpush %v2040_v38  ;;  %v6018_v0 = vpop.permute.xlu1 %1564  ;;  %v6020_v6 = vpop.permute.xlu0 %1576 }
  0xf5   :  { %4766 = vpush %v5871_v62  ;;  %v1050_v62 = vpop.f32.mrf.mxu1 }
  0xf6   :  { %9574 = vst [vmem:[#allocation76_spill] sm:$0xff] %v6020_v6 }
  0xf7   :  { %v1034_v51 = vpop.f32.mrf.mxu0 }
  0xf9   :  { %v976_v54 = vpop.f32.mrf.mxu2 }
  0xfa   :  { %v977_v29 = vadd.f32 %v976_v54, %v5888_v53  ;;  %v1005_v59 = vpop.f32.mrf.mxu3 }
  0xfc   :  { %v1006_v11 = vadd.f32 %v1005_v59, %v977_v29  ;;  %v964_v59 = vadd.f32 %v5932_v43, %v935_v42  ;;  %v6029_v44 = vpop.permute.xlu1 %1566  ;;  %v911_v42 = vadd.f32 %v5846_v61, %v5892_v48 }
  0xfd   :  { %v1053_v54 = vpop.f32.mrf.mxu1 }
  0xfe   :  { %v6016_v32 = vadd.f32 %v1034_v51, %v1006_v11  ;;  %v993_v63 = vadd.f32 %v5935_v13, %v964_v59  ;;  %v1049_v51 = vadd.f32 %v1048_v60, %v5930_v41  ;;  %v940_v41 = vadd.f32 %v939_v19, %v911_v42 }
  0xff   :  { %v6012_v38 = vpop.f32.mrf.mxu0 }
 0x100   :  { %v1022_v1 = vadd.f32 %v5926_v39, %v993_v63 }
 0x101   :  { %v6022_v47 = vpop.f32.mrf.mxu2 }
 0x102   :  { %v6025_v53 = vpop.f32.mrf.mxu3  ;;  %v1051_v13 = vadd.f32 %v1050_v62, %v1022_v1 }
 0x104   :  { %v6039_v39 = vpop.permute.xlu1 %1572 }
 0x105   :  { %v1055_v49 = vpop.f32.mrf.mxu1  ;;  %9575 = vst [vmem:[#allocation77_spill] sm:$0xff] %v6039_v39 }
 0x107   :  { %v1135_v29 = vpop.f32.mrf.mxu0 }
 0x109   :  { %v1077_v11 = vpop.f32.mrf.mxu2 }
 0x10a   :  { %v1106_v30 = vpop.f32.mrf.mxu3  ;;  %v1078_v37 = vadd.f32 %v1077_v11, %v1049_v51 }
 0x10c   :  { %v2177_v33 = vpop.permute.xlu0 %2176  ;;  %v1107_v59 = vadd.f32 %v1106_v30, %v1078_v37  ;;  %v6043_v1 = vpop.permute.xlu1 %1578  ;;  %v1054_v37 = vadd.f32 %v1053_v54, %v5970_v27 }
 0x10d   :  { %v2179_v14 = vmul.f32 %v2177_v33, %v5816_v25  ;;  %v969_v25 = vadd.f32 %v5974_v35, %v940_v41  ;;  %9576 = vst [vmem:[#allocation78_spill] sm:$0xff] %v6043_v1 }
 0x10e   :  { %v1136_v33 = vadd.f32 %v1135_v29, %v1107_v59 }
 0x10f   :  { %v2504_v20 = vrot.slane %v2179_v14, 1  ;;  %2181 = vrot.lane.b32.xlu0 %v2179_v14, %s5143_s26  ;;  %v1137_v43 = vpop.f32.mrf.mxu0  ;;  %v998_v61 = vadd.f32 %v5976_v56, %v969_v25  ;;  %v974_v56 = vadd.f32 %v5999_v24, %v5873_v46 }
 0x110   :  { %v1155_v48 = vmax.f32 %v1136_v33, 0.0 }
 0x111   :  { %2505 = vrot.lane.b32.xlu1 %v2504_v20, %s5143_s26  ;;  %v1079_v10 = vpop.f32.mrf.mxu2  ;;  %v1027_v19 = vadd.f32 %v5964_v57, %v998_v61  ;;  %v1003_v57 = vadd.f32 %v6001_v23, %v974_v56 }
 0x112   :  { %v1080_v60 = vadd.f32 %v1079_v10, %v1051_v13  ;;  %v1108_v52 = vpop.f32.mrf.mxu3  ;;  %v1058_v10 = vpop.f32.mrf.mxu1 }
 0x113   :  { %v1056_v29 = vadd.f32 %v1055_v49, %v1027_v19  ;;  %v1032_v24 = vadd.f32 %v5992_v15, %v1003_v57 }
 0x114   :  { %v1109_v63 = vadd.f32 %v1108_v52, %v1080_v60 }
 0x116   :  { %v1138_v14 = vadd.f32 %v1137_v43, %v1109_v63  ;;  %v2119_v63 = vpop.permute.xlu1 %2118 }
 0x117   :  { %v1140_v11 = vpop.f32.mrf.mxu0 }
 0x118   :  { %v1156_v51 = vmax.f32 %v1138_v14, 0.0  ;;  %v2140_v14 = vpop.permute.xlu2 %2139 }
 0x119   :  { %v1082_v20 = vpop.f32.mrf.mxu2 }
 0x11a   :  { %v1163_v62 = vpack.c.bf16 %v1156_v51, %v1155_v48  ;;  %v1111_v30 = vpop.f32.mrf.mxu3  ;;  %v1083_v42 = vadd.f32 %v1082_v20, %v1054_v37  ;;  %v1060_v33 = vpop.f32.mrf.mxu1  ;;  %v1059_v48 = vadd.f32 %v1058_v10, %v5994_v40 }
 0x11c   :  { %1243 = vmatmul.bf16.vlgmr.msra.gmra.mxu1 %v1163_v62  ;;  %v1112_v59 = vadd.f32 %v1111_v30, %v1083_v42  ;;  %v1061_v30 = vadd.f32 %v1060_v33, %v1032_v24 }
 0x11e   :  { %v1141_v49 = vadd.f32 %v1140_v11, %v1112_v59  ;;  %v979_v11 = vadd.f32 %v6022_v47, %v5906_v45 }
 0x11f   :  { %v1142_v35 = vpop.f32.mrf.mxu0 }
 0x120   :  { %v1157_v46 = vmax.f32 %v1141_v49, 0.0  ;;  %v1008_v15 = vadd.f32 %v6025_v53, %v979_v11  ;;  %v5081_v11 = vld [vmem:[%s9289_s5 + $0x90] sm:$0xff] }
 0x121   :  { %v1084_v52 = vpop.f32.mrf.mxu2 }
 0x122   :  { %v1085_v43 = vadd.f32 %v1084_v52, %v1056_v29  ;;  %v1113_v13 = vpop.f32.mrf.mxu3  ;;  %v1063_v52 = vpop.f32.mrf.mxu1  ;;  %v1037_v33 = vadd.f32 %v6012_v38, %v1008_v15 }
 0x124   :  { %v1114_v41 = vadd.f32 %v1113_v13, %v1085_v43 }
 0x126   :  { %v1143_v54 = vadd.f32 %v1142_v35, %v1114_v41  ;;  %v1064_v41 = vadd.f32 %v1063_v52, %v6016_v32 }
 0x127   :  { %v1145_v60 = vpop.f32.mrf.mxu0 }
 0x128   :  { %v2098_v25 = vpop.permute.xlu0 %2097  ;;  %v1158_v51 = vmax.f32 %v1143_v54, 0.0 }
 0x129   :  { %4768 = vpush %v2098_v25  ;;  %v1087_v27 = vpop.f32.mrf.mxu2 }
 0x12a   :  { %4770 = vpush %v2119_v63  ;;  %v1116_v61 = vpop.f32.mrf.mxu3  ;;  %v1088_v20 = vadd.f32 %v1087_v27, %v1059_v48  ;;  %v1164_v19 = vpack.c.bf16 %v1158_v51, %v1157_v46 }
 0x12b   :  { %4772 = vpush %v2140_v14  ;;  %v1065_v14 = vpop.f32.mrf.mxu1 }
 0x12c   :  { %v1117_v23 = vadd.f32 %v1116_v61, %v1088_v20  ;;  %1248 = vmatmul.bf16.gmra.mxu1 %v1164_v19  ;;  %v1066_v27 = vadd.f32 %v1065_v14, %v1037_v33  ;;  %v5088_v33 = vld [vmem:[%s9289_s5 + $0x30] sm:$0xff] }
 0x12e   :  { %v1146_v35 = vadd.f32 %v1145_v60, %v1117_v23 }
 0x12f   :  { %v1147_v62 = vpop.f32.mrf.mxu0 }
 0x130   :  { %v1159_v10 = vmax.f32 %v1146_v35, 0.0  ;;  %v6056_v60 = vpop.permute.xlu0 %1598 }
 0x131   :  { %v1089_v37 = vpop.f32.mrf.mxu2 }
 0x132   :  { %v1090_v29 = vadd.f32 %v1089_v37, %v1061_v30  ;;  %v1118_v42 = vpop.f32.mrf.mxu3  ;;  %v6065_v30 = vrot.slane %v5949_v2, 1  ;;  %v5078_v2 = vld [vmem:[%s9289_s5 + $0x8] sm:$0xff] }
 0x134   :  { %v1119_v43 = vadd.f32 %v1118_v42, %v1090_v29  ;;  %9580 = vst [vmem:[#allocation82_spill] sm:$0xff] %v6065_v30  ;;  %2726 = vrot.lane.b32.xlu2 %v6065_v30, %s5146_s0  ;;  %v5079_v29 = vld [vmem:[%s9289_s5 + $0x88] sm:$0xff]  ;;  %v5080_v42 = vld [vmem:[%s9289_s5 + $0x10] sm:$0xff] }
 0x135   :  { %v6083_v52 = vmin.f32 %v5078_v2, %v5079_v29  ;;  %v6091_v35 = vmin.f32 %v5080_v42, %v5081_v11 }
 0x136   :  { %v1148_v40 = vadd.f32 %v1147_v62, %v1119_v43  ;;  %v5082_v43 = vld [vmem:[%s9289_s5 + $0x18] sm:$0xff] }
 0x137   :  { %v1150_v59 = vpop.f32.mrf.mxu0  ;;  %9583 = vst [vmem:[#allocation85_spill] sm:$0xff] %v6083_v52 }
 0x138   :  { %v1160_v13 = vmax.f32 %v1148_v40, 0.0  ;;  %v6058_v20 = vpop.permute.xlu0 %1604  ;;  %9584 = vst [vmem:[#allocation86_spill] sm:$0xff] %v6091_v35  ;;  %v5083_v40 = vld [vmem:[%s9289_s5 + $0x98] sm:$0xff] }
 0x139   :  { %9577 = vst [vmem:[#allocation79_spill] sm:$0xff] %v6058_v20  ;;  %v6099_v15 = vmin.f32 %v5082_v43, %v5083_v40 }
 0x13a   :  { %v1092_v56 = vpop.f32.mrf.mxu2  ;;  %v1165_v25 = vpack.c.bf16 %v1160_v13, %v1159_v10  ;;  %v1121_v57 = vpop.f32.mrf.mxu3  ;;  %v5084_v10 = vld [vmem:[%s9289_s5 + $0x20] sm:$0xff] }
 0x13b   :  { %v1093_v63 = vadd.f32 %v1092_v56, %v1064_v41  ;;  %9585 = vst [vmem:[#allocation87_spill] sm:$0xff] %v6099_v15  ;;  %v5085_v13 = vld [vmem:[%s9289_s5 + $0xa0] sm:$0xff]  ;;  %v5087_v41 = vld [vmem:[%s9289_s5 + $0xa8] sm:$0xff] }
 0x13c   :  { %1253 = vmatmul.bf16.gmra.mxu1 %v1165_v25  ;;  %2744 = vrot.lane.b32.xlu2 %v6065_v30, %s5141_s28  ;;  %v6107_v56 = vmin.f32 %v5084_v10, %v5085_v13 }
 0x13d   :  { %v1122_v49 = vadd.f32 %v1121_v57, %v1093_v63  ;;  %v2020_v57 = vstv %s4763_s3  ;;  %v5089_v63 = vld [vmem:[%s9289_s5 + $0xb0] sm:$0xff]  ;;  %s4765_s3 = spop %4764 }
 0x13e   :  { %9586 = vst [vmem:[#allocation88_spill] sm:$0xff] %v6107_v56  ;;  %v6123_v14 = vmin.f32 %v5088_v33, %v5089_v63  ;;  %s4767_s11 = spop %4766 }
 0x13f   :  { %v1152_v54 = vpop.f32.mrf.mxu0  ;;  %v1151_v61 = vadd.f32 %v1150_v59, %v1122_v49  ;;  %v5086_v59 = vld [vmem:[%s9289_s5 + $0x28] sm:$0xff]  ;;  %v5091_v49 = vld [vmem:[%s9289_s5 + $0xb8] sm:$0xff] }
 0x140   :  { %v6060_v38 = vpop.permute.xlu0 %1610  ;;  %v6115_v25 = vmin.f32 %v5086_v59, %v5087_v41  ;;  %9588 = vst [vmem:[#allocation90_spill] sm:$0xff] %v6123_v14 }
 0x141   :  { %v1161_v46 = vmax.f32 %v1151_v61, 0.0  ;;  %9578 = vst [vmem:[#allocation80_spill] sm:$0xff] %v6060_v38  ;;  %v2024_v61 = vmin.f32 %v6091_v35, %v2020_v57  ;;  %v6149_v35 = vmax.f32 %v5078_v2, %v5079_v29  ;;  %v6168_v2 = vld [vmem:[%s9288_s4] ss:$0 sm:$0xff] }
 0x142   :  { %v1094_v47 = vpop.f32.mrf.mxu2  ;;  %v1123_v53 = vpop.f32.mrf.mxu3  ;;  %9587 = vst [vmem:[#allocation89_spill] sm:$0xff] %v6115_v25 }
 0x143   :  { %v1095_v45 = vadd.f32 %v1094_v47, %v1066_v27  ;;  %v5090_v27 = vld [vmem:[%s9289_s5 + $0x38] sm:$0xff]  ;;  %9591 = vst [vmem:[#allocation92_spill] sm:$0xff] %v6149_v35 }
 0x144   :  { %2762 = vrot.lane.b32.xlu2 %v6065_v30, %s5143_s26  ;;  %v6131_v47 = vmin.f32 %v5090_v27, %v5091_v49 }
 0x145   :  { %v1124_v48 = vadd.f32 %v1123_v53, %v1095_v45  ;;  %v9590_v45 = vld [vmem:[#allocation9_spill] sm:$0xff] }
 0x146   :  { %9589 = vst [vmem:[#allocation91_spill] sm:$0xff] %v6131_v47  ;;  %v2022_v53 = vmin.f32 %v9590_v45, %v2020_v57 }
 0x147   :  { %v1153_v24 = vadd.f32 %v1152_v54, %v1124_v48  ;;  %v2023_v54 = vmin.f32 %v6083_v52, %v2020_v57  ;;  %v2025_v48 = vmin.f32 %v6099_v15, %v2020_v57  ;;  %v2042_v15 = vstv %s4765_s3 }
 0x148   :  { %v6062_v62 = vpop.permute.xlu0 %2731  ;;  %v6163_v52 = vmax.f32 %v5090_v27, %v5091_v49 }
 0x149   :  { %v1162_v32 = vmax.f32 %v1153_v24, 0.0  ;;  %9579 = vst [vmem:[#allocation81_spill] sm:$0xff] %v6062_v62  ;;  %v2026_v24 = vmin.f32 %v6107_v56, %v2020_v57  ;;  %v2033_v62 = vadd.f32 %v2025_v48, %v5347_v50  ;;  %v6159_v48 = vmax.f32 %v5086_v59, %v5087_v41  ;;  %v5092_v59 = vld [vmem:[%s9289_s5 + $0x40] sm:$0xff] }
 0x14a   :  { %9597 = vst [vmem:[#allocation98_spill] sm:$0xff] %v6163_v52  ;;  %v5093_v41 = vld [vmem:[%s9289_s5 + $0xc0] sm:$0xff] }
 0x14b   :  { %v1166_v51 = vpack.c.bf16 %v1162_v32, %v1161_v46  ;;  %v2027_v46 = vmin.f32 %v6115_v25, %v2020_v57  ;;  %v2028_v32 = vmin.f32 %v6123_v14, %v2020_v57  ;;  %v2034_v30 = vadd.f32 %v2026_v24, %v5268_v21  ;;  %9595 = vst [vmem:[#allocation96_spill] sm:$0xff] %v6159_v48 }
 0x14d   :  { %1258 = vmatmul.bf16.gmra.mxu1 %v1166_v51  ;;  %v2029_v51 = vmin.f32 %v6131_v47, %v2020_v57  ;;  %v2035_v56 = vadd.f32 %v2027_v46, %v5259_v16  ;;  %v2036_v25 = vadd.f32 %v2028_v32, %v5390_v22  ;;  %v6151_v57 = vstv %s4767_s11 }
 0x14e   :  { %v6161_v46 = vmax.f32 %v5088_v33, %v5089_v63  ;;  %v6180_v33 = vmin.f32 %v5092_v59, %v5093_v41  ;;  %v5097_v63 = vld [vmem:[%s9289_s5 + $0xd0] sm:$0xff] }
 0x14f   :  { %v2037_v14 = vadd.f32 %v2029_v51, %v5321_v36 }
 0x150   :  { %v6069_v23 = vpop.permute.xlu0 %2749  ;;  %9596 = vst [vmem:[#allocation97_spill] sm:$0xff] %v6161_v46  ;;  %v2071_v45 = vmax.f32 %v6161_v46, %v6151_v57 }
 0x151   :  { %9581 = vst [vmem:[#allocation83_spill] sm:$0xff] %v6069_v23  ;;  %v2032_v23 = vadd.f32 %v2024_v61, %v5224_v3  ;;  %v6157_v61 = vmax.f32 %v5084_v10, %v5085_v13  ;;  %v2049_v10 = vadd.f32 %v2042_v15, %v2035_v56  ;;  %v2050_v13 = vadd.f32 %v2042_v15, %v2036_v25  ;;  %v5096_v25 = vld [vmem:[%s9289_s5 + $0x50] sm:$0xff] }
 0x152   :  { %9599 = vst [vmem:[#allocation99_spill] sm:$0xff] %v6180_v33  ;;  %v6198_v27 = vmin.f32 %v5096_v25, %v5097_v63 }
 0x153   :  { %9594 = vst [vmem:[#allocation95_spill] sm:$0xff] %v6157_v61  ;;  %v2046_v29 = vadd.f32 %v2042_v15, %v2032_v23  ;;  %v5095_v23 = vld [vmem:[%s9289_s5 + $0xc8] sm:$0xff]  ;;  %v6254_v17 = vsub.f32 %v2050_v13, %v2071_v45  ;;  %v5105_v45 = vld [vmem:[%s9289_s5 + $0xf8] sm:$0xff] }
 0x154   :  { %9601 = vst [vmem:[#allocation101_spill] sm:$0xff] %v6198_v27 }
 0x158   :  { %v6073_v19 = vpop.permute.xlu0 %2767 }
 0x159   :  { %9582 = vst [vmem:[#allocation84_spill] sm:$0xff] %v6073_v19  ;;  %v2031_v19 = vadd.f32 %v2023_v54, %v5230_v7  ;;  %v6155_v54 = vmax.f32 %v5082_v43, %v5083_v40  ;;  %v9598_v43 = vld [vmem:[#allocation10_spill] sm:$0xff] }
 0x15a   :  { %s4769_s12 = spop %4768  ;;  %v2065_v40 = vmax.f32 %v9598_v43, %v6151_v57  ;;  %v6211_v43 = vadd.f32 %v2042_v15, %v2037_v14  ;;  %v5101_v14 = vld [vmem:[%s9289_s5 + $0xe0] sm:$0xff] }
 0x15b   :  { %9593 = vst [vmem:[#allocation94_spill] sm:$0xff] %v6155_v54  ;;  %v2045_v47 = vadd.f32 %v2042_v15, %v2031_v19  ;;  %v2066_v19 = vmax.f32 %v6149_v35, %v6151_v57  ;;  %v6200_v49 = vstv %s4769_s12  ;;  %v2068_v51 = vmax.f32 %v6155_v54, %v6151_v57  ;;  %s4771_s16 = spop %4770  ;;  %s5149_s12 = smov 119  }
 0x15c   :  { %v2104_v6 = vmin.f32 %v6198_v27, %v6200_v49  ;;  %s4773_s0 = spop %4772 }
 0x15d   :  { %v6240_v46 = vsub.f32 %v2045_v47, %v2066_v19  ;;  %v5102_v47 = vld [vmem:[%s9289_s5 + $0x68] sm:$0xff] }
 0x181   :  { %v2182_v37 = vpop.permute.xlu0 %2181 }
 0x182   :  { %4774 = vpush %v2182_v37  ;;  %v2030_v37 = vadd.f32 %v2022_v53, %v5261_v18  ;;  %v6153_v53 = vmax.f32 %v5080_v42, %v5081_v11  ;;  %v2047_v42 = vadd.f32 %v2042_v15, %v2033_v62  ;;  %v2048_v11 = vadd.f32 %v2042_v15, %v2034_v30  ;;  %v5094_v30 = vld [vmem:[%s9289_s5 + $0x48] sm:$0xff] }
 0x183   :  { %v6190_v56 = vmin.f32 %v5094_v30, %v5095_v23 }
 0x184   :  { %9592 = vst [vmem:[#allocation93_spill] sm:$0xff] %v6153_v53  ;;  %v2044_v24 = vadd.f32 %v2042_v15, %v2030_v37  ;;  %v2067_v62 = vmax.f32 %v6153_v53, %v6151_v57  ;;  %v2069_v37 = vmax.f32 %v6157_v61, %v6151_v57  ;;  %v2070_v53 = vmax.f32 %v6159_v48, %v6151_v57  ;;  %v5098_v61 = vld [vmem:[%s9289_s5 + $0x58] sm:$0xff]  ;;  %v5100_v15 = vld [vmem:[%s9289_s5 + $0x60] sm:$0xff] }
 0x185   :  { %9600 = vst [vmem:[#allocation100_spill] sm:$0xff] %v6190_v56  ;;  %v5099_v48 = vld [vmem:[%s9289_s5 + $0xd8] sm:$0xff]  ;;  %v2103_v1 = vmin.f32 %v6190_v56, %v6200_v49  ;;  %v6248_v39 = vsub.f32 %v2047_v42, %v2068_v51  ;;  %v6266_v42 = vmin.f32 %v5673_v28, %v5678_v31  ;;  %v6281_v31 = vmax.f32 %v5092_v59, %v5093_v41 }
 0x186   :  { %v6217_v38 = vsub.f32 %v2044_v24, %v2065_v40  ;;  %v6233_v24 = vmin.f32 %v5100_v15, %v5101_v14  ;;  %v2102_v40 = vmin.f32 %v6180_v33, %v6200_v49  ;;  %v6242_v54 = vsub.f32 %v2046_v29, %v2067_v62  ;;  %v5103_v29 = vld [vmem:[%s9289_s5 + $0xe8] sm:$0xff] }
 0x187   :  { %v6250_v20 = vsub.f32 %v2048_v11, %v2069_v37  ;;  %v6252_v33 = vsub.f32 %v2049_v10, %v2070_v53  ;;  %v6262_v19 = vmin.f32 %v5102_v47, %v5103_v29  ;;  %9606 = vst [vmem:[#allocation106_spill] sm:$0xff] %v6266_v42  ;;  %v2111_v13 = vadd.f32 %v2103_v1, %v5619_v26 }
 0x188   :  { %9604 = vst [vmem:[#allocation104_spill] sm:$0xff] %v6233_v24  ;;  %v2106_v10 = vmin.f32 %v6233_v24, %v6200_v49  ;;  %v2110_v28 = vadd.f32 %v2102_v40, %v5525_v55  ;;  %v2112_v62 = vadd.f32 %v2104_v6, %v5555_v34  ;;  %v6285_v51 = vmax.f32 %v5094_v30, %v5095_v23 }
 0x189   :  { %9605 = vst [vmem:[#allocation105_spill] sm:$0xff] %v6262_v19  ;;  %v6287_v37 = vmax.f32 %v5096_v25, %v5097_v63  ;;  %v6289_v56 = vmax.f32 %v5098_v61, %v5099_v48  ;;  %v2107_v59 = vmin.f32 %v6262_v19, %v6200_v49  ;;  %v2108_v6 = vmin.f32 %v6266_v42, %v6200_v49  ;;  %v1597_v63 = vpop.permute.xlu2 %1596 }
 0x18a   :  { %9608 = vst [vmem:[#allocation108_spill] sm:$0xff] %v6281_v31  ;;  %v2121_v41 = vstv %s4771_s16  ;;  %v6318_v42 = vmax.f32 %v5102_v47, %v5103_v29 }
 0x18b   :  { %9609 = vst [vmem:[#allocation109_spill] sm:$0xff] %v6285_v51  ;;  %v2123_v23 = vadd.f32 %v2121_v41, %v2110_v28  ;;  %v2081_v28 = vmax.f32 %v6217_v38, 0.0  ;;  %v5107_v38 = vld [vmem:[%s9289_s5 + $0xf0] sm:$0xff] }
 0x18c   :  { %9610 = vst [vmem:[#allocation110_spill] sm:$0xff] %v6287_v37 }
 0x18d   :  { %9611 = vst [vmem:[#allocation111_spill] sm:$0xff] %v6289_v56 }
 0x18e   :  { %9614 = vst [vmem:[#allocation114_spill] sm:$0xff] %v6318_v42 }
 0x199   :  { %v1244_v32 = vpop.f32.mrf.mxu1 }
 0x19a   :  { %v6209_v35 = vadd.f32 %v6168_v2, %v1244_v32  ;;  %v6225_v32 = vmin.f32 %v5098_v61, %v5099_v48  ;;  %v2114_v48 = vadd.f32 %v2106_v10, %v5654_v5 }
 0x19c   :  { %9602 = vst [vmem:[#allocation102_spill] sm:$0xff] %v6209_v35  ;;  %1272 = vrot.lane.b32.xlu0 %v6209_v35, %s5143_s26  ;;  %v1548_v58 = vmul.f32 1.442695, %v6209_v35  ;;  %v2105_v11 = vmin.f32 %v6225_v32, %v6200_v49  ;;  %v6291_v35 = vmax.f32 %v5100_v15, %v5101_v14  ;;  %v2125_v15 = vadd.f32 %v2121_v41, %v2112_v62 }
 0x19d   :  { %9603 = vst [vmem:[#allocation103_spill] sm:$0xff] %v6225_v32  ;;  %v6293_v32 = vstv %s4773_s0  ;;  %v2115_v62 = vadd.f32 %v2107_v59, %v5622_v8  ;;  %v2127_v19 = vadd.f32 %v2121_v41, %v2114_v48 }
 0x19e   :  { %4915 = vpow2.f32 %v1548_v58  ;;  %v5104_v58 = vld [vmem:[%s9289_s5 + $0x78] sm:$0xff]  ;;  %9612 = vst [vmem:[#allocation112_spill] sm:$0xff] %v6291_v35  ;;  %v2113_v61 = vadd.f32 %v2105_v11, %v5586_v9  ;;  %v2144_v14 = vmax.f32 %v6281_v31, %v6293_v32  ;;  %v2145_v40 = vmax.f32 %v6285_v51, %v6293_v32 }
 0x19f   :  { %v6274_v53 = vmin.f32 %v5104_v58, %v5105_v45  ;;  %v2146_v11 = vmax.f32 %v6287_v37, %v6293_v32  ;;  %v2116_v31 = vadd.f32 %v2108_v6, %v5684_v12  ;;  %v2147_v51 = vmax.f32 %v6289_v56, %v6293_v32 }
 0x1a0   :  { %v2148_v47 = vmax.f32 %v6291_v35, %v6293_v32  ;;  %v2152_v29 = vsub.f32 %v2123_v23, %v2144_v14  ;;  %v2128_v56 = vadd.f32 %v2121_v41, %v2115_v62  ;;  %v2149_v23 = vmax.f32 %v6318_v42, %v6293_v32 }
 0x1a1   :  { %9607 = vst [vmem:[#allocation107_spill] sm:$0xff] %v6274_v53  ;;  %v1246_v27 = vpop.f32.mrf.mxu1  ;;  %v2109_v1 = vmin.f32 %v6274_v53, %v6200_v49  ;;  %v2082_v53 = vmax.f32 %v6240_v46, 0.0  ;;  %v2129_v35 = vadd.f32 %v2121_v41, %v2116_v31 }
 0x1a2   :  { %v6296_v24 = vadd.f32 %v6168_v2, %v1246_v27  ;;  %v2124_v27 = vadd.f32 %v2121_v41, %v2111_v13  ;;  %v2157_v62 = vsub.f32 %v2128_v56, %v2149_v23 }
 0x1a3   :  { %v2117_v59 = vadd.f32 %v2109_v1, %v5658_v4 }
 0x1a4   :  { %9613 = vst [vmem:[#allocation113_spill] sm:$0xff] %v6296_v24  ;;  %v4916_v30 = vpop.eup %4915  ;;  %1274 = vrot.lane.b32.xlu0 %v6296_v24, %s5143_s26  ;;  %v1550_v25 = vmul.f32 1.442695, %v6296_v24  ;;  %v2153_v6 = vsub.f32 %v2124_v27, %v2145_v40  ;;  %v2156_v27 = vsub.f32 %v2127_v19, %v2148_v47  ;;  %v6357_v40 = vmul.f32 %v5555_v34, %v5224_v3  ;;  %v9642_v34 = vld [vmem:[#allocation79_spill] sm:$0xff] }
 0x1a5   :  { %v1588_v49 = vmul.f32 %v4916_v30, %v6018_v0  ;;  %v1620_v10 = vmul.f32 %v4916_v30, %v1597_v63  ;;  %v2126_v0 = vadd.f32 %v2121_v41, %v2113_v61  ;;  %v5106_v30 = vld [vmem:[%s9289_s5 + $0x70] sm:$0xff]  ;;  %v2154_v61 = vsub.f32 %v2125_v15, %v2146_v11 }
 0x1a6   :  { %4917 = vpow2.f32 %v1550_v25  ;;  %v6330_v46 = vmax.f32 %v5106_v30, %v5107_v38  ;;  %v2083_v25 = vmax.f32 %v6242_v54, 0.0  ;;  %v2084_v63 = vmax.f32 %v6248_v39, 0.0  ;;  %9619 = vst [vmem:[#allocation119_spill] sm:$0xff] %v6357_v40 }
 0x1a7   :  { %v1628_v13 = vmul.f32 0.5, %v1588_v49  ;;  %v1684_v48 = vmul.f32 0.5, %v1620_v10  ;;  %v2085_v49 = vmax.f32 %v6250_v20, 0.0  ;;  %v6339_v30 = vmax.f32 %v5104_v58, %v5105_v45 }
 0x1a8   :  { %9615 = vst [vmem:[#allocation115_spill] sm:$0xff] %v6330_v46  ;;  %v2155_v14 = vsub.f32 %v2126_v0, %v2147_v51  ;;  %v2150_v1 = vmax.f32 %v6330_v46, %v6293_v32  ;;  %v2160_v54 = vmax.f32 %v2152_v29, 0.0  ;;  %v2130_v15 = vadd.f32 %v2121_v41, %v2117_v59 }
 0x1a9   :  { %1644 = vrot.lane.b32.xlu1 %v1628_v13, %s5147_s29  ;;  %9616 = vst [vmem:[#allocation116_spill] sm:$0xff] %v6339_v30  ;;  %v2161_v20 = vmax.f32 %v2153_v6, 0.0  ;;  %v2162_v58 = vmax.f32 %v2154_v61, 0.0  ;;  %v6349_v45 = vmul.f32 %v5525_v55, %v5261_v18  ;;  %v1249_v31 = vpop.f32.mrf.mxu1  ;;  %v6353_v51 = vmul.f32 %v5619_v26, %v5230_v7  ;;  %v6574_v55 = vld [vmem:[%s9290_s6 + $0x8] sm:$0xff] }
 0x1aa   :  { %v6361_v19 = vmul.f32 %v5586_v9, %v5347_v50  ;;  %v2151_v41 = vmax.f32 %v6339_v30, %v6293_v32  ;;  %v2163_v11 = vmax.f32 %v2155_v14, 0.0  ;;  %v6366_v10 = vadd.f32 %v6168_v2, %v1249_v31  ;;  %v6568_v9 = vpop.permute.xlu2 %1602 }
 0x1ab   :  { %9617 = vst [vmem:[#allocation117_spill] sm:$0xff] %v6349_v45  ;;  %v6370_v13 = vmul.f32 %v5654_v5, %v5268_v21  ;;  %v2158_v0 = vsub.f32 %v2129_v35, %v2150_v1  ;;  %v2164_v47 = vmax.f32 %v2156_v27, 0.0  ;;  %v6373_v29 = vmul.f32 %v2160_v54, %v2081_v28 }
 0x1ac   :  { %v4918_v38 = vpop.eup %4917  ;;  %1700 = vrot.lane.b32.xlu0 %v1684_v48, %s5147_s29  ;;  %9618 = vst [vmem:[#allocation118_spill] sm:$0xff] %v6353_v51  ;;  %v1552_v32 = vmul.f32 1.442695, %v6366_v10  ;;  %v6378_v6 = vmul.f32 %v2161_v20, %v2082_v53  ;;  %v6380_v61 = vmul.f32 %v2162_v58, %v2083_v25  ;;  %v6388_v28 = vmul.f32 %v5622_v8, %v5259_v16 }
 0x1ad   :  { %v1589_v39 = vmul.f32 %v4918_v38, %v6029_v44  ;;  %9620 = vst [vmem:[#allocation120_spill] sm:$0xff] %v6361_v19  ;;  %v1621_v1 = vmul.f32 %v4918_v38, %v6056_v60  ;;  %v6392_v53 = vmul.f32 %v2163_v11, %v2084_v63  ;;  %v2086_v58 = vmax.f32 %v6252_v33, 0.0 }
 0x1ae   :  { %9621 = vst [vmem:[#allocation121_spill] sm:$0xff] %v6366_v10  ;;  %4919 = vpow2.f32 %v1552_v32  ;;  %v2159_v60 = vsub.f32 %v2130_v15, %v2151_v41  ;;  %v2165_v63 = vmax.f32 %v2157_v62, 0.0  ;;  %v6410_v38 = vmul.f32 %v5684_v12, %v5390_v22 }
 0x1af   :  { %v1629_v44 = vmul.f32 0.5, %v1589_v39  ;;  %9622 = vst [vmem:[#allocation122_spill] sm:$0xff] %v6370_v13  ;;  %v9624_v39 = vmax.f32 %v6163_v52, %v6151_v57  ;;  %v6420_v57 = vmul.f32 %v5658_v4, %v5321_v36  ;;  %v1685_v33 = vmul.f32 0.5, %v1621_v1 }
 0x1b0   :  { %9623 = vst [vmem:[#allocation123_spill] sm:$0xff] %v6388_v28  ;;  %v2166_v15 = vmax.f32 %v2158_v0, 0.0  ;;  %v2167_v62 = vmax.f32 %v2159_v60, 0.0  ;;  %v6437_v0 = vmul.f32 %v2165_v63, %v2086_v58 }
 0x1b1   :  { %1646 = vrot.lane.b32.xlu2 %v1629_v44, %s5147_s29  ;;  %1276 = vrot.lane.b32.xlu1 %v6366_v10, %s5143_s26  ;;  %v2080_v20 = vsub.f32 %v6211_v43, %v9624_v39  ;;  %9625 = vst [vmem:[#allocation124_spill] sm:$0xff] %v6410_v38  ;;  %v1251_v31 = vpop.f32.mrf.mxu1  ;;  %v6412_v44 = vmul.f32 %v2164_v47, %v2085_v49 }
 0x1b2   :  { %9626 = vst [vmem:[#allocation125_spill] sm:$0xff] %v6420_v57  ;;  %v6423_v43 = vadd.f32 %v6168_v2, %v1251_v31 }
 0x1b3   :  { %s4775_s5 = spop %4774 }
 0x1b4   :  { %v2184_v59 = vstv %s4775_s5  ;;  %9627 = vst [vmem:[#allocation126_spill] sm:$0xff] %v6423_v43  ;;  %v1554_v47 = vmul.f32 1.442695, %v6423_v43  ;;  %v6433_v32 = vpop.eup %4919 }
 0x1b5   :  { %v2186_v48 = vadd.f32 %v2184_v59, %v6349_v45  ;;  %v2187_v35 = vadd.f32 %v2184_v59, %v6353_v51  ;;  %v2188_v56 = vadd.f32 %v2184_v59, %v6357_v40  ;;  %v2189_v23 = vadd.f32 %v2184_v59, %v6361_v19  ;;  %v9629_v51 = vld [vmem:[#allocation75_spill] sm:$0xff] }
 0x1b6   :  { %v2190_v14 = vadd.f32 %v2184_v59, %v6370_v13  ;;  %v2191_v41 = vadd.f32 %v2184_v59, %v6388_v28 }
 0x1b7   :  { %v6395_v25 = vsub.f32 %v2186_v48, %v6373_v29  ;;  %v6398_v27 = vsub.f32 %v2187_v35, %v6378_v6  ;;  %v6401_v54 = vsub.f32 %v2188_v56, %v6380_v61  ;;  %v6415_v11 = vsub.f32 %v2189_v23, %v6392_v53  ;;  %v1601_v48 = vpop.permute.xlu1 %1600 }
 0x1b8   :  { %v6428_v49 = vsub.f32 %v2190_v14, %v6412_v44  ;;  %v2087_v35 = vmax.f32 %v6254_v17, 0.0  ;;  %v2192_v56 = vadd.f32 %v2184_v59, %v6410_v38  ;;  %v2088_v23 = vmax.f32 %v2080_v20, 0.0 }
 0x1b9   :  { %4921 = vrcp.f32 %v6395_v25  ;;  %1702 = vrot.lane.b32.xlu1 %v1685_v33, %s5147_s29  ;;  %v2193_v14 = vadd.f32 %v2184_v59, %v6420_v57  ;;  %v1622_v1 = vmul.f32 %v6433_v32, %v1601_v48  ;;  %v6447_v31 = vsub.f32 %v2191_v41, %v6437_v0  ;;  %v1254_v33 = vpop.f32.mrf.mxu1 }
 0x1ba   :  { %4923 = vrcp.f32 %v6398_v27  ;;  %v6444_v60 = vmul.f32 %v2166_v15, %v2087_v35  ;;  %v6452_v63 = vmul.f32 %v2167_v62, %v2088_v23  ;;  %v2213_v15 = vand.u32 2147483648, %v6395_v25 }
 0x1bb   :  { %4925 = vrcp.f32 %v6401_v54  ;;  %v1686_v58 = vmul.f32 0.5, %v1622_v1  ;;  %v6465_v48 = vadd.f32 %v6168_v2, %v1254_v33  ;;  %vm2207_vm4 = vweird.f32 %v6395_v25 }
 0x1bc   :  { %4927 = vrcp.f32 %v6415_v11  ;;  %v6469_v62 = vsub.f32 %v2193_v14, %v6452_v63  ;;  %v2228_v38 = vand.u32 2147483648, %v6398_v27  ;;  %vm2222_vm5 = vweird.f32 %v6398_v27 }
 0x1bd   :  { %4929 = vpow2.f32 %v1554_v47  ;;  %v6459_v47 = vsub.f32 %v2192_v56, %v6444_v60  ;;  %9628 = vst [vmem:[#allocation127_spill] sm:$0xff] %v6465_v48  ;;  %1704 = vrot.lane.b32.xlu2 %v1686_v58, %s5147_s29  ;;  %v2211_v56 = vand.u32 2147483647, %v6395_v25  ;;  %v1556_v14 = vmul.f32 1.442695, %v6465_v48 }
 0x1be   :  { %4931 = vrcp.f32 %v6428_v49  ;;  %v6490_v13 = vor.u32 1.1754944e-38, %v2213_v15  ;;  %v2226_v19 = vand.u32 2147483647, %v6398_v27  ;;  %vm2237_vm6 = vweird.f32 %v6401_v54 }
 0x1bf   :  { %v6442_v39 = vpop.eup %4921  ;;  %4933 = vrcp.f32 %v6447_v31  ;;  %v2241_v40 = vand.u32 2147483647, %v6401_v54  ;;  %v6499_v42 = vor.u32 1.1754944e-38, %v2228_v38  ;;  %vm6504_vm7 = vcmp.eq.f32.partialorder %v2211_v56, 8.507059e+37 }
 0x1c0   :  { %v6450_v17 = vpop.eup %4923  ;;  %v2203_v59 = vmul.f32 %v6442_v39, %v6395_v25  ;;  %4935 = vpow2.f32 %v1556_v14  ;;  %vm2252_vm8 = vweird.f32 %v6415_v11  ;;  %vm2208_vm9 = vweird.f32 %v6442_v39 }
 0x1c1   :  { %v6456_v20 = vpop.eup %4925  ;;  %v2218_v41 = vmul.f32 %v6450_v17, %v6398_v27  ;;  %1278 = vrot.lane.b32.xlu1 %v6423_v43, %s5143_s26  ;;  %v1256_v38 = vpop.f32.mrf.mxu1  ;;  %vm2267_vm10 = vweird.f32 %v6428_v49  ;;  %vm2223_vm11 = vweird.f32 %v6450_v17  ;;  %vm6522_vm12 = vcmp.eq.f32.partialorder %v2226_v19, 8.507059e+37  ;;  %vm6540_vm15 = vmor %vm2207_vm4, %vm2208_vm9  ;;  %v6579_v27 = vld [vmem:[%s9290_s6 + $0x20] sm:$0xff] }
 0x1c2   :  { %v2204_v35 = vsub.f32 1.0, %v2203_v59  ;;  %v2233_v23 = vmul.f32 %v6456_v20, %v6401_v54  ;;  %v6473_v1 = vpop.eup %4927  ;;  %v2243_v59 = vand.u32 2147483648, %v6401_v54  ;;  %vm6526_vm13 = vcmp.eq.f32.partialorder %v2241_v40, 8.507059e+37  ;;  %vm6561_vm2 = vmor %vm2222_vm5, %vm2223_vm11 }
 0x1c3   :  { %v2219_v57 = vsub.f32 1.0, %v2218_v41  ;;  %v6479_v33 = vpop.eup %4929  ;;  %v2248_v28 = vmul.f32 %v6473_v1, %v6415_v11  ;;  %vm2238_vm14 = vweird.f32 %v6456_v20  ;;  %vm2253_vm0 = vweird.f32 %v6473_v1 }
 0x1c4   :  { %v2234_v58 = vsub.f32 1.0, %v2233_v23  ;;  %v6488_v41 = vpop.eup %4931  ;;  %v1591_v45 = vmul.f32 %v6479_v33, %v9629_v51  ;;  %v2205_v23 = vmul.f32 %v6442_v39, %v2204_v35  ;;  %v6508_v12 = vor.u32 1.1754944e-38, %v2243_v59  ;;  %vm6588_vm4 = vmor %vm2237_vm6, %vm2238_vm14 }
 0x1c5   :  { %v2249_v30 = vsub.f32 1.0, %v2248_v28  ;;  %v2220_v46 = vmul.f32 %v6450_v17, %v2219_v57  ;;  %v2263_v37 = vmul.f32 %v6488_v41, %v6428_v49  ;;  %v2256_v28 = vand.u32 2147483647, %v6415_v11  ;;  %v6513_v57 = vpop.eup %4933  ;;  %1280 = vrot.lane.b32.xlu2 %v6465_v48, %s5143_s26  ;;  %vm6605_vm5 = vmor %vm2252_vm8, %vm2253_vm0 }
 0x1c6   :  { %v2235_v15 = vmul.f32 %v6456_v20, %v2234_v58  ;;  %v2258_v35 = vand.u32 2147483648, %v6415_v11  ;;  %v1631_v56 = vmul.f32 0.5, %v1591_v45  ;;  %vm2268_vm3 = vweird.f32 %v6488_v41  ;;  %v6680_v58 = vld [vmem:[%s9290_s6 + $0x30] sm:$0xff] }
 0x1c7   :  { %v2250_v51 = vmul.f32 %v6473_v1, %v2249_v30  ;;  %v2264_v14 = vsub.f32 1.0, %v2263_v37  ;;  %v2206_v30 = vadd.f32 %v6442_v39, %v2205_v23  ;;  %v2273_v37 = vand.u32 2147483648, %v6428_v49  ;;  %v4936_v23 = vpop.eup %4935  ;;  %vm6622_vm9 = vmor %vm2267_vm10, %vm2268_vm3 }
 0x1c8   :  { %v2221_v8 = vadd.f32 %v6450_v17, %v2220_v46  ;;  %v2236_v5 = vadd.f32 %v6456_v20, %v2235_v15  ;;  %vm6546_vm1 = vcmp.eq.f32.partialorder %v2256_v28, 8.507059e+37  ;;  %v2278_v15 = vmul.f32 %v6513_v57, %v6447_v31 }
 0x1c9   :  { %v2265_v45 = vmul.f32 %v6488_v41, %v2264_v14  ;;  %1650 = vrot.lane.b32.xlu1 %v1631_v56, %s5147_s29  ;;  %v2251_v19 = vadd.f32 %v6473_v1, %v2250_v51  ;;  %v6555_v14 = vld [vmem:[%s9290_s6] sm:$0xff]  ;;  %v2259_v51 = vor.u32 1.1754944e-38, %v2258_v35  ;;  %v2271_v56 = vand.u32 2147483647, %v6428_v49 }
 0x1ca   :  { %v1624_v26 = vmul.f32 %v4936_v23, %v9642_v34  ;;  %v2210_v35 = vsel %vm6540_vm15, %v6442_v39, %v2206_v30  ;;  %v2279_v52 = vsub.f32 1.0, %v2278_v15  ;;  %v6593_v36 = vadd.f32 %v6168_v2, %v1256_v38  ;;  %v6613_v38 = vld [vmem:[%s9290_s6 + $0x10] sm:$0xff]  ;;  %v9650_v30 = vld [vmem:[#allocation77_spill] sm:$0xff] }
 0x1cb   :  { %v2266_v28 = vadd.f32 %v6488_v41, %v2265_v45  ;;  %v2274_v45 = vor.u32 1.1754944e-38, %v2273_v37  ;;  %v2225_v22 = vsel %vm6561_vm2, %v6450_v17, %v2221_v8  ;;  %v2240_v39 = vsel %vm6588_vm4, %v6456_v20, %v2236_v5  ;;  %v1259_v20 = vpop.f32.mrf.mxu1 }
 0x1cc   :  { %9645 = vst [vmem:[#allocation75_spill] sm:$0xff] %v6593_v36  ;;  %vm2283_vm6 = vweird.f32 %v6513_v57  ;;  %v2255_v8 = vsel %vm6605_vm5, %v6473_v1, %v2251_v19  ;;  %v2280_v11 = vmul.f32 %v6513_v57, %v2279_v52  ;;  %v2288_v17 = vand.u32 2147483648, %v6447_v31  ;;  %v6646_v19 = vld [vmem:[%s9290_s6 + $0x28] sm:$0xff] }
 0x1cd   :  { %4937 = vrcp.f32 %v6459_v47  ;;  %vm9449_vm8 = vcmp.gt.f32.partialorder %v6555_v14, 0.5  ;;  %vm9448_vm11 = vcmp.gt.f32.partialorder %v6574_v55, 0.5  ;;  %vm9447_vm14 = vcmp.gt.f32.partialorder %v6579_v27, 0.5  ;;  %1282 = vrot.lane.b32.xlu2 %v6593_v36, %s5143_s26 }
 0x1ce   :  { %v2215_v49 = vsel %vm6504_vm7, %v6490_v13, %v2210_v35  ;;  %v2270_v1 = vsel %vm6622_vm9, %v6488_v41, %v2266_v28  ;;  %vm2282_vm10 = vweird.f32 %v6447_v31  ;;  %v2286_v52 = vand.u32 2147483647, %v6447_v31  ;;  %v6653_v13 = vld [vmem:[%s9290_s6 + $0x18] sm:$0xff] }
 0x1cf   :  { %v1592_v37 = vmul.f32 %v4936_v23, %v9650_v30  ;;  %v1688_v40 = vmul.f32 0.5, %v1624_v26  ;;  %v2281_v4 = vadd.f32 %v6513_v57, %v2280_v11  ;;  %4939 = vrcp.f32 %v6469_v62  ;;  %vm6666_vm0 = vmor %vm2282_vm10, %vm2283_vm6  ;;  %v6697_v35 = vld [vmem:[%s9290_s6 + $0x38] sm:$0xff] }
 0x1d0   :  { %vm9445_vm7 = vcmp.gt.f32.partialorder %v6613_v38, 0.5  ;;  %v2230_v26 = vsel %vm6522_vm12, %v6499_v42, %v2225_v22  ;;  %v2245_v31 = vsel %vm6526_vm13, %v6508_v12, %v2240_v39  ;;  %v2260_v41 = vsel %vm6546_vm1, %v2259_v51, %v2255_v8  ;;  %v6707_v39 = vpop.permute.xlu2 %1608 }
 0x1d1   :  { %vm2272_vm15 = vcmp.eq.f32.partialorder %v2271_v56, 8.507059e+37  ;;  %v6671_v15 = vadd.f32 %v6168_v2, %v1259_v20  ;;  %1708 = vrot.lane.b32.xlu1 %v1688_v40, %s5147_s29  ;;  %vm9450_vm12 = vcmask 23552   ;;  %v2285_v12 = vsel %vm6666_vm0, %v6513_v57, %v2281_v4 }
 0x1d2   :  { %v2275_v22 = vsel %vm2272_vm15, %v2274_v45, %v2270_v1  ;;  %v2289_v42 = vor.u32 1.1754944e-38, %v2288_v17  ;;  %vm9446_vm13 = vcmp.gt.f32.partialorder %v6646_v19, 0.5  ;;  %v6684_v59 = vmul.f32 %v2215_v49, %v6373_v29 }
 0x1d3   :  { %9653 = vst [vmem:[#allocation79_spill] sm:$0xff] %v6671_v15  ;;  %vm2287_vm1 = vcmp.eq.f32.partialorder %v2286_v52, 8.507059e+37  ;;  %v2301_v46 = vand.u32 2147483647, %v6459_v47  ;;  %v4938_v25 = vpop.eup %4937  ;;  %v1632_v51 = vmul.f32 0.5, %v1592_v37  ;;  %vm9443_vm2 = vcmp.gt.f32.partialorder %v6653_v13, 0.5  ;;  %v1261_v8 = vpop.f32.mrf.mxu1 }
 0x1d4   :  { %9654 = vst [vmem:[#allocation77_spill] sm:$0xff] %v6684_v59  ;;  %v6689_v57 = vmul.f32 %v2230_v26, %v6378_v6  ;;  %v6692_v28 = vmul.f32 %v2245_v31, %v6380_v61  ;;  %v2290_v56 = vsel %vm2287_vm1, %v2289_v42, %v2285_v12  ;;  %v6700_v29 = vmul.f32 %v2260_v41, %v6392_v53 }
 0x1d5   :  { %v6703_v34 = vmul.f32 %v2275_v22, %v6412_v44  ;;  %v2293_v45 = vmul.f32 %v4938_v25, %v6459_v47  ;;  %vm2297_vm3 = vweird.f32 %v6459_v47  ;;  %v4940_v6 = vpop.eup %4939  ;;  %vm9444_vm4 = vcmp.gt.f32.partialorder %v6680_v58, 0.5  ;;  %1652 = vrot.lane.b32.xlu2 %v1632_v51, %s5147_s29 }
 0x1d6   :  { %9655 = vst [vmem:[#allocation128_spill] sm:$0xff] %v6689_v57  ;;  %v2303_v61 = vand.u32 2147483648, %v6459_v47  ;;  %vm2312_vm5 = vweird.f32 %v6469_v62  ;;  %v1558_v54 = vmul.f32 1.442695, %v6593_v36  ;;  %v1560_v53 = vmul.f32 1.442695, %v6671_v15 }
 0x1d7   :  { %9656 = vst [vmem:[#allocation129_spill] sm:$0xff] %v6692_v28  ;;  %v6715_v44 = vmul.f32 %v2290_v56, %v6437_v0  ;;  %v2294_v5 = vsub.f32 1.0, %v2293_v45  ;;  %vm6717_vm6 = vcmp.eq.f32.partialorder %v2301_v46, 8.507059e+37  ;;  %v2308_v17 = vmul.f32 %v4940_v6, %v6469_v62  ;;  %v1607_v45 = vpop.permute.xlu1 %1606 }
 0x1d8   :  { %9657 = vst [vmem:[#allocation130_spill] sm:$0xff] %v6700_v29  ;;  %v6723_v20 = vadd.f32 %v6168_v2, %v1261_v8  ;;  %vm9442_vm9 = vcmp.gt.f32.partialorder %v6697_v35, 0.5  ;;  %v2316_v49 = vand.u32 2147483647, %v6469_v62  ;;  %v2318_v1 = vand.u32 2147483648, %v6469_v62  ;;  %v6767_v11 = vpop.permute.xlu2 %2433 }
 0x1d9   :  { %9658 = vst [vmem:[#allocation131_spill] sm:$0xff] %v6703_v34  ;;  %4941 = vpow2.f32 %v1558_v54  ;;  %v2295_v0 = vmul.f32 %v4938_v25, %v2294_v5  ;;  %vm2298_vm10 = vweird.f32 %v4938_v25  ;;  %v2309_v52 = vsub.f32 1.0, %v2308_v17 }
 0x1da   :  { %9659 = vst [vmem:[#allocation132_spill] sm:$0xff] %v6715_v44  ;;  %4943 = vpow2.f32 %v1560_v53  ;;  %v2322_v30 = vsel %vm9449_vm8, %v6684_v59, -inf  ;;  %v2323_v2 = vsel %vm9448_vm11, %v6689_v57, -inf  ;;  %v2326_v37 = vsel %vm9447_vm14, %v6703_v34, -inf  ;;  %1286 = vrot.lane.b32.xlu1 %v6723_v20, %s5143_s26  ;;  %vm2299_vm0 = vmor %vm2297_vm3, %vm2298_vm10 }
 0x1db   :  { %9662 = vst [vmem:[#allocation133_spill] sm:$0xff] %v6723_v20  ;;  %v1562_v40 = vmul.f32 1.442695, %v6723_v20  ;;  %v2296_v4 = vadd.f32 %v4938_v25, %v2295_v0  ;;  %v2310_v26 = vmul.f32 %v4940_v6, %v2309_v52  ;;  %vm2313_vm15 = vweird.f32 %v4940_v6  ;;  %v9666_v52 = vld [vmem:[#allocation76_spill] sm:$0xff] }
 0x1dc   :  { %v2327_v31 = vsel %vm9446_vm13, %v6715_v44, -inf  ;;  %v2304_v41 = vor.u32 1.1754944e-38, %v2303_v61  ;;  %vm6746_vm1 = vcmp.eq.f32.partialorder %v2316_v49, 8.507059e+37  ;;  %v2324_v22 = vsel %vm9445_vm7, %v6692_v28, -inf  ;;  %vm2314_vm3 = vmor %vm2312_vm5, %vm2313_vm15  ;;  %v9759_v44 = vld [vmem:[#allocation105_spill] sm:$0xff] }
 0x1dd   :  { %4945 = vpow2.f32 %v1562_v40  ;;  %v2300_v12 = vsel %vm2299_vm0, %v4938_v25, %v2296_v4  ;;  %v2311_v42 = vadd.f32 %v4940_v6, %v2310_v26  ;;  %v2330_v46 = vsel %vm9450_vm12, %v2322_v30, -inf }
 0x1de   :  { %v2334_v51 = vsel %vm9450_vm12, %v2326_v37, -inf  ;;  %v2305_v47 = vsel %vm6717_vm6, %v2304_v41, %v2300_v12  ;;  %v2319_v61 = vor.u32 1.1754944e-38, %v2318_v1  ;;  %v2331_v54 = vsel %vm9450_vm12, %v2323_v2, -inf }
 0x1df   :  { %v4942_v56 = vpop.eup %4941  ;;  %v2336_v53 = vsel %vm9450_vm12, %v2327_v31, -inf  ;;  %v6762_v25 = vmul.f32 %v2305_v47, %v6444_v60  ;;  %v2315_v5 = vsel %vm2314_vm3, %v4940_v6, %v2311_v42  ;;  %v2325_v17 = vsel %vm9443_vm2, %v6700_v29, -inf }
 0x1e0   :  { %v4944_v8 = vpop.eup %4943  ;;  %v1625_v49 = vmul.f32 %v4942_v56, %v1607_v45  ;;  %v2320_v62 = vsel %vm6746_vm1, %v2319_v61, %v2315_v5  ;;  %v2332_v1 = vsel %vm9450_vm12, %v2324_v22, -inf  ;;  %v2335_v0 = vmax.f32 %v2330_v46, %v2334_v51  ;;  %v9669_v51 = vld [vmem:[#allocation80_spill] sm:$0xff] }
 0x1e1   :  { %9665 = vst [vmem:[#allocation134_spill] sm:$0xff] %v6762_v25  ;;  %v1594_v30 = vmul.f32 %v4944_v8, %v9666_v52  ;;  %v6774_v2 = vmul.f32 %v2320_v62, %v6452_v63  ;;  %v2328_v60 = vsel %vm9444_vm4, %v6762_v25, -inf  ;;  %v2337_v6 = vmax.f32 %v2331_v54, %v2336_v53  ;;  %v9668_v63 = vld [vmem:[#allocation78_spill] sm:$0xff]  ;;  %v6789_v53 = vpop.permute.xlu2 %2467  ;;  %v6800_v52 = vpop.permute.xlu1 %2392  ;;  %v9762_v25 = vld [vmem:[#allocation23_spill] sm:$0xff] }
 0x1e2   :  { %v1689_v37 = vmul.f32 0.5, %v1625_v49  ;;  %v2333_v4 = vsel %vm9450_vm12, %v2325_v17, -inf  ;;  %v2338_v26 = vsel %vm9450_vm12, %v2328_v60, -inf  ;;  %v9671_v49 = vld [vmem:[#allocation68_spill] sm:$0xff] }
 0x1e3   :  { %9667 = vst [vmem:[#allocation76_spill] sm:$0xff] %v6774_v2  ;;  %v4946_v40 = vpop.eup %4945  ;;  %v1634_v31 = vmul.f32 0.5, %v1594_v30  ;;  %v2329_v41 = vsel %vm9442_vm9, %v6774_v2, -inf  ;;  %v2339_v23 = vmax.f32 %v2332_v1, %v2338_v26  ;;  %v2342_v46 = vmax.f32 %v2335_v0, %v2337_v6 }
 0x1e4   :  { %1710 = vrot.lane.b32.xlu2 %v1689_v37, %s5147_s29  ;;  %v1595_v22 = vmul.f32 %v4946_v40, %v9668_v63  ;;  %v2340_v12 = vsel %vm9450_vm12, %v2329_v41, -inf  ;;  %v1627_v45 = vmul.f32 %v4946_v40, %v9669_v51  ;;  %v1590_v62 = vmul.f32 %v6433_v32, %v9671_v49  ;;  %v9679_v63 = vld [vmem:[#allocation42_spill] sm:$0xff] }
 0x1e5   :  { %1656 = vrot.lane.b32.xlu1 %v1634_v31, %s5147_s29  ;;  %v2341_v42 = vmax.f32 %v2333_v4, %v2340_v12  ;;  %v1623_v30 = vmul.f32 %v6479_v33, %v6568_v9  ;;  %v9675_v9 = vld [vmem:[#allocation102_spill] sm:$0xff]  ;;  %v9677_v4 = vld [vmem:[#allocation71_spill] sm:$0xff]  ;;  %v9680_v12 = vld [vmem:[#allocation45_spill] sm:$0xff] }
 0x1e6   :  { %v1635_v61 = vmul.f32 0.5, %v1595_v22  ;;  %v1691_v5 = vmul.f32 0.5, %v1627_v45  ;;  %v1630_v0 = vmul.f32 0.5, %v1590_v62  ;;  %v1593_v26 = vmul.f32 %v4942_v56, %v9677_v4  ;;  %v9683_v62 = vld [vmem:[#allocation49_spill] sm:$0xff] }
 0x1e7   :  { %v2343_v47 = vmax.f32 %v2339_v23, %v2341_v42  ;;  %v1687_v60 = vmul.f32 0.5, %v1623_v30  ;;  %v1420_v22 = vmul.f32 %v9679_v63, %v9675_v9  ;;  %v1626_v56 = vmul.f32 %v4944_v8, %v6707_v39  ;;  %v9684_v30 = vld [vmem:[#allocation61_spill] sm:$0xff] }
 0x1e8   :  { %v1633_v41 = vmul.f32 0.5, %v1593_v26  ;;  %v1421_v42 = vmul.f32 %v9680_v12, %v6296_v24 }
 0x1e9   :  { %v2344_v54 = vmax.f32 %v2342_v46, %v2343_v47  ;;  %v6793_v17 = vpop.permute.xlu2 %2726  ;;  %v6807_v37 = vpop.permute.xlu1 %2454  ;;  %v9681_v46 = vld [vmem:[#allocation62_spill] sm:$0xff]  ;;  %v1690_v49 = vmul.f32 0.5, %v1626_v56 }
 0x1ea   :  { %9670 = vst [vmem:[#allocation78_spill] sm:$0xff] %v6793_v17  ;;  %v1500_v51 = vmul.f32 %v9681_v46, %v9675_v9  ;;  %v9682_v47 = vld [vmem:[#allocation50_spill] sm:$0xff] }
 0x1eb   :  { %2345 = vmax.xlane.f32.xlu0 %v2344_v54  ;;  %v9764_v17 = vld [vmem:[#allocation26_spill] sm:$0xff] }
 0x1ec   :  { %1658 = vrot.lane.b32.xlu2 %v1635_v61, %s5147_s29  ;;  %v1460_v61 = vadd.f32 %v9682_v47, %v1420_v22 }
 0x1ed   :  { %1714 = vrot.lane.b32.xlu1 %v1691_v5, %s5147_s29 }
 0x1f1   :  { %v6797_v1 = vpop.permute.xlu2 %2744  ;;  %v6825_v31 = vpop.permute.xlu1 %2505 }
 0x1f2   :  { %9672 = vst [vmem:[#allocation80_spill] sm:$0xff] %v6797_v1  ;;  %v9763_v1 = vld [vmem:[#allocation29_spill] sm:$0xff] }
 0x1f9   :  { %v6804_v6 = vpop.permute.xlu2 %2762 }
 0x1fa   :  { %9673 = vst [vmem:[#allocation68_spill] sm:$0xff] %v6804_v6 }
 0x1ff   :  { %1648 = vrot.lane.b32.xlu0 %v1630_v0, %s5147_s29  ;;  %v1461_v0 = vadd.f32 %v9683_v62, %v1421_v42 }
 0x207   :  { %1706 = vrot.lane.b32.xlu0 %v1687_v60, %s5147_s29  ;;  %v1540_v60 = vadd.f32 %v9684_v30, %v1500_v51  ;;  %v9690_v30 = vld [vmem:[#allocation48_spill] sm:$0xff] }
 0x20b   :  { %v1647_v33 = vpop.permute.xlu2 %1646 }
 0x20c   :  { %v1741_v39 = vadd.f32 %v1647_v33, %v1461_v0  ;;  %v1669_v47 = vsub.f32 %v1461_v0, %v1647_v33  ;;  %v9691_v33 = vld [vmem:[#allocation55_spill] sm:$0xff] }
 0x20d   :  { %v1501_v0 = vmul.f32 %v9691_v33, %v6296_v24 }
 0x20e   :  { %v6809_v40 = vpop.permute.xlu0 %1272  ;;  %v1749_v56 = vmax.f32 %v1741_v39, 0.0  ;;  %v1677_v62 = vmax.f32 %v1669_v47, 0.0 }
 0x20f   :  { %9674 = vst [vmem:[#allocation135_spill] sm:$0xff] %v6809_v40  ;;  %1284 = vrot.lane.b32.xlu0 %v6671_v15, %s5143_s26  ;;  %v6820_v32 = vmax.f32 %v9675_v9, %v6809_v40 }
 0x210   :  { %1297 = vst.msk [vmem:[%s9293_s9] sm:$0xff] %vm9450_vm12, %v6809_v40  ;;  %vm1789_vm5 = vcmp.gt.f32.partialorder %v1749_v56, 32.0 }
 0x211   :  { %9676 = vst [vmem:[#allocation136_spill] sm:$0xff] %v6820_v32  ;;  %3292 = vrot.lane.b32.xlu2 %v6820_v32, %s5148_s24  ;;  %v9758_v32 = vld [vmem:[#allocation104_spill] sm:$0xff] }
 0x216   :  { %v6827_v23 = vpop.permute.xlu0 %1274 }
 0x217   :  { %9678 = vst [vmem:[#allocation71_spill] sm:$0xff] %v6827_v23  ;;  %1654 = vrot.lane.b32.xlu0 %v1633_v41, %s5147_s29  ;;  %v6842_v45 = vpop.permute.xlu2 %1704  ;;  %v6853_v22 = vmax.f32 %v6296_v24, %v6827_v23 }
 0x218   :  { %1298 = vst.msk [vmem:[%s9293_s9 + $0x8] sm:$0xff] %vm9450_vm12, %v6827_v23 }
 0x219   :  { %9686 = vst [vmem:[#allocation45_spill] sm:$0xff] %v6853_v22 }
 0x21b   :  { %v1645_v54 = vpop.permute.xlu1 %1644 }
 0x21c   :  { %v1668_v5 = vsub.f32 %v1460_v61, %v1645_v54  ;;  %v1740_v12 = vadd.f32 %v1645_v54, %v1460_v61  ;;  %v1797_v54 = vsel %vm1789_vm5, 31.0, %v1749_v56 }
 0x21e   :  { %v1701_v4 = vpop.permute.xlu0 %1700  ;;  %v1676_v26 = vmax.f32 %v1668_v5, 0.0  ;;  %v1748_v51 = vmax.f32 %v1740_v12, 0.0  ;;  %v9693_v12 = vld [vmem:[#allocation67_spill] sm:$0xff] }
 0x21f   :  { %1712 = vrot.lane.b32.xlu0 %v1690_v49, %s5147_s29  ;;  %v1724_v8 = vsub.f32 %v1540_v60, %v1701_v4  ;;  %v6849_v63 = vpop.permute.xlu2 %1280  ;;  %v1756_v5 = vadd.f32 %v1701_v4, %v1540_v60 }
 0x220   :  { %1812 = vrot.lane.b32.xlu2 %v1676_v26, %s5147_s29  ;;  %9685 = vst [vmem:[#allocation42_spill] sm:$0xff] %v6849_v63  ;;  %vm1788_vm6 = vcmp.gt.f32.partialorder %v1748_v51, 32.0  ;;  %v1424_v26 = vmul.f32 %v9690_v30, %v6465_v48 }
 0x221   :  { %v1732_v41 = vmax.f32 %v1724_v8, 0.0  ;;  %1301 = vst.msk [vmem:[%s9293_s9 + $0x20] sm:$0xff] %vm9450_vm12, %v6849_v63  ;;  %v1796_v39 = vsel %vm1788_vm6, 31.0, %v1748_v51  ;;  %v1764_v8 = vmax.f32 %v1756_v5, 0.0 }
 0x223   :  { %1852 = vrot.lane.b32.xlu1 %v1732_v41, %s5149_s12  ;;  %v6861_v42 = vpop.permute.xlu1 %1276  ;;  %v9692_v41 = vld [vmem:[#allocation17_spill] sm:$0xff]  ;;  %vm1772_vm10 = vcmp.gt.f32.partialorder %v1764_v8, 32.0 }
 0x224   :  { %9687 = vst [vmem:[#allocation62_spill] sm:$0xff] %v6861_v42  ;;  %v6870_v46 = vmax.f32 %v6366_v10, %v6861_v42  ;;  %v1464_v56 = vadd.f32 %v9692_v41, %v1424_v26  ;;  %v1780_v5 = vsel %vm1772_vm10, 31.0, %v1764_v8 }
 0x225   :  { %1299 = vst.msk [vmem:[%s9293_s9 + $0x10] sm:$0xff] %vm9450_vm12, %v6861_v42 }
 0x226   :  { %9688 = vst [vmem:[#allocation50_spill] sm:$0xff] %v6870_v46 }
 0x227   :  { %3294 = vrot.lane.b32.xlu0 %v6853_v22, %s5148_s24  ;;  %v6876_v61 = vpop.permute.xlu2 %1282  ;;  %v9745_v22 = vld [vmem:[#allocation12_spill] sm:$0xff] }
 0x228   :  { %3296 = vrot.lane.b32.xlu2 %v6870_v46, %s5148_s24  ;;  %9689 = vst [vmem:[#allocation49_spill] sm:$0xff] %v6876_v61 }
 0x229   :  { %1302 = vst.msk [vmem:[%s9293_s9 + $0x28] sm:$0xff] %vm9450_vm12, %v6876_v61 }
 0x22b   :  { %1895 = vrot.lane.b32.xlu1 %v1797_v54, %s5147_s29  ;;  %v1703_v49 = vpop.permute.xlu1 %1702  ;;  %v1541_v54 = vadd.f32 %v9693_v12, %v1501_v0  ;;  %v9697_v0 = vld [vmem:[#allocation52_spill] sm:$0xff] }
 0x22d   :  { %v1757_v47 = vadd.f32 %v1703_v49, %v1541_v54  ;;  %v1725_v33 = vsub.f32 %v1541_v54, %v1703_v49 }
 0x22f   :  { %1814 = vrot.lane.b32.xlu0 %v1677_v62, %s5147_s29  ;;  %v1653_v60 = vpop.permute.xlu2 %1652  ;;  %v9696_v62 = vld [vmem:[#allocation43_spill] sm:$0xff]  ;;  %v1765_v26 = vmax.f32 %v1757_v47, 0.0  ;;  %v1733_v23 = vmax.f32 %v1725_v33, 0.0  ;;  %v6917_v47 = vmax.f32 %v6465_v48, %v6849_v63 }
 0x230   :  { %1893 = vrot.lane.b32.xlu2 %v1796_v39, %s5147_s29  ;;  %v6892_v4 = vadd.f32 %v1653_v60, %v1464_v56  ;;  %v1423_v30 = vmul.f32 %v9696_v62, %v6423_v43  ;;  %v1672_v49 = vsub.f32 %v1464_v56, %v1653_v60 }
 0x231   :  { %vm1773_vm15 = vcmp.gt.f32.partialorder %v1765_v26, 32.0  ;;  %9698 = vst [vmem:[#allocation55_spill] sm:$0xff] %v6917_v47 }
 0x232   :  { %v1463_v39 = vadd.f32 %v9697_v0, %v1423_v30  ;;  %v1781_v40 = vsel %vm1773_vm15, 31.0, %v1765_v26  ;;  %v1752_v46 = vmax.f32 %v6892_v4, 0.0 }
 0x233   :  { %v6894_v42 = vpop.permute.xlu1 %1278 }
 0x234   :  { %9694 = vst [vmem:[#allocation61_spill] sm:$0xff] %v6894_v42  ;;  %v6903_v51 = vmax.f32 %v6423_v43, %v6894_v42  ;;  %vm1792_vm15 = vcmp.gt.f32.partialorder %v1752_v46, 32.0 }
 0x235   :  { %1300 = vst.msk [vmem:[%s9293_s9 + $0x18] sm:$0xff] %vm9450_vm12, %v6894_v42 }
 0x236   :  { %9695 = vst [vmem:[#allocation48_spill] sm:$0xff] %v6903_v51 }
 0x237   :  { %3298 = vrot.lane.b32.xlu0 %v6903_v51, %s5148_s24 }
 0x238   :  { %1934 = vrot.lane.b32.xlu2 %v1780_v5, %s5149_s12 }
 0x23b   :  { %v1651_v41 = vpop.permute.xlu1 %1650 }
 0x23c   :  { %v1743_v12 = vadd.f32 %v1651_v41, %v1463_v39 }
 0x23e   :  { %v1751_v42 = vmax.f32 %v1743_v12, 0.0  ;;  %v6930_v5 = vpop.permute.xlu2 %1710  ;;  %v9700_v12 = vld [vmem:[#allocation57_spill] sm:$0xff] }
 0x23f   :  { %1936 = vrot.lane.b32.xlu0 %v1781_v40, %s5149_s12  ;;  %v1680_v40 = vmax.f32 %v1672_v49, 0.0  ;;  %v9702_v49 = vld [vmem:[#allocation44_spill] sm:$0xff] }
 0x240   :  { %1854 = vrot.lane.b32.xlu2 %v1733_v23, %s5149_s12  ;;  %vm1791_vm0 = vcmp.gt.f32.partialorder %v1751_v42, 32.0  ;;  %v1422_v63 = vmul.f32 %v9702_v49, %v6366_v10 }
 0x241   :  { %v1799_v62 = vsel %vm1791_vm0, 31.0, %v1751_v42 }
 0x243   :  { %v6913_v8 = vpop.permute.xlu1 %1708 }
 0x246   :  { %v6932_v60 = vpop.permute.xlu2 %1658 }
 0x247   :  { %1899 = vrot.lane.b32.xlu0 %v1799_v62, %s5147_s29  ;;  %v9701_v62 = vrot.slane %v9700_v12, 1 }
 0x248   :  { %3300 = vrot.lane.b32.xlu2 %v6917_v47, %s5148_s24 }
 0x24c   :  { %v6922_v54 = vpop.permute.xlu1 %1286 }
 0x24d   :  { %9699 = vst [vmem:[#allocation17_spill] sm:$0xff] %v6922_v54 }
 0x24e   :  { %1304 = vst.msk [vmem:[%s9293_s9 + $0x38] sm:$0xff] %vm9450_vm12, %v6922_v54 }
 0x24f   :  { %1820 = vrot.lane.b32.xlu0 %v1680_v40, %s5147_s29  ;;  %v9703_v40 = vld [vmem:[#allocation58_spill] sm:$0xff] }
 0x250   :  { %v9704_v51 = vrot.slane %v9703_v40, 1  ;;  %v9708_v40 = vld [vmem:[#allocation25_spill] sm:$0xff] }
 0x25e   :  { %v2346_v23 = vpop.xlane.xlu0 %2345 }
 0x25f   :  { %v2347_v42 = vrot.slane %v2346_v23, 4 }
 0x261   :  { %v2348_v30 = vmax.f32 %v2346_v23, %v2347_v42  ;;  %v9705_v23 = vld [vmem:[#allocation53_spill] sm:$0xff] }
 0x262   :  { %v1462_v42 = vadd.f32 %v9705_v23, %v1422_v63  ;;  %v1504_v23 = vmul.f32 %v9708_v40, %v6465_v48 }
 0x263   :  { %v2349_v26 = vrot.slane %v2348_v30, 2 }
 0x265   :  { %v2350_v33 = vmax.f32 %v2348_v30, %v2349_v26  ;;  %v9706_v26 = vld [vmem:[#allocation24_spill] sm:$0xff] }
 0x267   :  { %v2351_v0 = vrot.slane %v2350_v33, 1 }
 0x269   :  { %v2352_v56 = vmax.f32 %v2350_v33, %v2351_v0  ;;  %v1502_v33 = vmul.f32 %v9706_v26, %v6366_v10 }
 0x26b   :  { %4776 = vpush %v2352_v56 }
 0x26c   :  { %4778 = vpush %v9701_v62  ;;  %v9707_v62 = vld [vmem:[#allocation72_spill] sm:$0xff] }
 0x26d   :  { %4780 = vpush %v6800_v52  ;;  %v6948_v52 = vpop.permute.xlu2 %3292 }
 0x26e   :  { %4782 = vpush %v9704_v51 }
 0x26f   :  { %4784 = vpush %v6767_v11  ;;  %v1542_v11 = vadd.f32 %v9707_v62, %v1502_v33 }
 0x270   :  { %4786 = vpush %v6807_v37 }
 0x271   :  { %4788 = vpush %v6789_v53  ;;  %v1649_v30 = vpop.permute.xlu0 %1648  ;;  %v1726_v53 = vsub.f32 %v1542_v11, %v6842_v45  ;;  %v1758_v49 = vadd.f32 %v6842_v45, %v1542_v11 }
 0x272   :  { %4790 = vpush %v6825_v31  ;;  %v1670_v0 = vsub.f32 %v1462_v42, %v1649_v30  ;;  %v1742_v56 = vadd.f32 %v1649_v30, %v1462_v42  ;;  %v1671_v31 = vsub.f32 %v1463_v39, %v1651_v41  ;;  %v9709_v30 = vld [vmem:[#allocation64_spill] sm:$0xff]  ;;  %v9711_v41 = vld [vmem:[#allocation63_spill] sm:$0xff] }
 0x273   :  { %v1503_v26 = vmul.f32 %v9709_v30, %v6423_v43  ;;  %v1734_v33 = vmax.f32 %v1726_v53, 0.0  ;;  %v1766_v45 = vmax.f32 %v1758_v49, 0.0  ;;  %v6985_v30 = vpop.permute.xlu1 %1656 }
 0x274   :  { %v1678_v12 = vmax.f32 %v1670_v0, 0.0  ;;  %v1750_v51 = vmax.f32 %v1742_v56, 0.0  ;;  %v9710_v0 = vld [vmem:[#allocation70_spill] sm:$0xff] }
 0x275   :  { %v1544_v56 = vadd.f32 %v9710_v0, %v1504_v23  ;;  %vm1774_vm3 = vcmp.gt.f32.partialorder %v1766_v45, 32.0  ;;  %v9715_v0 = vld [vmem:[#allocation46_spill] sm:$0xff] }
 0x276   :  { %1816 = vrot.lane.b32.xlu1 %v1678_v12, %s5147_s29  ;;  %vm1790_vm1 = vcmp.gt.f32.partialorder %v1750_v51, 32.0  ;;  %v1679_v12 = vmax.f32 %v1671_v31, 0.0  ;;  %v1782_v31 = vsel %vm1774_vm3, 31.0, %v1766_v45  ;;  %v6994_v45 = vmax.f32 %v6593_v36, %v6876_v61 }
 0x277   :  { %v1798_v37 = vsel %vm1790_vm1, 31.0, %v1750_v51  ;;  %v1760_v39 = vadd.f32 %v6913_v8, %v1544_v56  ;;  %v1543_v51 = vadd.f32 %v9711_v41, %v1503_v26  ;;  %v9714_v26 = vld [vmem:[#allocation66_spill] sm:$0xff] }
 0x278   :  { %1897 = vrot.lane.b32.xlu2 %v1798_v37, %s5147_s29  ;;  %9716 = vst [vmem:[#allocation52_spill] sm:$0xff] %v6994_v45 }
 0x279   :  { %v1707_v63 = vpop.permute.xlu0 %1706  ;;  %v1768_v49 = vmax.f32 %v1760_v39, 0.0  ;;  %v9717_v39 = vld [vmem:[#allocation59_spill] sm:$0xff] }
 0x27a   :  { %v1813_v42 = vpop.permute.xlu2 %1812  ;;  %v1727_v11 = vsub.f32 %v1543_v51, %v1707_v63  ;;  %v1759_v53 = vadd.f32 %v1707_v63, %v1543_v51  ;;  %v1506_v41 = vmul.f32 %v9717_v39, %v6671_v15 }
 0x27b   :  { %1836 = vst.msk [vmem:[%s9292_s8] sm:$0xff] %vm9450_vm12, %v1813_v42  ;;  %vm1776_vm5 = vcmp.gt.f32.partialorder %v1768_v49, 32.0 }
 0x27c   :  { %v1735_v40 = vmax.f32 %v1727_v11, 0.0  ;;  %v1767_v23 = vmax.f32 %v1759_v53, 0.0  ;;  %v1784_v63 = vsel %vm1776_vm5, 31.0, %v1768_v49  ;;  %v9718_v11 = vld [vmem:[#allocation74_spill] sm:$0xff]  ;;  %v1728_v49 = vsub.f32 %v1544_v56, %v6913_v8 }
 0x27e   :  { %1856 = vrot.lane.b32.xlu1 %v1734_v33, %s5149_s12  ;;  %v1505_v33 = vmul.f32 %v9714_v26, %v6593_v36  ;;  %vm1775_vm6 = vcmp.gt.f32.partialorder %v1767_v23, 32.0  ;;  %v9720_v26 = vld [vmem:[#allocation65_spill] sm:$0xff] }
 0x27f   :  { %v1783_v51 = vsel %vm1775_vm6, 31.0, %v1767_v23 }
 0x280   :  { %1818 = vrot.lane.b32.xlu2 %v1679_v12, %s5147_s29  ;;  %v1426_v12 = vmul.f32 %v9715_v0, %v6671_v15  ;;  %v1545_v53 = vadd.f32 %v9718_v11, %v1505_v33  ;;  %v9721_v0 = vld [vmem:[#allocation51_spill] sm:$0xff]  ;;  %v9722_v33 = vld [vmem:[#allocation69_spill] sm:$0xff] }
 0x281   :  { %v6968_v62 = vpop.permute.xlu0 %1284 }
 0x282   :  { %9712 = vst [vmem:[#allocation67_spill] sm:$0xff] %v6968_v62  ;;  %v6977_v37 = vmax.f32 %v6671_v15, %v6968_v62  ;;  %v7009_v39 = vpop.permute.xlu2 %3296  ;;  %v1761_v23 = vadd.f32 %v6930_v5, %v1545_v53 }
 0x283   :  { %1303 = vst.msk [vmem:[%s9293_s9 + $0x30] sm:$0xff] %vm9450_vm12, %v6968_v62  ;;  %v1427_v62 = vmul.f32 %v9721_v0, %v6723_v20  ;;  %v9724_v0 = vld [vmem:[#allocation47_spill] sm:$0xff] }
 0x284   :  { %9713 = vst [vmem:[#allocation43_spill] sm:$0xff] %v6977_v37  ;;  %3304 = vrot.lane.b32.xlu0 %v6977_v37, %s5148_s24  ;;  %v1729_v37 = vsub.f32 %v1545_v53, %v6930_v5  ;;  %v1769_v29 = vmax.f32 %v1761_v23, 0.0  ;;  %v3316_v23 = vsub.f32 %v9675_v9, %v6948_v52 }
 0x286   :  { %1938 = vrot.lane.b32.xlu1 %v1782_v31, %s5149_s12  ;;  %v9719_v31 = vld [vmem:[#allocation54_spill] sm:$0xff]  ;;  %v1737_v47 = vmax.f32 %v1729_v37, 0.0  ;;  %vm7034_vm0 = vcmp.gt.f32.partialorder %v1769_v29, 32.0 }
 0x288   :  { %1858 = vrot.lane.b32.xlu2 %v1735_v40, %s5149_s12  ;;  %v7003_v40 = vadd.f32 %v9719_v31, %v1426_v12  ;;  %v1507_v12 = vmul.f32 %v9722_v33, %v6723_v20  ;;  %v9723_v31 = vld [vmem:[#allocation56_spill] sm:$0xff] }
 0x289   :  { %v6983_v42 = vpop.permute.xlu0 %1654 }
 0x28a   :  { %v1746_v8 = vadd.f32 %v6985_v30, %v7003_v40 }
 0x28c   :  { %1942 = vrot.lane.b32.xlu0 %v1784_v63, %s5149_s12  ;;  %v1546_v63 = vadd.f32 %v9720_v26, %v1506_v41  ;;  %v1736_v41 = vmax.f32 %v1728_v49, 0.0  ;;  %v1467_v26 = vadd.f32 %v9723_v31, %v1427_v62  ;;  %v1754_v5 = vmax.f32 %v1746_v8, 0.0  ;;  %v9725_v49 = vld [vmem:[#allocation73_spill] sm:$0xff]  ;;  %v9726_v62 = vld [vmem:[#allocation60_spill] sm:$0xff] }
 0x28e   :  { %3302 = vrot.lane.b32.xlu1 %v6994_v45, %s5148_s24  ;;  %v1425_v45 = vmul.f32 %v9724_v0, %v6593_v36  ;;  %v1675_v53 = vsub.f32 %v1467_v26, %v6932_v60  ;;  %v7025_v33 = vadd.f32 %v6932_v60, %v1467_v26  ;;  %vm1794_vm10 = vcmp.gt.f32.partialorder %v1754_v5, 32.0  ;;  %v9767_v36 = vld [vmem:[#allocation30_spill] sm:$0xff] }
 0x28f   :  { %v7065_v26 = vsel %vm7034_vm0, 31.0, %v1769_v29  ;;  %v1674_v0 = vsub.f32 %v7003_v40, %v6985_v30  ;;  %v9730_v29 = vld [vmem:[#allocation9_spill] sm:$0xff] }
 0x290   :  { %1940 = vrot.lane.b32.xlu2 %v1783_v51, %s5149_s12  ;;  %v1715_v51 = vpop.permute.xlu1 %1714  ;;  %v7030_v31 = vadd.f32 %v9726_v62, %v1425_v45  ;;  %v7046_v45 = vmax.f32 %v1675_v53, 0.0  ;;  %v3318_v62 = vsub.f32 %v6366_v10, %v7009_v39  ;;  %v9731_v30 = vld [vmem:[#allocation85_spill] sm:$0xff]  ;;  %v9734_v39 = vld [vmem:[#allocation88_spill] sm:$0xff]  ;;  %v9737_v10 = vld [vmem:[#allocation91_spill] sm:$0xff] }
 0x291   :  { %v1713_v61 = vpop.permute.xlu0 %1712 }
 0x292   :  { %v1730_v56 = vsub.f32 %v1546_v63, %v1713_v61  ;;  %v1745_v60 = vadd.f32 %v6983_v42, %v7030_v31  ;;  %v7042_v8 = vadd.f32 %v1713_v61, %v1546_v63  ;;  %v1802_v61 = vsel %vm1794_vm10, 31.0, %v1754_v5 }
 0x293   :  { %v1800_v63 = vsel %vm1792_vm15, 31.0, %v1752_v46  ;;  %v3324_v46 = vmul.f32 1.442695, %v3316_v23 }
 0x294   :  { %v1738_v11 = vmax.f32 %v1730_v56, 0.0  ;;  %v1547_v56 = vadd.f32 %v9725_v49, %v1507_v12  ;;  %v1753_v5 = vmax.f32 %v1745_v60, 0.0  ;;  %v9735_v60 = vld [vmem:[#allocation89_spill] sm:$0xff] }
 0x295   :  { %4947 = vpow2.f32 %v3324_v46 }
 0x296   :  { %1864 = vrot.lane.b32.xlu0 %v1738_v11, %s5149_s12  ;;  %1860 = vrot.lane.b32.xlu1 %v1736_v41, %s5149_s12  ;;  %v7032_v4 = vadd.f32 %v1715_v51, %v1547_v56  ;;  %v7057_v41 = vmax.f32 %v6723_v20, %v6922_v54  ;;  %v1731_v53 = vsub.f32 %v1547_v56, %v1715_v51  ;;  %v9732_v51 = vld [vmem:[#allocation86_spill] sm:$0xff]  ;;  %vm7099_vm3 = vcmp.gt.f32.partialorder %v1753_v5, 32.0  ;;  %v9765_v20 = vld [vmem:[#allocation28_spill] sm:$0xff] }
 0x298   :  { %1862 = vrot.lane.b32.xlu2 %v1737_v47, %s5149_s12  ;;  %v1894_v47 = vpop.permute.xlu2 %1893  ;;  %v1853_v52 = vpop.permute.xlu1 %1852  ;;  %9729 = vst [vmem:[#allocation57_spill] sm:$0xff] %v7057_v41  ;;  %v1771_v49 = vmax.f32 %v7032_v4, 0.0  ;;  %v9733_v4 = vld [vmem:[#allocation87_spill] sm:$0xff] }
 0x299   :  { %v7044_v12 = vpop.permute.xlu0 %3294  ;;  %4602 = vst.msk [vmem:[%s9292_s8 + $0x80] sm:$0xff] %vm9450_vm12, %v1894_v47  ;;  %v1770_v47 = vmax.f32 %v7042_v8, 0.0 }
 0x29a   :  { %4594 = vst.msk [vmem:[%s9292_s8 + $0x40] sm:$0xff] %vm9450_vm12, %v1853_v52  ;;  %vm7095_vm1 = vcmp.gt.f32.partialorder %v1771_v49, 32.0 }
 0x29b   :  { %vm7103_vm5 = vcmp.gt.f32.partialorder %v1770_v47, 32.0 }
 0x29c   :  { %s7049_s9 = spop %4776 }
 0x29d   :  { %s4779_s23 = spop %4778 }
 0x29e   :  { %1905 = vrot.lane.b32.xlu0 %v1802_v61, %s5147_s29  ;;  %v2373_v52 = vstv %s4779_s23  ;;  %s7074_s3 = spop %4780  ;;  %1901 = vrot.lane.b32.xlu1 %v1800_v63, %s5147_s29  ;;  %v9736_v61 = vld [vmem:[#allocation90_spill] sm:$0xff]  ;;  %v7087_v63 = vmax.f32 %v1674_v0, 0.0 }
 0x29f   :  { %v2375_v37 = vmin.f32 %v9730_v29, %v2373_v52  ;;  %v2376_v40 = vmin.f32 %v9731_v30, %v2373_v52  ;;  %v2377_v56 = vmin.f32 %v9732_v51, %v2373_v52  ;;  %v2378_v11 = vmin.f32 %v9733_v4, %v2373_v52  ;;  %s4783_s11 = spop %4782 }
 0x2a0   :  { %3306 = vrot.lane.b32.xlu2 %v7057_v41, %s5148_s24  ;;  %v2379_v23 = vmin.f32 %v9734_v39, %v2373_v52  ;;  %v2380_v8 = vmin.f32 %v9735_v60, %v2373_v52  ;;  %v2381_v54 = vmin.f32 %v9736_v61, %v2373_v52  ;;  %v2382_v28 = vmin.f32 %v9737_v10, %v2373_v52  ;;  %s7093_s13 = spop %4784  ;;  %v1935_v39 = vpop.permute.xlu2 %1934  ;;  %v9744_v61 = vld [vmem:[#allocation16_spill] sm:$0xff] }
 0x2a1   :  { %v7089_v29 = vmax.f32 %v1731_v53, 0.0  ;;  %v1673_v30 = vsub.f32 %v7030_v31, %v6983_v42  ;;  %v3328_v51 = vmul.f32 1.442695, %v3318_v62  ;;  %v1815_v60 = vpop.permute.xlu0 %1814  ;;  %v2383_v42 = vadd.f32 %v2375_v37, %v5261_v18  ;;  %4610 = vst.msk [vmem:[%s9292_s8 + $0xc0] sm:$0xff] %vm9450_vm12, %v1935_v39  ;;  %s4787_s16 = spop %4786  ;;  %v9760_v18 = vld [vmem:[#allocation106_spill] sm:$0xff] }
 0x2a2   :  { %v2384_v31 = vadd.f32 %v2376_v40, %v5230_v7  ;;  %v2385_v53 = vadd.f32 %v2377_v56, %v5224_v3  ;;  %v2386_v62 = vadd.f32 %v2378_v11, %v5347_v50  ;;  %v2387_v46 = vadd.f32 %v2379_v23, %v5268_v21  ;;  %1837 = vst.msk [vmem:[%s9292_s8 + $0x8] sm:$0xff] %vm9450_vm12, %v1815_v60  ;;  %s4789_s18 = spop %4788  ;;  %v9751_v50 = vld [vmem:[#allocation96_spill] sm:$0xff] }
 0x2a3   :  { %v2388_v52 = vadd.f32 %v2380_v8, %v5259_v16  ;;  %v2389_v41 = vadd.f32 %v2381_v54, %v9744_v61  ;;  %v2390_v57 = vadd.f32 %v2382_v28, %v9745_v22  ;;  %v1681_v11 = vmax.f32 %v1673_v30, 0.0  ;;  %v1896_v54 = vpop.permute.xlu1 %1895  ;;  %v9755_v7 = vld [vmem:[#allocation100_spill] sm:$0xff]  ;;  %v9756_v16 = vld [vmem:[#allocation101_spill] sm:$0xff]  ;;  %s4791_s28 = spop %4790 }
 0x2a4   :  { %4949 = vpow2.f32 %v3328_v51  ;;  %v1787_v37 = vsel %vm7095_vm1, 31.0, %v1771_v49  ;;  %v1801_v40 = vsel %vm7099_vm3, 31.0, %v1753_v5  ;;  %v2395_v56 = vstv %s7074_s3  ;;  %v4948_v5 = vpop.eup %4947  ;;  %4603 = vst.msk [vmem:[%s9292_s8 + $0x88] sm:$0xff] %vm9450_vm12, %v1896_v54  ;;  %v9752_v54 = vld [vmem:[#allocation97_spill] sm:$0xff] }
 0x2a5   :  { %v7128_v23 = vstv %s4783_s11  ;;  %v7135_v8 = vsel %vm7103_vm5, 31.0, %v1770_v47  ;;  %v2397_v30 = vadd.f32 %v2395_v56, %v2383_v42  ;;  %v2398_v49 = vadd.f32 %v2395_v56, %v2384_v31 }
 0x2a6   :  { %1948 = vrot.lane.b32.xlu0 %v1787_v37, %s5149_s12  ;;  %v2399_v51 = vadd.f32 %v2395_v56, %v2385_v53  ;;  %v2400_v4 = vadd.f32 %v2395_v56, %v2386_v62  ;;  %1822 = vrot.lane.b32.xlu1 %v1681_v11, %s5147_s29  ;;  %v2401_v39 = vadd.f32 %v2395_v56, %v2387_v46  ;;  %v9746_v37 = vld [vmem:[#allocation10_spill] sm:$0xff]  ;;  %v2436_v47 = vstv %s7093_s13 }
 0x2a7   :  { %v2402_v60 = vadd.f32 %v2395_v56, %v2388_v52  ;;  %v7138_v10 = vadd.f32 %v2395_v56, %v2389_v41  ;;  %v7140_v28 = vadd.f32 %v2395_v56, %v2390_v57  ;;  %v2409_v0 = vmax.f32 %v9746_v37, %v7128_v23  ;;  %v9747_v41 = vld [vmem:[#allocation92_spill] sm:$0xff]  ;;  %v9748_v57 = vld [vmem:[#allocation93_spill] sm:$0xff]  ;;  %v9749_v62 = vld [vmem:[#allocation94_spill] sm:$0xff] }
 0x2a8   :  { %1903 = vrot.lane.b32.xlu2 %v1801_v40, %s5147_s29  ;;  %v7146_v22 = vstv %s4787_s16  ;;  %v7148_v42 = vstv %s4789_s18  ;;  %v2410_v31 = vmax.f32 %v9747_v41, %v7128_v23  ;;  %v2411_v53 = vmax.f32 %v9748_v57, %v7128_v23  ;;  %v9750_v52 = vld [vmem:[#allocation95_spill] sm:$0xff]  ;;  %v1855_v40 = vpop.permute.xlu2 %1854  ;;  %v9753_v41 = vld [vmem:[#allocation98_spill] sm:$0xff] }
 0x2a9   :  { %v2412_v46 = vmax.f32 %v9749_v62, %v7128_v23  ;;  %v2413_v11 = vmax.f32 %v9750_v52, %v7128_v23  ;;  %v7162_v56 = vpop.permute.xlu0 %3298  ;;  %v2414_v21 = vmax.f32 %v9751_v50, %v7128_v23  ;;  %v7170_v57 = vsub.f32 %v2397_v30, %v2409_v0  ;;  %4595 = vst.msk [vmem:[%s9292_s8 + $0x48] sm:$0xff] %vm9450_vm12, %v1855_v40  ;;  %v9754_v62 = vld [vmem:[#allocation99_spill] sm:$0xff] }
 0x2aa   :  { %v4950_v37 = vpop.eup %4949  ;;  %v2438_v52 = vmin.f32 %v9754_v62, %v2436_v47  ;;  %v2439_v61 = vmin.f32 %v9755_v7, %v2436_v47  ;;  %v2440_v59 = vmin.f32 %v9756_v16, %v2436_v47  ;;  %v9757_v50 = vld [vmem:[#allocation103_spill] sm:$0xff]  ;;  %v2442_v3 = vmin.f32 %v9758_v32, %v2436_v47 }
 0x2ab   :  { %v2441_v9 = vmin.f32 %v9757_v50, %v2436_v47  ;;  %v2443_v34 = vmin.f32 %v9759_v44, %v2436_v47  ;;  %v2444_v30 = vmin.f32 %v9760_v18, %v2436_v47  ;;  %v9761_v0 = vld [vmem:[#allocation107_spill] sm:$0xff]  ;;  %v7189_v16 = vsub.f32 %v2398_v49, %v2410_v31 }
 0x2ac   :  { %v2445_v2 = vmin.f32 %v9761_v0, %v2436_v47  ;;  %v2446_v6 = vadd.f32 %v2438_v52, %v9762_v25  ;;  %v2447_v40 = vadd.f32 %v2439_v61, %v9763_v1  ;;  %v2448_v62 = vadd.f32 %v2440_v59, %v9764_v17  ;;  %v9766_v32 = vld [vmem:[#allocation31_spill] sm:$0xff]  ;;  %v9772_v0 = vld [vmem:[#allocation110_spill] sm:$0xff] }
 0x2ad   :  { %v2449_v7 = vadd.f32 %v2441_v9, %v9765_v20  ;;  %v7191_v50 = vsub.f32 %v2399_v51, %v2411_v53  ;;  %v2450_v44 = vadd.f32 %v2442_v3, %v9766_v32  ;;  %v2451_v18 = vadd.f32 %v2443_v34, %v9767_v36  ;;  %v9768_v51 = vld [vmem:[#allocation34_spill] sm:$0xff]  ;;  %v9769_v3 = vld [vmem:[#allocation32_spill] sm:$0xff] }
 0x2ae   :  { %3348 = vrot.lane.b32.xlu0 %v4948_v5, %s5143_s26  ;;  %1944 = vrot.lane.b32.xlu1 %v7065_v26, %s5149_s12  ;;  %v2459_v47 = vadd.f32 %v7146_v22, %v2446_v6  ;;  %v2460_v61 = vadd.f32 %v7146_v22, %v2447_v40  ;;  %v2461_v59 = vadd.f32 %v7146_v22, %v2448_v62  ;;  %v9770_v26 = vld [vmem:[#allocation108_spill] sm:$0xff]  ;;  %v9771_v6 = vld [vmem:[#allocation109_spill] sm:$0xff]  ;;  %v9773_v62 = vld [vmem:[#allocation111_spill] sm:$0xff]  ;;  %v2425_v25 = vmax.f32 %v7170_v57, 0.0 }
 0x2af   :  { %v2462_v9 = vadd.f32 %v7146_v22, %v2449_v7  ;;  %v2420_v49 = vsub.f32 %v2400_v4, %v2412_v46  ;;  %v2452_v5 = vadd.f32 %v2444_v30, %v9768_v51  ;;  %v2453_v31 = vadd.f32 %v2445_v2, %v9769_v3 }
 0x2b0   :  { %1824 = vrot.lane.b32.xlu2 %v7087_v63, %s5147_s29  ;;  %v2463_v34 = vadd.f32 %v7146_v22, %v2450_v44  ;;  %v2472_v53 = vmax.f32 %v9770_v26, %v7148_v42  ;;  %v2473_v52 = vmax.f32 %v9771_v6, %v7148_v42  ;;  %v2474_v40 = vmax.f32 %v9772_v0, %v7148_v42  ;;  %v9777_v26 = vld [vmem:[#allocation112_spill] sm:$0xff] }
 0x2b1   :  { %v2475_v7 = vmax.f32 %v9773_v62, %v7148_v42  ;;  %v9774_v63 = vmax.f32 %v7025_v33, 0.0  ;;  %v1937_v2 = vpop.permute.xlu0 %1936  ;;  %v2421_v46 = vsub.f32 %v2401_v39, %v2413_v11  ;;  %v2422_v30 = vsub.f32 %v2402_v60, %v2414_v21  ;;  %v9778_v21 = vld [vmem:[#allocation114_spill] sm:$0xff] }
 0x2b2   :  { %v2464_v44 = vadd.f32 %v7146_v22, %v2451_v18  ;;  %v2476_v6 = vmax.f32 %v9777_v26, %v7148_v42  ;;  %4611 = vst.msk [vmem:[%s9292_s8 + $0xc8] sm:$0xff] %vm9450_vm12, %v1937_v2  ;;  %v2480_v0 = vsub.f32 %v2459_v47, %v2472_v53  ;;  %v2481_v62 = vsub.f32 %v2460_v61, %v2473_v52  ;;  %v9779_v47 = vld [vmem:[#allocation115_spill] sm:$0xff] }
 0x2b3   :  { %vm7216_vm6 = vcmp.gt.f32.partialorder %v9774_v63, 32.0  ;;  %v2482_v36 = vsub.f32 %v2461_v59, %v2474_v40  ;;  %v2483_v63 = vsub.f32 %v2462_v9, %v2475_v7  ;;  %v2426_v51 = vmax.f32 %v7189_v16, 0.0  ;;  %v9780_v9 = vld [vmem:[#allocation116_spill] sm:$0xff] }
 0x2b4   :  { %v2477_v39 = vmax.f32 %v9778_v21, %v7148_v42  ;;  %v2484_v60 = vsub.f32 %v2463_v34, %v2476_v6  ;;  %v2427_v11 = vmax.f32 %v7191_v50, 0.0  ;;  %v2428_v18 = vmax.f32 %v2420_v49, 0.0 }
 0x2b5   :  { %v2465_v26 = vadd.f32 %v7146_v22, %v2452_v5  ;;  %v2466_v2 = vadd.f32 %v7146_v22, %v2453_v31  ;;  %v2478_v61 = vmax.f32 %v9779_v47, %v7148_v42  ;;  %v2488_v59 = vmax.f32 %v2480_v0, 0.0  ;;  %v9784_v0 = vld [vmem:[#allocation117_spill] sm:$0xff] }
 0x2b6   :  { %3352 = vrot.lane.b32.xlu0 %v4950_v37, %s5143_s26  ;;  %v2485_v57 = vsub.f32 %v2464_v44, %v2477_v39  ;;  %v2489_v16 = vmax.f32 %v2481_v62, 0.0  ;;  %1866 = vrot.lane.b32.xlu1 %v7089_v29, %s5149_s12  ;;  %v2479_v34 = vmax.f32 %v9780_v9, %v7148_v42  ;;  %v2490_v50 = vmax.f32 %v2482_v36, 0.0 }
 0x2b7   :  { %v2491_v49 = vmax.f32 %v2483_v63, 0.0  ;;  %v2508_v53 = vstv %s4791_s28  ;;  %v9781_v22 = vmax.f32 %v9752_v54, %v7128_v23  ;;  %v2429_v5 = vmax.f32 %v2421_v46, 0.0  ;;  %v9785_v46 = vld [vmem:[#allocation118_spill] sm:$0xff] }
 0x2b8   :  { %1946 = vrot.lane.b32.xlu2 %v7135_v8, %s5149_s12  ;;  %v2492_v31 = vmax.f32 %v2484_v60, 0.0  ;;  %v9782_v52 = vsub.f32 %v6296_v24, %v7044_v12  ;;  %v9783_v42 = vmax.f32 %v9753_v41, %v7128_v23  ;;  %v2430_v40 = vmax.f32 %v2422_v30, 0.0  ;;  %v9786_v41 = vld [vmem:[#allocation119_spill] sm:$0xff] }
 0x2b9   :  { %v2423_v37 = vsub.f32 %v7138_v10, %v9781_v22  ;;  %v2486_v7 = vsub.f32 %v2465_v26, %v2478_v61  ;;  %v2487_v44 = vsub.f32 %v2466_v2, %v2479_v34  ;;  %v1900_v8 = vpop.permute.xlu0 %1899  ;;  %v2493_v6 = vmax.f32 %v2485_v57, 0.0  ;;  %v9788_v26 = vld [vmem:[#allocation120_spill] sm:$0xff] }
 0x2ba   :  { %v3326_v29 = vmul.f32 1.442695, %v9782_v52  ;;  %v2424_v36 = vsub.f32 %v7140_v28, %v9783_v42  ;;  %v2510_v54 = vadd.f32 %v2508_v53, %v9784_v0  ;;  %4605 = vst.msk [vmem:[%s9292_s8 + $0x98] sm:$0xff] %vm9450_vm12, %v1900_v8  ;;  %v7259_v10 = vmul.f32 %v2488_v59, %v2425_v25 }
 0x2bb   :  { %v7261_v12 = vmul.f32 %v2489_v16, %v2426_v51  ;;  %v2511_v23 = vadd.f32 %v2508_v53, %v9785_v46  ;;  %v2512_v28 = vadd.f32 %v2508_v53, %v9786_v41  ;;  %v7265_v30 = vmul.f32 %v2490_v50, %v2427_v11  ;;  %v9790_v16 = vld [vmem:[#allocation123_spill] sm:$0xff]  ;;  %v7335_v46 = vpop.permute.xlu2 %3300 }
 0x2bc   :  { %v7267_v62 = vmul.f32 %v2491_v49, %v2428_v18  ;;  %v2431_v63 = vmax.f32 %v2423_v37, 0.0  ;;  %v9787_v21 = vmax.f32 %v7025_v33, 0.0  ;;  %v7273_v60 = vmul.f32 %v2492_v31, %v2429_v5  ;;  %v9789_v18 = vld [vmem:[#allocation122_spill] sm:$0xff]  ;;  %v9791_v37 = vld [vmem:[#allocation124_spill] sm:$0xff] }
 0x2bd   :  { %v7276_v25 = vsub.f32 %v2510_v54, %v7259_v10  ;;  %v2494_v51 = vmax.f32 %v2486_v7, 0.0  ;;  %v2513_v2 = vadd.f32 %v2508_v53, %v9788_v26  ;;  %v7280_v47 = vsub.f32 %v2511_v23, %v7261_v12 }
 0x2be   :  { %v1803_v39 = vsel %vm7216_vm6, 31.0, %v9787_v21  ;;  %v7283_v11 = vsub.f32 %v2512_v28, %v7265_v30  ;;  %v2514_v61 = vadd.f32 %v2508_v53, %v9789_v18  ;;  %4951 = vpow2.f32 %v3326_v29 }
 0x2bf   :  { %1907 = vrot.lane.b32.xlu1 %v1803_v39, %s5147_s29  ;;  %v7287_v33 = vmul.f32 %v2493_v6, %v2430_v40  ;;  %v2432_v4 = vmax.f32 %v2424_v36, 0.0  ;;  %v2495_v57 = vmax.f32 %v2487_v44, 0.0  ;;  %v7292_v59 = vsub.f32 %v2513_v2, %v7267_v62  ;;  %v9792_v40 = vld [vmem:[#allocation125_spill] sm:$0xff] }
 0x2c0   :  { %1826 = vrot.lane.b32.xlu2 %v7046_v45, %s5147_s29  ;;  %4953 = vrcp.f32 %v7276_v25  ;;  %v2515_v9 = vadd.f32 %v2508_v53, %v9790_v16  ;;  %v3319_v34 = vsub.f32 %v6423_v43, %v7162_v56  ;;  %v7299_v50 = vsub.f32 %v2514_v61, %v7273_v60 }
 0x2c1   :  { %4955 = vrcp.f32 %v7280_v47  ;;  %v1821_v49 = vpop.permute.xlu0 %1820  ;;  %v7302_v22 = vmul.f32 %v2494_v51, %v2431_v63  ;;  %v2516_v56 = vadd.f32 %v2508_v53, %v9791_v37  ;;  %v7314_v52 = vmul.f32 %v2495_v57, %v2432_v4 }
 0x2c2   :  { %4957 = vrcp.f32 %v7283_v11  ;;  %1840 = vst.msk [vmem:[%s9292_s8 + $0x20] sm:$0xff] %vm9450_vm12, %v1821_v49  ;;  %v7310_v45 = vsub.f32 %v2515_v9, %v7287_v33  ;;  %v3330_v31 = vmul.f32 1.442695, %v3319_v34  ;;  %v2517_v7 = vadd.f32 %v2508_v53, %v9792_v40 }
 0x2c3   :  { %4959 = vrcp.f32 %v7292_v59  ;;  %v7320_v42 = vsub.f32 %v2516_v56, %v7302_v22  ;;  %v2537_v6 = vand.u32 2147483648, %v7276_v25  ;;  %v2552_v54 = vand.u32 2147483648, %v7280_v47 }
 0x2c4   :  { %v4952_v5 = vpop.eup %4951  ;;  %4961 = vrcp.f32 %v7299_v50  ;;  %v7338_v53 = vsub.f32 %v2517_v7, %v7314_v52  ;;  %vm2531_vm10 = vweird.f32 %v7276_v25  ;;  %v2535_v63 = vand.u32 2147483647, %v7276_v25 }
 0x2c5   :  { %4963 = vrcp.f32 %v7310_v45  ;;  %vm2546_vm15 = vweird.f32 %v7280_v47  ;;  %v2550_v51 = vand.u32 2147483647, %v7280_v47  ;;  %v2567_v26 = vand.u32 2147483648, %v7283_v11 }
 0x2c6   :  { %v7317_v29 = vpop.eup %4953  ;;  %4965 = vpow2.f32 %v3330_v31  ;;  %v7354_v18 = vor.u32 1.1754944e-38, %v2537_v6  ;;  %v7356_v61 = vor.u32 1.1754944e-38, %v2552_v54  ;;  %v2565_v4 = vand.u32 2147483647, %v7283_v11 }
 0x2c7   :  { %v7322_v36 = vpop.eup %4955  ;;  %v2527_v44 = vmul.f32 %v7317_v29, %v7276_v25  ;;  %4967 = vrcp.f32 %v7320_v42  ;;  %v2595_v37 = vand.u32 2147483647, %v7299_v50  ;;  %vm2561_vm0 = vweird.f32 %v7283_v11 }
 0x2c8   :  { %v7328_v8 = vpop.eup %4957  ;;  %3350 = vrot.lane.b32.xlu2 %v4952_v5, %s5143_s26  ;;  %v2542_v0 = vmul.f32 %v7322_v36, %v7280_v47  ;;  %vm2591_vm1 = vweird.f32 %v7299_v50  ;;  %vm2532_vm3 = vweird.f32 %v7317_v29  ;;  %vm7379_vm5 = vcmp.eq.f32.partialorder %v2535_v63, 8.507059e+37 }
 0x2c9   :  { %v2528_v23 = vsub.f32 1.0, %v2527_v44  ;;  %v2557_v41 = vmul.f32 %v7328_v8, %v7283_v11  ;;  %v7342_v28 = vpop.eup %4959  ;;  %v7370_v44 = vor.u32 1.1754944e-38, %v2567_v26  ;;  %vm7383_vm6 = vcmp.eq.f32.partialorder %v2550_v51, 8.507059e+37  ;;  %vm7409_vm14 = vmor %vm2531_vm10, %vm2532_vm3 }
 0x2ca   :  { %v2543_v21 = vsub.f32 1.0, %v2542_v0  ;;  %v7347_v39 = vpop.eup %4961  ;;  %v2572_v2 = vmul.f32 %v7342_v28, %v7292_v59  ;;  %v2597_v0 = vand.u32 2147483648, %v7299_v50  ;;  %vm2606_vm2 = vweird.f32 %v7310_v45 }
 0x2cb   :  { %v2587_v57 = vmul.f32 %v7347_v39, %v7299_v50  ;;  %v7361_v16 = vpop.eup %4963  ;;  %v2529_v9 = vmul.f32 %v7317_v29, %v2528_v23  ;;  %v2558_v34 = vsub.f32 1.0, %v2557_v41  ;;  %vm2547_vm4 = vweird.f32 %v7322_v36 }
 0x2cc   :  { %v2544_v56 = vmul.f32 %v7322_v36, %v2543_v21  ;;  %v2573_v5 = vsub.f32 1.0, %v2572_v2  ;;  %v2602_v40 = vmul.f32 %v7361_v16, %v7310_v45  ;;  %v4966_v7 = vpop.eup %4965  ;;  %vm7393_vm7 = vcmp.eq.f32.partialorder %v2595_v37, 8.507059e+37  ;;  %vm7424_vm9 = vmor %vm2546_vm15, %vm2547_vm4 }
 0x2cd   :  { %v2588_v31 = vsub.f32 1.0, %v2587_v57  ;;  %v7375_v54 = vpop.eup %4967  ;;  %v2530_v57 = vadd.f32 %v7317_v29, %v2529_v9  ;;  %v2559_v63 = vmul.f32 %v7328_v8, %v2558_v34  ;;  %vm2592_vm13 = vweird.f32 %v7347_v39 }
 0x2ce   :  { %v2603_v26 = vsub.f32 1.0, %v2602_v40  ;;  %v2545_v51 = vadd.f32 %v7322_v36, %v2544_v56  ;;  %vm2562_vm11 = vweird.f32 %v7328_v8  ;;  %vm7414_vm8 = vcmp.eq.f32.partialorder %v2565_v4, 8.507059e+37  ;;  %vm7440_vm4 = vmor %vm2591_vm1, %vm2592_vm13 }
 0x2cf   :  { %v2589_v21 = vmul.f32 %v7347_v39, %v2588_v31  ;;  %v2574_v31 = vmul.f32 %v7342_v28, %v2573_v5  ;;  %v2617_v5 = vmul.f32 %v7375_v54, %v7320_v42  ;;  %vm2577_vm10 = vweird.f32 %v7342_v28 }
 0x2d0   :  { %3354 = vrot.lane.b32.xlu2 %v4966_v7, %s5143_s26  ;;  %v2604_v9 = vmul.f32 %v7361_v16, %v2603_v26  ;;  %v2610_v40 = vand.u32 2147483647, %v7310_v45  ;;  %v2612_v26 = vand.u32 2147483648, %v7310_v45  ;;  %v2549_v49 = vsel %vm7424_vm9, %v7322_v36, %v2545_v51 }
 0x2d1   :  { %v2590_v56 = vadd.f32 %v7347_v39, %v2589_v21  ;;  %v2534_v21 = vsel %vm7409_vm14, %v7317_v29, %v2530_v57  ;;  %v2618_v6 = vsub.f32 1.0, %v2617_v5  ;;  %v2575_v34 = vadd.f32 %v7342_v28, %v2574_v31 }
 0x2d2   :  { %v1898_v2 = vpop.permute.xlu2 %1897  ;;  %v2605_v4 = vadd.f32 %v7361_v16, %v2604_v9  ;;  %v2625_v9 = vand.u32 2147483647, %v7320_v42  ;;  %v2627_v50 = vand.u32 2147483648, %v7320_v42  ;;  %4969 = vrcp.f32 %v7338_v53 }
 0x2d3   :  { %4604 = vst.msk [vmem:[%s9292_s8 + $0x90] sm:$0xff] %vm9450_vm12, %v1898_v2  ;;  %vm2607_vm12 = vweird.f32 %v7361_v16  ;;  %v2560_v2 = vadd.f32 %v7328_v8, %v2559_v63  ;;  %v2594_v57 = vsel %vm7440_vm4, %v7347_v39, %v2590_v56  ;;  %v2619_v63 = vmul.f32 %v7375_v54, %v2618_v6 }
 0x2d4   :  { %vm7451_vm14 = vmor %vm2606_vm2, %vm2607_vm12  ;;  %vm2622_vm13 = vweird.f32 %v7375_v54  ;;  %v2598_v51 = vor.u32 1.1754944e-38, %v2597_v0  ;;  %vm2611_vm2 = vcmp.eq.f32.partialorder %v2610_v40, 8.507059e+37  ;;  %v2613_v31 = vor.u32 1.1754944e-38, %v2612_v26 }
 0x2d5   :  { %v2609_v36 = vsel %vm7451_vm14, %v7361_v16, %v2605_v4  ;;  %vm7469_vm12 = vmor %vm2561_vm0, %vm2562_vm11  ;;  %vm2621_vm9 = vweird.f32 %v7320_v42  ;;  %v2539_v16 = vsel %vm7379_vm5, %v7354_v18, %v2534_v21  ;;  %v2554_v6 = vsel %vm7383_vm6, %v7356_v61, %v2549_v49 }
 0x2d6   :  { %v2564_v11 = vsel %vm7469_vm12, %v7328_v8, %v2560_v2  ;;  %vm9811_vm11 = vweird.f32 %v7292_v59  ;;  %v2620_v42 = vadd.f32 %v7375_v54, %v2619_v63  ;;  %vm9814_vm0 = vcmask 23552   ;;  %vm2623_vm1 = vmor %vm2621_vm9, %vm2622_vm13 }
 0x2d7   :  { %vm7487_vm15 = vmor %vm9811_vm11, %vm2577_vm10  ;;  %v2599_v8 = vsel %vm7393_vm7, %v2598_v51, %v2594_v57  ;;  %v2614_v61 = vsel %vm2611_vm2, %v2613_v31, %v2609_v36  ;;  %v2628_v49 = vor.u32 1.1754944e-38, %v2627_v50  ;;  %v9815_v23 = vand.u32 2147483647, %v7292_v59 }
 0x2d8   :  { %v2579_v18 = vsel %vm7487_vm15, %v7342_v28, %v2575_v34  ;;  %v9816_v41 = vand.u32 2147483648, %v7292_v59  ;;  %v2624_v5 = vsel %vm2623_vm1, %v7375_v54, %v2620_v42  ;;  %vm2626_vm5 = vcmp.eq.f32.partialorder %v2625_v9, 8.507059e+37  ;;  %v4970_v25 = vpop.eup %4969  ;;  %vm9821_vm14 = vmmov %vm9814_vm0 }
 0x2d9   :  { %vm2581_vm3 = vcmp.eq.f32.partialorder %v9815_v23, 8.507059e+37  ;;  %v7509_v28 = vmul.f32 %v2539_v16, %v7259_v10  ;;  %v7512_v7 = vmul.f32 %v2554_v6, %v7261_v12  ;;  %v2569_v4 = vsel %vm7414_vm8, %v7370_v44, %v2564_v11  ;;  %vm9824_vm11 = vmmov %vm9814_vm0 }
 0x2da   :  { %v1819_v39 = vpop.permute.xlu2 %1818  ;;  %v2583_v56 = vor.u32 1.1754944e-38, %v9816_v41  ;;  %v2629_v40 = vsel %vm2626_vm5, %v2628_v49, %v2624_v5  ;;  %v7518_v21 = vmul.f32 %v2599_v8, %v7273_v60  ;;  %v7521_v59 = vmul.f32 %v2614_v61, %v7287_v33  ;;  %vm9825_vm15 = vmmov %vm9814_vm0 }
 0x2db   :  { %1839 = vst.msk [vmem:[%s9292_s8 + $0x18] sm:$0xff] %vm9814_vm0, %v1819_v39  ;;  %v2632_v54 = vmul.f32 %v4970_v25, %v7338_v53  ;;  %v7525_v10 = vmul.f32 %v2569_v4, %v7265_v30  ;;  %v7528_v12 = vmul.f32 %v2629_v40, %v7302_v22  ;;  %v2642_v37 = vand.u32 2147483648, %v7338_v53  ;;  %vm9826_vm1 = vmmov %vm9814_vm0 }
 0x2dc   :  { %v2584_v26 = vsel %vm2581_vm3, %v2583_v56, %v2579_v18  ;;  %v2640_v60 = vand.u32 2147483647, %v7338_v53  ;;  %vm9817_vm8 = vcmp.gt.f32.partialorder %v6555_v14, 0.5  ;;  %vm9818_vm7 = vcmp.gt.f32.partialorder %v6574_v55, 0.5 }
 0x2dd   :  { %v2633_v2 = vsub.f32 1.0, %v2632_v54  ;;  %v7532_v44 = vmul.f32 %v2584_v26, %v7267_v62  ;;  %v2646_v33 = vsel %vm9817_vm8, %v7509_v28, -inf  ;;  %v2647_v30 = vsel %vm9818_vm7, %v7512_v7, -inf  ;;  %vm9828_vm8 = vmmov %vm9814_vm0 }
 0x2de   :  { %vm2637_vm6 = vweird.f32 %v4970_v25  ;;  %vm9819_vm10 = vcmp.gt.f32.partialorder %v6579_v27, 0.5  ;;  %vm9820_vm4 = vcmp.gt.f32.partialorder %v6646_v19, 0.5  ;;  %vm2636_vm13 = vweird.f32 %v7338_v53  ;;  %vm9829_vm7 = vmmov %vm9814_vm0 }
 0x2df   :  { %v2634_v9 = vmul.f32 %v4970_v25, %v2633_v2  ;;  %v2650_v22 = vsel %vm9819_vm10, %v7518_v21, -inf  ;;  %v2651_v62 = vsel %vm9820_vm4, %v7521_v59, -inf  ;;  %v2643_v29 = vor.u32 1.1754944e-38, %v2642_v37  ;;  %vm2638_vm9 = vmor %vm2636_vm13, %vm2637_vm6 }
 0x2e0   :  { %vm9822_vm12 = vcmp.gt.f32.partialorder %v6613_v38, 0.5  ;;  %vm9823_vm2 = vcmp.gt.f32.partialorder %v6680_v58, 0.5  ;;  %v2654_v36 = vsel %vm9824_vm11, %v2646_v33, -inf  ;;  %v2655_v63 = vsel %vm9825_vm15, %v2647_v30, -inf  ;;  %vm9830_vm6 = vmmov %vm9814_vm0 }
 0x2e1   :  { %v2635_v34 = vadd.f32 %v4970_v25, %v2634_v9  ;;  %v2648_v50 = vsel %vm9822_vm12, %v7525_v10, -inf  ;;  %v2652_v57 = vsel %vm9823_vm2, %v7528_v12, -inf  ;;  %v2658_v45 = vsel %vm9814_vm0, %v2650_v22, -inf  ;;  %vm9831_vm10 = vmmov %vm9814_vm0 }
 0x2e2   :  { %v1859_v47 = vpop.permute.xlu2 %1858  ;;  %v2660_v51 = vsel %vm9826_vm1, %v2651_v62, -inf  ;;  %vm2641_vm3 = vcmp.eq.f32.partialorder %v2640_v60, 8.507059e+37  ;;  %vm9827_vm5 = vcmp.gt.f32.partialorder %v6653_v13, 0.5  ;;  %v2656_v16 = vsel %vm9828_vm8, %v2648_v50, -inf  ;;  %vm9834_vm13 = vmmov %vm9814_vm0  ;;  %v9839_v62 = vld [vmem:[#allocation75_spill] sm:$0xff] }
 0x2e3   :  { %4597 = vst.msk [vmem:[%s9292_s8 + $0x58] sm:$0xff] %vm9821_vm14, %v1859_v47  ;;  %v2639_v53 = vsel %vm2638_vm9, %v4970_v25, %v2635_v34  ;;  %v2649_v31 = vsel %vm9827_vm5, %v7532_v44, -inf  ;;  %v2662_v6 = vsel %vm9829_vm7, %v2652_v57, -inf  ;;  %v2659_v0 = vmax.f32 %v2654_v36, %v2658_v45  ;;  %vm9833_vm14 = vmmov %vm9814_vm0  ;;  %v9840_v57 = vld [vmem:[#allocation133_spill] sm:$0xff] }
 0x2e4   :  { %v2644_v39 = vsel %vm2641_vm3, %v2643_v29, %v2639_v53  ;;  %v2661_v42 = vmax.f32 %v2655_v63, %v2660_v51  ;;  %v2657_v8 = vsel %vm9830_vm6, %v2649_v31, -inf  ;;  %vm9832_vm4 = vcmp.gt.f32.partialorder %v6697_v35, 0.5  ;;  %vm9835_vm12 = vmmov %vm9814_vm0 }
 0x2e5   :  { %v7568_v11 = vmul.f32 %v2644_v39, %v7314_v52  ;;  %v2663_v49 = vmax.f32 %v2656_v16, %v2662_v6  ;;  %vm9836_vm2 = vmmov %vm9814_vm0  ;;  %v3320_v33 = vsub.f32 %v6465_v48, %v7335_v46 }
 0x2e6   :  { %v2666_v56 = vmax.f32 %v2659_v0, %v2661_v42  ;;  %vm9837_vm9 = vmmov %vm9814_vm0 }
 0x2e7   :  { %v2653_v61 = vsel %vm9832_vm4, %v7568_v11, -inf  ;;  %vm9838_vm11 = vmmov %vm9814_vm0  ;;  %v3332_v47 = vmul.f32 1.442695, %v3320_v33  ;;  %v9857_v33 = vld [vmem:[#allocation83_spill] sm:$0xff] }
 0x2e8   :  { %v1817_v18 = vpop.permute.xlu1 %1816  ;;  %v2664_v41 = vsel %vm9833_vm14, %v2653_v61, -inf  ;;  %vm9841_vm15 = vmmov %vm9814_vm0 }
 0x2e9   :  { %1838 = vst.msk [vmem:[%s9292_s8 + $0x10] sm:$0xff] %vm9831_vm10, %v1817_v18  ;;  %v2665_v52 = vmax.f32 %v2657_v8, %v2664_v41  ;;  %vm9842_vm1 = vmmov %vm9814_vm0 }
 0x2ea   :  { %v1941_v23 = vpop.permute.xlu2 %1940  ;;  %vm9843_vm3 = vmmov %vm9814_vm0 }
 0x2eb   :  { %4613 = vst.msk [vmem:[%s9292_s8 + $0xd8] sm:$0xff] %vm9834_vm13, %v1941_v23  ;;  %v2667_v5 = vmax.f32 %v2663_v49, %v2665_v52  ;;  %vm9844_vm5 = vmmov %vm9814_vm0 }
 0x2ec   :  { %vm9845_vm8 = vmmov %vm9814_vm0 }
 0x2ed   :  { %v2668_v25 = vmax.f32 %v2666_v56, %v2667_v5  ;;  %vm9846_vm7 = vmmov %vm9814_vm0 }
 0x2ee   :  { %vm9847_vm6 = vmmov %vm9814_vm0 }
 0x2ef   :  { %2669 = vmax.xlane.f32.xlu1 %v2668_v25  ;;  %vm9848_vm10 = vmmov %vm9814_vm0 }
 0x2f0   :  { %v1857_v4 = vpop.permute.xlu1 %1856  ;;  %vm9849_vm4 = vmmov %vm9814_vm0 }
 0x2f1   :  { %4596 = vst.msk [vmem:[%s9292_s8 + $0x50] sm:$0xff] %vm9835_vm12, %v1857_v4  ;;  %vm9850_vm14 = vmmov %vm9814_vm0 }
 0x2f2   :  { %v1863_v40 = vpop.permute.xlu2 %1862  ;;  %vm9851_vm13 = vmmov %vm9814_vm0 }
 0x2f3   :  { %4599 = vst.msk [vmem:[%s9292_s8 + $0x68] sm:$0xff] %vm9836_vm2, %v1863_v40  ;;  %vm9852_vm12 = vmmov %vm9814_vm0 }
 0x2f6   :  { %v3305_v26 = vpop.permute.xlu0 %3304 }
 0x2f7   :  { %v3322_v54 = vsub.f32 %v6671_v15, %v3305_v26  ;;  %v9853_v26 = vld [vmem:[#allocation82_spill] sm:$0xff] }
 0x2f8   :  { %v1939_v2 = vpop.permute.xlu1 %1938 }
 0x2f9   :  { %v3336_v37 = vmul.f32 1.442695, %v3322_v54  ;;  %4612 = vst.msk [vmem:[%s9292_s8 + $0xd0] sm:$0xff] %vm9837_vm9, %v1939_v2  ;;  %v5108_v54 = vld [vmem:[%s9291_s7] sm:$0x3]  ;;  %v9854_v2 = vld [vmem:[#allocation78_spill] sm:$0xff] }
 0x2fa   :  { %v3307_v60 = vpop.permute.xlu2 %3306 }
 0x2fb   :  { %4971 = vpow2.f32 %v3336_v37  ;;  %v3323_v36 = vsub.f32 %v9840_v57, %v3307_v60  ;;  %v9855_v37 = vld [vmem:[#allocation81_spill] sm:$0xff]  ;;  %v9856_v60 = vld [vmem:[#allocation80_spill] sm:$0xff]  ;;  %v9995_v57 = vmov -1.0  }
 0x2fc   :  { %4973 = vpow2.f32 %v3332_v47  ;;  %v9859_v47 = vld [vmem:[#allocation84_spill] sm:$0xff] }
 0x2fd   :  { %v3338_v46 = vmul.f32 1.442695, %v3323_v36 }
 0x2fe   :  { %v1943_v30 = vpop.permute.xlu0 %1942 }
 0x2ff   :  { %4614 = vst.msk [vmem:[%s9292_s8 + $0xe0] sm:$0xff] %vm9838_vm11, %v1943_v30  ;;  %v9858_v30 = vld [vmem:[#allocation68_spill] sm:$0xff] }
 0x300   :  { %v3303_v9 = vpop.permute.xlu1 %3302 }
 0x301   :  { %v4972_v22 = vpop.eup %4971  ;;  %v3321_v34 = vsub.f32 %v9839_v62, %v3303_v9  ;;  %v9860_v9 = vld [vmem:[#allocation134_spill] sm:$0xff] }
 0x302   :  { %3360 = vrot.lane.b32.xlu2 %v4972_v22, %s5143_s26  ;;  %v1904_v50 = vpop.permute.xlu2 %1903  ;;  %v4974_v51 = vpop.eup %4973  ;;  %vm7672_vm2 = vcmp.gt.f32.partialorder %v7528_v12, %v9860_v9  ;;  %v9861_v22 = vmov 0 }
 0x303   :  { %v3334_v29 = vmul.f32 1.442695, %v3321_v34  ;;  %4607 = vst.msk [vmem:[%s9292_s8 + $0xa8] sm:$0xff] %vm9841_vm15, %v1904_v50  ;;  %v9862_v22 = vsel %vm7672_vm2, 4294967295, %v9861_v22  ;;  %v7677_v34 = vstv %s7049_s9  ;;  %v9864_v50 = vmov 0 }
 0x304   :  { %v2786_v36 = vsel %vm7672_vm2, %v7528_v12, %v9860_v9  ;;  %vm2361_vm15 = vcmp.eq.f32.partialorder %v9860_v9, %v7677_v34  ;;  %v9921_v9 = vmov 0 }
 0x305   :  { %4975 = vpow2.f32 %v3334_v29  ;;  %v9863_v29 = vld [vmem:[#allocation76_spill] sm:$0xff] }
 0x306   :  { %4977 = vpow2.f32 %v3338_v46  ;;  %vm7681_vm9 = vcmp.gt.f32.partialorder %v7568_v11, %v9863_v29  ;;  %v9866_v46 = vld [vmem:[#allocation131_spill] sm:$0xff] }
 0x307   :  { %v9865_v50 = vsel %vm7681_vm9, 4294967295, %v9864_v50  ;;  %vm7691_vm11 = vcmp.gt.f32.partialorder %v7518_v21, %v9866_v46 }
 0x308   :  { %v1865_v63 = vpop.permute.xlu0 %1864  ;;  %v1861_v45 = vpop.permute.xlu1 %1860  ;;  %3356 = vrot.lane.b32.xlu1 %v4974_v51, %s5143_s26  ;;  %v9870_v51 = vmov 0 }
 0x309   :  { %4600 = vst.msk [vmem:[%s9292_s8 + $0x70] sm:$0xff] %vm9814_vm0, %v1865_v63  ;;  %v9867_v63 = vmov 0 }
 0x30a   :  { %4598 = vst.msk [vmem:[%s9292_s8 + $0x60] sm:$0xff] %vm9842_vm1, %v1861_v45  ;;  %v1825_v31 = vpop.permute.xlu2 %1824  ;;  %v9868_v63 = vsel %vm7691_vm11, 4294967295, %v9867_v63  ;;  %v9869_v45 = vld [vmem:[#allocation132_spill] sm:$0xff]  ;;  %vm2362_vm1 = vcmp.eq.f32.partialorder %v9863_v29, %v7677_v34 }
 0x30b   :  { %v4976_v53 = vpop.eup %4975  ;;  %1842 = vst.msk [vmem:[%s9292_s8 + $0x30] sm:$0xff] %vm9843_vm3, %v1825_v31  ;;  %vm7699_vm0 = vcmp.gt.f32.partialorder %v7521_v59, %v9869_v45  ;;  %vm2802_vm3 = vcmp.ge.f32.partialorder %v2786_v36, 0.7  ;;  %v2784_v31 = vsel %vm7691_vm11, %v7518_v21, %v9866_v46 }
 0x30c   :  { %3358 = vrot.lane.b32.xlu0 %v4976_v53, %s5143_s26  ;;  %v4978_v6 = vpop.eup %4977  ;;  %v9871_v51 = vsel %vm7699_vm0, 4294967295, %v9870_v51  ;;  %v2787_v53 = vsel %vm7681_vm9, %v7568_v11, %v9863_v29  ;;  %vm9910_vm11 = vcmp.ge.f32.partialorder %v2784_v31, 0.7  ;;  %v9925_v29 = vmov 0 }
 0x30d   :  { %9872 = vst [vmem:[#allocation44_spill] sm:$0xff] %v9871_v51 }
 0x310   :  { %v1906_v39 = vpop.permute.xlu0 %1905  ;;  %v1902_v16 = vpop.permute.xlu1 %1901  ;;  %3362 = vrot.lane.b32.xlu1 %v4978_v6, %s5143_s26 }
 0x311   :  { %4608 = vst.msk [vmem:[%s9292_s8 + $0xb0] sm:$0xff] %vm9844_vm5, %v1906_v39  ;;  %v9873_v39 = vld [vmem:[#allocation136_spill] sm:$0xff]  ;;  %vm9875_vm5 = vcmp.gt.f32.partialorder %v6680_v58, 0.5 }
 0x312   :  { %4606 = vst.msk [vmem:[%s9292_s8 + $0xa0] sm:$0xff] %vm9845_vm8, %v1902_v16  ;;  %v1947_v0 = vpop.permute.xlu2 %1946  ;;  %v9874_v16 = vld [vmem:[#allocation102_spill] sm:$0xff]  ;;  %vm7717_vm8 = vmand %vm2361_vm15, %vm9875_vm5 }
 0x313   :  { %4616 = vst.msk [vmem:[%s9292_s8 + $0xf0] sm:$0xff] %vm9846_vm7, %v1947_v0  ;;  %v3260_v6 = vsub.f32 %v9874_v16, %v9873_v39  ;;  %vm2826_vm7 = vcmp.le.f32.partialorder %v2786_v36, 0.3 }
 0x318   :  { %v1949_v42 = vpop.permute.xlu0 %1948  ;;  %v1823_v18 = vpop.permute.xlu1 %1822 }
 0x319   :  { %4617 = vst.msk [vmem:[%s9292_s8 + $0xf8] sm:$0xff] %vm9847_vm6, %v1949_v42  ;;  %v2785_v42 = vsel %vm7699_vm0, %v7521_v59, %v9869_v45  ;;  %vm9898_vm0 = vcmp.gt.f32.partialorder %v6697_v35, 0.5 }
 0x31a   :  { %1841 = vst.msk [vmem:[%s9292_s8 + $0x28] sm:$0xff] %vm9848_vm10, %v1823_v18  ;;  %v1827_v8 = vpop.permute.xlu2 %1826  ;;  %vm9878_vm10 = vcmp.gt.f32.partialorder %v6697_v35, 0.5 }
 0x31b   :  { %1843 = vst.msk [vmem:[%s9292_s8 + $0x38] sm:$0xff] %vm9849_vm4, %v1827_v8  ;;  %vm7729_vm4 = vmand %vm2362_vm1, %vm9878_vm10  ;;  %v9881_v8 = vld [vmem:[#allocation77_spill] sm:$0xff] }
 0x31c   :  { %vm9887_vm1 = vmmov %vm9875_vm5 }
 0x31d   :  { %vm7751_vm5 = vmand %vm9887_vm1, %vm2802_vm3  ;;  %vm9893_vm3 = vcmp.gt.f32.partialorder %v6579_v27, 0.5 }
 0x31e   :  { %vm9890_vm9 = vmmov %vm9887_vm1  ;;  %vm9894_vm1 = vcmp.eq.f32.partialorder %v9866_v46, %v7677_v34 }
 0x31f   :  { %vm7762_vm2 = vmand %vm9890_vm9, %vm2826_vm7  ;;  %vm9897_vm7 = vcmp.ge.f32.partialorder %v2787_v53, 0.7  ;;  %vm9911_vm9 = vcmp.gt.f32.partialorder %v6579_v27, 0.5 }
 0x320   :  { %v1945_v61 = vpop.permute.xlu1 %1944  ;;  %vm7771_vm10 = vmand %vm9894_vm1, %vm9893_vm3  ;;  %vm9901_vm3 = vcmp.gt.f32.partialorder %v6646_v19, 0.5  ;;  %vm9902_vm1 = vcmp.eq.f32.partialorder %v9869_v45, %v7677_v34 }
 0x321   :  { %4615 = vst.msk [vmem:[%s9292_s8 + $0xe8] sm:$0xff] %vm9850_vm14, %v1945_v61  ;;  %v9882_v61 = vmov 0  ;;  %vm7817_vm6 = vmand %vm9911_vm9, %vm9910_vm11  ;;  %vm9920_vm11 = vcmp.gt.f32.partialorder %v6646_v19, 0.5  ;;  %vm9923_vm14 = vcmp.le.f32.partialorder %v2784_v31, 0.3 }
 0x328   :  { %v1867_v49 = vpop.permute.xlu1 %1866 }
 0x329   :  { %4601 = vst.msk [vmem:[%s9292_s8 + $0x78] sm:$0xff] %vm9851_vm13, %v1867_v49  ;;  %v9884_v49 = vld [vmem:[#allocation128_spill] sm:$0xff]  ;;  %vm7791_vm13 = vmand %vm9902_vm1, %vm9901_vm3 }
 0x32a   :  { %vm7743_vm15 = vcmp.gt.f32.partialorder %v7512_v7, %v9884_v49  ;;  %vm9907_vm3 = vmmov %vm9898_vm0 }
 0x331   :  { %v1908_v23 = vpop.permute.xlu1 %1907 }
 0x332   :  { %4609 = vst.msk [vmem:[%s9292_s8 + $0xb8] sm:$0xff] %vm9852_vm12, %v1908_v23  ;;  %vm7737_vm12 = vcmp.gt.f32.partialorder %v7509_v28, %v9881_v8  ;;  %v9885_v23 = vmov 0 }
 0x333   :  { %v9883_v61 = vsel %vm7737_vm12, 4294967295, %v9882_v61  ;;  %v9886_v23 = vsel %vm7743_vm15, 4294967295, %v9885_v23 }
 0x362   :  { %v2670_v41 = vpop.xlane.xlu1 %2669 }
 0x363   :  { %v2671_v52 = vrot.slane %v2670_v41, 4 }
 0x365   :  { %v2672_v56 = vmax.f32 %v2670_v41, %v2671_v52  ;;  %v9973_v52 = vmov 0 }
 0x367   :  { %v2673_v5 = vrot.slane %v2672_v56, 2 }
 0x369   :  { %v2674_v25 = vmax.f32 %v2672_v56, %v2673_v5  ;;  %v9891_v56 = vmov 0  ;;  %v9895_v5 = vmov 0 }
 0x36a   :  { %v9892_v56 = vsel %vm7762_vm2, 4294967295, %v9891_v56  ;;  %v9896_v5 = vsel %vm7771_vm10, 4294967295, %v9895_v5  ;;  %vm7782_vm2 = vmand %vm9898_vm0, %vm9897_vm7  ;;  %vm9906_vm7 = vcmp.le.f32.partialorder %v2787_v53, 0.3 }
 0x36b   :  { %v2675_v4 = vrot.slane %v2674_v25, 1  ;;  %vm7810_vm1 = vmand %vm9907_vm3, %vm9906_vm7 }
 0x36d   :  { %v2676_v40 = vmax.f32 %v2674_v25, %v2675_v4  ;;  %v9903_v4 = vmov 0 }
 0x36e   :  { %v9904_v4 = vsel %vm7791_vm13, 4294967295, %v9903_v4 }
 0x36f   :  { %4792 = vpush %v2676_v40  ;;  %v2780_v40 = vsel %vm7737_vm12, %v7509_v28, %v9881_v8  ;;  %vm9915_vm12 = vcmp.gt.f32.partialorder %v6680_v58, 0.5  ;;  %v9927_v58 = vld [vmem:[#allocation130_spill] sm:$0xff] }
 0x370   :  { %4794 = vpush %v9853_v26  ;;  %v2781_v26 = vsel %vm7743_vm15, %v7512_v7, %v9884_v49  ;;  %vm9919_vm15 = vcmp.ge.f32.partialorder %v2785_v42, 0.7 }
 0x371   :  { %4796 = vpush %v5108_v54  ;;  %v9905_v54 = vld [vmem:[#allocation45_spill] sm:$0xff]  ;;  %vm7837_vm9 = vmand %vm9920_vm11, %vm9919_vm15  ;;  %vm9932_vm15 = vcmp.gt.f32.partialorder %v6697_v35, 0.5  ;;  %v9942_v35 = vmov 0 }
 0x372   :  { %4798 = vpush %v9854_v2  ;;  %v3261_v2 = vsub.f32 %v6296_v24, %v9905_v54  ;;  %v9922_v9 = vsel %vm7837_vm9, 4294967295, %v9921_v9 }
 0x373   :  { %4800 = vpush %v9855_v37  ;;  %v3268_v37 = vmul.f32 1.442695, %v3260_v6  ;;  %v9956_v6 = vld [vmem:[#allocation55_spill] sm:$0xff] }
 0x374   :  { %4802 = vpush %v9856_v60  ;;  %v9908_v60 = vmov 0  ;;  %v3270_v31 = vmul.f32 1.442695, %v3261_v2  ;;  %v3264_v0 = vsub.f32 %v6465_v48, %v9956_v6  ;;  %v9961_v2 = vld [vmem:[#allocation50_spill] sm:$0xff] }
 0x375   :  { %4804 = vpush %v9857_v33  ;;  %v9909_v60 = vsel %vm7810_vm1, 4294967295, %v9908_v60  ;;  %v9912_v33 = vmov 0  ;;  %4979 = vpow2.f32 %v3268_v37  ;;  %v9962_v37 = vld [vmem:[#allocation121_spill] sm:$0xff] }
 0x376   :  { %4806 = vpush %v9858_v30  ;;  %v9913_v33 = vsel %vm7817_vm6, 4294967295, %v9912_v33  ;;  %v9914_v30 = vld [vmem:[#allocation129_spill] sm:$0xff]  ;;  %vm9924_vm6 = vcmp.gt.f32.partialorder %v6579_v27, 0.5  ;;  %4981 = vpow2.f32 %v3270_v31 }
 0x377   :  { %4808 = vpush %v9859_v47  ;;  %vm7844_vm0 = vmand %vm9924_vm6, %vm9923_vm14  ;;  %v3262_v47 = vsub.f32 %v9962_v37, %v9961_v2 }
 0x378   :  { %v9926_v29 = vsel %vm7844_vm0, 4294967295, %v9925_v29  ;;  %vm9937_vm0 = vmmov %vm9920_vm11  ;;  %vm9944_vm11 = vcmp.gt.f32.partialorder %v6653_v13, 0.5 }
 0x3a0   :  { %s4793_s7 = spop %4792 }
 0x3a1   :  { %v7747_v41 = vstv %s4793_s7  ;;  %s7969_s8 = spop %4794 }
 0x3a2   :  { %vm9916_vm7 = vcmp.eq.f32.partialorder %v7528_v12, %v7747_v41  ;;  %vm9929_vm13 = vcmp.eq.f32.partialorder %v7525_v10, %v7747_v41  ;;  %v9930_v12 = vmov 0  ;;  %vm9933_vm6 = vcmp.eq.f32.partialorder %v7568_v11, %v7747_v41  ;;  %s8019_s9 = spop %4796 }
 0x3a3   :  { %vm7830_vm3 = vmand %vm9916_vm7, %vm9915_vm12  ;;  %vm9928_vm7 = vcmp.gt.f32.partialorder %v6613_v38, 0.5  ;;  %vm9936_vm12 = vcmp.le.f32.partialorder %v2785_v42, 0.3  ;;  %vm9945_vm1 = vcmp.eq.f32.partialorder %v7532_v44, %v7747_v41  ;;  %v9946_v11 = vmov 0  ;;  %s8045_s17 = spop %4798 }
 0x3a4   :  { %vm7855_vm10 = vmand %vm9929_vm13, %vm9928_vm7  ;;  %vm9940_vm13 = vcmp.gt.f32.partialorder %v6555_v14, 0.5  ;;  %vm9941_vm7 = vcmp.eq.f32.partialorder %v9881_v8, %v7677_v34  ;;  %v9463_v42 = vmov -1.0   ;;  %s8079_s2 = spop %4800 }
 0x3a5   :  { %v9931_v12 = vsel %vm7855_vm10, 4294967295, %v9930_v12  ;;  %vm7864_vm14 = vmand %vm9933_vm6, %vm9932_vm15  ;;  %vm9949_vm6 = vcmp.eq.f32.partialorder %v9884_v49, %v7677_v34  ;;  %v9959_v49 = vmov 0  ;;  %s4803_s18 = spop %4802 }
 0x3a6   :  { %vm7873_vm9 = vmand %vm9937_vm0, %vm9936_vm12  ;;  %s4805_s4 = spop %4804 }
 0x3a7   :  { %vm7882_vm10 = vmand %vm9941_vm7, %vm9940_vm13  ;;  %vm2684_vm13 = vcmp.eq.f32.partialorder %v7521_v59, %v7747_v41  ;;  %vm9948_vm7 = vcmp.gt.f32.partialorder %v6574_v55, 0.5  ;;  %s4807_s19 = spop %4806 }
 0x3a8   :  { %v9943_v35 = vsel %vm7882_vm10, 4294967295, %v9942_v35  ;;  %vm7891_vm0 = vmand %vm9945_vm1, %vm9944_vm11  ;;  %vm2820_vm1 = vcmp.le.f32.partialorder %v2780_v40, 0.3  ;;  %vm9953_vm10 = vcmp.eq.f32.partialorder %v9914_v30, %v7677_v34  ;;  %s4809_s20 = spop %4808 }
 0x3a9   :  { %v9947_v11 = vsel %vm7891_vm0, 4294967295, %v9946_v11  ;;  %vm2701_vm12 = vmor %vm7717_vm8, %vm7830_vm3  ;;  %vm9952_vm0 = vcmp.gt.f32.partialorder %v6613_v38, 0.5 }
 0x3aa   :  { %vm7906_vm15 = vmand %vm9949_vm6, %vm9948_vm7  ;;  %v2794_v8 = vsel %vm2701_vm12, 1.0, %v9463_v42  ;;  %vm9967_vm7 = vcmp.ge.f32.partialorder %v2780_v40, 0.7  ;;  %v9465_v40 = vmov 0.0  }
 0x3ab   :  { %vm7915_vm8 = vmand %vm9953_vm10, %vm9952_vm0  ;;  %vm9958_vm10 = vcmp.eq.f32.partialorder %v9927_v58, %v7677_v34  ;;  %v2818_v18 = vsel %vm7751_vm5, 1.0, %v2794_v8  ;;  %v3351_v34 = vpop.permute.xlu2 %3350 }
 0x3ac   :  { %vm2702_vm3 = vmor %vm7729_vm4, %vm7864_vm14  ;;  %vm9963_vm4 = vcmp.gt.f32.partialorder %v6579_v27, 0.5  ;;  %vm9964_vm14 = vcmp.eq.f32.partialorder %v7518_v21, %v7747_v41 }
 0x3ad   :  { %vm9957_vm6 = vmmov %vm9944_vm11  ;;  %v2795_v36 = vsel %vm2702_vm3, 1.0, %v9463_v42  ;;  %vm9971_vm3 = vcmp.ge.f32.partialorder %v2781_v26, 0.7  ;;  %vm9972_vm11 = vcmp.gt.f32.partialorder %v6574_v55, 0.5  ;;  %v4980_v42 = vpop.eup %4979 }
 0x3ae   :  { %vm7931_vm0 = vmand %vm9958_vm10, %vm9957_vm6  ;;  %vm9968_vm6 = vcmp.gt.f32.partialorder %v6555_v14, 0.5  ;;  %v2819_v21 = vsel %vm7782_vm2, 1.0, %v2795_v36 }
 0x3af   :  { %v9960_v49 = vsel %vm7931_vm0, 4294967295, %v9959_v49  ;;  %vm7945_vm12 = vmand %vm9964_vm14, %vm9963_vm4  ;;  %vm7965_vm4 = vcmp.gt.f32.partialorder %v7525_v10, %v9914_v30  ;;  %vm9977_vm14 = vnez %v9892_v56  ;;  %vm9986_vm0 = vcmp.gt.f32.partialorder %v6574_v55, 0.5 }
 0x3b0   :  { %vm7952_vm10 = vmand %vm9968_vm6, %vm9967_vm7  ;;  %v7975_v8 = vsel %vm9977_vm14, 0.0, %v2818_v18  ;;  %vm9985_vm14 = vcmp.le.f32.partialorder %v2781_v26, 0.3  ;;  %v8147_v18 = vstv %s8019_s9 }
 0x3b1   :  { %vm7959_vm5 = vmand %vm9972_vm11, %vm9971_vm3  ;;  %9978 = vst [vmem:[#allocation58_spill] sm:$0xff] %v7975_v8  ;;  %vm9979_vm11 = vcmp.gt.f32.partialorder %v6646_v19, 0.5  ;;  %v9987_v19 = vmov 0 }
 0x3b2   :  { %v9974_v52 = vsel %vm7959_vm5, 4294967295, %v9973_v52  ;;  %vm7982_vm7 = vmand %vm2684_vm13, %vm9979_vm11  ;;  %vm8004_vm13 = vcmp.gt.f32.partialorder %v7532_v44, %v9927_v58  ;;  %vm9991_vm11 = vnez %v9909_v60 }
 0x3b3   :  { %vm9982_vm3 = vmmov %vm9968_vm6  ;;  %v8010_v56 = vsel %vm9991_vm11, 0.0, %v2819_v21  ;;  %vm9994_vm11 = vnez %v9904_v4  ;;  %v2782_v4 = vsel %vm7965_vm4, %v7525_v10, %v9914_v30  ;;  %v2783_v10 = vsel %vm8004_vm13, %v7532_v44, %v9927_v58  ;;  %v3349_v30 = vpop.permute.xlu0 %3348 }
 0x3b4   :  { %vm7991_vm2 = vmand %vm9982_vm3, %vm2820_vm1  ;;  %9992 = vst [vmem:[#allocation53_spill] sm:$0xff] %v8010_v56  ;;  %vm3516_vm1 = vcmp.gt.f32.partialorder %v7975_v8, 0.0  ;;  %vm9993_vm3 = vnez %v9896_v5  ;;  %vm3517_vm6 = vcmp.gt.f32.partialorder %v8010_v56, 0.0 }
 0x3b5   :  { %vm7998_vm5 = vmand %vm9986_vm0, %vm9985_vm14  ;;  %v4632_v26 = vsel %vm3516_vm1, 1.0, %v9465_v40  ;;  %v4633_v5 = vsel %vm3517_vm6, 1.0, %v9465_v40  ;;  %vm9998_vm14 = vcmp.eq.f32.partialorder %v7509_v28, %v7747_v41  ;;  %vm10004_vm6 = vcmp.gt.f32.partialorder %v6574_v55, 0.5  ;;  %v10010_v55 = vld [vmem:[#allocation48_spill] sm:$0xff] }
 0x3b6   :  { %v9988_v19 = vsel %vm7998_vm5, 4294967295, %v9987_v19  ;;  %vm2699_vm0 = vmor %vm9993_vm3, %vm7945_vm12  ;;  %vm9996_vm12 = vnez %v9913_v33  ;;  %vm9997_vm3 = vcmp.gt.f32.partialorder %v6555_v14, 0.5  ;;  %v8047_v21 = vpack.i.bf16 %v4633_v5, %v4632_v26 }
 0x3b7   :  { %vm2700_vm5 = vmor %vm9994_vm11, %vm7982_vm7  ;;  %v2792_v60 = vsel %vm2699_vm0, 1.0, %v9995_v57  ;;  %vm10002_vm7 = vnez %v9926_v29  ;;  %vm10005_vm0 = vcmp.eq.f32.partialorder %v7512_v7, %v7747_v41  ;;  %v3276_v26 = vmul.f32 1.442695, %v3264_v0 }
 0x3b8   :  { %v2793_v36 = vsel %vm2700_vm5, 1.0, %v9995_v57  ;;  %v2816_v31 = vsel %vm9996_vm12, 1.0, %v2792_v60  ;;  %vm8037_vm1 = vmand %vm9998_vm14, %vm9997_vm3  ;;  %vm10001_vm5 = vnez %v9922_v9  ;;  %v3272_v9 = vmul.f32 1.442695, %v3262_v47  ;;  %4849 = vrot.lane.b32.xlu2 %v8047_v21, %s5138_s27 }
 0x3b9   :  { %v2817_v14 = vsel %vm10001_vm5, 1.0, %v2793_v36  ;;  %v8053_v28 = vsel %vm10002_vm7, 0.0, %v2816_v31  ;;  %vm8060_vm14 = vmand %vm10005_vm0, %vm10004_vm6  ;;  %vm10009_vm12 = vnez %v9943_v35  ;;  %v3263_v7 = vsub.f32 %v6423_v43, %v10010_v55  ;;  %v4982_v35 = vpop.eup %4981 }
 0x3ba   :  { %10003 = vst [vmem:[#allocation24_spill] sm:$0xff] %v8053_v28  ;;  %v8070_v29 = vsel %vm7873_vm9, 0.0, %v2817_v14  ;;  %vm3514_vm11 = vcmp.gt.f32.partialorder %v8053_v28, 0.0  ;;  %vm2695_vm3 = vmor %vm10009_vm12, %vm8037_vm1  ;;  %vm2798_vm7 = vcmp.ge.f32.partialorder %v2782_v4, 0.7  ;;  %vm10011_vm1 = vnez %v9931_v12 }
 0x3bb   :  { %10008 = vst [vmem:[#allocation72_spill] sm:$0xff] %v8070_v29  ;;  %vm3515_vm5 = vcmp.gt.f32.partialorder %v8070_v29, 0.0  ;;  %v4630_v44 = vsel %vm3514_vm11, 1.0, %v9465_v40  ;;  %vm2696_vm9 = vmor %vm7906_vm15, %vm8060_vm14  ;;  %v2788_v58 = vsel %vm2695_vm3, 1.0, %v9995_v57  ;;  %vm2799_vm0 = vcmp.ge.f32.partialorder %v2783_v10, 0.7 }
 0x3bc   :  { %v4631_v41 = vsel %vm3515_vm5, 1.0, %v9465_v40  ;;  %v2789_v46 = vsel %vm2696_vm9, 1.0, %v9995_v57  ;;  %vm2697_vm6 = vmor %vm7915_vm8, %vm10011_vm1  ;;  %v2812_v45 = vsel %vm7952_vm10, 1.0, %v2788_v58  ;;  %vm10012_vm15 = vnez %v9974_v52  ;;  %v3353_v58 = vpop.permute.xlu0 %3352  ;;  %v10033_v29 = vld [vmem:[#allocation20_spill] sm:$0xff] }
 0x3bd   :  { %v8096_v0 = vpack.i.bf16 %v4631_v41, %v4630_v44  ;;  %v2813_v47 = vsel %vm10012_vm15, 1.0, %v2789_v46  ;;  %vm10013_vm14 = vnez %v9947_v11  ;;  %vm10014_vm11 = vnez %v9960_v49 }
 0x3be   :  { %vm2698_vm12 = vmor %vm10014_vm11, %vm10013_vm14  ;;  %v2790_v12 = vsel %vm2697_vm6, 1.0, %v9995_v57  ;;  %4983 = vpow2.f32 %v3272_v9  ;;  %v8109_v53 = vsel %vm7991_vm2, 0.0, %v2812_v45  ;;  %vm10015_vm8 = vnez %v9988_v19 }
 0x3bf   :  { %v8113_v60 = vsel %vm10015_vm8, 0.0, %v2813_v47  ;;  %vm2822_vm10 = vcmp.le.f32.partialorder %v2782_v4, 0.3  ;;  %4844 = vrot.lane.b32.xlu0 %v8096_v0, %s5138_s27  ;;  %vm3510_vm3 = vcmp.gt.f32.partialorder %v8109_v53, 0.0  ;;  %v2791_v11 = vsel %vm2698_vm12, 1.0, %v9995_v57 }
 0x3c0   :  { %vm3511_vm5 = vcmp.gt.f32.partialorder %v8113_v60, 0.0  ;;  %vm10016_vm2 = vcmp.gt.f32.partialorder %v6613_v38, 0.5  ;;  %vm2823_vm1 = vcmp.le.f32.partialorder %v2783_v10, 0.3  ;;  %v3274_v52 = vmul.f32 1.442695, %v3263_v7 }
 0x3c1   :  { %vm8123_vm9 = vmand %vm10016_vm2, %vm2798_vm7  ;;  %v4626_v25 = vsel %vm3510_vm3, 1.0, %v9465_v40  ;;  %v4627_v19 = vsel %vm3511_vm5, 1.0, %v9465_v40  ;;  %vm10019_vm6 = vcmp.gt.f32.partialorder %v6653_v13, 0.5  ;;  %4985 = vpow2.f32 %v3276_v26  ;;  %v10024_v26 = vld [vmem:[#allocation52_spill] sm:$0xff] }
 0x3c2   :  { %vm8132_vm15 = vmand %vm10019_vm6, %vm2799_vm0  ;;  %v2814_v57 = vsel %vm8123_vm9, 1.0, %v2790_v12  ;;  %v8139_v36 = vstv %s7969_s8  ;;  %v8141_v31 = vpack.i.bf16 %v4627_v19, %v4626_v25  ;;  %v8149_v14 = vstv %s4803_s18  ;;  %v10028_v25 = vld [vmem:[#allocation7_spill] sm:$0xff]  ;;  %v3355_v19 = vpop.permute.xlu2 %3354 }
 0x3c3   :  { %vm10022_vm7 = vmmov %vm10016_vm2  ;;  %v8151_v33 = vstv %s4805_s4  ;;  %v2815_v10 = vsel %vm8132_vm15, 1.0, %v2791_v11  ;;  %v3372_v9 = vadd.f32 %v4980_v42, %v3349_v30  ;;  %v3265_v7 = vsub.f32 %v9839_v62, %v10024_v26 }
 0x3c4   :  { %vm2830_vm14 = vmand %vm10022_vm7, %vm2822_vm10  ;;  %4834 = vrot.lane.b32.xlu1 %v8141_v31, %s5138_s27  ;;  %v4984_v44 = vpop.eup %4983  ;;  %v3373_v41 = vadd.f32 %v4982_v35, %v3351_v34  ;;  %4987 = vpow2.f32 %v3274_v52  ;;  %vm10027_vm10 = vnez %v9871_v51  ;;  %v8178_v35 = vstv %s8045_s17 }
 0x3c5   :  { %vm10023_vm0 = vmmov %vm10019_vm6  ;;  %v8161_v38 = vsel %vm2830_vm14, 0.0, %v2814_v57  ;;  %v2723_v30 = vsel %vm10027_vm10, %v8139_v36, %v8147_v18  ;;  %v2759_v46 = vsel %vm10027_vm10, %v8149_v14, %v8151_v33  ;;  %v8181_v45 = vstv %s8079_s2 }
 0x3c6   :  { %vm2831_vm11 = vmand %vm10023_vm0, %vm2823_vm1  ;;  %10025 = vst [vmem:[#allocation25_spill] sm:$0xff] %v8161_v38  ;;  %vm3512_vm12 = vcmp.gt.f32.partialorder %v8161_v38, 0.0  ;;  %4989 = vlog2.f32 %v3372_v9  ;;  %v3374_v34 = vadd.f32 %v4984_v44, %v3353_v58  ;;  %v8187_v11 = vstv %s4807_s19 }
 0x3c7   :  { %v8163_v4 = vsel %vm2831_vm11, 0.0, %v2815_v10  ;;  %v4628_v13 = vsel %vm3512_vm12, 1.0, %v9465_v40  ;;  %v8185_v12 = vpop.eup %4985  ;;  %v8189_v49 = vstv %s4809_s20  ;;  %4864 = vrot.lane.b32.xlu0 %v8141_v31, %s5142_s25  ;;  %v8195_v52 = vsub.f32 %v2759_v46, %v2723_v30 }
 0x3c8   :  { %10026 = vst [vmem:[#allocation64_spill] sm:$0xff] %v8163_v4  ;;  %vm3513_vm8 = vcmp.gt.f32.partialorder %v8163_v4, 0.0  ;;  %vm2897_vm3 = vcmp.le.f32.partialorder %v10028_v25, 0.0  ;;  %4991 = vlog2.f32 %v3373_v41  ;;  %vm10029_vm5 = vnez %v9886_v23  ;;  %v10050_v4 = vld [vmem:[#allocation36_spill] sm:$0xff] }
 0x3c9   :  { %v4629_v42 = vsel %vm3513_vm8, 1.0, %v9465_v40  ;;  %v2905_v5 = vsel %vm2897_vm3, 1e-30, %v10028_v25  ;;  %v2737_v57 = vsel %vm10029_vm5, %v8178_v35, %v8181_v45  ;;  %v8203_v9 = vmul.f32 1.442695, %v3265_v7 }
 0x3ca   :  { %v8183_v47 = vpack.i.bf16 %v4629_v42, %v4628_v13  ;;  %v4988_v10 = vpop.eup %4987  ;;  %v2865_v44 = vmul.f32 0.5, %v8195_v52  ;;  %4993 = vrcp.f32 %v2905_v5  ;;  %v2773_v41 = vsel %vm10029_vm5, %v8187_v11, %v8189_v49 }
 0x3cb   :  { %10030 = vst [vmem:[#allocation70_spill] sm:$0xff] %v8203_v9  ;;  %4995 = vlog2.f32 %v3374_v34  ;;  %vm2909_vm2 = vcmp.le.f32.partialorder %v9763_v1, 0.0  ;;  %v8215_v42 = vadd.f32 %v4988_v10, %v3355_v19  ;;  %v8217_v7 = vsub.f32 %v2773_v41, %v2737_v57 }
 0x3cc   :  { %4859 = vrot.lane.b32.xlu2 %v8183_v47, %s5140_s15  ;;  %4839 = vrot.lane.b32.xlu1 %v8183_v47, %s5138_s27  ;;  %v2917_v46 = vsel %vm2909_vm2, 1e-30, %v9763_v1  ;;  %v8220_v25 = vpop.eup %4989  ;;  %v2873_v34 = vadd.f32 %v2865_v44, %v2723_v30  ;;  %v3016_v13 = vand.u32 2147483647, %v2905_v5  ;;  %v3018_v40 = vand.u32 2147483648, %v2905_v5 }
 0x3cd   :  { %4997 = vrcp.f32 %v2917_v46  ;;  %v2877_v8 = vmul.f32 0.5, %v8217_v7  ;;  %v3084_v26 = vand.u32 2147483647, %v2917_v46  ;;  %vm2912_vm9 = vcmp.le.f32.partialorder %v9766_v32, 0.0 }
 0x3ce   :  { %v8222_v56 = vpop.eup %4991  ;;  %v3086_v1 = vand.u32 2147483648, %v2917_v46  ;;  %vm10032_vm1 = vnez %v9868_v63  ;;  %v2920_v10 = vsel %vm2912_vm9, 1e-30, %v9766_v32  ;;  %vm3012_vm6 = vweird.f32 %v2905_v5 }
 0x3cf   :  { %4874 = vrot.lane.b32.xlu0 %v8141_v31, %s5145_s30  ;;  %v2740_v30 = vsel %vm10032_vm1, %v8178_v35, %v8181_v45  ;;  %v2776_v19 = vsel %vm10032_vm1, %v8187_v11, %v8189_v49  ;;  %4999 = vrcp.f32 %v2920_v10  ;;  %v2929_v58 = vsub.f32 %v2873_v34, %v10033_v29 }
 0x3d0   :  { %v4994_v62 = vpop.eup %4993  ;;  %vm8242_vm15 = vcmp.eq.f32.partialorder %v3016_v13, 8.507059e+37  ;;  %v3019_v9 = vor.u32 1.1754944e-38, %v3018_v40  ;;  %vm3080_vm7 = vweird.f32 %v2917_v46  ;;  %v8248_v32 = vsub.f32 %v2776_v19, %v2740_v30 }
 0x3d1   :  { %v8239_v44 = vpop.eup %4995  ;;  %v3008_v41 = vmul.f32 %v4994_v62, %v2905_v5  ;;  %vm3013_vm14 = vweird.f32 %v4994_v62  ;;  %v8250_v6 = vadd.f32 %v2877_v8, %v2737_v57  ;;  %vm8252_vm0 = vcmp.eq.f32.partialorder %v3084_v26, 8.507059e+37 }
 0x3d2   :  { %v3087_v29 = vor.u32 1.1754944e-38, %v3086_v1  ;;  %vm3125_vm11 = vweird.f32 %v2920_v10  ;;  %vm10038_vm12 = vnez %v9862_v22  ;;  %vm8262_vm3 = vmor %vm3012_vm6, %vm3013_vm14  ;;  %v2880_v19 = vmul.f32 0.5, %v8248_v32 }
 0x3d3   :  { %v4998_v48 = vpop.eup %4997  ;;  %v3009_v43 = vsub.f32 1.0, %v3008_v41  ;;  %v2724_v40 = vsel %vm10038_vm12, %v8139_v36, %v8147_v18  ;;  %v3129_v41 = vand.u32 2147483647, %v2920_v10  ;;  %v3131_v55 = vand.u32 2147483648, %v2920_v10 }
 0x3d4   :  { %4869 = vrot.lane.b32.xlu2 %v8183_v47, %s5142_s25  ;;  %4854 = vrot.lane.b32.xlu1 %v8141_v31, %s5140_s15  ;;  %v3076_v37 = vmul.f32 %v4998_v48, %v2917_v46  ;;  %v10039_v31 = vld [vmem:[#allocation16_spill] sm:$0xff]  ;;  %vm3081_vm2 = vweird.f32 %v4998_v48  ;;  %vm10045_vm6 = vnez %v9865_v50 }
 0x3d5   :  { %v3010_v13 = vmul.f32 %v4994_v62, %v3009_v43  ;;  %vm2898_vm8 = vcmp.le.f32.partialorder %v10039_v31, 0.0  ;;  %v2760_v43 = vsel %vm10038_vm12, %v8149_v14, %v8151_v33  ;;  %v5000_v57 = vpop.eup %4999  ;;  %vm8282_vm9 = vmor %vm3080_vm7, %vm3081_vm2  ;;  %v2743_v24 = vsel %vm10045_vm6, %v8178_v35, %v8181_v45 }
 0x3d6   :  { %v3077_v8 = vsub.f32 1.0, %v3076_v37  ;;  %v8271_v26 = vsel %vm2898_vm8, 1e-30, %v10039_v31  ;;  %v10042_v37 = vld [vmem:[#allocation33_spill] sm:$0xff]  ;;  %v3121_v38 = vmul.f32 %v5000_v57, %v2920_v10  ;;  %v8286_v16 = vsub.f32 %v2760_v43, %v2724_v40 }
 0x3d7   :  { %v3011_v1 = vadd.f32 %v4994_v62, %v3010_v13  ;;  %5001 = vrcp.f32 %v8271_v26  ;;  %v3053_v5 = vsub.f32 %v8250_v6, %v10042_v37  ;;  %v2779_v6 = vsel %vm10045_vm6, %v8187_v11, %v8189_v49 }
 0x3d8   :  { %v3078_v28 = vmul.f32 %v4998_v48, %v3077_v8  ;;  %v3122_v34 = vsub.f32 1.0, %v3121_v38  ;;  %vm3126_vm7 = vweird.f32 %v5000_v57  ;;  %vm8303_vm14 = vcmp.eq.f32.partialorder %v3129_v41, 8.507059e+37 }
 0x3d9   :  { %v3015_v31 = vsel %vm8262_vm3, %v4994_v62, %v3011_v1  ;;  %v2888_v1 = vadd.f32 %v2880_v19, %v2740_v30  ;;  %vm8316_vm8 = vmor %vm3125_vm11, %vm3126_vm7  ;;  %v2866_v30 = vmul.f32 0.5, %v8286_v16  ;;  %v3033_v13 = vand.u32 2147483648, %v8271_v26 }
 0x3da   :  { %v3020_v62 = vsel %vm8242_vm15, %v3019_v9, %v3015_v31  ;;  %v3079_v46 = vadd.f32 %v4998_v48, %v3078_v28  ;;  %v3123_v15 = vmul.f32 %v5000_v57, %v3122_v34  ;;  %v8309_v9 = vsub.f32 %v2779_v6, %v2743_v24 }
 0x3db   :  { %v3021_v8 = vmul.f32 %v3020_v62, %v2929_v58  ;;  %v8299_v43 = vmul.f32 %v3020_v62, %v8195_v52  ;;  %vm2915_vm15 = vcmp.le.f32.partialorder %v9769_v3, 0.0  ;;  %v3132_v58 = vor.u32 1.1754944e-38, %v3131_v55 }
 0x3dc   :  { %4894 = vrot.lane.b32.xlu2 %v8047_v21, %s5140_s15  ;;  %4879 = vrot.lane.b32.xlu1 %v8096_v0, %s5140_s15  ;;  %v3083_v51 = vsel %vm8282_vm9, %v4998_v48, %v3079_v46  ;;  %v2923_v48 = vsel %vm2915_vm15, 1e-30, %v9769_v3  ;;  %v3124_v41 = vadd.f32 %v5000_v57, %v3123_v15  ;;  %v2883_v10 = vmul.f32 0.5, %v8309_v9 }
 0x3dd   :  { %v5002_v28 = vpop.eup %5001  ;;  %3552 = vrot.lane.b32.xlu0 %v3021_v8, %s5138_s27  ;;  %v3088_v38 = vsel %vm8252_vm0, %v3087_v29, %v3083_v51  ;;  %v3056_v51 = vsub.f32 %v2888_v1, %v10050_v4  ;;  %vm3027_vm0 = vweird.f32 %v8271_v26  ;;  %5003 = vrcp.f32 %v2923_v48 }
 0x3de   :  { %v8323_v19 = vmul.f32 %v3088_v38, %v8217_v7  ;;  %v3023_v31 = vmul.f32 %v5002_v28, %v8271_v26  ;;  %v3128_v3 = vsel %vm8316_vm8, %v5000_v57, %v3124_v41  ;;  %vm3028_vm11 = vweird.f32 %v5002_v28 }
 0x3df   :  { %v3031_v7 = vand.u32 2147483647, %v8271_v26  ;;  %v3133_v29 = vsel %vm8303_vm14, %v3132_v58, %v3128_v3  ;;  %v2874_v6 = vadd.f32 %v2866_v30, %v2724_v40  ;;  %v2738_v62 = vsel %vm7965_vm4, %v8178_v35, %v8181_v45  ;;  %vm8352_vm3 = vmor %vm3027_vm0, %vm3028_vm11 }
 0x3e0   :  { %v3024_v55 = vsub.f32 1.0, %v3023_v31  ;;  %v2774_v46 = vsel %vm7965_vm4, %v8187_v11, %v8189_v49  ;;  %v3089_v34 = vmul.f32 %v3088_v38, %v3053_v5  ;;  %v8346_v57 = vmul.f32 %v3133_v29, %v8248_v32 }
 0x3e1   :  { %v3034_v1 = vor.u32 1.1754944e-38, %v3033_v13  ;;  %v8356_v37 = vadd.f32 %v2883_v10, %v2743_v24  ;;  %v3174_v15 = vand.u32 2147483647, %v2923_v48  ;;  %v3176_v52 = vand.u32 2147483648, %v2923_v48  ;;  %v10054_v13 = vld [vmem:[#allocation39_spill] sm:$0xff] }
 0x3e2   :  { %v3025_v8 = vmul.f32 %v5002_v28, %v3024_v55  ;;  %vm2910_vm2 = vcmp.le.f32.partialorder %v9764_v17, 0.0  ;;  %vm3032_vm9 = vcmp.eq.f32.partialorder %v3031_v7, 8.507059e+37  ;;  %v8359_v32 = vsub.f32 %v2774_v46, %v2738_v62  ;;  %v10057_v7 = vld [vmem:[#allocation6_spill] sm:$0xff] }
 0x3e3   :  { %v2918_v38 = vsel %vm2910_vm2, 1e-30, %v9764_v17  ;;  %v5004_v58 = vpop.eup %5003  ;;  %v3134_v30 = vmul.f32 %v3133_v29, %v3056_v51  ;;  %vm3170_vm7 = vweird.f32 %v2923_v48  ;;  %v3059_v4 = vsub.f32 %v8356_v37, %v10054_v13 }
 0x3e4   :  { %4899 = vrot.lane.b32.xlu2 %v8096_v0, %s5145_s30  ;;  %4884 = vrot.lane.b32.xlu1 %v8183_v47, %s5145_s30  ;;  %v3026_v5 = vadd.f32 %v5002_v28, %v3025_v8  ;;  %v10053_v47 = vld [vmem:[#allocation27_spill] sm:$0xff]  ;;  %5005 = vrcp.f32 %v2918_v38  ;;  %v3166_v41 = vmul.f32 %v5004_v58, %v2923_v48  ;;  %vm8368_vm14 = vcmp.eq.f32.partialorder %v3174_v15, 8.507059e+37  ;;  %v10059_v8 = vld [vmem:[#allocation8_spill] sm:$0xff] }
 0x3e5   :  { %3680 = vrot.lane.b32.xlu0 %v3089_v34, %s5140_s15  ;;  %v2930_v26 = vsub.f32 %v2874_v6, %v10053_v47  ;;  %v3177_v17 = vor.u32 1.1754944e-38, %v3176_v52  ;;  %vm3171_vm15 = vweird.f32 %v5004_v58  ;;  %v3099_v55 = vand.u32 2147483647, %v2918_v38 }
 0x3e6   :  { %v3030_v24 = vsel %vm8352_vm3, %v5002_v28, %v3026_v5  ;;  %v3167_v51 = vsub.f32 1.0, %v3166_v41  ;;  %v2878_v28 = vmul.f32 0.5, %v8359_v32  ;;  %vm2893_vm8 = vcmp.le.f32.partialorder %v10057_v7, 0.0  ;;  %vm8394_vm3 = vmor %vm3170_vm7, %vm3171_vm15 }
 0x3e7   :  { %v3035_v31 = vsel %vm3032_vm9, %v3034_v1, %v3030_v24  ;;  %vm10058_vm0 = vnez %v9883_v61  ;;  %vm2892_vm11 = vcmp.le.f32.partialorder %v10059_v8, 0.0  ;;  %v3101_v37 = vand.u32 2147483648, %v2918_v38  ;;  %v10072_v24 = vld [vmem:[#allocation13_spill] sm:$0xff] }
 0x3e8   :  { %v8375_v3 = vmul.f32 %v3035_v31, %v8286_v16  ;;  %v2718_v29 = vsel %vm10058_vm0, %v8139_v36, %v8147_v18  ;;  %v2754_v6 = vsel %vm10058_vm0, %v8149_v14, %v8151_v33  ;;  %v3168_v46 = vmul.f32 %v5004_v58, %v3167_v51 }
 0x3e9   :  { %v2901_v16 = vsel %vm2893_vm8, 1e-30, %v10057_v7  ;;  %v8388_v34 = vsub.f32 %v2754_v6, %v2718_v29  ;;  %v8402_v15 = vsel %vm10029_vm5, %v8139_v36, %v8147_v18  ;;  %v2755_v52 = vsel %vm10029_vm5, %v8149_v14, %v8151_v33 }
 0x3ea   :  { %v5006_v1 = vpop.eup %5005  ;;  %5007 = vrcp.f32 %v2901_v16  ;;  %v3169_v5 = vadd.f32 %v5004_v58, %v3168_v46  ;;  %vm3095_vm2 = vweird.f32 %v2918_v38  ;;  %v3036_v47 = vmul.f32 %v3035_v31, %v2930_v26 }
 0x3eb   :  { %v3091_v48 = vmul.f32 %v5006_v1, %v2918_v38  ;;  %vm3096_vm9 = vweird.f32 %v5006_v1  ;;  %vm8409_vm7 = vcmp.eq.f32.partialorder %v3099_v55, 8.507059e+37  ;;  %v2900_v41 = vsel %vm2892_vm11, 1e-30, %v10059_v8 }
 0x3ec   :  { %4909 = vrot.lane.b32.xlu2 %v8047_v21, %s5145_s30  ;;  %4889 = vrot.lane.b32.xlu1 %v8096_v0, %s5142_s25  ;;  %v2886_v0 = vadd.f32 %v2878_v28, %v2738_v62  ;;  %v3173_v23 = vsel %vm8394_vm3, %v5004_v58, %v3169_v5  ;;  %v2860_v62 = vmul.f32 0.5, %v8388_v34  ;;  %5009 = vrcp.f32 %v2900_v41  ;;  %v10064_v58 = vld [vmem:[#allocation35_spill] sm:$0xff] }
 0x3ed   :  { %3686 = vrot.lane.b32.xlu0 %v3134_v30, %s5140_s15  ;;  %v3092_v13 = vsub.f32 1.0, %v3091_v48  ;;  %v3178_v30 = vsel %vm8368_vm14, %v3177_v17, %v3173_v23  ;;  %v3102_v26 = vor.u32 1.1754944e-38, %v3101_v37  ;;  %v2845_v31 = vsub.f32 %v2755_v52, %v8402_v15  ;;  %vm8433_vm14 = vmor %vm3095_vm2, %vm3096_vm9 }
 0x3ee   :  { %v2739_v51 = vsel %vm8004_vm13, %v8178_v35, %v8181_v45  ;;  %v8428_v28 = vmul.f32 %v3178_v30, %v8309_v9  ;;  %v3054_v55 = vsub.f32 %v2886_v0, %v10064_v58  ;;  %vm2952_vm5 = vweird.f32 %v2901_v16 }
 0x3ef   :  { %v3093_v7 = vmul.f32 %v5006_v1, %v3092_v13  ;;  %v2956_v17 = vand.u32 2147483647, %v2901_v16  ;;  %v2958_v46 = vand.u32 2147483648, %v2901_v16  ;;  %v2775_v8 = vsel %vm8004_vm13, %v8187_v11, %v8189_v49 }
 0x3f0   :  { %v5008_v6 = vpop.eup %5007  ;;  %vm2911_vm15 = vcmp.le.f32.partialorder %v9765_v20, 0.0  ;;  %v2868_v37 = vadd.f32 %v2860_v62, %v2718_v29  ;;  %v8442_v52 = vsub.f32 %v2775_v8, %v2739_v51  ;;  %v3179_v5 = vmul.f32 %v3178_v30, %v3059_v4  ;;  %v10069_v62 = vld [vmem:[#allocation5_spill] sm:$0xff] }
 0x3f1   :  { %v3094_v9 = vadd.f32 %v5006_v1, %v3093_v7  ;;  %v2948_v40 = vmul.f32 %v5008_v6, %v2901_v16  ;;  %v2941_v38 = vand.u32 2147483647, %v2900_v41  ;;  %v2943_v0 = vand.u32 2147483648, %v2900_v41 }
 0x3f2   :  { %v2919_v48 = vsel %vm2911_vm15, 1e-30, %v9765_v20  ;;  %vm2953_vm8 = vweird.f32 %v5008_v6  ;;  %vm8454_vm11 = vcmp.eq.f32.partialorder %v2956_v17, 8.507059e+37  ;;  %vm2894_vm3 = vcmp.le.f32.partialorder %v10069_v62, 0.0 }
 0x3f3   :  { %v3098_v23 = vsel %vm8433_vm14, %v5006_v1, %v3094_v9  ;;  %v2949_v13 = vsub.f32 1.0, %v2948_v40  ;;  %5011 = vrcp.f32 %v2919_v48  ;;  %v2959_v1 = vor.u32 1.1754944e-38, %v2958_v46  ;;  %vm8462_vm2 = vmor %vm2952_vm5, %vm2953_vm8 }
 0x3f4   :  { %3554 = vrot.lane.b32.xlu2 %v3036_v47, %s5138_s27  ;;  %4904 = vrot.lane.b32.xlu1 %v8047_v21, %s5142_s25  ;;  %v5010_v47 = vpop.eup %5009  ;;  %v8452_v29 = vsel %vm8409_vm7, %v3102_v26, %v3098_v23  ;;  %v2879_v58 = vmul.f32 0.5, %v8442_v52  ;;  %v2924_v26 = vsub.f32 %v2868_v37, %v10072_v24  ;;  %vm2937_vm9 = vweird.f32 %v2900_v41 }
 0x3f5   :  { %3692 = vrot.lane.b32.xlu0 %v3179_v5, %s5140_s15  ;;  %v2933_v21 = vmul.f32 %v5010_v47, %v2900_v41  ;;  %v3104_v20 = vmul.f32 %v8452_v29, %v3054_v55  ;;  %v2950_v30 = vmul.f32 %v5008_v6, %v2949_v13  ;;  %vm2938_vm7 = vweird.f32 %v5010_v47 }
 0x3f6   :  { %vm8468_vm14 = vcmp.eq.f32.partialorder %v2941_v38, 8.507059e+37  ;;  %v2944_v55 = vor.u32 1.1754944e-38, %v2943_v0  ;;  %v2902_v46 = vsel %vm2894_vm3, 1e-30, %v10069_v62  ;;  %v8477_v9 = vsel %vm7965_vm4, %v8139_v36, %v8147_v18  ;;  %vm8485_vm5 = vmor %vm2937_vm9, %vm2938_vm7 }
 0x3f7   :  { %v2934_v10 = vsub.f32 1.0, %v2933_v21  ;;  %v2951_v17 = vadd.f32 %v5008_v6, %v2950_v30  ;;  %v2756_v41 = vsel %vm7965_vm4, %v8149_v14, %v8151_v33  ;;  %5013 = vrcp.f32 %v2902_v46 }
 0x3f8   :  { %v2887_v38 = vadd.f32 %v2879_v58, %v2739_v51  ;;  %vm3110_vm15 = vweird.f32 %v2919_v48  ;;  %v2861_v0 = vmul.f32 0.5, %v2845_v31  ;;  %v3114_v62 = vand.u32 2147483647, %v2919_v48 }
 0x3f9   :  { %v2935_v16 = vmul.f32 %v5010_v47, %v2934_v10  ;;  %v5012_v40 = vpop.eup %5011  ;;  %v2955_v37 = vsel %vm8462_vm2, %v5008_v6, %v2951_v17  ;;  %v8492_v30 = vsub.f32 %v2756_v41, %v8477_v9  ;;  %v2742_v51 = vsel %vm10038_vm12, %v8178_v35, %v8181_v45  ;;  %v10078_v41 = vld [vmem:[#allocation34_spill] sm:$0xff] }
 0x3fa   :  { %v2960_v23 = vsel %vm8454_vm11, %v2959_v1, %v2955_v37  ;;  %v3106_v21 = vmul.f32 %v5012_v40, %v2919_v48  ;;  %vm3111_vm4 = vweird.f32 %v5012_v40  ;;  %v2778_v4 = vsel %vm10038_vm12, %v8187_v11, %v8189_v49  ;;  %v10077_v1 = vld [vmem:[#allocation40_spill] sm:$0xff] }
 0x3fb   :  { %v2936_v13 = vadd.f32 %v5010_v47, %v2935_v16  ;;  %v3181_v27 = vmul.f32 %v2960_v23, %v2845_v31  ;;  %v3055_v58 = vsub.f32 %v2887_v38, %v10077_v1  ;;  %v2869_v24 = vadd.f32 %v2861_v0, %v8402_v15  ;;  %vm8514_vm11 = vmor %vm3110_vm15, %vm3111_vm4 }
 0x3fc   :  { %3682 = vrot.lane.b32.xlu2 %v3104_v20, %s5140_s15  ;;  %v3116_v20 = vand.u32 2147483648, %v2919_v48  ;;  %v3107_v7 = vsub.f32 1.0, %v3106_v21  ;;  %vm2914_vm8 = vcmp.le.f32.partialorder %v10078_v41, 0.0  ;;  %vm8518_vm12 = vcmp.eq.f32.partialorder %v3114_v62, 8.507059e+37  ;;  %v10083_v21 = vld [vmem:[#allocation19_spill] sm:$0xff] }
 0x3fd   :  { %v2940_v6 = vsel %vm8485_vm5, %v5010_v47, %v2936_v13  ;;  %5015 = vlog2.f32 %v3181_v27  ;;  %v5014_v47 = vpop.eup %5013  ;;  %v8522_v37 = vsub.f32 %v2778_v4, %v2742_v51  ;;  %vm2967_vm3 = vweird.f32 %v2902_v46  ;;  %v10084_v4 = vld [vmem:[#allocation11_spill] sm:$0xff] }
 0x3fe   :  { %v2945_v31 = vsel %vm8468_vm14, %v2944_v55, %v2940_v6  ;;  %v3108_v16 = vmul.f32 %v5012_v40, %v3107_v7  ;;  %v3117_v55 = vor.u32 1.1754944e-38, %v3116_v20  ;;  %v2963_v15 = vmul.f32 %v5014_v47, %v2902_v46 }
 0x3ff   :  { %v2946_v10 = vmul.f32 %v2945_v31, %v2924_v26  ;;  %v8509_v17 = vmul.f32 %v2945_v31, %v8388_v34  ;;  %v2973_v26 = vand.u32 2147483648, %v2902_v46  ;;  %v2922_v5 = vsel %vm2914_vm8, 1e-30, %v10078_v41  ;;  %v3357_v41 = vpop.permute.xlu1 %3356 }
 0x400   :  { %v3109_v34 = vadd.f32 %v5012_v40, %v3108_v16  ;;  %v2964_v48 = vsub.f32 1.0, %v2963_v15  ;;  %vm2968_vm2 = vweird.f32 %v5014_v47  ;;  %v2971_v38 = vand.u32 2147483647, %v2902_v46 }
 0x401   :  { %3542 = vrot.lane.b32.xlu1 %v2946_v10, %s5138_s27  ;;  %5017 = vrcp.f32 %v2922_v5  ;;  %v3381_v0 = vmul.f32 0.6931472, %v8220_v25  ;;  %v2925_v62 = vsub.f32 %v2869_v24, %v10083_v21  ;;  %v2882_v7 = vmul.f32 0.5, %v8522_v37  ;;  %vm8540_vm7 = vmor %vm2967_vm3, %vm2968_vm2  ;;  %v10090_v21 = vld [vmem:[#allocation23_spill] sm:$0xff]  ;;  %v10096_v10 = vld [vmem:[#allocation14_spill] sm:$0xff] }
 0x402   :  { %5019 = vlog2.f32 %v8215_v42  ;;  %v3113_v13 = vsel %vm8514_vm11, %v5012_v40, %v3109_v34  ;;  %v2965_v6 = vmul.f32 %v5014_v47, %v2964_v48  ;;  %vm2896_vm9 = vcmp.le.f32.partialorder %v10084_v4, 0.0 }
 0x403   :  { %v5016_v27 = vpop.eup %5015  ;;  %v3118_v20 = vsel %vm8518_vm12, %v3117_v55, %v3113_v13  ;;  %v2974_v40 = vor.u32 1.1754944e-38, %v2973_v26  ;;  %vm8544_vm14 = vcmp.eq.f32.partialorder %v2971_v38, 8.507059e+37  ;;  %v8549_v16 = vsel %vm2896_vm9, 1e-30, %v10084_v4 }
 0x404   :  { %v3191_v31 = vmul.f32 0.6931472, %v5016_v27  ;;  %v3119_v1 = vmul.f32 %v3118_v20, %v3055_v58  ;;  %v8536_v25 = vmul.f32 %v3118_v20, %v8442_v52  ;;  %v2966_v24 = vadd.f32 %v5014_v47, %v2965_v6 }
 0x405   :  { %v2862_v58 = vmul.f32 0.5, %v8492_v30  ;;  %v8553_v52 = vadd.f32 %v3381_v0, %v9873_v39  ;;  %v8556_v46 = vmul.f32 0.6931472, %v8222_v56  ;;  %v2961_v22 = vmul.f32 %v2960_v23, %v2925_v62  ;;  %v10091_v62 = vld [vmem:[#allocation41_spill] sm:$0xff] }
 0x406   :  { %3848 = vrot.lane.b32.xlu0 %v3191_v31, %s5142_s25  ;;  %3684 = vrot.lane.b32.xlu2 %v3119_v1, %s5140_s15  ;;  %5021 = vrcp.f32 %v8549_v16  ;;  %v8562_v55 = vmul.f32 0.6931472, %v8239_v44  ;;  %v2970_v15 = vsel %vm8540_vm7, %v5014_v47, %v2966_v24  ;;  %v2890_v39 = vadd.f32 %v2882_v7, %v2742_v51  ;;  %v10089_v47 = vld [vmem:[#allocation15_spill] sm:$0xff] }
 0x407   :  { %v5018_v8 = vpop.eup %5017  ;;  %v2870_v34 = vadd.f32 %v2862_v58, %v8477_v9  ;;  %v2975_v26 = vsel %vm8544_vm14, %v2974_v40, %v2970_v15  ;;  %v3159_v48 = vand.u32 2147483647, %v2922_v5  ;;  %v3161_v38 = vand.u32 2147483648, %v2922_v5  ;;  %v8609_v58 = vpop.permute.xlu2 %3360 }
 0x408   :  { %v8567_v56 = vpop.eup %5019  ;;  %v3151_v23 = vmul.f32 %v5018_v8, %v2922_v5  ;;  %v3376_v0 = vadd.f32 %v8185_v12, %v3357_v41  ;;  %v3182_v44 = vmul.f32 %v2975_v26, %v8492_v30  ;;  %vm3155_vm5 = vweird.f32 %v2922_v5 }
 0x409   :  { %3544 = vrot.lane.b32.xlu1 %v2961_v22, %s5138_s27  ;;  %v8578_v9 = vsel %vm10032_vm1, %v8139_v36, %v8147_v18  ;;  %vm3156_vm15 = vweird.f32 %v5018_v8  ;;  %v2926_v13 = vsub.f32 %v2870_v34, %v10089_v47  ;;  %vm2908_vm4 = vcmp.le.f32.partialorder %v10090_v21, 0.0 }
 0x40a   :  { %v3152_v51 = vsub.f32 1.0, %v3151_v23  ;;  %5023 = vlog2.f32 %v3182_v44  ;;  %v3058_v27 = vsub.f32 %v2890_v39, %v10091_v62  ;;  %v2758_v12 = vsel %vm10032_vm1, %v8149_v14, %v8151_v33  ;;  %vm8593_vm11 = vmor %vm3155_vm5, %vm3156_vm15 }
 0x40b   :  { %v2916_v30 = vsel %vm2908_vm4, 1e-30, %v10090_v21  ;;  %vm8588_vm8 = vcmp.eq.f32.partialorder %v3159_v48, 8.507059e+37  ;;  %v3162_v4 = vor.u32 1.1754944e-38, %v3161_v38  ;;  %v3003_v63 = vand.u32 2147483648, %v8549_v16 }
 0x40c   :  { %v5022_v20 = vpop.eup %5021  ;;  %v3153_v6 = vmul.f32 %v5018_v8, %v3152_v51  ;;  %5025 = vrcp.f32 %v2916_v30  ;;  %v2721_v42 = vsel %vm8004_vm13, %v8139_v36, %v8147_v18  ;;  %v2757_v40 = vsel %vm8004_vm13, %v8149_v14, %v8151_v33 }
 0x40d   :  { %v2993_v1 = vmul.f32 %v5022_v20, %v8549_v16  ;;  %vm2997_vm1 = vweird.f32 %v8549_v16  ;;  %v2976_v5 = vmul.f32 %v2975_v26, %v2926_v13  ;;  %vm2895_vm12 = vcmp.le.f32.partialorder %v10096_v10, 0.0  ;;  %v10116_v13 = vld [vmem:[#allocation48_spill] sm:$0xff] }
 0x40e   :  { %v3154_v24 = vadd.f32 %v5018_v8, %v3153_v6  ;;  %vm2998_vm3 = vweird.f32 %v5022_v20  ;;  %v3001_v22 = vand.u32 2147483647, %v8549_v16  ;;  %v2903_v15 = vsel %vm2895_vm12, 1e-30, %v10096_v10 }
 0x40f   :  { %v2994_v41 = vsub.f32 1.0, %v2993_v1  ;;  %v8620_v59 = vsel %vm10058_vm0, %v8178_v35, %v8181_v45  ;;  %v8622_v34 = vsub.f32 %v2757_v40, %v2721_v42  ;;  %5027 = vrcp.f32 %v2903_v15  ;;  %vm8636_vm13 = vmor %vm2997_vm1, %vm2998_vm3 }
 0x410   :  { %v3158_v39 = vsel %vm8593_vm11, %v5018_v8, %v3154_v24  ;;  %v5024_v26 = vpop.eup %5023  ;;  %v3004_v38 = vor.u32 1.1754944e-38, %v3003_v63  ;;  %v2772_v8 = vsel %vm10058_vm0, %v8187_v11, %v8189_v49  ;;  %v3069_v21 = vand.u32 2147483647, %v2916_v30 }
 0x411   :  { %3546 = vrot.lane.b32.xlu1 %v2976_v5, %s5138_s27  ;;  %v8626_v23 = vsel %vm8588_vm8, %v3162_v4, %v3158_v39  ;;  %v2995_v48 = vmul.f32 %v5022_v20, %v2994_v41  ;;  %v3193_v51 = vmul.f32 0.6931472, %v5024_v26  ;;  %v3071_v62 = vand.u32 2147483648, %v2916_v30 }
 0x412   :  { %v5026_v44 = vpop.eup %5025  ;;  %v3164_v47 = vmul.f32 %v8626_v23, %v3058_v27  ;;  %v2848_v6 = vsub.f32 %v2758_v12, %v8578_v9  ;;  %vm3002_vm2 = vcmp.eq.f32.partialorder %v3001_v22, 8.507059e+37  ;;  %5029 = vlog2.f32 %v3376_v0  ;;  %v10099_v27 = vld [vmem:[#allocation30_spill] sm:$0xff] }
 0x413   :  { %v2996_v7 = vadd.f32 %v5022_v20, %v2995_v48  ;;  %v3061_v4 = vmul.f32 %v5026_v44, %v2916_v30  ;;  %3850 = vrot.lane.b32.xlu0 %v3193_v51, %s5142_s25  ;;  %v8644_v61 = vsub.f32 %v2772_v8, %v8620_v59  ;;  %v2863_v16 = vmul.f32 0.5, %v8622_v34 }
 0x414   :  { %3690 = vrot.lane.b32.xlu2 %v3164_v47, %s5140_s15  ;;  %vm2913_vm0 = vcmp.le.f32.partialorder %v10099_v27, 0.0  ;;  %vm3065_vm9 = vweird.f32 %v2916_v30  ;;  %vm3066_vm7 = vweird.f32 %v5026_v44  ;;  %vm8652_vm14 = vcmp.eq.f32.partialorder %v3069_v21, 8.507059e+37 }
 0x415   :  { %v3000_v31 = vsel %vm8636_vm13, %v5022_v20, %v2996_v7  ;;  %v3062_v1 = vsub.f32 1.0, %v3061_v4  ;;  %v5028_v12 = vpop.eup %5027  ;;  %v3072_v40 = vor.u32 1.1754944e-38, %v3071_v62  ;;  %v8657_v24 = vsel %vm2913_vm0, 1e-30, %v10099_v27  ;;  %v8660_v20 = vpop.permute.xlu2 %4849  ;;  %vm8662_vm5 = vmor %vm3065_vm9, %vm3066_vm7 }
 0x416   :  { %v8650_v63 = vsel %vm3002_vm2, %v3004_v38, %v3000_v31  ;;  %v2978_v41 = vmul.f32 %v5028_v12, %v2903_v15  ;;  %v2986_v22 = vand.u32 2147483647, %v2903_v15  ;;  %v2871_v39 = vadd.f32 %v2863_v16, %v2721_v42  ;;  %v10109_v16 = vld [vmem:[#allocation12_spill] sm:$0xff] }
 0x417   :  { %v3184_v5 = vmul.f32 %v8650_v63, %v2848_v6  ;;  %v3063_v10 = vmul.f32 %v5026_v44, %v3062_v1  ;;  %vm2982_vm15 = vweird.f32 %v2903_v15  ;;  %v2988_v26 = vand.u32 2147483648, %v2903_v15 }
 0x418   :  { %5031 = vrcp.f32 %v8657_v24  ;;  %v2979_v38 = vsub.f32 1.0, %v2978_v41  ;;  %vm2983_vm4 = vweird.f32 %v5028_v12  ;;  %v5030_v8 = vpop.eup %5029  ;;  %v3387_v51 = vmul.f32 0.6931472, %v8567_v56  ;;  %v10106_v56 = vld [vmem:[#allocation22_spill] sm:$0xff] }
 0x419   :  { %5033 = vlog2.f32 %v3184_v5  ;;  %v3064_v48 = vadd.f32 %v5026_v44, %v3063_v10  ;;  %vm3405_vm8 = vcmp.eq.f32.partialorder %v8113_v60, 1.0  ;;  %vm3404_vm11 = vcmp.eq.f32.partialorder %v8109_v53, 1.0  ;;  %vm8683_vm12 = vmor %vm2982_vm15, %vm2983_vm4 }
 0x41a   :  { %5035 = vlog2.f32 %v8299_v43  ;;  %v2980_v47 = vmul.f32 %v5028_v12, %v2979_v38  ;;  %vm8673_vm1 = vcmp.eq.f32.partialorder %v2986_v22, 8.507059e+37  ;;  %v2864_v21 = vmul.f32 0.5, %v2848_v6  ;;  %v10111_v38 = vld [vmem:[#allocation113_spill] sm:$0xff] }
 0x41b   :  { %v3068_v42 = vsel %vm8662_vm5, %v5026_v44, %v3064_v48  ;;  %v2927_v7 = vsub.f32 %v2871_v39, %v10106_v56  ;;  %v2989_v43 = vor.u32 1.1754944e-38, %v2988_v26  ;;  %vm2899_vm3 = vcmp.le.f32.partialorder %v10109_v16, 0.0 }
 0x41c   :  { %v8679_v62 = vsel %vm8652_vm14, %v3072_v40, %v3068_v42  ;;  %v2981_v27 = vadd.f32 %v5028_v12, %v2980_v47  ;;  %v2725_v6 = vsel %vm10045_vm6, %v8139_v36, %v8147_v18  ;;  %v2761_v15 = vsel %vm10045_vm6, %v8149_v14, %v8151_v33  ;;  %v10112_v42 = vld [vmem:[#allocation71_spill] sm:$0xff] }
 0x41d   :  { %v3204_v44 = vmul.f32 %v8679_v62, %v8644_v61  ;;  %v3206_v1 = vmul.f32 %v8452_v29, %v8359_v32  ;;  %vm3140_vm13 = vweird.f32 %v8657_v24  ;;  %v3146_v0 = vand.u32 2147483648, %v8657_v24 }
 0x41e   :  { %v5032_v31 = vpop.eup %5031  ;;  %v8703_v40 = vsel %vm2899_vm3, 1e-30, %v10109_v16  ;;  %v2985_v36 = vsel %vm8683_vm12, %v5028_v12, %v2981_v27  ;;  %v2872_v50 = vadd.f32 %v2864_v21, %v8578_v9  ;;  %v8713_v29 = vsub.f32 %v2761_v15, %v2725_v6  ;;  %v10119_v27 = vld [vmem:[#allocation25_spill] sm:$0xff] }
 0x41f   :  { %v5034_v5 = vpop.eup %5033  ;;  %5037 = vlog2.f32 %v3204_v44  ;;  %v3136_v18 = vmul.f32 %v5032_v31, %v8657_v24  ;;  %v8711_v32 = vsel %vm8673_vm1, %v2989_v43, %v2985_v36  ;;  %vm3141_vm6 = vweird.f32 %v5032_v31  ;;  %v8767_v36 = vpop.permute.xlu0 %3358 }
 0x420   :  { %v5036_v14 = vpop.eup %5035  ;;  %v3197_v33 = vmul.f32 0.6931472, %v5034_v5  ;;  %5039 = vrcp.f32 %v8703_v40  ;;  %v2991_v10 = vmul.f32 %v8711_v32, %v2927_v7  ;;  %v3144_v12 = vand.u32 2147483647, %v8657_v24 }
 0x421   :  { %v3137_v41 = vsub.f32 1.0, %v3136_v18  ;;  %v3397_v9 = vadd.f32 %v8556_v46, %v9905_v54  ;;  %v8724_v30 = vadd.f32 %v8562_v55, %v9961_v2  ;;  %v8731_v26 = vsel %vm10027_vm10, %v8178_v35, %v8181_v45  ;;  %v10113_v2 = vld [vmem:[#allocation102_spill] sm:$0xff]  ;;  %v10114_v46 = vld [vmem:[#allocation135_spill] sm:$0xff] }
 0x422   :  { %3854 = vrot.lane.b32.xlu0 %v3197_v33, %s5142_s25  ;;  %v2777_v48 = vsel %vm10027_vm10, %v8187_v11, %v8189_v49  ;;  %v3413_v54 = vsel %vm3405_vm8, %v10112_v42, %v10111_v38  ;;  %v3412_v55 = vsel %vm3404_vm11, %v10114_v46, %v10113_v2  ;;  %3548 = vrot.lane.b32.xlu1 %v2991_v10, %s5138_s27  ;;  %v10115_v35 = vld [vmem:[#allocation18_spill] sm:$0xff]  ;;  %v3389_v56 = vmul.f32 0.6931472, %v5030_v8  ;;  %vm8753_vm10 = vmor %vm3140_vm13, %vm3141_vm6  ;;  %v10120_v10 = vld [vmem:[#allocation24_spill] sm:$0xff] }
 0x423   :  { %v3138_v47 = vmul.f32 %v5032_v31, %v3137_v41  ;;  %v2928_v45 = vsub.f32 %v2872_v50, %v10115_v35  ;;  %v8748_v21 = vadd.f32 %v3387_v51, %v10116_v13  ;;  %v3147_v49 = vor.u32 1.1754944e-38, %v3146_v0  ;;  %v10122_v42 = vld [vmem:[#allocation121_spill] sm:$0xff] }
 0x424   :  { %v2867_v7 = vmul.f32 0.5, %v8713_v29  ;;  %5041 = vlog2.f32 %v3206_v1  ;;  %v8759_v43 = vsub.f32 %v2777_v48, %v8731_v26  ;;  %vm3145_vm2 = vcmp.eq.f32.partialorder %v3144_v12, 8.507059e+37  ;;  %v8785_v48 = vpop.permute.xlu1 %3362 }
 0x425   :  { %v5038_v4 = vpop.eup %5037  ;;  %v3139_v16 = vadd.f32 %v5032_v31, %v3138_v47  ;;  %v3420_v8 = vsub.f32 %v3412_v55, %v8553_v52  ;;  %v3421_v44 = vsub.f32 %v3413_v54, %v3397_v9  ;;  %vm3406_vm0 = vcmp.eq.f32.partialorder %v10119_v27, 1.0  ;;  %v10121_v9 = vld [vmem:[#allocation64_spill] sm:$0xff]  ;;  %v10123_v54 = vld [vmem:[#allocation62_spill] sm:$0xff] }
 0x426   :  { %v8718_v22 = vpop.permute.xlu2 %4859  ;;  %v5040_v51 = vpop.eup %5039  ;;  %v3213_v24 = vmul.f32 0.6931472, %v5038_v4  ;;  %v3199_v15 = vmul.f32 0.6931472, %v5036_v14  ;;  %v3006_v5 = vmul.f32 %v8650_v63, %v2928_v45  ;;  %v2875_v50 = vadd.f32 %v2867_v7, %v2725_v6  ;;  %v10126_v45 = vld [vmem:[#allocation21_spill] sm:$0xff]  ;;  %v10127_v7 = vld [vmem:[#allocation55_spill] sm:$0xff] }
 0x427   :  { %v3143_v0 = vsel %vm8753_vm10, %v5032_v31, %v3139_v16  ;;  %v3038_v1 = vmul.f32 %v5040_v51, %v8703_v40  ;;  %vm3042_vm9 = vweird.f32 %v8703_v40  ;;  %v3048_v52 = vand.u32 2147483648, %v8703_v40 }
 0x428   :  { %4014 = vrot.lane.b32.xlu2 %v3213_v24, %s5145_s30  ;;  %v8770_v18 = vsel %vm3145_vm2, %v3147_v49, %v3143_v0  ;;  %vm3043_vm7 = vweird.f32 %v5040_v51  ;;  %v3046_v63 = vand.u32 2147483647, %v8703_v40  ;;  %vm3408_vm14 = vcmp.eq.f32.partialorder %v10120_v10, 1.0  ;;  %v10130_v40 = vld [vmem:[#allocation61_spill] sm:$0xff]  ;;  %v10132_v24 = vld [vmem:[#allocation42_spill] sm:$0xff] }
 0x429   :  { %v3209_v14 = vmul.f32 %v8770_v18, %v8759_v43  ;;  %v3039_v33 = vsub.f32 1.0, %v3038_v1  ;;  %vm3229_vm5 = vcmp.ne.f32.partialorder %v8113_v60, -1.0  ;;  %vm3228_vm15 = vcmp.ne.f32.partialorder %v8109_v53, -1.0  ;;  %vm8797_vm8 = vmor %vm3042_vm9, %vm3043_vm7 }
 0x42a   :  { %v3454_v6 = vsub.f32 0.0, %v3421_v44  ;;  %3856 = vrot.lane.b32.xlu0 %v3199_v15, %s5142_s25  ;;  %v5042_v41 = vpop.eup %5041  ;;  %v3453_v12 = vsub.f32 0.0, %v3420_v8  ;;  %vm3407_vm4 = vcmp.eq.f32.partialorder %v10121_v9, 1.0  ;;  %3550 = vrot.lane.b32.xlu1 %v3006_v5, %s5138_s27  ;;  %v3414_v46 = vsel %vm3406_vm0, %v10123_v54, %v10122_v42  ;;  %v10131_v44 = vld [vmem:[#allocation127_spill] sm:$0xff] }
 0x42b   :  { %5043 = vlog2.f32 %v3209_v14  ;;  %v3040_v39 = vmul.f32 %v5040_v51, %v3039_v33  ;;  %v3210_v55 = vmul.f32 %v8626_v23, %v8522_v37  ;;  %v3049_v35 = vor.u32 1.1754944e-38, %v3048_v52  ;;  %v10129_v23 = vld [vmem:[#allocation126_spill] sm:$0xff] }
 0x42c   :  { %5045 = vlog2.f32 %v8346_v57  ;;  %v2931_v13 = vsub.f32 %v2875_v50, %v10126_v45  ;;  %vm3047_vm11 = vcmp.eq.f32.partialorder %v3046_v63, 8.507059e+37  ;;  %v2876_v49 = vmul.f32 0.5, %v8644_v61  ;;  %v10138_v45 = vld [vmem:[#allocation70_spill] sm:$0xff] }
 0x42d   :  { %v3041_v11 = vadd.f32 %v5040_v51, %v3040_v39  ;;  %v3400_v4 = vadd.f32 %v3389_v56, %v10127_v7  ;;  %v10128_v16 = vmov 0.0   ;;  %v3217_v37 = vmul.f32 0.6931472, %v5042_v41  ;;  %v10139_v7 = vld [vmem:[#allocation57_spill] sm:$0xff] }
 0x42e   :  { %v8777_v31 = vpop.permute.xlu2 %4869  ;;  %v4619_v57 = vsel %vm3229_vm5, 1.0, %v10128_v16  ;;  %v3415_v8 = vsel %vm3407_vm4, %v10130_v40, %v10129_v23  ;;  %v3416_v15 = vsel %vm3408_vm14, %v10132_v24, %v10131_v44  ;;  %v4618_v61 = vsel %vm3228_vm15, 1.0, %v10128_v16  ;;  %v10141_v24 = vld [vmem:[#allocation79_spill] sm:$0xff] }
 0x42f   :  { %v3462_v56 = vmul.f32 %v4619_v57, %v3454_v6  ;;  %v3045_v60 = vsel %vm8797_vm8, %v5040_v51, %v3041_v11  ;;  %v3461_v0 = vmul.f32 %v4618_v61, %v3453_v12  ;;  %v3422_v50 = vsub.f32 %v3414_v46, %v8724_v30 }
 0x430   :  { %4018 = vrot.lane.b32.xlu2 %v3217_v37, %s5145_s30  ;;  %v8821_v5 = vsel %vm3047_vm11, %v3049_v35, %v3045_v60  ;;  %v3423_v52 = vsub.f32 %v3415_v8, %v8748_v21  ;;  %vm3232_vm1 = vcmp.ne.f32.partialorder %v10120_v10, -1.0  ;;  %5047 = vlog2.f32 %v3210_v55 }
 0x431   :  { %v8823_v1 = vpop.permute.xlu0 %4844  ;;  %v5044_v14 = vpop.eup %5043  ;;  %v3051_v53 = vmul.f32 %v8821_v5, %v2931_v13  ;;  %v2884_v33 = vadd.f32 %v2876_v49, %v8620_v59  ;;  %vm10133_vm12 = vcmask 23552   ;;  %vm3230_vm3 = vcmp.ne.f32.partialorder %v10119_v27, -1.0 }
 0x432   :  { %v5046_v63 = vpop.eup %5045  ;;  %v3429_v6 = vsel %vm10133_vm12, %v4619_v57, 0.0  ;;  %v3223_v41 = vmul.f32 0.6931472, %v5044_v14  ;;  %vm3231_vm13 = vcmp.ne.f32.partialorder %v10121_v9, -1.0  ;;  %vm10134_vm6 = vmmov %vm10133_vm12  ;;  %5049 = vlog2.f32 %v8375_v3  ;;  %v10137_v9 = vld [vmem:[#allocation37_spill] sm:$0xff] }
 0x433   :  { %v3428_v30 = vsel %vm10134_vm6, %v4618_v61, 0.0  ;;  %3556 = vrot.lane.b32.xlu1 %v3051_v53, %s5138_s27  ;;  %v2881_v21 = vmul.f32 0.5, %v8759_v43  ;;  %v3424_v12 = vsub.f32 %v3416_v15, %v3400_v4  ;;  %v3455_v39 = vsub.f32 0.0, %v3422_v50  ;;  %vm10135_vm10 = vmmov %vm10134_vm6  ;;  %v10140_v4 = vld [vmem:[#allocation133_spill] sm:$0xff]  ;;  %v10142_v15 = vld [vmem:[#allocation43_spill] sm:$0xff] }
 0x434   :  { %4024 = vrot.lane.b32.xlu0 %v3223_v41, %s5145_s30  ;;  %v3456_v54 = vsub.f32 0.0, %v3423_v52  ;;  %v3469_v27 = vsel %vm10135_vm10, %v3461_v0, 0.0  ;;  %vm10136_vm2 = vmmov %vm10134_vm6  ;;  %v3052_v55 = vsub.f32 %v2884_v33, %v10137_v9  ;;  %v4620_v47 = vsel %vm3230_vm3, 1.0, %v10128_v16 }
 0x435   :  { %v3470_v46 = vsel %vm10136_vm2, %v3462_v56, 0.0  ;;  %v4621_v35 = vsel %vm3231_vm13, 1.0, %v10128_v16  ;;  %v3457_v3 = vsub.f32 0.0, %v3424_v12  ;;  %5051 = vpow2.f32 %v10138_v45  ;;  %vm10144_vm0 = vmmov %vm10136_vm2 }
 0x436   :  { %v8830_v51 = vpop.permute.xlu2 %4894  ;;  %v8840_v59 = vpop.permute.xlu1 %4834  ;;  %v3221_v43 = vmul.f32 0.6931472, %v5046_v63  ;;  %v3463_v13 = vmul.f32 %v4620_v47, %v3455_v39  ;;  %v3464_v11 = vmul.f32 %v4621_v35, %v3456_v54  ;;  %v3267_v57 = vsub.f32 %v10140_v4, %v10139_v7  ;;  %vm10145_vm9 = vmmov %vm10144_vm0  ;;  %v10149_v54 = vld [vmem:[#allocation38_spill] sm:$0xff] }
 0x437   :  { %v5048_v49 = vpop.eup %5047  ;;  %v4622_v37 = vsel %vm3232_vm1, 1.0, %v10128_v16  ;;  %v3471_v40 = vadd.f32 %v3470_v46, %v3469_v27  ;;  %v3430_v8 = vadd.f32 %v3429_v6, %v3428_v30  ;;  %v10143_v61 = vsub.f32 %v10141_v24, %v10142_v15  ;;  %vm10146_vm7 = vmmov %vm10144_vm0 }
 0x438   :  { %4022 = vrot.lane.b32.xlu2 %v3221_v43, %s5145_s30  ;;  %v3465_v60 = vmul.f32 %v4622_v37, %v3457_v3  ;;  %v3472_v0 = vsel %vm10144_vm0, %v3463_v13, 0.0  ;;  %v5050_v50 = vpop.eup %5049  ;;  %5053 = vlog2.f32 %v8428_v28  ;;  %v3074_v52 = vmul.f32 %v8679_v62, %v3052_v55  ;;  %vm10147_vm14 = vmmov %vm10144_vm0 }
 0x439   :  { %v3280_v56 = vmul.f32 1.442695, %v10143_v61  ;;  %v2889_v14 = vadd.f32 %v2881_v21, %v8731_v26  ;;  %v3473_v53 = vadd.f32 %v3472_v0, %v3471_v40  ;;  %v3225_v33 = vmul.f32 0.6931472, %v5048_v49  ;;  %v8863_v63 = vpop.permute.xlu0 %4864  ;;  %vm10148_vm5 = vmmov %vm10144_vm0  ;;  %v10151_v0 = vld [vmem:[#allocation72_spill] sm:$0xff] }
 0x43a   :  { %v3474_v6 = vsel %vm10145_vm9, %v3464_v11, 0.0  ;;  %v3431_v41 = vsel %vm10146_vm7, %v4620_v47, 0.0  ;;  %v3282_v30 = vmul.f32 1.442695, %v3267_v57  ;;  %v3476_v26 = vsel %vm10147_vm14, %v3465_v60, 0.0  ;;  %vm10150_vm15 = vmmov %vm10144_vm0 }
 0x43b   :  { %3678 = vrot.lane.b32.xlu1 %v3074_v52, %s5140_s15  ;;  %v3475_v12 = vadd.f32 %v3474_v6, %v3473_v53  ;;  %v3432_v39 = vadd.f32 %v3431_v41, %v3430_v8  ;;  %v5052_v28 = vpop.eup %5051  ;;  %5055 = vpow2.f32 %v3280_v56  ;;  %v3433_v21 = vsel %vm10148_vm5, %v4621_v35, 0.0  ;;  %v10152_v41 = vld [vmem:[#allocation75_spill] sm:$0xff]  ;;  %vm10159_vm13 = vmmov %vm10144_vm0 }
 0x43c   :  { %4026 = vrot.lane.b32.xlu0 %v3225_v33, %s5145_s30  ;;  %v3057_v27 = vsub.f32 %v2889_v14, %v10149_v54  ;;  %v3377_v55 = vadd.f32 %v5052_v28, %v8767_v36  ;;  %v3201_v47 = vmul.f32 0.6931472, %v5050_v50  ;;  %v3435_v3 = vsel %vm10150_vm15, %v4622_v37, 0.0  ;;  %vm10160_vm6 = vmmov %vm10144_vm0 }
 0x43d   :  { %v8874_v46 = vadd.f32 %v3476_v26, %v3475_v12  ;;  %v3434_v9 = vadd.f32 %v3433_v21, %v3432_v39  ;;  %5057 = vpow2.f32 %v3282_v30  ;;  %vm3409_vm4 = vcmp.eq.f32.partialorder %v10151_v0, 1.0  ;;  %v10153_v12 = vld [vmem:[#allocation49_spill] sm:$0xff]  ;;  %v10154_v26 = vld [vmem:[#allocation52_spill] sm:$0xff]  ;;  %vm10161_vm10 = vmmov %vm10144_vm0 }
 0x43e   :  { %v8861_v10 = vpop.permute.xlu2 %4899  ;;  %v8869_v62 = vpop.permute.xlu1 %4839  ;;  %5059 = vlog2.f32 %v8509_v17  ;;  %v3149_v35 = vmul.f32 %v8770_v18, %v3057_v27  ;;  %v3183_v50 = vmul.f32 %v8711_v32, %v8622_v34  ;;  %v4851_v52 = vunpack.i.l.bf16 %v8660_v20  ;;  %v10155_v32 = vld [vmem:[#allocation58_spill] sm:$0xff]  ;;  %vm10162_vm2 = vmmov %vm10144_vm0 }
 0x43f   :  { %v5054_v45 = vpop.eup %5053  ;;  %v8878_v43 = vadd.f32 %v3435_v3, %v3434_v9  ;;  %5061 = vlog2.f32 %v3377_v55  ;;  %v3417_v39 = vsel %vm3409_vm4, %v10153_v12, %v10152_v41  ;;  %vm3410_vm8 = vcmp.eq.f32.partialorder %v10155_v32, 1.0  ;;  %v10156_v3 = vld [vmem:[#allocation67_spill] sm:$0xff]  ;;  %vm10163_vm9 = vmmov %vm10144_vm0 }
 0x440   :  { %3858 = vrot.lane.b32.xlu2 %v3201_v47, %s5142_s25  ;;  %v3227_v49 = vmul.f32 0.6931472, %v5054_v45  ;;  %v4847_v54 = vunpack.i.h.bf16 %v8823_v1  ;;  %v3418_v45 = vsel %vm3410_vm8, %v10156_v3, %v10141_v24  ;;  %vm3233_vm1 = vcmp.ne.f32.partialorder %v10151_v0, -1.0 }
 0x441   :  { %v5056_v11 = vpop.eup %5055  ;;  %v8888_v57 = vpop.permute.xlu0 %4874  ;;  %vm3234_vm12 = vcmp.ne.f32.partialorder %v10155_v32, -1.0  ;;  %v3187_v0 = vmul.f32 %v8821_v5, %v8713_v29 }
 0x442   :  { %v3378_v36 = vadd.f32 %v5056_v11, %v8609_v58 }
 0x443   :  { %3688 = vrot.lane.b32.xlu1 %v3149_v35, %s5140_s15  ;;  %v5058_v40 = vpop.eup %5057 }
 0x444   :  { %4028 = vrot.lane.b32.xlu0 %v3227_v49, %s5145_s30  ;;  %v5060_v8 = vpop.eup %5059  ;;  %5063 = vlog2.f32 %v3378_v36  ;;  %v3379_v17 = vadd.f32 %v5058_v40, %v8785_v48  ;;  %v10157_v49 = vld [vmem:[#allocation53_spill] sm:$0xff] }
 0x445   :  { %v5062_v18 = vpop.eup %5061  ;;  %5065 = vlog2.f32 %v8323_v19  ;;  %v3189_v61 = vmul.f32 0.6931472, %v5060_v8  ;;  %vm3411_vm11 = vcmp.eq.f32.partialorder %v10157_v49, 1.0  ;;  %vm3235_vm3 = vcmp.ne.f32.partialorder %v10157_v49, -1.0 }
 0x446   :  { %v8883_v13 = vpop.permute.xlu2 %4909  ;;  %v8890_v37 = vpop.permute.xlu1 %4854  ;;  %5067 = vlog2.f32 %v3379_v17  ;;  %v3391_v60 = vmul.f32 0.6931472, %v5062_v18  ;;  %v4625_v5 = vsel %vm3235_vm3, 1.0, %v10128_v16 }
 0x447   :  { %5069 = vlog2.f32 %v3183_v50 }
 0x448   :  { %v3401_v34 = vadd.f32 %v3391_v60, %v10154_v26  ;;  %5071 = vlog2.f32 %v8536_v25 }
 0x449   :  { %5073 = vlog2.f32 %v3187_v0 }
 0x44a   :  { %v5064_v53 = vpop.eup %5063  ;;  %v3425_v55 = vsub.f32 %v3417_v39, %v3401_v34 }
 0x44b   :  { %3846 = vrot.lane.b32.xlu1 %v3189_v61, %s5142_s25  ;;  %v5066_v19 = vpop.eup %5065  ;;  %v3393_v28 = vmul.f32 0.6931472, %v5064_v53  ;;  %v10158_v61 = vld [vmem:[#allocation17_spill] sm:$0xff] }
 0x44c   :  { %v5068_v21 = vpop.eup %5067  ;;  %v3215_v27 = vmul.f32 0.6931472, %v5066_v19  ;;  %v3458_v17 = vsub.f32 0.0, %v3425_v55 }
 0x44d   :  { %v3402_v35 = vadd.f32 %v3393_v28, %v10142_v15  ;;  %v3395_v11 = vmul.f32 0.6931472, %v5068_v21  ;;  %v5070_v40 = vpop.eup %5069  ;;  %v4623_v15 = vsel %vm3233_vm1, 1.0, %v10128_v16 }
 0x44e   :  { %v3555_v56 = vpop.permute.xlu2 %3554  ;;  %v8900_v14 = vpop.permute.xlu1 %4879  ;;  %v3195_v60 = vmul.f32 0.6931472, %v5070_v40  ;;  %v3466_v53 = vmul.f32 %v4623_v15, %v3458_v17  ;;  %v3437_v3 = vsel %vm10161_vm10, %v4623_v15, 0.0 }
 0x44f   :  { %v3572_v58 = vsub.f32 %v10141_v24, %v3555_v56  ;;  %v3553_v33 = vpop.permute.xlu0 %3552  ;;  %v3426_v8 = vsub.f32 %v3418_v45, %v3402_v35  ;;  %v3419_v56 = vsel %vm3411_vm11, %v10158_v61, %v10140_v4  ;;  %v4881_v32 = vunpack.i.l.bf16 %v8900_v14 }
 0x450   :  { %v3571_v30 = vsub.f32 %v10152_v41, %v3553_v33  ;;  %v4624_v33 = vsel %vm3234_vm12, 1.0, %v10128_v16  ;;  %v3478_v12 = vsel %vm10159_vm13, %v3466_v53, 0.0  ;;  %v3438_v45 = vadd.f32 %v3437_v3, %v8878_v43 }
 0x451   :  { %v3580_v48 = vand.u32 2147483647, %v3572_v58  ;;  %v3403_v58 = vadd.f32 %v3395_v11, %v10139_v7  ;;  %v3479_v26 = vadd.f32 %v3478_v12, %v8874_v46  ;;  %v9492_v3 = vunpack.i.l.bf16 %v8840_v59 }
 0x452   :  { %v3579_v9 = vand.u32 2147483647, %v3571_v30  ;;  %v5072_v30 = vpop.eup %5071 }
 0x453   :  { %v8904_v6 = vmul.f32 %v4851_v52, %v3580_v48  ;;  %4016 = vrot.lane.b32.xlu1 %v3215_v27, %s5145_s30  ;;  %v3427_v50 = vsub.f32 %v3419_v56, %v3403_v58  ;;  %v3459_v48 = vsub.f32 0.0, %v3426_v8  ;;  %v3219_v29 = vmul.f32 0.6931472, %v5072_v30  ;;  %v5074_v11 = vpop.eup %5073 }
 0x454   :  { %v8915_v47 = vmul.f32 %v4847_v54, %v3579_v9  ;;  %v3439_v8 = vsel %vm10144_vm0, %v4624_v33, 0.0  ;;  %v3203_v15 = vmul.f32 0.6931472, %v5074_v11  ;;  %v4861_v30 = vunpack.i.l.bf16 %v8718_v22 }
 0x455   :  { %v3460_v25 = vsub.f32 0.0, %v3427_v50  ;;  %v3467_v7 = vmul.f32 %v4624_v33, %v3459_v48  ;;  %v3440_v61 = vadd.f32 %v3439_v8, %v3438_v45  ;;  %v3441_v48 = vsel %vm10163_vm9, %v4625_v5, 0.0 }
 0x456   :  { %v8921_v36 = vpop.permute.xlu1 %4884  ;;  %v3683_v19 = vpop.permute.xlu2 %3682  ;;  %vm3627_vm12 = vcmp.lt.f32.partialorder %v8915_v47, 1.0  ;;  %vm3628_vm3 = vcmp.lt.f32.partialorder %v8904_v6, 1.0 }
 0x457   :  { %v3681_v18 = vpop.permute.xlu0 %3680  ;;  %v3468_v27 = vmul.f32 %v4625_v5, %v3460_v25  ;;  %v3480_v9 = vsel %vm10160_vm6, %v3467_v7, 0.0  ;;  %v3704_v56 = vsub.f32 %v10122_v42, %v3683_v19  ;;  %v3442_v0 = vadd.f32 %v3441_v48, %v3440_v61 }
 0x458   :  { %v3481_v55 = vadd.f32 %v3480_v9, %v3479_v26  ;;  %v3703_v43 = vsub.f32 %v10111_v38, %v3681_v18  ;;  %v4857_v7 = vunpack.i.h.bf16 %v8890_v37  ;;  %v4896_v26 = vunpack.i.l.bf16 %v8830_v51 }
 0x459   :  { %v3482_v49 = vsel %vm10162_vm2, %v3468_v27, 0.0  ;;  %v3712_v33 = vand.u32 2147483647, %v3704_v56  ;;  %v4867_v56 = vunpack.i.h.bf16 %v8863_v63 }
 0x45a   :  { %v3483_v40 = vadd.f32 %v3482_v49, %v3481_v55  ;;  %v3711_v19 = vand.u32 2147483647, %v3703_v43  ;;  %v4862_v49 = vunpack.i.h.bf16 %v8718_v22 }
 0x45b   :  { %3852 = vrot.lane.b32.xlu1 %v3195_v60, %s5142_s25  ;;  %v4897_v60 = vunpack.i.h.bf16 %v8830_v51  ;;  %v3744_v12 = vmul.f32 %v4861_v30, %v3712_v33 }
 0x45d   :  { %v3760_v9 = vmul.f32 0.5, %v3744_v12  ;;  %v4644_v43 = vadd.f32 -0.5, %v3744_v12  ;;  %vm3752_vm7 = vcmp.lt.f32.partialorder %v3744_v12, 1.0 }
 0x45e   :  { %v8936_v28 = vpop.permute.xlu1 %4889 }
 0x45f   :  { %v3687_v39 = vpop.permute.xlu0 %3686 }
 0x460   :  { %v3706_v34 = vsub.f32 %v10131_v44, %v3687_v39  ;;  %v3685_v35 = vpop.permute.xlu2 %3684 }
 0x461   :  { %v3705_v39 = vsub.f32 %v10129_v23, %v3685_v35 }
 0x462   :  { %v3714_v21 = vand.u32 2147483647, %v3706_v34  ;;  %v3743_v34 = vmul.f32 %v4857_v7, %v3711_v19  ;;  %v9496_v19 = vunpack.i.h.bf16 %v8840_v59 }
 0x463   :  { %4020 = vrot.lane.b32.xlu1 %v3219_v29, %s5145_s30  ;;  %v3713_v55 = vand.u32 2147483647, %v3705_v39 }
 0x464   :  { %v8947_v46 = vmul.f32 %v4881_v32, %v3714_v21  ;;  %v3759_v45 = vmul.f32 0.5, %v3743_v34  ;;  %vm3751_vm14 = vcmp.lt.f32.partialorder %v3743_v34, 1.0 }
 0x466   :  { %v8954_v58 = vpop.permute.xlu1 %4904  ;;  %vm3754_vm8 = vcmp.lt.f32.partialorder %v8947_v46, 1.0 }
 0x467   :  { %v3693_v16 = vpop.permute.xlu0 %3692 }
 0x468   :  { %v3709_v17 = vsub.f32 %v10140_v4, %v3693_v16  ;;  %v3768_v16 = vmul.f32 %v3760_v9, %v3744_v12 }
 0x469   :  { %3484 = vadd.xlane.f32.xlu2 %v3483_v40  ;;  %v3745_v40 = vmul.f32 %v4862_v49, %v3713_v55 }
 0x46a   :  { %v3717_v50 = vand.u32 2147483647, %v3709_v17  ;;  %v3767_v17 = vmul.f32 %v3759_v45, %v3743_v34  ;;  %v3784_v33 = vsel %vm3752_vm7, %v3768_v16, %v4644_v43  ;;  %v4841_v43 = vunpack.i.l.bf16 %v8869_v62 }
 0x46b   :  { %3860 = vrot.lane.b32.xlu1 %v3203_v15, %s5142_s25  ;;  %v3761_v22 = vmul.f32 0.5, %v3745_v40  ;;  %vm3753_vm15 = vcmp.lt.f32.partialorder %v3745_v40, 1.0 }
 0x46c   :  { %v8962_v53 = vmul.f32 %v4897_v60, %v3717_v50  ;;  %v4643_v50 = vadd.f32 -0.5, %v3743_v34 }
 0x46d   :  { %v3769_v9 = vmul.f32 %v3761_v22, %v3745_v40 }
 0x46e   :  { %3443 = vadd.xlane.f32.xlu0 %v3442_v0  ;;  %v3691_v25 = vpop.permute.xlu2 %3690  ;;  %vm3757_vm2 = vcmp.lt.f32.partialorder %v8962_v53, 1.0 }
 0x46f   :  { %v3708_v18 = vsub.f32 %v10141_v24, %v3691_v25  ;;  %v3783_v25 = vsel %vm3751_vm14, %v3767_v17, %v4643_v50 }
 0x470   :  { %v3791_v55 = vmul.f32 %v4857_v7, %v3783_v25  ;;  %v4876_v7 = vunpack.i.l.bf16 %v8888_v57 }
 0x471   :  { %v3716_v29 = vand.u32 2147483647, %v3708_v18 }
 0x473   :  { %v3543_v5 = vpop.permute.xlu1 %3542  ;;  %v8971_v21 = vmul.f32 %v4896_v26, %v3716_v29  ;;  %v3792_v29 = vmul.f32 %v4861_v30, %v3784_v33 }
 0x474   :  { %v3566_v27 = vsub.f32 %v10113_v2, %v3543_v5 }
 0x475   :  { %vm3756_vm1 = vcmp.lt.f32.partialorder %v8971_v21, 1.0 }
 0x476   :  { %v3574_v11 = vand.u32 2147483647, %v3566_v27 }
 0x478   :  { %v8978_v35 = vmul.f32 %v9492_v3, %v3574_v11  ;;  %v3849_v8 = vpop.permute.xlu0 %3848  ;;  %v4645_v11 = vadd.f32 -0.5, %v3745_v40 }
 0x479   :  { %v3871_v61 = vsub.f32 %v10111_v38, %v3849_v8 }
 0x47b   :  { %v3545_v15 = vpop.permute.xlu1 %3544  ;;  %v3879_v48 = vand.u32 2147483647, %v3871_v61  ;;  %v3785_v61 = vsel %vm3753_vm15, %v3769_v9, %v4645_v11  ;;  %v3762_v11 = vmul.f32 0.5, %v8947_v46 }
 0x47c   :  { %v3567_v0 = vsub.f32 %v10111_v38, %v3545_v15  ;;  %v3793_v22 = vmul.f32 %v4862_v49, %v3785_v61  ;;  %v4842_v49 = vunpack.i.h.bf16 %v8869_v62 }
 0x47d   :  { %v3911_v18 = vmul.f32 %v4867_v56, %v3879_v48 }
 0x47e   :  { %v3575_v39 = vand.u32 2147483647, %v3567_v0 }
 0x47f   :  { %v3927_v5 = vmul.f32 0.5, %v3911_v18  ;;  %v4651_v45 = vadd.f32 -0.5, %v3911_v18  ;;  %vm3919_vm5 = vcmp.lt.f32.partialorder %v3911_v18, 1.0 }
 0x480   :  { %v8986_v27 = vmul.f32 %v9496_v19, %v3575_v39 }
 0x481   :  { %3810 = vrot.lane.b32.xlu2 %v3792_v29, %s5143_s26  ;;  %v3935_v12 = vmul.f32 %v3927_v5, %v3911_v18 }
 0x482   :  { %3808 = vrot.lane.b32.xlu0 %v3791_v55, %s5143_s26  ;;  %v4015_v34 = vpop.permute.xlu2 %4014 }
 0x483   :  { %v3547_v16 = vpop.permute.xlu1 %3546  ;;  %v4038_v8 = vsub.f32 %v10113_v2, %v4015_v34  ;;  %v3951_v30 = vsel %vm3919_vm5, %v3935_v12, %v4651_v45  ;;  %v9491_v34 = vunpack.i.l.bf16 %v8823_v1  ;;  %vm3623_vm5 = vcmp.lt.f32.partialorder %v8986_v27, 1.0 }
 0x484   :  { %v3568_v17 = vsub.f32 %v10122_v42, %v3547_v16  ;;  %v3959_v48 = vmul.f32 %v4867_v56, %v3951_v30  ;;  %v3770_v30 = vmul.f32 %v3762_v11, %v8947_v46 }
 0x485   :  { %v4046_v15 = vand.u32 2147483647, %v4038_v8 }
 0x486   :  { %v3576_v50 = vand.u32 2147483647, %v3568_v17  ;;  %v4646_v17 = vadd.f32 -0.5, %v8947_v46 }
 0x487   :  { %v4078_v0 = vmul.f32 %v4876_v7, %v4046_v15  ;;  %v3851_v15 = vpop.permute.xlu0 %3850 }
 0x488   :  { %v8996_v33 = vmul.f32 %v4841_v43, %v3576_v50  ;;  %v3786_v50 = vsel %vm3754_vm8, %v3770_v30, %v4646_v17  ;;  %v3635_v30 = vmul.f32 0.5, %v8915_v47 }
 0x489   :  { %v4094_v25 = vmul.f32 0.5, %v4078_v0  ;;  %3812 = vrot.lane.b32.xlu2 %v3793_v22, %s5143_s26  ;;  %v4658_v18 = vadd.f32 -0.5, %v4078_v0  ;;  %vm4086_vm4 = vcmp.lt.f32.partialorder %v4078_v0, 1.0  ;;  %v3794_v22 = vmul.f32 %v4881_v32, %v3786_v50 }
 0x48a   :  { %3976 = vrot.lane.b32.xlu0 %v3959_v48, %s5147_s29  ;;  %v9490_v48 = vunpack.i.h.bf16 %v8660_v20  ;;  %v4882_v32 = vunpack.i.h.bf16 %v8900_v14  ;;  %v3643_v50 = vmul.f32 %v3635_v30, %v8915_v47  ;;  %vm3624_vm6 = vcmp.lt.f32.partialorder %v8996_v33, 1.0 }
 0x48b   :  { %v4102_v40 = vmul.f32 %v4094_v25, %v4078_v0 }
 0x48d   :  { %v4118_v39 = vsel %vm4086_vm4, %v4102_v40, %v4658_v18 }
 0x48e   :  { %v4126_v29 = vmul.f32 %v4876_v7, %v4118_v39  ;;  %v3764_v39 = vmul.f32 0.5, %v8971_v21 }
 0x492   :  { %4142 = vrot.lane.b32.xlu0 %v4126_v29, %s5149_s12  ;;  %v4856_v29 = vunpack.i.l.bf16 %v8890_v37  ;;  %v4019_v37 = vpop.permute.xlu2 %4018 }
 0x494   :  { %v3549_v5 = vpop.permute.xlu1 %3548 }
 0x495   :  { %v3569_v56 = vsub.f32 %v10129_v23, %v3549_v5  ;;  %v9028_v5 = vpop.permute.xlu0 %3854 }
 0x497   :  { %v3577_v9 = vand.u32 2147483647, %v3569_v56 }
 0x499   :  { %v9005_v55 = vmul.f32 %v4842_v49, %v3577_v9  ;;  %v3772_v9 = vmul.f32 %v3764_v39, %v8971_v21 }
 0x49b   :  { %vm3625_vm0 = vcmp.lt.f32.partialorder %v9005_v55, 1.0 }
 0x49c   :  { %v3551_v12 = vpop.permute.xlu1 %3550 }
 0x49d   :  { %v3570_v45 = vsub.f32 %v10131_v44, %v3551_v12 }
 0x49f   :  { %v3578_v16 = vand.u32 2147483647, %v3570_v45  ;;  %v4648_v45 = vadd.f32 -0.5, %v8971_v21 }
 0x4a1   :  { %v9012_v8 = vmul.f32 %v9491_v34, %v3578_v16 }
 0x4a5   :  { %v3557_v61 = vpop.permute.xlu1 %3556 }
 0x4a6   :  { %v3573_v7 = vsub.f32 %v10140_v4, %v3557_v61 }
 0x4a8   :  { %v3581_v0 = vand.u32 2147483647, %v3573_v7  ;;  %v3788_v7 = vsel %vm3756_vm1, %v3772_v9, %v4648_v45 }
 0x4a9   :  { %v9041_v39 = vmul.f32 %v4896_v26, %v3788_v7  ;;  %v4872_v7 = vunpack.i.h.bf16 %v8777_v31 }
 0x4aa   :  { %v9023_v25 = vmul.f32 %v9490_v48, %v3581_v0  ;;  %v4639_v0 = vadd.f32 -0.5, %v8915_v47  ;;  %v4640_v47 = vadd.f32 -0.5, %v8904_v6  ;;  %v3633_v48 = vmul.f32 0.5, %v9005_v55 }
 0x4ad   :  { %v3679_v40 = vpop.permute.xlu1 %3678 }
 0x4ae   :  { %v3702_v18 = vsub.f32 %v10113_v2, %v3679_v40 }
 0x4b0   :  { %v3710_v46 = vand.u32 2147483647, %v3702_v18 }
 0x4b2   :  { %v3742_v56 = vmul.f32 %v4856_v29, %v3710_v46  ;;  %v3636_v46 = vmul.f32 0.5, %v8904_v6 }
 0x4b4   :  { %v3758_v12 = vmul.f32 0.5, %v3742_v56  ;;  %v4642_v11 = vadd.f32 -0.5, %v3742_v56  ;;  %vm3750_vm11 = vcmp.lt.f32.partialorder %v3742_v56, 1.0  ;;  %v3644_v45 = vmul.f32 %v3636_v46, %v8904_v6 }
 0x4b5   :  { %v3689_v16 = vpop.permute.xlu1 %3688  ;;  %v4866_v6 = vunpack.i.l.bf16 %v8863_v63 }
 0x4b6   :  { %v3766_v17 = vmul.f32 %v3758_v12, %v3742_v56  ;;  %v3707_v61 = vsub.f32 %v10152_v41, %v3689_v16  ;;  %v3659_v56 = vsel %vm3627_vm12, %v3643_v50, %v4639_v0  ;;  %v3660_v26 = vsel %vm3628_vm3, %v3644_v45, %v4640_v47 }
 0x4b7   :  { %v9048_v9 = vmul.f32 %v4847_v54, %v3659_v56  ;;  %v9058_v16 = vmul.f32 %v4851_v52, %v3660_v26  ;;  %v3872_v54 = vsub.f32 %v10122_v42, %v3851_v15  ;;  %v9495_v52 = vunpack.i.l.bf16 %v8861_v10 }
 0x4b8   :  { %v3715_v40 = vand.u32 2147483647, %v3707_v61  ;;  %v3782_v18 = vsel %vm3750_vm11, %v3766_v17, %v4642_v11  ;;  %v9052_v11 = vpop.permute.xlu0 %3856  ;;  %v4040_v17 = vsub.f32 %v10122_v42, %v4019_v37  ;;  %v4023_v61 = vpop.permute.xlu2 %4022  ;;  %v4887_v56 = vunpack.i.h.bf16 %v8921_v36 }
 0x4b9   :  { %v3790_v12 = vmul.f32 %v4856_v29, %v3782_v18  ;;  %v3880_v46 = vand.u32 2147483647, %v3872_v54  ;;  %v4042_v42 = vsub.f32 %v10131_v44, %v4023_v61  ;;  %v4886_v26 = vunpack.i.l.bf16 %v8921_v36 }
 0x4ba   :  { %v3747_v21 = vmul.f32 %v4882_v32, %v3715_v40  ;;  %v9493_v40 = vunpack.i.l.bf16 %v8777_v31  ;;  %v4048_v15 = vand.u32 2147483647, %v4040_v17  ;;  %v4892_v54 = vunpack.i.h.bf16 %v8936_v28 }
 0x4bb   :  { %3806 = vrot.lane.b32.xlu1 %v3790_v12, %s5143_s26  ;;  %v4877_v12 = vunpack.i.h.bf16 %v8888_v57  ;;  %v9494_v17 = vunpack.i.l.bf16 %v8936_v28  ;;  %v3765_v57 = vmul.f32 0.5, %v8962_v53  ;;  %v3632_v61 = vmul.f32 0.5, %v8996_v33 }
 0x4bc   :  { %v3763_v30 = vmul.f32 0.5, %v3747_v21  ;;  %v4647_v37 = vadd.f32 -0.5, %v3747_v21  ;;  %vm3755_vm13 = vcmp.lt.f32.partialorder %v3747_v21, 1.0  ;;  %vm3622_vm11 = vcmp.lt.f32.partialorder %v8978_v35, 1.0 }
 0x4bd   :  { %v3847_v29 = vpop.permute.xlu1 %3846 }
 0x4be   :  { %v3771_v50 = vmul.f32 %v3763_v30, %v3747_v21  ;;  %v3870_v0 = vsub.f32 %v10113_v2, %v3847_v29  ;;  %v3874_v2 = vsub.f32 %v10131_v44, %v9028_v5  ;;  %v9084_v44 = vmul.f32 %v9493_v40, %v3880_v46 }
 0x4bf   :  { %v9088_v5 = vmul.f32 %v4886_v26, %v4048_v15  ;;  %v4050_v21 = vand.u32 2147483647, %v4042_v42  ;;  %v3773_v15 = vmul.f32 %v3765_v57, %v8962_v53  ;;  %v4649_v42 = vadd.f32 -0.5, %v8962_v53 }
 0x4c0   :  { %v9074_v45 = vpop.permute.xlu0 %4024  ;;  %v3878_v29 = vand.u32 2147483647, %v3870_v0  ;;  %v3787_v30 = vsel %vm3755_vm13, %v3771_v50, %v4647_v37  ;;  %v3640_v37 = vmul.f32 %v3632_v61, %v8996_v33  ;;  %v9112_v57 = vadd.f32 -0.5, %v9084_v44 }
 0x4c1   :  { %v3795_v50 = vmul.f32 %v4882_v32, %v3787_v30  ;;  %v9103_v32 = vmul.f32 0.5, %v9084_v44  ;;  %v3859_v30 = vpop.permute.xlu2 %3858  ;;  %v4096_v61 = vmul.f32 0.5, %v9088_v5  ;;  %vm4088_vm7 = vcmp.lt.f32.partialorder %v9088_v5, 1.0 }
 0x4c2   :  { %v3910_v46 = vmul.f32 %v4866_v6, %v3878_v29  ;;  %vm3920_vm4 = vcmp.lt.f32.partialorder %v9084_v44, 1.0 }
 0x4c3   :  { %3814 = vrot.lane.b32.xlu1 %v3794_v22, %s5143_s26  ;;  %v4104_v53 = vmul.f32 %v4096_v61, %v9088_v5 }
 0x4c4   :  { %vm3918_vm9 = vcmp.lt.f32.partialorder %v3910_v46, 1.0 }
 0x4c5   :  { %v4017_v47 = vpop.permute.xlu1 %4016 }
 0x4c6   :  { %v4039_v22 = vsub.f32 %v10111_v38, %v4017_v47  ;;  %v3882_v38 = vand.u32 2147483647, %v3874_v2  ;;  %v4636_v47 = vadd.f32 -0.5, %v8996_v33  ;;  %v3641_v2 = vmul.f32 %v3633_v48, %v9005_v55 }
 0x4c8   :  { %v4047_v0 = vand.u32 2147483647, %v4039_v22  ;;  %v3656_v14 = vsel %vm3624_vm6, %v3640_v37, %v4636_v47  ;;  %v3875_v22 = vsub.f32 %v10152_v41, %v9052_v11  ;;  %v3926_v37 = vmul.f32 0.5, %v3910_v46  ;;  %v9125_v3 = vpop.permute.xlu0 %4026 }
 0x4c9   :  { %v9109_v33 = vmul.f32 %v4841_v43, %v3656_v14  ;;  %v3876_v14 = vsub.f32 %v10141_v24, %v3859_v30  ;;  %v4660_v30 = vadd.f32 -0.5, %v9088_v5 }
 0x4ca   :  { %v4079_v34 = vmul.f32 %v4877_v12, %v4047_v0  ;;  %v9117_v0 = vmul.f32 %v9494_v17, %v3882_v38  ;;  %v3883_v38 = vand.u32 2147483647, %v3875_v22 }
 0x4cb   :  { %3816 = vrot.lane.b32.xlu1 %v3795_v50, %s5143_s26  ;;  %v9121_v50 = vmul.f32 %v9495_v52, %v4050_v21  ;;  %v3789_v21 = vsel %vm3757_vm2, %v3773_v15, %v4649_v42  ;;  %v4120_v61 = vsel %vm4088_vm7, %v4104_v53, %v4660_v30  ;;  %vm10177_vm7 = vcmask 23552  }
 0x4cc   :  { %v4095_v29 = vmul.f32 0.5, %v4079_v34  ;;  %v4659_v18 = vadd.f32 -0.5, %v4079_v34  ;;  %vm4087_vm10 = vcmp.lt.f32.partialorder %v4079_v34, 1.0  ;;  %v4654_v63 = vadd.f32 -0.5, %v9117_v0 }
 0x4cd   :  { %v3853_v11 = vpop.permute.xlu1 %3852  ;;  %v4098_v48 = vmul.f32 0.5, %v9121_v50  ;;  %vm3922_vm15 = vcmp.lt.f32.partialorder %v9117_v0, 1.0  ;;  %vm4090_vm12 = vcmp.lt.f32.partialorder %v9121_v50, 1.0 }
 0x4ce   :  { %v4103_v47 = vmul.f32 %v4095_v29, %v4079_v34  ;;  %v3873_v43 = vsub.f32 %v10129_v23, %v3853_v11  ;;  %v4637_v29 = vadd.f32 -0.5, %v9005_v55  ;;  %v9133_v11 = vmul.f32 %v4897_v60, %v3789_v21 }
 0x4cf   :  { %v3934_v34 = vmul.f32 %v3926_v37, %v3910_v46  ;;  %v3884_v60 = vand.u32 2147483647, %v3876_v14  ;;  %v9151_v55 = vmul.f32 %v4892_v54, %v3883_v38  ;;  %v4043_v37 = vsub.f32 %v10152_v41, %v9074_v45 }
 0x4d0   :  { %v3881_v40 = vand.u32 2147483647, %v3873_v43  ;;  %v4119_v17 = vsel %vm4087_vm10, %v4103_v47, %v4659_v18  ;;  %v3930_v18 = vmul.f32 0.5, %v9117_v0  ;;  %v3657_v51 = vsel %vm3625_vm0, %v3641_v2, %v4637_v29  ;;  %v9162_v43 = vpop.permute.xlu0 %4028 }
 0x4d1   :  { %v4127_v52 = vmul.f32 %v4877_v12, %v4119_v17  ;;  %v4650_v12 = vadd.f32 -0.5, %v3910_v46  ;;  %v3936_v38 = vmul.f32 %v9103_v32, %v9084_v44  ;;  %v10164_v45 = vunpack.i.h.bf16 %v8840_v59 }
 0x4d2   :  { %v3913_v19 = vmul.f32 %v4872_v7, %v3881_v40  ;;  %v9147_v40 = vmul.f32 %v4842_v49, %v3657_v51  ;;  %v4635_v49 = vadd.f32 -0.5, %v8986_v27  ;;  %v3938_v5 = vmul.f32 %v3930_v18, %v9117_v0 }
 0x4d3   :  { %3818 = vrot.lane.b32.xlu1 %v9041_v39, %s5143_s26  ;;  %4144 = vrot.lane.b32.xlu2 %v4127_v52, %s5149_s12  ;;  %v3631_v39 = vmul.f32 0.5, %v8986_v27  ;;  %v3950_v22 = vsel %vm3918_vm9, %v3934_v34, %v4650_v12  ;;  %v10165_v29 = vunpack.i.l.bf16 %v8954_v58  ;;  %v4051_v32 = vand.u32 2147483647, %v4043_v37 }
 0x4d4   :  { %v3929_v17 = vmul.f32 0.5, %v3913_v19  ;;  %v4653_v52 = vadd.f32 -0.5, %v3913_v19  ;;  %vm3921_vm14 = vcmp.lt.f32.partialorder %v3913_v19, 1.0  ;;  %v3954_v51 = vsel %vm3922_vm15, %v3938_v5, %v4654_v63 }
 0x4d5   :  { %v4021_v15 = vpop.permute.xlu1 %4020  ;;  %v3639_v62 = vmul.f32 %v3631_v39, %v8986_v27  ;;  %v4128_v27 = vmul.f32 %v4886_v26, %v4120_v61  ;;  %v9183_v30 = vmul.f32 %v10165_v29, %v3884_v60  ;;  %v4044_v26 = vsub.f32 %v10141_v24, %v9125_v3 }
 0x4d6   :  { %v3937_v42 = vmul.f32 %v3929_v17, %v3913_v19  ;;  %v4041_v2 = vsub.f32 %v10129_v23, %v4021_v15  ;;  %v3958_v23 = vmul.f32 %v4866_v6, %v3950_v22  ;;  %v4106_v6 = vmul.f32 %v4098_v48, %v9121_v50 }
 0x4d7   :  { %v3655_v14 = vsel %vm3623_vm5, %v3639_v62, %v4635_v49  ;;  %v3630_v60 = vmul.f32 0.5, %v8978_v35  ;;  %v3952_v39 = vsel %vm3920_vm4, %v3936_v38, %v9112_v57  ;;  %v10167_v62 = vunpack.i.l.bf16 %v8777_v31  ;;  %vm10179_vm5 = vmmov %vm10177_vm7 }
 0x4d8   :  { %v4049_v47 = vand.u32 2147483647, %v4041_v2  ;;  %v3953_v46 = vsel %vm3921_vm14, %v3937_v42, %v4653_v52  ;;  %v9176_v21 = vmul.f32 %v10164_v45, %v3655_v14  ;;  %v4634_v42 = vadd.f32 -0.5, %v8978_v35  ;;  %vm10178_vm14 = vmmov %vm10177_vm7 }
 0x4d9   :  { %v3961_v19 = vmul.f32 %v4872_v7, %v3953_v46  ;;  %v3931_v7 = vmul.f32 0.5, %v9151_v55  ;;  %v3638_v3 = vmul.f32 %v3630_v60, %v8978_v35  ;;  %v10166_v52 = vunpack.i.l.bf16 %v8936_v28  ;;  %vm10180_vm15 = vmmov %vm10179_vm5 }
 0x4da   :  { %v4081_v41 = vmul.f32 %v4887_v56, %v4049_v47  ;;  %v3960_v49 = vmul.f32 %v10167_v62, %v3952_v39  ;;  %v10168_v5 = vunpack.i.h.bf16 %v8954_v58  ;;  %v10170_v35 = vunpack.i.h.bf16 %v8861_v10  ;;  %vm10181_vm4 = vmmov %vm10179_vm5 }
 0x4db   :  { %3974 = vrot.lane.b32.xlu1 %v3958_v23, %s5147_s29  ;;  %3980 = vrot.lane.b32.xlu0 %v3961_v19, %s5147_s29  ;;  %v3962_v2 = vmul.f32 %v10166_v52, %v3954_v51  ;;  %v3654_v37 = vsel %vm3622_vm11, %v3638_v3, %v4634_v42  ;;  %v3939_v47 = vmul.f32 %v3931_v7, %v9151_v55  ;;  %v10169_v19 = vunpack.i.l.bf16 %v8840_v59  ;;  %vm10183_vm11 = vmmov %vm10181_vm4 }
 0x4dc   :  { %v4097_v34 = vmul.f32 0.5, %v4081_v41  ;;  %v3485_v53 = vpop.xlane.xlu2 %3484  ;;  %4146 = vrot.lane.b32.xlu2 %v4128_v27, %s5149_s12  ;;  %v4661_v17 = vadd.f32 -0.5, %v4081_v41  ;;  %vm4089_vm8 = vcmp.lt.f32.partialorder %v4081_v41, 1.0  ;;  %v4083_v38 = vmul.f32 %v10170_v35, %v4051_v32 }
 0x4dd   :  { %v3486_v18 = vrot.slane %v3485_v53, 4  ;;  %v3861_v48 = vpop.permute.xlu1 %3860  ;;  %v9209_v14 = vmul.f32 %v10169_v19, %v3654_v37  ;;  %v4045_v31 = vsub.f32 %v10140_v4, %v9162_v43  ;;  %v4662_v59 = vadd.f32 -0.5, %v9121_v50 }
 0x4de   :  { %v4105_v12 = vmul.f32 %v4097_v34, %v4081_v41  ;;  %v3877_v15 = vsub.f32 %v10140_v4, %v3861_v48  ;;  %v3932_v27 = vmul.f32 0.5, %v9183_v30  ;;  %v4052_v45 = vand.u32 2147483647, %v4044_v26 }
 0x4df   :  { %v3487_v24 = vadd.f32 %v3486_v18, %v3485_v53  ;;  %vm3923_vm1 = vcmp.lt.f32.partialorder %v9151_v55, 1.0  ;;  %v4099_v43 = vmul.f32 0.5, %v4083_v38  ;;  %v4053_v29 = vand.u32 2147483647, %v4045_v31 }
 0x4e0   :  { %v3885_v0 = vand.u32 2147483647, %v3877_v15  ;;  %v4121_v22 = vsel %vm4089_vm8, %v4105_v12, %v4661_v17  ;;  %v4122_v34 = vsel %vm4090_vm12, %v4106_v6, %v4662_v59  ;;  %v4911_v53 = vunpack.i.l.bf16 %v8883_v13  ;;  %vm10182_vm8 = vmmov %vm10181_vm4 }
 0x4e1   :  { %v3488_v44 = vrot.slane %v3487_v24, 2  ;;  %v3444_v61 = vpop.xlane.xlu0 %3443  ;;  %v4129_v57 = vmul.f32 %v4887_v56, %v4121_v22  ;;  %v4655_v56 = vadd.f32 -0.5, %v9151_v55  ;;  %v4912_v48 = vunpack.i.h.bf16 %v8883_v13 }
 0x4e2   :  { %v3445_v46 = vrot.slane %v3444_v61, 4  ;;  %v3917_v23 = vmul.f32 %v10168_v5, %v3885_v0  ;;  %v3940_v51 = vmul.f32 %v3932_v27, %v9183_v30  ;;  %v4084_v55 = vmul.f32 %v4911_v53, %v4052_v45 }
 0x4e3   :  { %3982 = vrot.lane.b32.xlu0 %v3962_v2, %s5147_s29  ;;  %3978 = vrot.lane.b32.xlu1 %v3960_v49, %s5147_s29  ;;  %v3489_v36 = vadd.f32 %v3488_v44, %v3487_v24  ;;  %v3955_v4 = vsel %vm3923_vm1, %v3939_v47, %v4655_v56  ;;  %v10171_v17 = vunpack.i.l.bf16 %v8861_v10  ;;  %v4107_v15 = vmul.f32 %v4099_v43, %v4083_v38  ;;  %vm10184_vm1 = vmmov %vm10181_vm4 }
 0x4e4   :  { %v3446_v41 = vadd.f32 %v3445_v46, %v3444_v61  ;;  %4148 = vrot.lane.b32.xlu2 %v4129_v57, %s5149_s12  ;;  %v3933_v7 = vmul.f32 0.5, %v3917_v23  ;;  %v3963_v26 = vmul.f32 %v4892_v54, %v3955_v4  ;;  %v4085_v39 = vmul.f32 %v4912_v48, %v4053_v29 }
 0x4e5   :  { %v3490_v32 = vrot.slane %v3489_v36, 1  ;;  %v4130_v50 = vmul.f32 %v10171_v17, %v4122_v34  ;;  %v4656_v13 = vadd.f32 -0.5, %v9183_v30  ;;  %v4657_v6 = vadd.f32 -0.5, %v3917_v23 }
 0x4e6   :  { %v3447_v63 = vrot.slane %v3446_v41, 2  ;;  %v3941_v60 = vmul.f32 %v3933_v7, %v3917_v23  ;;  %v4663_v28 = vadd.f32 -0.5, %v4083_v38  ;;  %vm3924_vm3 = vcmp.lt.f32.partialorder %v9183_v30, 1.0 }
 0x4e7   :  { %v3491_v24 = vadd.f32 %v3490_v32, %v3489_v36  ;;  %vm3925_vm13 = vcmp.lt.f32.partialorder %v3917_v23, 1.0  ;;  %v4100_v54 = vmul.f32 0.5, %v4084_v55  ;;  %v3956_v42 = vsel %vm3924_vm3, %v3940_v51, %v4656_v13 }
 0x4e8   :  { %v3448_v18 = vadd.f32 %v3447_v63, %v3446_v41  ;;  %v3957_v0 = vsel %vm3925_vm13, %v3941_v60, %v4657_v6  ;;  %vm4091_vm6 = vcmp.lt.f32.partialorder %v4083_v38, 1.0  ;;  %v4101_v52 = vmul.f32 0.5, %v4085_v39  ;;  %v3811_v63 = vpop.permute.xlu2 %3810 }
 0x4e9   :  { %v4123_v2 = vsel %vm4091_vm6, %v4107_v15, %v4663_v28  ;;  %v10173_v44 = vmov %v10168_v5  ;;  %v4108_v62 = vmul.f32 %v4100_v54, %v4084_v55  ;;  %v10174_v49 = vmov %v10170_v35 }
 0x4ea   :  { %v3449_v12 = vrot.slane %v3448_v18, 1  ;;  %v3965_v61 = vmul.f32 %v10173_v44, %v3957_v0  ;;  %v4131_v57 = vmul.f32 %v10174_v49, %v4123_v2  ;;  %v4109_v30 = vmul.f32 %v4101_v52, %v4085_v39 }
 0x4eb   :  { %3984 = vrot.lane.b32.xlu0 %v3963_v26, %s5147_s29  ;;  %3820 = vrot.lane.b32.xlu1 %v9133_v11, %s5143_s26  ;;  %v10172_v11 = vunpack.i.l.bf16 %v8954_v58  ;;  %v4664_v37 = vadd.f32 -0.5, %v4084_v55  ;;  %v3634_v47 = vmul.f32 0.5, %v9012_v8  ;;  %v4665_v46 = vadd.f32 -0.5, %v4085_v39 }
 0x4ec   :  { %v3450_v3 = vadd.f32 %v3449_v12, %v3448_v18  ;;  %4150 = vrot.lane.b32.xlu2 %v4130_v50, %s5149_s12  ;;  %vm4092_vm10 = vcmp.lt.f32.partialorder %v4084_v55, 1.0  ;;  %vm4093_vm2 = vcmp.lt.f32.partialorder %v4085_v39, 1.0  ;;  %v4638_v23 = vadd.f32 -0.5, %v9012_v8 }
 0x4ed   :  { %v3964_v22 = vmul.f32 %v10172_v11, %v3956_v42  ;;  %v4124_v5 = vsel %vm4092_vm10, %v4108_v62, %v4664_v37  ;;  %v3642_v58 = vmul.f32 %v3634_v47, %v9012_v8  ;;  %v4125_v10 = vsel %vm4093_vm2, %v4109_v30, %v4665_v46 }
 0x4ee   :  { %4810 = vpush %v3450_v3  ;;  %vm3626_vm0 = vcmp.lt.f32.partialorder %v9012_v8, 1.0  ;;  %v4132_v35 = vmul.f32 %v4911_v53, %v4124_v5  ;;  %v10175_v38 = vunpack.i.l.bf16 %v8823_v1  ;;  %v4133_v36 = vmul.f32 %v4912_v48, %v4125_v10 }
 0x4ef   :  { %4812 = vpush %v3491_v24  ;;  %v3658_v19 = vsel %vm3626_vm0, %v3642_v58, %v4638_v23  ;;  %v3637_v56 = vmul.f32 0.5, %v9023_v25  ;;  %v4641_v59 = vadd.f32 -0.5, %v9023_v25  ;;  %vm3629_vm9 = vcmp.lt.f32.partialorder %v9023_v25, 1.0 }
 0x4f0   :  { %v3666_v31 = vmul.f32 %v10175_v38, %v3658_v19  ;;  %v10176_v8 = vunpack.i.h.bf16 %v8660_v20  ;;  %v3813_v7 = vpop.permute.xlu2 %3812  ;;  %v3832_v39 = vadd.f32 %v3811_v63, %v9109_v33  ;;  %vm4231_vm10 = vcmask 7168  }
 0x4f1   :  { %v3645_v41 = vmul.f32 %v3637_v56, %v9023_v25  ;;  %vm4233_vm2 = vcmask 15360   ;;  %vm4235_vm0 = vcmask 57344  }
 0x4f3   :  { %3986 = vrot.lane.b32.xlu0 %v3964_v22, %s5147_s29  ;;  %3988 = vrot.lane.b32.xlu1 %v3965_v61, %s5147_s29  ;;  %v3661_v27 = vsel %vm3629_vm9, %v3645_v41, %v4641_v59 }
 0x4f4   :  { %4152 = vrot.lane.b32.xlu2 %v4131_v57, %s5149_s12  ;;  %v3669_v45 = vmul.f32 %v10176_v8, %v3661_v27  ;;  %v3809_v1 = vpop.permute.xlu0 %3808 }
 0x4f5   :  { %v3831_v43 = vadd.f32 %v3809_v1, %v9176_v21  ;;  %v3833_v21 = vadd.f32 %v3813_v7, %v9147_v40 }
 0x4fb   :  { %4154 = vrot.lane.b32.xlu0 %v4132_v35, %s5149_s12 }
 0x4fc   :  { %4156 = vrot.lane.b32.xlu2 %v4133_v36, %s5149_s12  ;;  %v3977_v4 = vpop.permute.xlu0 %3976 }
 0x4fd   :  { %v3999_v29 = vadd.f32 %v3977_v4, %v3831_v43 }
 0x504   :  { %v4143_v25 = vpop.permute.xlu0 %4142 }
 0x51f   :  { %s4811_s27 = spop %4810 }
 0x520   :  { %s4813_s15 = spop %4812 }
 0x52d   :  { %v3807_v32 = vpop.permute.xlu1 %3806  ;;  %v4145_v34 = vpop.permute.xlu2 %4144 }
 0x52e   :  { %v4167_v53 = vadd.f32 %v4145_v34, %v3999_v29  ;;  %v3830_v20 = vadd.f32 %v3807_v32, %v9209_v14 }
 0x530   :  { %4184 = vrot.lane.b32.xlu0 %v4167_v53, %s5147_s29 }
 0x535   :  { %v3815_v18 = vpop.permute.xlu1 %3814 }
 0x536   :  { %v4147_v51 = vpop.permute.xlu2 %4146  ;;  %v3834_v24 = vadd.f32 %v3815_v18, %v3666_v31 }
 0x53d   :  { %v3817_v48 = vpop.permute.xlu1 %3816 }
 0x53e   :  { %v4149_v55 = vpop.permute.xlu2 %4148  ;;  %v3835_v40 = vadd.f32 %v3817_v48, %v9048_v9 }
 0x545   :  { %v3819_v26 = vpop.permute.xlu1 %3818 }
 0x546   :  { %v4151_v15 = vpop.permute.xlu2 %4150  ;;  %v3836_v37 = vadd.f32 %v3819_v26, %v9058_v16 }
 0x54d   :  { %v3975_v60 = vpop.permute.xlu1 %3974  ;;  %v3981_v12 = vpop.permute.xlu0 %3980 }
 0x54e   :  { %v3998_v17 = vadd.f32 %v3975_v60, %v3830_v20  ;;  %v4001_v13 = vadd.f32 %v3981_v12, %v3833_v21  ;;  %v4153_v52 = vpop.permute.xlu2 %4152 }
 0x550   :  { %v4166_v50 = vadd.f32 %v4143_v25, %v3998_v17  ;;  %v4169_v42 = vadd.f32 %v4149_v55, %v4001_v13  ;;  %v3452_v55 = vstv %s4811_s27 }
 0x551   :  { %v3494_v20 = vmax.f32 %v3452_v55, 1.0 }
 0x552   :  { %4182 = vrot.lane.b32.xlu1 %v4166_v50, %s5147_s29 }
 0x553   :  { %5075 = vrcp.f32 %v3494_v20  ;;  %vm3500_vm3 = vweird.f32 %v3494_v20 }
 0x555   :  { %v3983_v6 = vpop.permute.xlu0 %3982  ;;  %v3979_v3 = vpop.permute.xlu1 %3978 }
 0x556   :  { %v4002_v28 = vadd.f32 %v3983_v6, %v3834_v24  ;;  %v4000_v54 = vadd.f32 %v3979_v3, %v3832_v39  ;;  %v4157_v57 = vpop.permute.xlu2 %4156  ;;  %v3504_v39 = vand.u32 2147483647, %v3494_v20  ;;  %v3493_v3 = vstv %s4813_s15 }
 0x558   :  { %v4170_v0 = vadd.f32 %v4151_v15, %v4002_v28  ;;  %v4168_v14 = vadd.f32 %v4147_v51, %v4000_v54  ;;  %v3506_v15 = vand.u32 2147483648, %v3494_v20  ;;  %vm3505_vm6 = vcmp.eq.f32.partialorder %v3504_v39, 8.507059e+37 }
 0x559   :  { %v5076_v60 = vpop.eup %5075 }
 0x55a   :  { %4186 = vrot.lane.b32.xlu2 %v4168_v14, %s5147_s29  ;;  %4188 = vrot.lane.b32.xlu1 %v4169_v42, %s5147_s29  ;;  %v3496_v12 = vmul.f32 %v5076_v60, %v3494_v20  ;;  %vm3501_vm12 = vweird.f32 %v5076_v60  ;;  %v3507_v13 = vor.u32 1.1754944e-38, %v3506_v15 }
 0x55b   :  { %4190 = vrot.lane.b32.xlu0 %v4170_v0, %s5147_s29  ;;  %vm3502_vm13 = vmor %vm3500_vm3, %vm3501_vm12 }
 0x55c   :  { %v3497_v17 = vsub.f32 1.0, %v3496_v12 }
 0x55d   :  { %v3985_v2 = vpop.permute.xlu0 %3984  ;;  %v3821_v33 = vpop.permute.xlu1 %3820 }
 0x55e   :  { %v4003_v11 = vadd.f32 %v3985_v2, %v3835_v40  ;;  %v3837_v44 = vadd.f32 %v3821_v33, %v3669_v45  ;;  %v3498_v50 = vmul.f32 %v5076_v60, %v3497_v17 }
 0x560   :  { %v4171_v22 = vadd.f32 %v4153_v52, %v4003_v11  ;;  %v3499_v21 = vadd.f32 %v5076_v60, %v3498_v50 }
 0x562   :  { %4192 = vrot.lane.b32.xlu2 %v4171_v22, %s5147_s29  ;;  %v3503_v24 = vsel %vm3502_vm13, %v5076_v60, %v3499_v21 }
 0x563   :  { %v3508_v6 = vsel %vm3505_vm6, %v3507_v13, %v3503_v24 }
 0x564   :  { %v3509_v28 = vmul.f32 %v3508_v6, %v3493_v3 }
 0x565   :  { %v3987_v61 = vpop.permute.xlu0 %3986  ;;  %v3989_v62 = vpop.permute.xlu1 %3988 }
 0x566   :  { %v4005_v49 = vadd.f32 %v3989_v62, %v3837_v44  ;;  %v4004_v47 = vadd.f32 %v3987_v61, %v3836_v37 }
 0x568   :  { %v4173_v30 = vadd.f32 %v4157_v57, %v4005_v49 }
 0x56a   :  { %4196 = vrot.lane.b32.xlu0 %v4173_v30, %s5147_s29 }
 0x56d   :  { %v4155_v46 = vpop.permute.xlu0 %4154 }
 0x56e   :  { %v4172_v9 = vadd.f32 %v4155_v46, %v4004_v47 }
 0x570   :  { %4194 = vrot.lane.b32.xlu1 %v4172_v9, %s5147_s29 }
 0x5a2   :  { %v4185_v58 = vpop.permute.xlu0 %4184 }
 0x5a3   :  { %v4207_v10 = vsel %vm10178_vm14, %v4185_v58, 0.0 }
 0x5b4   :  { %v4187_v19 = vpop.permute.xlu2 %4186 }
 0x5b5   :  { %v4209_v31 = vsel %vm10179_vm5, %v4187_v19, 0.0 }
 0x5bc   :  { %v4193_v27 = vpop.permute.xlu2 %4192 }
 0x5bd   :  { %v4215_v45 = vsel %vm10182_vm8, %v4193_v27, 0.0 }
 0x5c4   :  { %v4183_v5 = vpop.permute.xlu1 %4182 }
 0x5c5   :  { %v4206_v23 = vsel %vm10177_vm7, %v4183_v5, 0.0 }
 0x5c6   :  { %v4208_v35 = vadd.f32 %v4207_v10, %v4206_v23 }
 0x5c8   :  { %v4210_v36 = vadd.f32 %v4209_v31, %v4208_v35 }
 0x5cc   :  { %v4189_v38 = vpop.permute.xlu1 %4188 }
 0x5cd   :  { %v4211_v16 = vsel %vm10180_vm15, %v4189_v38, 0.0  ;;  %v4191_v41 = vpop.permute.xlu0 %4190 }
 0x5ce   :  { %v4212_v56 = vadd.f32 %v4211_v16, %v4210_v36  ;;  %v4213_v59 = vsel %vm10181_vm4, %v4191_v41, 0.0 }
 0x5d0   :  { %v4214_v8 = vadd.f32 %v4213_v59, %v4212_v56 }
 0x5d2   :  { %v4216_v1 = vadd.f32 %v4215_v45, %v4214_v8 }
 0x5dc   :  { %v4197_v63 = vpop.permute.xlu0 %4196 }
 0x5dd   :  { %v4219_v29 = vsel %vm10184_vm1, %v4197_v63, 0.0 }
 0x5e2   :  { %v4195_v7 = vpop.permute.xlu1 %4194 }
 0x5e3   :  { %v4217_v4 = vsel %vm10183_vm11, %v4195_v7, 0.0 }
 0x5e4   :  { %v4218_v43 = vadd.f32 %v4217_v4, %v4216_v1 }
 0x5e6   :  { %v4220_v32 = vadd.f32 %v4219_v29, %v4218_v43 }
 0x5e8   :  { %4221 = vadd.xlane.f32.xlu2 %v4220_v32 }
 0x65b   :  { %v4222_v34 = vpop.xlane.xlu2 %4221 }
 0x65c   :  { %v4223_v53 = vrot.slane %v4222_v34, 4 }
 0x65e   :  { %v4224_v18 = vadd.f32 %v4223_v53, %v4222_v34 }
 0x660   :  { %v4225_v48 = vrot.slane %v4224_v18, 2 }
 0x662   :  { %v4226_v51 = vadd.f32 %v4225_v48, %v4224_v18 }
 0x664   :  { %v4227_v25 = vrot.slane %v4226_v51, 1 }
 0x666   :  { %v4228_v26 = vadd.f32 %v4227_v25, %v4226_v51 }
 0x668   :  { %4814 = vpush %v4228_v26 }
 0x699   :  { %s4815_s25 = spop %4814 }
 0x69a   :  { %v4230_v54 = vstv %s4815_s25 }
 0x69b   :  { %v4232_v42 = vsel %vm4231_vm10, %v3509_v28, %v4230_v54 }
 0x69c   :  { %v4234_v0 = vsel %vm4233_vm2, %v4232_v42, 0.0 }
 0x69d   :  { %4236 = vst.msk [vmem:[%s9294_s10] sm:$0x1] %vm4235_vm0, %v4234_v0 }
 0x69e   :  { %4249 = vsyncpa [#allocation3], 1 }

</bundles_post_ra>
